<compile_context>
chip_gen: v5e
topology: v5e:2x2
jax: 0.10.0
libtpu: 0.0.40
codegen_flags: <defaults>
</compile_context>

<pallas_src>
import jax
import jax.numpy as jnp
from jax.experimental import pallas as pl
from jax.experimental.pallas import tpu as pltpu


# ---------------------------------------------------------------------------
# Pallas kernel (all 4 residual blocks fused)
# ---------------------------------------------------------------------------

def _store_packed(dst_ref, y3):
    """Store activation y3 (H, W, C) into the kx-replicated padded scratch.

    dst_ref: (H+2, W, 3C) f32 scratch with
        dst[h, w, kx*C:(kx+1)*C] == xp[h, w + kx, :]
    where xp is the zero-padded (H+2, W+2, C) activation.  Halo entries were
    zeroed once per grid step and are never written, so they stay zero across
    all layers of the chain.
    """
    H, W, C = y3.shape
    # kx = 1 (centre replica): xp[:, w+1] == y[:, w]  -> full copy.
    dst_ref[pl.ds(1, H), pl.ds(0, W), pl.ds(C, C)] = y3
    # kx = 0: xp[:, w] == y[:, w-1], valid for w >= 1 (w == 0 is left halo).
    dst_ref[pl.ds(1, H), pl.ds(1, W - 1), pl.ds(0, C)] = y3[:, : W - 1, :]
    # kx = 2: xp[:, w+2] == y[:, w+1], valid for w <= W-2 (w == W-1 is halo).
    dst_ref[pl.ds(1, H), pl.ds(0, W - 1), pl.ds(2 * C, C)] = y3[:, 1:, :]


def _conv3x3_packed(src_ref, w_ref, layer, H, W, C):
    """3x3 SAME conv as 3 MXU matmuls of (H*W, 3C) x (3C, C)."""
    acc = None
    for ky in range(3):
        # (H, W, 3C) -> (H*W, 3C): leading-dim merge, layout-free (W % 8 == 0).
        lhs = src_ref[pl.ds(ky, H), :, :].reshape(H * W, 3 * C)
        part = jnp.dot(lhs, w_ref[layer, ky, :, :],
                       preferred_element_type=jnp.float32)
        acc = part if acc is None else acc + part
    return acc


def fused_resblocks_kernel(x_ref, w_ref, scale_ref, bias_ref, out_ref,
                           a_ref, b_ref):
    # x_ref:     (1, H, W, C)        one image of the batch
    # w_ref:     (NL, 3, 3C, C)      per-layer, per-ky packed weight slabs
    # scale_ref: (NL, 1, C)          folded-BN scale
    # bias_ref:  (NL, 1, C)          folded-BN bias
    # out_ref:   (1, H, W, C)
    # a_ref/b_ref: (H+2, W, 3C) f32  kx-replicated padded activation scratch
    _, H, W, C = x_ref.shape
    n_layers = w_ref.shape[0]
    n_blocks = n_layers // 2

    # Zero every grid step (cheap, ~2x110 KiB of VMEM stores): only the halo
    # entries matter -- interiors are fully overwritten by _store_packed.
    # (Do NOT gate this on program_id: with a "parallel" batch axis each core
    #  may start at a non-zero grid index.)
    a_ref[...] = jnp.zeros_like(a_ref)
    b_ref[...] = jnp.zeros_like(b_ref)

    x0 = x_ref[0].astype(jnp.float32)           # (H, W, C)
    _store_packed(a_ref, x0)
    res = x0.reshape(H * W, C)                  # residual carried in registers

    for blk in range(n_blocks):
        l1, l2 = 2 * blk, 2 * blk + 1

        # conv3x3 -> BN(affine) -> ReLU          (block input lives in a_ref)
        h = _conv3x3_packed(a_ref, w_ref, l1, H, W, C)
        h = jnp.maximum(h * scale_ref[l1] + bias_ref[l1], 0.0)
        _store_packed(b_ref, h.reshape(H, W, C))

        # conv3x3 -> BN(affine) -> +residual (registers) -> ReLU
        y = _conv3x3_packed(b_ref, w_ref, l2, H, W, C)
        y = jnp.maximum(y * scale_ref[l2] + bias_ref[l2] + res, 0.0)

        if blk < n_blocks - 1:
            _store_packed(a_ref, y.reshape(H, W, C))
            res = y
        else:
            # Last block: write straight to the output (skip repack/re-read).
            out_ref[0] = y.reshape(H, W, C).astype(out_ref.dtype)


# ---------------------------------------------------------------------------
# Wrapper
# ---------------------------------------------------------------------------

def _pack_params(params_list):
    """Stack 8 layers of weights / folded-BN affines into matmul-ready slabs."""
    ws, ss, bs = [], [], []
    for p in params_list:
        for j in ("1", "2"):
            w = p["w" + j]                         # (3, 3, C, C) HWIO
            C = w.shape[-1]
            ws.append(w.reshape(3, 3 * C, C))      # [ky, kx*C + ci, co]
            ss.append(p["scale" + j].reshape(1, C))
            bs.append(p["bias" + j].reshape(1, C))
    return (jnp.stack(ws).astype(jnp.float32),
            jnp.stack(ss).astype(jnp.float32),
            jnp.stack(bs).astype(jnp.float32))


@jax.jit
def residual_feature_generator_fwd(x, params_list):
    B, H, W, C = x.shape
    w_packed, scale, bias = _pack_params(params_list)
    NL = w_packed.shape[0]

    return pl.pallas_call(
        fused_resblocks_kernel,
        out_shape=jax.ShapeDtypeStruct((B, H, W, C), x.dtype),
        grid=(B,),
        in_specs=[
            pl.BlockSpec((1, H, W, C), lambda b: (b, 0, 0, 0)),
            pl.BlockSpec((NL, 3, 3 * C, C), lambda b: (0, 0, 0, 0)),
            pl.BlockSpec((NL, 1, C), lambda b: (0, 0, 0)),
            pl.BlockSpec((NL, 1, C), lambda b: (0, 0, 0)),
        ],
        out_specs=pl.BlockSpec((1, H, W, C), lambda b: (b, 0, 0, 0)),
        scratch_shapes=[
            pltpu.VMEM((H + 2, W, 3 * C), jnp.float32),
            pltpu.VMEM((H + 2, W, 3 * C), jnp.float32),
        ],
        compiler_params=pltpu.CompilerParams(
            dimension_semantics=("parallel",)),
    )(x, w_packed, scale, bias)


# ---------------------------------------------------------------------------
# Deterministic parameter construction (synthetic, no checkpoint)
# ---------------------------------------------------------------------------

def _folded_bn(kg, kb, km, kv, dim, eps=1e-5):
    gamma = 1.0 + 0.1 * jax.random.normal(kg, (dim,), jnp.float32)
    beta = 0.1 * jax.random.normal(kb, (dim,), jnp.float32)
    mean = 0.05 * jax.random.normal(km, (dim,), jnp.float32)
    var = jnp.abs(0.5 + 0.1 * jax.random.normal(kv, (dim,), jnp.float32))
    scale = gamma * jax.lax.rsqrt(var + eps)
    bias = beta - mean * scale
    return scale, bias


def init_params(key, dim, num_blocks=4):
    params = []
    for i in range(num_blocks):
        ks = jax.random.split(jax.random.fold_in(key, i), 10)
        w_std = 1.0 / (3.0 * float(dim) ** 0.5)
        w1 = w_std * jax.random.normal(ks[0], (3, 3, dim, dim), jnp.float32)
        w2 = w_std * jax.random.normal(ks[1], (3, 3, dim, dim), jnp.float32)
        s1, b1 = _folded_bn(ks[2], ks[3], ks[4], ks[5], dim)
        s2, b2 = _folded_bn(ks[6], ks[7], ks[8], ks[9], dim)
        params.append(dict(w1=w1, scale1=s1, bias1=b1,
                           w2=w2, scale2=s2, bias2=b2))
    return params


# ---------------------------------------------------------------------------
# Pure-JAX reference (for correctness verification)
# ---------------------------------------------------------------------------

def _ref_conv(x, w):
    return jax.lax.conv_general_dilated(
        x, w, window_strides=(1, 1), padding="SAME",
        dimension_numbers=("NHWC", "HWIO", "NHWC"))


def _ref_forward(x, params_list):
    out = x
    for p in params_list:
        h = jnp.maximum(_ref_conv(out, p["w1"]) * p["scale1"] + p["bias1"], 0.0)
        y = _ref_conv(h, p["w2"]) * p["scale2"] + p["bias2"] + out
        out = jnp.maximum(y, 0.0)
    return out


# ---------------------------------------------------------------------------
# Main
# ---------------------------------------------------------------------------

if __name__ == "__main__":
    B, H, W, dim = 2, 16, 16, 32

    key = jax.random.PRNGKey(0)
    k_x, k_p = jax.random.split(key)
    x = jax.random.normal(k_x, (B, H, W, dim), jnp.float32)   # NHWC
    params = init_params(k_p, dim, num_blocks=4)

    out = residual_feature_generator_fwd(x, params)
    out = jax.block_until_ready(out)

    ref = _ref_forward(x, params)
    assert out.shape == (B, H, W, dim)
    assert jnp.allclose(out, ref, atol=2e-4, rtol=2e-4), "mismatch vs reference"

    print("KERNEL_OK")
</pallas_src>

<mosaic_0001>
module attributes {stable_mosaic.version = 11 : i64} {
  func.func @fused_resblocks_kernel(%arg0: i32, %arg1: memref<1x16x16x32xf32, #tpu.memory_space<vmem>>, %arg2: memref<8x3x96x32xf32, #tpu.memory_space<vmem>>, %arg3: memref<8x1x32xf32, #tpu.memory_space<vmem>>, %arg4: memref<8x1x32xf32, #tpu.memory_space<vmem>>, %arg5: memref<1x16x16x32xf32, #tpu.memory_space<vmem>>, %arg6: memref<18x16x96xf32, #tpu.memory_space<vmem>>, %arg7: memref<18x16x96xf32, #tpu.memory_space<vmem>>) attributes {dimension_semantics = [#tpu.dimension_semantics<parallel>], iteration_bounds = array<i64: 2>, scalar_prefetch = 0 : i64, scratch_operands = 2 : i64, tpu.core_type = #tpu.core_type<tc>, window_params = [{transform_indices = @transform_0, window_bounds = array<i64: 1, 16, 16, 32>}, {pipeline_mode = #tpu.pipeline_mode<synchronous>, transform_indices = @transform_1, window_bounds = array<i64: 8, 3, 96, 32>}, {pipeline_mode = #tpu.pipeline_mode<synchronous>, transform_indices = @transform_2, window_bounds = array<i64: 8, 1, 32>}, {pipeline_mode = #tpu.pipeline_mode<synchronous>, transform_indices = @transform_3, window_bounds = array<i64: 8, 1, 32>}, {transform_indices = @transform_4, window_bounds = array<i64: 1, 16, 16, 32>}]} {
    %cst = arith.constant 0.000000e+00 : f32
    %0 = vector.broadcast %cst : f32 to vector<18x16x96xf32>
    %c0 = arith.constant 0 : index
    %c0_0 = arith.constant 0 : index
    %c0_1 = arith.constant 0 : index
    %1 = vector.load %arg6[%c0, %c0_0, %c0_1] : memref<18x16x96xf32, #tpu.memory_space<vmem>>, vector<18x16x96xf32>
    tpu.vector_store %arg6[%c0, %c0_0, %c0_1], %0 {strides = array<i32>} : memref<18x16x96xf32, #tpu.memory_space<vmem>>, vector<18x16x96xf32>,
    %cst_2 = arith.constant 0.000000e+00 : f32
    %2 = vector.broadcast %cst_2 : f32 to vector<18x16x96xf32>
    %c0_3 = arith.constant 0 : index
    %c0_4 = arith.constant 0 : index
    %c0_5 = arith.constant 0 : index
    %3 = vector.load %arg7[%c0_3, %c0_4, %c0_5] : memref<18x16x96xf32, #tpu.memory_space<vmem>>, vector<18x16x96xf32>
    tpu.vector_store %arg7[%c0_3, %c0_4, %c0_5], %2 {strides = array<i32>} : memref<18x16x96xf32, #tpu.memory_space<vmem>>, vector<18x16x96xf32>,
    %c0_6 = arith.constant 0 : index
    %c0_7 = arith.constant 0 : index
    %c0_8 = arith.constant 0 : index
    %c0_9 = arith.constant 0 : index
    %4 = vector.load %arg1[%c0_6, %c0_7, %c0_8, %c0_9] : memref<1x16x16x32xf32, #tpu.memory_space<vmem>>, vector<1x16x16x32xf32>
    %5 = vector.shape_cast %4 : vector<1x16x16x32xf32> to vector<16x16x32xf32>
    %c1 = arith.constant 1 : index
    %c0_10 = arith.constant 0 : index
    %c32 = arith.constant 32 : index
    %6 = vector.load %arg6[%c1, %c0_10, %c32] : memref<18x16x96xf32, #tpu.memory_space<vmem>>, vector<16x16x32xf32>
    tpu.vector_store %arg6[%c1, %c0_10, %c32], %5 {strides = array<i32>} : memref<18x16x96xf32, #tpu.memory_space<vmem>>, vector<16x16x32xf32>,
    %7 = vector.extract_strided_slice %5 {offsets = [0, 0, 0], sizes = [16, 15, 32], strides = [1, 1, 1]} : vector<16x16x32xf32> to vector<16x15x32xf32>
    %c1_11 = arith.constant 1 : index
    %c1_12 = arith.constant 1 : index
    %c0_13 = arith.constant 0 : index
    %8 = vector.load %arg6[%c1_11, %c1_12, %c0_13] : memref<18x16x96xf32, #tpu.memory_space<vmem>>, vector<16x15x32xf32>
    tpu.vector_store %arg6[%c1_11, %c1_12, %c0_13], %7 {strides = array<i32>} : memref<18x16x96xf32, #tpu.memory_space<vmem>>, vector<16x15x32xf32>,
    %9 = vector.extract_strided_slice %5 {offsets = [0, 1, 0], sizes = [16, 15, 32], strides = [1, 1, 1]} : vector<16x16x32xf32> to vector<16x15x32xf32>
    %c1_14 = arith.constant 1 : index
    %c0_15 = arith.constant 0 : index
    %c64 = arith.constant 64 : index
    %10 = vector.load %arg6[%c1_14, %c0_15, %c64] : memref<18x16x96xf32, #tpu.memory_space<vmem>>, vector<16x15x32xf32>
    tpu.vector_store %arg6[%c1_14, %c0_15, %c64], %9 {strides = array<i32>} : memref<18x16x96xf32, #tpu.memory_space<vmem>>, vector<16x15x32xf32>,
    %11 = vector.shape_cast %5 : vector<16x16x32xf32> to vector<256x32xf32>
    %c0_16 = arith.constant 0 : index
    %c0_17 = arith.constant 0 : index
    %c0_18 = arith.constant 0 : index
    %12 = vector.load %arg6[%c0_16, %c0_17, %c0_18] : memref<18x16x96xf32, #tpu.memory_space<vmem>>, vector<16x16x96xf32>
    %13 = vector.shape_cast %12 : vector<16x16x96xf32> to vector<256x96xf32>
    %c0_19 = arith.constant 0 : index
    %c0_20 = arith.constant 0 : index
    %c0_21 = arith.constant 0 : index
    %c0_22 = arith.constant 0 : index
    %14 = vector.load %arg2[%c0_19, %c0_20, %c0_21, %c0_22] : memref<8x3x96x32xf32, #tpu.memory_space<vmem>>, vector<1x1x96x32xf32>
    %15 = vector.shape_cast %14 : vector<1x1x96x32xf32> to vector<96x32xf32>
    %cst_23 = arith.constant dense<0.000000e+00> : vector<256x32xf32>
    %16 = tpu.matmul %13, %15, %cst_23 {dimension_numbers = #tpu.dot_dimension_numbers<[1], [0], [0], [1], [0, 0, 1, 1], [], []>} : vector<256x96xf32>, vector<96x32xf32>, vector<256x32xf32> -> vector<256x32xf32>
    %c1_24 = arith.constant 1 : index
    %c0_25 = arith.constant 0 : index
    %c0_26 = arith.constant 0 : index
    %17 = vector.load %arg6[%c1_24, %c0_25, %c0_26] : memref<18x16x96xf32, #tpu.memory_space<vmem>>, vector<16x16x96xf32>
    %18 = vector.shape_cast %17 : vector<16x16x96xf32> to vector<256x96xf32>
    %c0_27 = arith.constant 0 : index
    %c1_28 = arith.constant 1 : index
    %c0_29 = arith.constant 0 : index
    %c0_30 = arith.constant 0 : index
    %19 = vector.load %arg2[%c0_27, %c1_28, %c0_29, %c0_30] : memref<8x3x96x32xf32, #tpu.memory_space<vmem>>, vector<1x1x96x32xf32>
    %20 = vector.shape_cast %19 : vector<1x1x96x32xf32> to vector<96x32xf32>
    %cst_31 = arith.constant dense<0.000000e+00> : vector<256x32xf32>
    %21 = tpu.matmul %18, %20, %cst_31 {dimension_numbers = #tpu.dot_dimension_numbers<[1], [0], [0], [1], [0, 0, 1, 1], [], []>} : vector<256x96xf32>, vector<96x32xf32>, vector<256x32xf32> -> vector<256x32xf32>
    %22 = arith.addf %16, %21 : vector<256x32xf32>
    %c2 = arith.constant 2 : index
    %c0_32 = arith.constant 0 : index
    %c0_33 = arith.constant 0 : index
    %23 = vector.load %arg6[%c2, %c0_32, %c0_33] : memref<18x16x96xf32, #tpu.memory_space<vmem>>, vector<16x16x96xf32>
    %24 = vector.shape_cast %23 : vector<16x16x96xf32> to vector<256x96xf32>
    %c0_34 = arith.constant 0 : index
    %c2_35 = arith.constant 2 : index
    %c0_36 = arith.constant 0 : index
    %c0_37 = arith.constant 0 : index
    %25 = vector.load %arg2[%c0_34, %c2_35, %c0_36, %c0_37] : memref<8x3x96x32xf32, #tpu.memory_space<vmem>>, vector<1x1x96x32xf32>
    %26 = vector.shape_cast %25 : vector<1x1x96x32xf32> to vector<96x32xf32>
    %cst_38 = arith.constant dense<0.000000e+00> : vector<256x32xf32>
    %27 = tpu.matmul %24, %26, %cst_38 {dimension_numbers = #tpu.dot_dimension_numbers<[1], [0], [0], [1], [0, 0, 1, 1], [], []>} : vector<256x96xf32>, vector<96x32xf32>, vector<256x32xf32> -> vector<256x32xf32>
    %28 = arith.addf %22, %27 : vector<256x32xf32>
    %c0_39 = arith.constant 0 : index
    %c0_40 = arith.constant 0 : index
    %c0_41 = arith.constant 0 : index
    %29 = vector.load %arg3[%c0_39, %c0_40, %c0_41] : memref<8x1x32xf32, #tpu.memory_space<vmem>>, vector<1x1x32xf32>
    %30 = vector.shape_cast %29 : vector<1x1x32xf32> to vector<1x32xf32>
    %31 = vector.broadcast %30 : vector<1x32xf32> to vector<256x32xf32>
    %32 = arith.mulf %28, %31 : vector<256x32xf32>
    %c0_42 = arith.constant 0 : index
    %c0_43 = arith.constant 0 : index
    %c0_44 = arith.constant 0 : index
    %33 = vector.load %arg4[%c0_42, %c0_43, %c0_44] : memref<8x1x32xf32, #tpu.memory_space<vmem>>, vector<1x1x32xf32>
    %34 = vector.shape_cast %33 : vector<1x1x32xf32> to vector<1x32xf32>
    %35 = vector.broadcast %34 : vector<1x32xf32> to vector<256x32xf32>
    %36 = arith.addf %32, %35 : vector<256x32xf32>
    %cst_45 = arith.constant 0.000000e+00 : f32
    %37 = vector.broadcast %cst_45 : f32 to vector<256x32xf32>
    %38 = arith.maximumf %36, %37 : vector<256x32xf32>
    %39 = vector.shape_cast %38 : vector<256x32xf32> to vector<16x16x32xf32>
    %c1_46 = arith.constant 1 : index
    %c0_47 = arith.constant 0 : index
    %c32_48 = arith.constant 32 : index
    %40 = vector.load %arg7[%c1_46, %c0_47, %c32_48] : memref<18x16x96xf32, #tpu.memory_space<vmem>>, vector<16x16x32xf32>
    tpu.vector_store %arg7[%c1_46, %c0_47, %c32_48], %39 {strides = array<i32>} : memref<18x16x96xf32, #tpu.memory_space<vmem>>, vector<16x16x32xf32>,
    %41 = vector.extract_strided_slice %39 {offsets = [0, 0, 0], sizes = [16, 15, 32], strides = [1, 1, 1]} : vector<16x16x32xf32> to vector<16x15x32xf32>
    %c1_49 = arith.constant 1 : index
    %c1_50 = arith.constant 1 : index
    %c0_51 = arith.constant 0 : index
    %42 = vector.load %arg7[%c1_49, %c1_50, %c0_51] : memref<18x16x96xf32, #tpu.memory_space<vmem>>, vector<16x15x32xf32>
    tpu.vector_store %arg7[%c1_49, %c1_50, %c0_51], %41 {strides = array<i32>} : memref<18x16x96xf32, #tpu.memory_space<vmem>>, vector<16x15x32xf32>,
    %43 = vector.extract_strided_slice %39 {offsets = [0, 1, 0], sizes = [16, 15, 32], strides = [1, 1, 1]} : vector<16x16x32xf32> to vector<16x15x32xf32>
    %c1_52 = arith.constant 1 : index
    %c0_53 = arith.constant 0 : index
    %c64_54 = arith.constant 64 : index
    %44 = vector.load %arg7[%c1_52, %c0_53, %c64_54] : memref<18x16x96xf32, #tpu.memory_space<vmem>>, vector<16x15x32xf32>
    tpu.vector_store %arg7[%c1_52, %c0_53, %c64_54], %43 {strides = array<i32>} : memref<18x16x96xf32, #tpu.memory_space<vmem>>, vector<16x15x32xf32>,
    %c0_55 = arith.constant 0 : index
    %c0_56 = arith.constant 0 : index
    %c0_57 = arith.constant 0 : index
    %45 = vector.load %arg7[%c0_55, %c0_56, %c0_57] : memref<18x16x96xf32, #tpu.memory_space<vmem>>, vector<16x16x96xf32>
    %46 = vector.shape_cast %45 : vector<16x16x96xf32> to vector<256x96xf32>
    %c1_58 = arith.constant 1 : index
    %c0_59 = arith.constant 0 : index
    %c0_60 = arith.constant 0 : index
    %c0_61 = arith.constant 0 : index
    %47 = vector.load %arg2[%c1_58, %c0_59, %c0_60, %c0_61] : memref<8x3x96x32xf32, #tpu.memory_space<vmem>>, vector<1x1x96x32xf32>
    %48 = vector.shape_cast %47 : vector<1x1x96x32xf32> to vector<96x32xf32>
    %cst_62 = arith.constant dense<0.000000e+00> : vector<256x32xf32>
    %49 = tpu.matmul %46, %48, %cst_62 {dimension_numbers = #tpu.dot_dimension_numbers<[1], [0], [0], [1], [0, 0, 1, 1], [], []>} : vector<256x96xf32>, vector<96x32xf32>, vector<256x32xf32> -> vector<256x32xf32>
    %c1_63 = arith.constant 1 : index
    %c0_64 = arith.constant 0 : index
    %c0_65 = arith.constant 0 : index
    %50 = vector.load %arg7[%c1_63, %c0_64, %c0_65] : memref<18x16x96xf32, #tpu.memory_space<vmem>>, vector<16x16x96xf32>
    %51 = vector.shape_cast %50 : vector<16x16x96xf32> to vector<256x96xf32>
    %c1_66 = arith.constant 1 : index
    %c1_67 = arith.constant 1 : index
    %c0_68 = arith.constant 0 : index
    %c0_69 = arith.constant 0 : index
    %52 = vector.load %arg2[%c1_66, %c1_67, %c0_68, %c0_69] : memref<8x3x96x32xf32, #tpu.memory_space<vmem>>, vector<1x1x96x32xf32>
    %53 = vector.shape_cast %52 : vector<1x1x96x32xf32> to vector<96x32xf32>
    %cst_70 = arith.constant dense<0.000000e+00> : vector<256x32xf32>
    %54 = tpu.matmul %51, %53, %cst_70 {dimension_numbers = #tpu.dot_dimension_numbers<[1], [0], [0], [1], [0, 0, 1, 1], [], []>} : vector<256x96xf32>, vector<96x32xf32>, vector<256x32xf32> -> vector<256x32xf32>
    %55 = arith.addf %49, %54 : vector<256x32xf32>
    %c2_71 = arith.constant 2 : index
    %c0_72 = arith.constant 0 : index
    %c0_73 = arith.constant 0 : index
    %56 = vector.load %arg7[%c2_71, %c0_72, %c0_73] : memref<18x16x96xf32, #tpu.memory_space<vmem>>, vector<16x16x96xf32>
    %57 = vector.shape_cast %56 : vector<16x16x96xf32> to vector<256x96xf32>
    %c1_74 = arith.constant 1 : index
    %c2_75 = arith.constant 2 : index
    %c0_76 = arith.constant 0 : index
    %c0_77 = arith.constant 0 : index
    %58 = vector.load %arg2[%c1_74, %c2_75, %c0_76, %c0_77] : memref<8x3x96x32xf32, #tpu.memory_space<vmem>>, vector<1x1x96x32xf32>
    %59 = vector.shape_cast %58 : vector<1x1x96x32xf32> to vector<96x32xf32>
    %cst_78 = arith.constant dense<0.000000e+00> : vector<256x32xf32>
    %60 = tpu.matmul %57, %59, %cst_78 {dimension_numbers = #tpu.dot_dimension_numbers<[1], [0], [0], [1], [0, 0, 1, 1], [], []>} : vector<256x96xf32>, vector<96x32xf32>, vector<256x32xf32> -> vector<256x32xf32>
    %61 = arith.addf %55, %60 : vector<256x32xf32>
    %c1_79 = arith.constant 1 : index
    %c0_80 = arith.constant 0 : index
    %c0_81 = arith.constant 0 : index
    %62 = vector.load %arg3[%c1_79, %c0_80, %c0_81] : memref<8x1x32xf32, #tpu.memory_space<vmem>>, vector<1x1x32xf32>
    %63 = vector.shape_cast %62 : vector<1x1x32xf32> to vector<1x32xf32>
    %64 = vector.broadcast %63 : vector<1x32xf32> to vector<256x32xf32>
    %65 = arith.mulf %61, %64 : vector<256x32xf32>
    %c1_82 = arith.constant 1 : index
    %c0_83 = arith.constant 0 : index
    %c0_84 = arith.constant 0 : index
    %66 = vector.load %arg4[%c1_82, %c0_83, %c0_84] : memref<8x1x32xf32, #tpu.memory_space<vmem>>, vector<1x1x32xf32>
    %67 = vector.shape_cast %66 : vector<1x1x32xf32> to vector<1x32xf32>
    %68 = vector.broadcast %67 : vector<1x32xf32> to vector<256x32xf32>
    %69 = arith.addf %65, %68 : vector<256x32xf32>
    %70 = arith.addf %69, %11 : vector<256x32xf32>
    %cst_85 = arith.constant 0.000000e+00 : f32
    %71 = vector.broadcast %cst_85 : f32 to vector<256x32xf32>
    %72 = arith.maximumf %70, %71 : vector<256x32xf32>
    %73 = vector.shape_cast %72 : vector<256x32xf32> to vector<16x16x32xf32>
    %c1_86 = arith.constant 1 : index
    %c0_87 = arith.constant 0 : index
    %c32_88 = arith.constant 32 : index
    %74 = vector.load %arg6[%c1_86, %c0_87, %c32_88] : memref<18x16x96xf32, #tpu.memory_space<vmem>>, vector<16x16x32xf32>
    tpu.vector_store %arg6[%c1_86, %c0_87, %c32_88], %73 {strides = array<i32>} : memref<18x16x96xf32, #tpu.memory_space<vmem>>, vector<16x16x32xf32>,
    %75 = vector.extract_strided_slice %73 {offsets = [0, 0, 0], sizes = [16, 15, 32], strides = [1, 1, 1]} : vector<16x16x32xf32> to vector<16x15x32xf32>
    %c1_89 = arith.constant 1 : index
    %c1_90 = arith.constant 1 : index
    %c0_91 = arith.constant 0 : index
    %76 = vector.load %arg6[%c1_89, %c1_90, %c0_91] : memref<18x16x96xf32, #tpu.memory_space<vmem>>, vector<16x15x32xf32>
    tpu.vector_store %arg6[%c1_89, %c1_90, %c0_91], %75 {strides = array<i32>} : memref<18x16x96xf32, #tpu.memory_space<vmem>>, vector<16x15x32xf32>,
    %77 = vector.extract_strided_slice %73 {offsets = [0, 1, 0], sizes = [16, 15, 32], strides = [1, 1, 1]} : vector<16x16x32xf32> to vector<16x15x32xf32>
    %c1_92 = arith.constant 1 : index
    %c0_93 = arith.constant 0 : index
    %c64_94 = arith.constant 64 : index
    %78 = vector.load %arg6[%c1_92, %c0_93, %c64_94] : memref<18x16x96xf32, #tpu.memory_space<vmem>>, vector<16x15x32xf32>
    tpu.vector_store %arg6[%c1_92, %c0_93, %c64_94], %77 {strides = array<i32>} : memref<18x16x96xf32, #tpu.memory_space<vmem>>, vector<16x15x32xf32>,
    %c0_95 = arith.constant 0 : index
    %c0_96 = arith.constant 0 : index
    %c0_97 = arith.constant 0 : index
    %79 = vector.load %arg6[%c0_95, %c0_96, %c0_97] : memref<18x16x96xf32, #tpu.memory_space<vmem>>, vector<16x16x96xf32>
    %80 = vector.shape_cast %79 : vector<16x16x96xf32> to vector<256x96xf32>
    %c2_98 = arith.constant 2 : index
    %c0_99 = arith.constant 0 : index
    %c0_100 = arith.constant 0 : index
    %c0_101 = arith.constant 0 : index
    %81 = vector.load %arg2[%c2_98, %c0_99, %c0_100, %c0_101] : memref<8x3x96x32xf32, #tpu.memory_space<vmem>>, vector<1x1x96x32xf32>
    %82 = vector.shape_cast %81 : vector<1x1x96x32xf32> to vector<96x32xf32>
    %cst_102 = arith.constant dense<0.000000e+00> : vector<256x32xf32>
    %83 = tpu.matmul %80, %82, %cst_102 {dimension_numbers = #tpu.dot_dimension_numbers<[1], [0], [0], [1], [0, 0, 1, 1], [], []>} : vector<256x96xf32>, vector<96x32xf32>, vector<256x32xf32> -> vector<256x32xf32>
    %c1_103 = arith.constant 1 : index
    %c0_104 = arith.constant 0 : index
    %c0_105 = arith.constant 0 : index
    %84 = vector.load %arg6[%c1_103, %c0_104, %c0_105] : memref<18x16x96xf32, #tpu.memory_space<vmem>>, vector<16x16x96xf32>
    %85 = vector.shape_cast %84 : vector<16x16x96xf32> to vector<256x96xf32>
    %c2_106 = arith.constant 2 : index
    %c1_107 = arith.constant 1 : index
    %c0_108 = arith.constant 0 : index
    %c0_109 = arith.constant 0 : index
    %86 = vector.load %arg2[%c2_106, %c1_107, %c0_108, %c0_109] : memref<8x3x96x32xf32, #tpu.memory_space<vmem>>, vector<1x1x96x32xf32>
    %87 = vector.shape_cast %86 : vector<1x1x96x32xf32> to vector<96x32xf32>
    %cst_110 = arith.constant dense<0.000000e+00> : vector<256x32xf32>
    %88 = tpu.matmul %85, %87, %cst_110 {dimension_numbers = #tpu.dot_dimension_numbers<[1], [0], [0], [1], [0, 0, 1, 1], [], []>} : vector<256x96xf32>, vector<96x32xf32>, vector<256x32xf32> -> vector<256x32xf32>
    %89 = arith.addf %83, %88 : vector<256x32xf32>
    %c2_111 = arith.constant 2 : index
    %c0_112 = arith.constant 0 : index
    %c0_113 = arith.constant 0 : index
    %90 = vector.load %arg6[%c2_111, %c0_112, %c0_113] : memref<18x16x96xf32, #tpu.memory_space<vmem>>, vector<16x16x96xf32>
    %91 = vector.shape_cast %90 : vector<16x16x96xf32> to vector<256x96xf32>
    %c2_114 = arith.constant 2 : index
    %c2_115 = arith.constant 2 : index
    %c0_116 = arith.constant 0 : index
    %c0_117 = arith.constant 0 : index
    %92 = vector.load %arg2[%c2_114, %c2_115, %c0_116, %c0_117] : memref<8x3x96x32xf32, #tpu.memory_space<vmem>>, vector<1x1x96x32xf32>
    %93 = vector.shape_cast %92 : vector<1x1x96x32xf32> to vector<96x32xf32>
    %cst_118 = arith.constant dense<0.000000e+00> : vector<256x32xf32>
    %94 = tpu.matmul %91, %93, %cst_118 {dimension_numbers = #tpu.dot_dimension_numbers<[1], [0], [0], [1], [0, 0, 1, 1], [], []>} : vector<256x96xf32>, vector<96x32xf32>, vector<256x32xf32> -> vector<256x32xf32>
    %95 = arith.addf %89, %94 : vector<256x32xf32>
    %c2_119 = arith.constant 2 : index
    %c0_120 = arith.constant 0 : index
    %c0_121 = arith.constant 0 : index
    %96 = vector.load %arg3[%c2_119, %c0_120, %c0_121] : memref<8x1x32xf32, #tpu.memory_space<vmem>>, vector<1x1x32xf32>
    %97 = vector.shape_cast %96 : vector<1x1x32xf32> to vector<1x32xf32>
    %98 = vector.broadcast %97 : vector<1x32xf32> to vector<256x32xf32>
    %99 = arith.mulf %95, %98 : vector<256x32xf32>
    %c2_122 = arith.constant 2 : index
    %c0_123 = arith.constant 0 : index
    %c0_124 = arith.constant 0 : index
    %100 = vector.load %arg4[%c2_122, %c0_123, %c0_124] : memref<8x1x32xf32, #tpu.memory_space<vmem>>, vector<1x1x32xf32>
    %101 = vector.shape_cast %100 : vector<1x1x32xf32> to vector<1x32xf32>
    %102 = vector.broadcast %101 : vector<1x32xf32> to vector<256x32xf32>
    %103 = arith.addf %99, %102 : vector<256x32xf32>
    %cst_125 = arith.constant 0.000000e+00 : f32
    %104 = vector.broadcast %cst_125 : f32 to vector<256x32xf32>
    %105 = arith.maximumf %103, %104 : vector<256x32xf32>
    %106 = vector.shape_cast %105 : vector<256x32xf32> to vector<16x16x32xf32>
    %c1_126 = arith.constant 1 : index
    %c0_127 = arith.constant 0 : index
    %c32_128 = arith.constant 32 : index
    %107 = vector.load %arg7[%c1_126, %c0_127, %c32_128] : memref<18x16x96xf32, #tpu.memory_space<vmem>>, vector<16x16x32xf32>
    tpu.vector_store %arg7[%c1_126, %c0_127, %c32_128], %106 {strides = array<i32>} : memref<18x16x96xf32, #tpu.memory_space<vmem>>, vector<16x16x32xf32>,
    %108 = vector.extract_strided_slice %106 {offsets = [0, 0, 0], sizes = [16, 15, 32], strides = [1, 1, 1]} : vector<16x16x32xf32> to vector<16x15x32xf32>
    %c1_129 = arith.constant 1 : index
    %c1_130 = arith.constant 1 : index
    %c0_131 = arith.constant 0 : index
    %109 = vector.load %arg7[%c1_129, %c1_130, %c0_131] : memref<18x16x96xf32, #tpu.memory_space<vmem>>, vector<16x15x32xf32>
    tpu.vector_store %arg7[%c1_129, %c1_130, %c0_131], %108 {strides = array<i32>} : memref<18x16x96xf32, #tpu.memory_space<vmem>>, vector<16x15x32xf32>,
    %110 = vector.extract_strided_slice %106 {offsets = [0, 1, 0], sizes = [16, 15, 32], strides = [1, 1, 1]} : vector<16x16x32xf32> to vector<16x15x32xf32>
    %c1_132 = arith.constant 1 : index
    %c0_133 = arith.constant 0 : index
    %c64_134 = arith.constant 64 : index
    %111 = vector.load %arg7[%c1_132, %c0_133, %c64_134] : memref<18x16x96xf32, #tpu.memory_space<vmem>>, vector<16x15x32xf32>
    tpu.vector_store %arg7[%c1_132, %c0_133, %c64_134], %110 {strides = array<i32>} : memref<18x16x96xf32, #tpu.memory_space<vmem>>, vector<16x15x32xf32>,
    %c0_135 = arith.constant 0 : index
    %c0_136 = arith.constant 0 : index
    %c0_137 = arith.constant 0 : index
    %112 = vector.load %arg7[%c0_135, %c0_136, %c0_137] : memref<18x16x96xf32, #tpu.memory_space<vmem>>, vector<16x16x96xf32>
    %113 = vector.shape_cast %112 : vector<16x16x96xf32> to vector<256x96xf32>
    %c3 = arith.constant 3 : index
    %c0_138 = arith.constant 0 : index
    %c0_139 = arith.constant 0 : index
    %c0_140 = arith.constant 0 : index
    %114 = vector.load %arg2[%c3, %c0_138, %c0_139, %c0_140] : memref<8x3x96x32xf32, #tpu.memory_space<vmem>>, vector<1x1x96x32xf32>
    %115 = vector.shape_cast %114 : vector<1x1x96x32xf32> to vector<96x32xf32>
    %cst_141 = arith.constant dense<0.000000e+00> : vector<256x32xf32>
    %116 = tpu.matmul %113, %115, %cst_141 {dimension_numbers = #tpu.dot_dimension_numbers<[1], [0], [0], [1], [0, 0, 1, 1], [], []>} : vector<256x96xf32>, vector<96x32xf32>, vector<256x32xf32> -> vector<256x32xf32>
    %c1_142 = arith.constant 1 : index
    %c0_143 = arith.constant 0 : index
    %c0_144 = arith.constant 0 : index
    %117 = vector.load %arg7[%c1_142, %c0_143, %c0_144] : memref<18x16x96xf32, #tpu.memory_space<vmem>>, vector<16x16x96xf32>
    %118 = vector.shape_cast %117 : vector<16x16x96xf32> to vector<256x96xf32>
    %c3_145 = arith.constant 3 : index
    %c1_146 = arith.constant 1 : index
    %c0_147 = arith.constant 0 : index
    %c0_148 = arith.constant 0 : index
    %119 = vector.load %arg2[%c3_145, %c1_146, %c0_147, %c0_148] : memref<8x3x96x32xf32, #tpu.memory_space<vmem>>, vector<1x1x96x32xf32>
    %120 = vector.shape_cast %119 : vector<1x1x96x32xf32> to vector<96x32xf32>
    %cst_149 = arith.constant dense<0.000000e+00> : vector<256x32xf32>
    %121 = tpu.matmul %118, %120, %cst_149 {dimension_numbers = #tpu.dot_dimension_numbers<[1], [0], [0], [1], [0, 0, 1, 1], [], []>} : vector<256x96xf32>, vector<96x32xf32>, vector<256x32xf32> -> vector<256x32xf32>
    %122 = arith.addf %116, %121 : vector<256x32xf32>
    %c2_150 = arith.constant 2 : index
    %c0_151 = arith.constant 0 : index
    %c0_152 = arith.constant 0 : index
    %123 = vector.load %arg7[%c2_150, %c0_151, %c0_152] : memref<18x16x96xf32, #tpu.memory_space<vmem>>, vector<16x16x96xf32>
    %124 = vector.shape_cast %123 : vector<16x16x96xf32> to vector<256x96xf32>
    %c3_153 = arith.constant 3 : index
    %c2_154 = arith.constant 2 : index
    %c0_155 = arith.constant 0 : index
    %c0_156 = arith.constant 0 : index
    %125 = vector.load %arg2[%c3_153, %c2_154, %c0_155, %c0_156] : memref<8x3x96x32xf32, #tpu.memory_space<vmem>>, vector<1x1x96x32xf32>
    %126 = vector.shape_cast %125 : vector<1x1x96x32xf32> to vector<96x32xf32>
    %cst_157 = arith.constant dense<0.000000e+00> : vector<256x32xf32>
    %127 = tpu.matmul %124, %126, %cst_157 {dimension_numbers = #tpu.dot_dimension_numbers<[1], [0], [0], [1], [0, 0, 1, 1], [], []>} : vector<256x96xf32>, vector<96x32xf32>, vector<256x32xf32> -> vector<256x32xf32>
    %128 = arith.addf %122, %127 : vector<256x32xf32>
    %c3_158 = arith.constant 3 : index
    %c0_159 = arith.constant 0 : index
    %c0_160 = arith.constant 0 : index
    %129 = vector.load %arg3[%c3_158, %c0_159, %c0_160] : memref<8x1x32xf32, #tpu.memory_space<vmem>>, vector<1x1x32xf32>
    %130 = vector.shape_cast %129 : vector<1x1x32xf32> to vector<1x32xf32>
    %131 = vector.broadcast %130 : vector<1x32xf32> to vector<256x32xf32>
    %132 = arith.mulf %128, %131 : vector<256x32xf32>
    %c3_161 = arith.constant 3 : index
    %c0_162 = arith.constant 0 : index
    %c0_163 = arith.constant 0 : index
    %133 = vector.load %arg4[%c3_161, %c0_162, %c0_163] : memref<8x1x32xf32, #tpu.memory_space<vmem>>, vector<1x1x32xf32>
    %134 = vector.shape_cast %133 : vector<1x1x32xf32> to vector<1x32xf32>
    %135 = vector.broadcast %134 : vector<1x32xf32> to vector<256x32xf32>
    %136 = arith.addf %132, %135 : vector<256x32xf32>
    %137 = arith.addf %136, %72 : vector<256x32xf32>
    %cst_164 = arith.constant 0.000000e+00 : f32
    %138 = vector.broadcast %cst_164 : f32 to vector<256x32xf32>
    %139 = arith.maximumf %137, %138 : vector<256x32xf32>
    %140 = vector.shape_cast %139 : vector<256x32xf32> to vector<16x16x32xf32>
    %c1_165 = arith.constant 1 : index
    %c0_166 = arith.constant 0 : index
    %c32_167 = arith.constant 32 : index
    %141 = vector.load %arg6[%c1_165, %c0_166, %c32_167] : memref<18x16x96xf32, #tpu.memory_space<vmem>>, vector<16x16x32xf32>
    tpu.vector_store %arg6[%c1_165, %c0_166, %c32_167], %140 {strides = array<i32>} : memref<18x16x96xf32, #tpu.memory_space<vmem>>, vector<16x16x32xf32>,
    %142 = vector.extract_strided_slice %140 {offsets = [0, 0, 0], sizes = [16, 15, 32], strides = [1, 1, 1]} : vector<16x16x32xf32> to vector<16x15x32xf32>
    %c1_168 = arith.constant 1 : index
    %c1_169 = arith.constant 1 : index
    %c0_170 = arith.constant 0 : index
    %143 = vector.load %arg6[%c1_168, %c1_169, %c0_170] : memref<18x16x96xf32, #tpu.memory_space<vmem>>, vector<16x15x32xf32>
    tpu.vector_store %arg6[%c1_168, %c1_169, %c0_170], %142 {strides = array<i32>} : memref<18x16x96xf32, #tpu.memory_space<vmem>>, vector<16x15x32xf32>,
    %144 = vector.extract_strided_slice %140 {offsets = [0, 1, 0], sizes = [16, 15, 32], strides = [1, 1, 1]} : vector<16x16x32xf32> to vector<16x15x32xf32>
    %c1_171 = arith.constant 1 : index
    %c0_172 = arith.constant 0 : index
    %c64_173 = arith.constant 64 : index
    %145 = vector.load %arg6[%c1_171, %c0_172, %c64_173] : memref<18x16x96xf32, #tpu.memory_space<vmem>>, vector<16x15x32xf32>
    tpu.vector_store %arg6[%c1_171, %c0_172, %c64_173], %144 {strides = array<i32>} : memref<18x16x96xf32, #tpu.memory_space<vmem>>, vector<16x15x32xf32>,
    %c0_174 = arith.constant 0 : index
    %c0_175 = arith.constant 0 : index
    %c0_176 = arith.constant 0 : index
    %146 = vector.load %arg6[%c0_174, %c0_175, %c0_176] : memref<18x16x96xf32, #tpu.memory_space<vmem>>, vector<16x16x96xf32>
    %147 = vector.shape_cast %146 : vector<16x16x96xf32> to vector<256x96xf32>
    %c4 = arith.constant 4 : index
    %c0_177 = arith.constant 0 : index
    %c0_178 = arith.constant 0 : index
    %c0_179 = arith.constant 0 : index
    %148 = vector.load %arg2[%c4, %c0_177, %c0_178, %c0_179] : memref<8x3x96x32xf32, #tpu.memory_space<vmem>>, vector<1x1x96x32xf32>
    %149 = vector.shape_cast %148 : vector<1x1x96x32xf32> to vector<96x32xf32>
    %cst_180 = arith.constant dense<0.000000e+00> : vector<256x32xf32>
    %150 = tpu.matmul %147, %149, %cst_180 {dimension_numbers = #tpu.dot_dimension_numbers<[1], [0], [0], [1], [0, 0, 1, 1], [], []>} : vector<256x96xf32>, vector<96x32xf32>, vector<256x32xf32> -> vector<256x32xf32>
    %c1_181 = arith.constant 1 : index
    %c0_182 = arith.constant 0 : index
    %c0_183 = arith.constant 0 : index
    %151 = vector.load %arg6[%c1_181, %c0_182, %c0_183] : memref<18x16x96xf32, #tpu.memory_space<vmem>>, vector<16x16x96xf32>
    %152 = vector.shape_cast %151 : vector<16x16x96xf32> to vector<256x96xf32>
    %c4_184 = arith.constant 4 : index
    %c1_185 = arith.constant 1 : index
    %c0_186 = arith.constant 0 : index
    %c0_187 = arith.constant 0 : index
    %153 = vector.load %arg2[%c4_184, %c1_185, %c0_186, %c0_187] : memref<8x3x96x32xf32, #tpu.memory_space<vmem>>, vector<1x1x96x32xf32>
    %154 = vector.shape_cast %153 : vector<1x1x96x32xf32> to vector<96x32xf32>
    %cst_188 = arith.constant dense<0.000000e+00> : vector<256x32xf32>
    %155 = tpu.matmul %152, %154, %cst_188 {dimension_numbers = #tpu.dot_dimension_numbers<[1], [0], [0], [1], [0, 0, 1, 1], [], []>} : vector<256x96xf32>, vector<96x32xf32>, vector<256x32xf32> -> vector<256x32xf32>
    %156 = arith.addf %150, %155 : vector<256x32xf32>
    %c2_189 = arith.constant 2 : index
    %c0_190 = arith.constant 0 : index
    %c0_191 = arith.constant 0 : index
    %157 = vector.load %arg6[%c2_189, %c0_190, %c0_191] : memref<18x16x96xf32, #tpu.memory_space<vmem>>, vector<16x16x96xf32>
    %158 = vector.shape_cast %157 : vector<16x16x96xf32> to vector<256x96xf32>
    %c4_192 = arith.constant 4 : index
    %c2_193 = arith.constant 2 : index
    %c0_194 = arith.constant 0 : index
    %c0_195 = arith.constant 0 : index
    %159 = vector.load %arg2[%c4_192, %c2_193, %c0_194, %c0_195] : memref<8x3x96x32xf32, #tpu.memory_space<vmem>>, vector<1x1x96x32xf32>
    %160 = vector.shape_cast %159 : vector<1x1x96x32xf32> to vector<96x32xf32>
    %cst_196 = arith.constant dense<0.000000e+00> : vector<256x32xf32>
    %161 = tpu.matmul %158, %160, %cst_196 {dimension_numbers = #tpu.dot_dimension_numbers<[1], [0], [0], [1], [0, 0, 1, 1], [], []>} : vector<256x96xf32>, vector<96x32xf32>, vector<256x32xf32> -> vector<256x32xf32>
    %162 = arith.addf %156, %161 : vector<256x32xf32>
    %c4_197 = arith.constant 4 : index
    %c0_198 = arith.constant 0 : index
    %c0_199 = arith.constant 0 : index
    %163 = vector.load %arg3[%c4_197, %c0_198, %c0_199] : memref<8x1x32xf32, #tpu.memory_space<vmem>>, vector<1x1x32xf32>
    %164 = vector.shape_cast %163 : vector<1x1x32xf32> to vector<1x32xf32>
    %165 = vector.broadcast %164 : vector<1x32xf32> to vector<256x32xf32>
    %166 = arith.mulf %162, %165 : vector<256x32xf32>
    %c4_200 = arith.constant 4 : index
    %c0_201 = arith.constant 0 : index
    %c0_202 = arith.constant 0 : index
    %167 = vector.load %arg4[%c4_200, %c0_201, %c0_202] : memref<8x1x32xf32, #tpu.memory_space<vmem>>, vector<1x1x32xf32>
    %168 = vector.shape_cast %167 : vector<1x1x32xf32> to vector<1x32xf32>
    %169 = vector.broadcast %168 : vector<1x32xf32> to vector<256x32xf32>
    %170 = arith.addf %166, %169 : vector<256x32xf32>
    %cst_203 = arith.constant 0.000000e+00 : f32
    %171 = vector.broadcast %cst_203 : f32 to vector<256x32xf32>
    %172 = arith.maximumf %170, %171 : vector<256x32xf32>
    %173 = vector.shape_cast %172 : vector<256x32xf32> to vector<16x16x32xf32>
    %c1_204 = arith.constant 1 : index
    %c0_205 = arith.constant 0 : index
    %c32_206 = arith.constant 32 : index
    %174 = vector.load %arg7[%c1_204, %c0_205, %c32_206] : memref<18x16x96xf32, #tpu.memory_space<vmem>>, vector<16x16x32xf32>
    tpu.vector_store %arg7[%c1_204, %c0_205, %c32_206], %173 {strides = array<i32>} : memref<18x16x96xf32, #tpu.memory_space<vmem>>, vector<16x16x32xf32>,
    %175 = vector.extract_strided_slice %173 {offsets = [0, 0, 0], sizes = [16, 15, 32], strides = [1, 1, 1]} : vector<16x16x32xf32> to vector<16x15x32xf32>
    %c1_207 = arith.constant 1 : index
    %c1_208 = arith.constant 1 : index
    %c0_209 = arith.constant 0 : index
    %176 = vector.load %arg7[%c1_207, %c1_208, %c0_209] : memref<18x16x96xf32, #tpu.memory_space<vmem>>, vector<16x15x32xf32>
    tpu.vector_store %arg7[%c1_207, %c1_208, %c0_209], %175 {strides = array<i32>} : memref<18x16x96xf32, #tpu.memory_space<vmem>>, vector<16x15x32xf32>,
    %177 = vector.extract_strided_slice %173 {offsets = [0, 1, 0], sizes = [16, 15, 32], strides = [1, 1, 1]} : vector<16x16x32xf32> to vector<16x15x32xf32>
    %c1_210 = arith.constant 1 : index
    %c0_211 = arith.constant 0 : index
    %c64_212 = arith.constant 64 : index
    %178 = vector.load %arg7[%c1_210, %c0_211, %c64_212] : memref<18x16x96xf32, #tpu.memory_space<vmem>>, vector<16x15x32xf32>
    tpu.vector_store %arg7[%c1_210, %c0_211, %c64_212], %177 {strides = array<i32>} : memref<18x16x96xf32, #tpu.memory_space<vmem>>, vector<16x15x32xf32>,
    %c0_213 = arith.constant 0 : index
    %c0_214 = arith.constant 0 : index
    %c0_215 = arith.constant 0 : index
    %179 = vector.load %arg7[%c0_213, %c0_214, %c0_215] : memref<18x16x96xf32, #tpu.memory_space<vmem>>, vector<16x16x96xf32>
    %180 = vector.shape_cast %179 : vector<16x16x96xf32> to vector<256x96xf32>
    %c5 = arith.constant 5 : index
    %c0_216 = arith.constant 0 : index
    %c0_217 = arith.constant 0 : index
    %c0_218 = arith.constant 0 : index
    %181 = vector.load %arg2[%c5, %c0_216, %c0_217, %c0_218] : memref<8x3x96x32xf32, #tpu.memory_space<vmem>>, vector<1x1x96x32xf32>
    %182 = vector.shape_cast %181 : vector<1x1x96x32xf32> to vector<96x32xf32>
    %cst_219 = arith.constant dense<0.000000e+00> : vector<256x32xf32>
    %183 = tpu.matmul %180, %182, %cst_219 {dimension_numbers = #tpu.dot_dimension_numbers<[1], [0], [0], [1], [0, 0, 1, 1], [], []>} : vector<256x96xf32>, vector<96x32xf32>, vector<256x32xf32> -> vector<256x32xf32>
    %c1_220 = arith.constant 1 : index
    %c0_221 = arith.constant 0 : index
    %c0_222 = arith.constant 0 : index
    %184 = vector.load %arg7[%c1_220, %c0_221, %c0_222] : memref<18x16x96xf32, #tpu.memory_space<vmem>>, vector<16x16x96xf32>
    %185 = vector.shape_cast %184 : vector<16x16x96xf32> to vector<256x96xf32>
    %c5_223 = arith.constant 5 : index
    %c1_224 = arith.constant 1 : index
    %c0_225 = arith.constant 0 : index
    %c0_226 = arith.constant 0 : index
    %186 = vector.load %arg2[%c5_223, %c1_224, %c0_225, %c0_226] : memref<8x3x96x32xf32, #tpu.memory_space<vmem>>, vector<1x1x96x32xf32>
    %187 = vector.shape_cast %186 : vector<1x1x96x32xf32> to vector<96x32xf32>
    %cst_227 = arith.constant dense<0.000000e+00> : vector<256x32xf32>
    %188 = tpu.matmul %185, %187, %cst_227 {dimension_numbers = #tpu.dot_dimension_numbers<[1], [0], [0], [1], [0, 0, 1, 1], [], []>} : vector<256x96xf32>, vector<96x32xf32>, vector<256x32xf32> -> vector<256x32xf32>
    %189 = arith.addf %183, %188 : vector<256x32xf32>
    %c2_228 = arith.constant 2 : index
    %c0_229 = arith.constant 0 : index
    %c0_230 = arith.constant 0 : index
    %190 = vector.load %arg7[%c2_228, %c0_229, %c0_230] : memref<18x16x96xf32, #tpu.memory_space<vmem>>, vector<16x16x96xf32>
    %191 = vector.shape_cast %190 : vector<16x16x96xf32> to vector<256x96xf32>
    %c5_231 = arith.constant 5 : index
    %c2_232 = arith.constant 2 : index
    %c0_233 = arith.constant 0 : index
    %c0_234 = arith.constant 0 : index
    %192 = vector.load %arg2[%c5_231, %c2_232, %c0_233, %c0_234] : memref<8x3x96x32xf32, #tpu.memory_space<vmem>>, vector<1x1x96x32xf32>
    %193 = vector.shape_cast %192 : vector<1x1x96x32xf32> to vector<96x32xf32>
    %cst_235 = arith.constant dense<0.000000e+00> : vector<256x32xf32>
    %194 = tpu.matmul %191, %193, %cst_235 {dimension_numbers = #tpu.dot_dimension_numbers<[1], [0], [0], [1], [0, 0, 1, 1], [], []>} : vector<256x96xf32>, vector<96x32xf32>, vector<256x32xf32> -> vector<256x32xf32>
    %195 = arith.addf %189, %194 : vector<256x32xf32>
    %c5_236 = arith.constant 5 : index
    %c0_237 = arith.constant 0 : index
    %c0_238 = arith.constant 0 : index
    %196 = vector.load %arg3[%c5_236, %c0_237, %c0_238] : memref<8x1x32xf32, #tpu.memory_space<vmem>>, vector<1x1x32xf32>
    %197 = vector.shape_cast %196 : vector<1x1x32xf32> to vector<1x32xf32>
    %198 = vector.broadcast %197 : vector<1x32xf32> to vector<256x32xf32>
    %199 = arith.mulf %195, %198 : vector<256x32xf32>
    %c5_239 = arith.constant 5 : index
    %c0_240 = arith.constant 0 : index
    %c0_241 = arith.constant 0 : index
    %200 = vector.load %arg4[%c5_239, %c0_240, %c0_241] : memref<8x1x32xf32, #tpu.memory_space<vmem>>, vector<1x1x32xf32>
    %201 = vector.shape_cast %200 : vector<1x1x32xf32> to vector<1x32xf32>
    %202 = vector.broadcast %201 : vector<1x32xf32> to vector<256x32xf32>
    %203 = arith.addf %199, %202 : vector<256x32xf32>
    %204 = arith.addf %203, %139 : vector<256x32xf32>
    %cst_242 = arith.constant 0.000000e+00 : f32
    %205 = vector.broadcast %cst_242 : f32 to vector<256x32xf32>
    %206 = arith.maximumf %204, %205 : vector<256x32xf32>
    %207 = vector.shape_cast %206 : vector<256x32xf32> to vector<16x16x32xf32>
    %c1_243 = arith.constant 1 : index
    %c0_244 = arith.constant 0 : index
    %c32_245 = arith.constant 32 : index
    %208 = vector.load %arg6[%c1_243, %c0_244, %c32_245] : memref<18x16x96xf32, #tpu.memory_space<vmem>>, vector<16x16x32xf32>
    tpu.vector_store %arg6[%c1_243, %c0_244, %c32_245], %207 {strides = array<i32>} : memref<18x16x96xf32, #tpu.memory_space<vmem>>, vector<16x16x32xf32>,
    %209 = vector.extract_strided_slice %207 {offsets = [0, 0, 0], sizes = [16, 15, 32], strides = [1, 1, 1]} : vector<16x16x32xf32> to vector<16x15x32xf32>
    %c1_246 = arith.constant 1 : index
    %c1_247 = arith.constant 1 : index
    %c0_248 = arith.constant 0 : index
    %210 = vector.load %arg6[%c1_246, %c1_247, %c0_248] : memref<18x16x96xf32, #tpu.memory_space<vmem>>, vector<16x15x32xf32>
    tpu.vector_store %arg6[%c1_246, %c1_247, %c0_248], %209 {strides = array<i32>} : memref<18x16x96xf32, #tpu.memory_space<vmem>>, vector<16x15x32xf32>,
    %211 = vector.extract_strided_slice %207 {offsets = [0, 1, 0], sizes = [16, 15, 32], strides = [1, 1, 1]} : vector<16x16x32xf32> to vector<16x15x32xf32>
    %c1_249 = arith.constant 1 : index
    %c0_250 = arith.constant 0 : index
    %c64_251 = arith.constant 64 : index
    %212 = vector.load %arg6[%c1_249, %c0_250, %c64_251] : memref<18x16x96xf32, #tpu.memory_space<vmem>>, vector<16x15x32xf32>
    tpu.vector_store %arg6[%c1_249, %c0_250, %c64_251], %211 {strides = array<i32>} : memref<18x16x96xf32, #tpu.memory_space<vmem>>, vector<16x15x32xf32>,
    %c0_252 = arith.constant 0 : index
    %c0_253 = arith.constant 0 : index
    %c0_254 = arith.constant 0 : index
    %213 = vector.load %arg6[%c0_252, %c0_253, %c0_254] : memref<18x16x96xf32, #tpu.memory_space<vmem>>, vector<16x16x96xf32>
    %214 = vector.shape_cast %213 : vector<16x16x96xf32> to vector<256x96xf32>
    %c6 = arith.constant 6 : index
    %c0_255 = arith.constant 0 : index
    %c0_256 = arith.constant 0 : index
    %c0_257 = arith.constant 0 : index
    %215 = vector.load %arg2[%c6, %c0_255, %c0_256, %c0_257] : memref<8x3x96x32xf32, #tpu.memory_space<vmem>>, vector<1x1x96x32xf32>
    %216 = vector.shape_cast %215 : vector<1x1x96x32xf32> to vector<96x32xf32>
    %cst_258 = arith.constant dense<0.000000e+00> : vector<256x32xf32>
    %217 = tpu.matmul %214, %216, %cst_258 {dimension_numbers = #tpu.dot_dimension_numbers<[1], [0], [0], [1], [0, 0, 1, 1], [], []>} : vector<256x96xf32>, vector<96x32xf32>, vector<256x32xf32> -> vector<256x32xf32>
    %c1_259 = arith.constant 1 : index
    %c0_260 = arith.constant 0 : index
    %c0_261 = arith.constant 0 : index
    %218 = vector.load %arg6[%c1_259, %c0_260, %c0_261] : memref<18x16x96xf32, #tpu.memory_space<vmem>>, vector<16x16x96xf32>
    %219 = vector.shape_cast %218 : vector<16x16x96xf32> to vector<256x96xf32>
    %c6_262 = arith.constant 6 : index
    %c1_263 = arith.constant 1 : index
    %c0_264 = arith.constant 0 : index
    %c0_265 = arith.constant 0 : index
    %220 = vector.load %arg2[%c6_262, %c1_263, %c0_264, %c0_265] : memref<8x3x96x32xf32, #tpu.memory_space<vmem>>, vector<1x1x96x32xf32>
    %221 = vector.shape_cast %220 : vector<1x1x96x32xf32> to vector<96x32xf32>
    %cst_266 = arith.constant dense<0.000000e+00> : vector<256x32xf32>
    %222 = tpu.matmul %219, %221, %cst_266 {dimension_numbers = #tpu.dot_dimension_numbers<[1], [0], [0], [1], [0, 0, 1, 1], [], []>} : vector<256x96xf32>, vector<96x32xf32>, vector<256x32xf32> -> vector<256x32xf32>
    %223 = arith.addf %217, %222 : vector<256x32xf32>
    %c2_267 = arith.constant 2 : index
    %c0_268 = arith.constant 0 : index
    %c0_269 = arith.constant 0 : index
    %224 = vector.load %arg6[%c2_267, %c0_268, %c0_269] : memref<18x16x96xf32, #tpu.memory_space<vmem>>, vector<16x16x96xf32>
    %225 = vector.shape_cast %224 : vector<16x16x96xf32> to vector<256x96xf32>
    %c6_270 = arith.constant 6 : index
    %c2_271 = arith.constant 2 : index
    %c0_272 = arith.constant 0 : index
    %c0_273 = arith.constant 0 : index
    %226 = vector.load %arg2[%c6_270, %c2_271, %c0_272, %c0_273] : memref<8x3x96x32xf32, #tpu.memory_space<vmem>>, vector<1x1x96x32xf32>
    %227 = vector.shape_cast %226 : vector<1x1x96x32xf32> to vector<96x32xf32>
    %cst_274 = arith.constant dense<0.000000e+00> : vector<256x32xf32>
    %228 = tpu.matmul %225, %227, %cst_274 {dimension_numbers = #tpu.dot_dimension_numbers<[1], [0], [0], [1], [0, 0, 1, 1], [], []>} : vector<256x96xf32>, vector<96x32xf32>, vector<256x32xf32> -> vector<256x32xf32>
    %229 = arith.addf %223, %228 : vector<256x32xf32>
    %c6_275 = arith.constant 6 : index
    %c0_276 = arith.constant 0 : index
    %c0_277 = arith.constant 0 : index
    %230 = vector.load %arg3[%c6_275, %c0_276, %c0_277] : memref<8x1x32xf32, #tpu.memory_space<vmem>>, vector<1x1x32xf32>
    %231 = vector.shape_cast %230 : vector<1x1x32xf32> to vector<1x32xf32>
    %232 = vector.broadcast %231 : vector<1x32xf32> to vector<256x32xf32>
    %233 = arith.mulf %229, %232 : vector<256x32xf32>
    %c6_278 = arith.constant 6 : index
    %c0_279 = arith.constant 0 : index
    %c0_280 = arith.constant 0 : index
    %234 = vector.load %arg4[%c6_278, %c0_279, %c0_280] : memref<8x1x32xf32, #tpu.memory_space<vmem>>, vector<1x1x32xf32>
    %235 = vector.shape_cast %234 : vector<1x1x32xf32> to vector<1x32xf32>
    %236 = vector.broadcast %235 : vector<1x32xf32> to vector<256x32xf32>
    %237 = arith.addf %233, %236 : vector<256x32xf32>
    %cst_281 = arith.constant 0.000000e+00 : f32
    %238 = vector.broadcast %cst_281 : f32 to vector<256x32xf32>
    %239 = arith.maximumf %237, %238 : vector<256x32xf32>
    %240 = vector.shape_cast %239 : vector<256x32xf32> to vector<16x16x32xf32>
    %c1_282 = arith.constant 1 : index
    %c0_283 = arith.constant 0 : index
    %c32_284 = arith.constant 32 : index
    %241 = vector.load %arg7[%c1_282, %c0_283, %c32_284] : memref<18x16x96xf32, #tpu.memory_space<vmem>>, vector<16x16x32xf32>
    tpu.vector_store %arg7[%c1_282, %c0_283, %c32_284], %240 {strides = array<i32>} : memref<18x16x96xf32, #tpu.memory_space<vmem>>, vector<16x16x32xf32>,
    %242 = vector.extract_strided_slice %240 {offsets = [0, 0, 0], sizes = [16, 15, 32], strides = [1, 1, 1]} : vector<16x16x32xf32> to vector<16x15x32xf32>
    %c1_285 = arith.constant 1 : index
    %c1_286 = arith.constant 1 : index
    %c0_287 = arith.constant 0 : index
    %243 = vector.load %arg7[%c1_285, %c1_286, %c0_287] : memref<18x16x96xf32, #tpu.memory_space<vmem>>, vector<16x15x32xf32>
    tpu.vector_store %arg7[%c1_285, %c1_286, %c0_287], %242 {strides = array<i32>} : memref<18x16x96xf32, #tpu.memory_space<vmem>>, vector<16x15x32xf32>,
    %244 = vector.extract_strided_slice %240 {offsets = [0, 1, 0], sizes = [16, 15, 32], strides = [1, 1, 1]} : vector<16x16x32xf32> to vector<16x15x32xf32>
    %c1_288 = arith.constant 1 : index
    %c0_289 = arith.constant 0 : index
    %c64_290 = arith.constant 64 : index
    %245 = vector.load %arg7[%c1_288, %c0_289, %c64_290] : memref<18x16x96xf32, #tpu.memory_space<vmem>>, vector<16x15x32xf32>
    tpu.vector_store %arg7[%c1_288, %c0_289, %c64_290], %244 {strides = array<i32>} : memref<18x16x96xf32, #tpu.memory_space<vmem>>, vector<16x15x32xf32>,
    %c0_291 = arith.constant 0 : index
    %c0_292 = arith.constant 0 : index
    %c0_293 = arith.constant 0 : index
    %246 = vector.load %arg7[%c0_291, %c0_292, %c0_293] : memref<18x16x96xf32, #tpu.memory_space<vmem>>, vector<16x16x96xf32>
    %247 = vector.shape_cast %246 : vector<16x16x96xf32> to vector<256x96xf32>
    %c7 = arith.constant 7 : index
    %c0_294 = arith.constant 0 : index
    %c0_295 = arith.constant 0 : index
    %c0_296 = arith.constant 0 : index
    %248 = vector.load %arg2[%c7, %c0_294, %c0_295, %c0_296] : memref<8x3x96x32xf32, #tpu.memory_space<vmem>>, vector<1x1x96x32xf32>
    %249 = vector.shape_cast %248 : vector<1x1x96x32xf32> to vector<96x32xf32>
    %cst_297 = arith.constant dense<0.000000e+00> : vector<256x32xf32>
    %250 = tpu.matmul %247, %249, %cst_297 {dimension_numbers = #tpu.dot_dimension_numbers<[1], [0], [0], [1], [0, 0, 1, 1], [], []>} : vector<256x96xf32>, vector<96x32xf32>, vector<256x32xf32> -> vector<256x32xf32>
    %c1_298 = arith.constant 1 : index
    %c0_299 = arith.constant 0 : index
    %c0_300 = arith.constant 0 : index
    %251 = vector.load %arg7[%c1_298, %c0_299, %c0_300] : memref<18x16x96xf32, #tpu.memory_space<vmem>>, vector<16x16x96xf32>
    %252 = vector.shape_cast %251 : vector<16x16x96xf32> to vector<256x96xf32>
    %c7_301 = arith.constant 7 : index
    %c1_302 = arith.constant 1 : index
    %c0_303 = arith.constant 0 : index
    %c0_304 = arith.constant 0 : index
    %253 = vector.load %arg2[%c7_301, %c1_302, %c0_303, %c0_304] : memref<8x3x96x32xf32, #tpu.memory_space<vmem>>, vector<1x1x96x32xf32>
    %254 = vector.shape_cast %253 : vector<1x1x96x32xf32> to vector<96x32xf32>
    %cst_305 = arith.constant dense<0.000000e+00> : vector<256x32xf32>
    %255 = tpu.matmul %252, %254, %cst_305 {dimension_numbers = #tpu.dot_dimension_numbers<[1], [0], [0], [1], [0, 0, 1, 1], [], []>} : vector<256x96xf32>, vector<96x32xf32>, vector<256x32xf32> -> vector<256x32xf32>
    %256 = arith.addf %250, %255 : vector<256x32xf32>
    %c2_306 = arith.constant 2 : index
    %c0_307 = arith.constant 0 : index
    %c0_308 = arith.constant 0 : index
    %257 = vector.load %arg7[%c2_306, %c0_307, %c0_308] : memref<18x16x96xf32, #tpu.memory_space<vmem>>, vector<16x16x96xf32>
    %258 = vector.shape_cast %257 : vector<16x16x96xf32> to vector<256x96xf32>
    %c7_309 = arith.constant 7 : index
    %c2_310 = arith.constant 2 : index
    %c0_311 = arith.constant 0 : index
    %c0_312 = arith.constant 0 : index
    %259 = vector.load %arg2[%c7_309, %c2_310, %c0_311, %c0_312] : memref<8x3x96x32xf32, #tpu.memory_space<vmem>>, vector<1x1x96x32xf32>
    %260 = vector.shape_cast %259 : vector<1x1x96x32xf32> to vector<96x32xf32>
    %cst_313 = arith.constant dense<0.000000e+00> : vector<256x32xf32>
    %261 = tpu.matmul %258, %260, %cst_313 {dimension_numbers = #tpu.dot_dimension_numbers<[1], [0], [0], [1], [0, 0, 1, 1], [], []>} : vector<256x96xf32>, vector<96x32xf32>, vector<256x32xf32> -> vector<256x32xf32>
    %262 = arith.addf %256, %261 : vector<256x32xf32>
    %c7_314 = arith.constant 7 : index
    %c0_315 = arith.constant 0 : index
    %c0_316 = arith.constant 0 : index
    %263 = vector.load %arg3[%c7_314, %c0_315, %c0_316] : memref<8x1x32xf32, #tpu.memory_space<vmem>>, vector<1x1x32xf32>
    %264 = vector.shape_cast %263 : vector<1x1x32xf32> to vector<1x32xf32>
    %265 = vector.broadcast %264 : vector<1x32xf32> to vector<256x32xf32>
    %266 = arith.mulf %262, %265 : vector<256x32xf32>
    %c7_317 = arith.constant 7 : index
    %c0_318 = arith.constant 0 : index
    %c0_319 = arith.constant 0 : index
    %267 = vector.load %arg4[%c7_317, %c0_318, %c0_319] : memref<8x1x32xf32, #tpu.memory_space<vmem>>, vector<1x1x32xf32>
    %268 = vector.shape_cast %267 : vector<1x1x32xf32> to vector<1x32xf32>
    %269 = vector.broadcast %268 : vector<1x32xf32> to vector<256x32xf32>
    %270 = arith.addf %266, %269 : vector<256x32xf32>
    %271 = arith.addf %270, %206 : vector<256x32xf32>
    %cst_320 = arith.constant 0.000000e+00 : f32
    %272 = vector.broadcast %cst_320 : f32 to vector<256x32xf32>
    %273 = arith.maximumf %271, %272 : vector<256x32xf32>
    %274 = vector.shape_cast %273 : vector<256x32xf32> to vector<16x16x32xf32>
    %c0_321 = arith.constant 0 : index
    %c0_322 = arith.constant 0 : index
    %c0_323 = arith.constant 0 : index
    %c0_324 = arith.constant 0 : index
    %275 = vector.load %arg5[%c0_321, %c0_322, %c0_323, %c0_324] : memref<1x16x16x32xf32, #tpu.memory_space<vmem>>, vector<1x16x16x32xf32>
    %276 = vector.shape_cast %275 : vector<1x16x16x32xf32> to vector<16x16x32xf32>
    %277 = vector.shape_cast %274 : vector<16x16x32xf32> to vector<1x16x16x32xf32>
    tpu.vector_store %arg5[%c0_321, %c0_322, %c0_323, %c0_324], %277 {strides = array<i32>} : memref<1x16x16x32xf32, #tpu.memory_space<vmem>>, vector<1x16x16x32xf32>,
    return
  }
  func.func @transform_0(%arg0: i32) -> (i32, i32, i32, i32) {
    %c0_i32 = arith.constant 0 : i32
    %c0_i32_0 = arith.constant 0 : i32
    %c0_i32_1 = arith.constant 0 : i32
    %c0_i32_2 = arith.constant 0 : i32
    return %arg0, %c0_i32, %c0_i32_0, %c0_i32_1 : i32, i32, i32, i32
  }
  func.func @transform_1(%arg0: i32) -> (i32, i32, i32, i32) {
    %c0_i32 = arith.constant 0 : i32
    %c0_i32_0 = arith.constant 0 : i32
    %c0_i32_1 = arith.constant 0 : i32
    %c0_i32_2 = arith.constant 0 : i32
    %c0_i32_3 = arith.constant 0 : i32
    return %c0_i32, %c0_i32_0, %c0_i32_1, %c0_i32_2 : i32, i32, i32, i32
  }
  func.func @transform_2(%arg0: i32) -> (i32, i32, i32) {
    %c0_i32 = arith.constant 0 : i32
    %c0_i32_0 = arith.constant 0 : i32
    %c0_i32_1 = arith.constant 0 : i32
    %c0_i32_2 = arith.constant 0 : i32
    return %c0_i32, %c0_i32_0, %c0_i32_1 : i32, i32, i32
  }
  func.func @transform_3(%arg0: i32) -> (i32, i32, i32) {
    %c0_i32 = arith.constant 0 : i32
    %c0_i32_0 = arith.constant 0 : i32
    %c0_i32_1 = arith.constant 0 : i32
    %c0_i32_2 = arith.constant 0 : i32
    return %c0_i32, %c0_i32_0, %c0_i32_1 : i32, i32, i32
  }
  func.func @transform_4(%arg0: i32) -> (i32, i32, i32, i32) {
    %c0_i32 = arith.constant 0 : i32
    %c0_i32_0 = arith.constant 0 : i32
    %c0_i32_1 = arith.constant 0 : i32
    %c0_i32_2 = arith.constant 0 : i32
    return %arg0, %c0_i32, %c0_i32_0, %c0_i32_1 : i32, i32, i32, i32
  }
}

</mosaic_0001>

<bundles_post_ra>
// kernel: residual_feature_generator_fwd.1
= control target key start
LH: loop header
LB: loop body
LE: loop exit
PB: predicated region body
PF: predicated region fallthrough
CT: control target
= control target key end

     0   :  { %9 = vsyncpa [#allocation5], 0  ;;  %s17567_s0 = inlined_call_operand.vmem [shape: f32[2,16,16,32], index: 0, kind: input, shape index: {}]   ;;  %s17568_s1 = inlined_call_operand.vmem [shape: f32[8,3,96,32], index: 1, kind: input, shape index: {}]   ;;  %s17569_s2 = inlined_call_operand.vmem [shape: f32[8,1,32], index: 2, kind: input, shape index: {}]   ;;  %s17570_s3 = inlined_call_operand.vmem [shape: f32[8,1,32], index: 3, kind: input, shape index: {}]   ;;  %s17571_s4 = inlined_call_operand.hbm [shape: f32[2,16,16,32], index: 4, kind: output, shape index: {}]  }
   0x1   :  { %11 = vsyncpa [#allocation5 + $0x1], 0  ;;  %s11545_s15 = smov 0   ;;  %s11547_s16 = smov 0  }
   0x2   :  { %s11549_s17 = smov 0   ;;  %s11551_s18 = smov 0  }
   0x3 LB: > { %s11566_s19 = sadd.s32 4294967295, %s11513_s18   ;;  %s10305_s20 = sadd.s32 4294967294, %s11513_s18   ;;  %s11513_s18 = sphi %s11551_s18, %s17619_s18   ;;  %s11509_s17 = sphi %s11549_s17, %s17618_s17   ;;  %s11505_s16 = sphi %s11547_s16, %s17617_s16   ;;  %s11501_s15 = sphi %s11545_s15, %s17616_s15  }
   0x4   : > { %s11570_s21 = sadd.s32 1, %s11513_s18   ;;  %s113_s22 = sadd.s32 1, %s11509_s17 }
   0x5   : > { %s110_s23 = ssub.s32 %s11513_s18, %s11570_s21  ;;  %p123_p0 = scmp.ne.s32.totalorder %s11509_s17, %s11505_s16 }
   0x6   : > { %p111_p1 = scmp.eq.s32.totalorder %s110_s23, 0  ;;  %p124_p2 = scmp.eq.s32.totalorder %s11566_s19, 1 }
   0x7   : > { %p129_p3 = scmp.ne.s32.totalorder %s11505_s16, %s11501_s15  ;;  %p130_p4 = scmp.eq.s32.totalorder %s10305_s20, 1 }
   0x8   : > { %s11581_s24 = scalar_select %p111_p1, %s11509_s17, %s113_s22  }
   0x9   : > { %p11583_p5 = por %p124_p2, %p123_p0  ;;  %p11587_p6 = por %p130_p4, %p129_p3 }
   0xa   : > { %p10308_p7 = scmp.ge.s32.totalorder %s11513_s18, 1  ;;  %p165_p8 = scmp.lt.s32.totalorder %s11513_s18, 3 }
   0xc   : > { %p166_p9 = pnand %p10308_p7, %p165_p8 }
   0xe   : > { %169 = sbr.rel (%p166_p9) target bundleno = 2712 (0xa98), region = 36 }
  0x13   : > { %p191_p10 = scmp.lt.s32.totalorder %s11566_s19, 1  ;;  %s11515_s6 = smov 64   ;;  %v670_v8 = vld [vmem:[%s17568_s1 + $0x58] sm:$0xff]  ;;  %v669_v9 = vld [vmem:[%s17568_s1 + $0x50] sm:$0xff]  ;;  %v668_v12 = vld [vmem:[%s17568_s1 + $0x48] sm:$0xff]  ;;  %vm196_vm0 = vcmask 785408  }
  0x14   : > { %s11516_s7 = smov 32   ;;  %1025 = vmatpush.msra.mxu1 %v670_v8  ;;  %v667_v13 = vld [vmem:[%s17568_s1 + $0x40] sm:$0xff]  ;;  %v666_v14 = vld [vmem:[%s17568_s1 + $0x38] sm:$0xff]  ;;  %v10322_v16 = vld [vmem:[%s17568_s1 + $0xb0] sm:$0xff]  ;;  %v11517_v30 = vmov 0.0   ;;  %vm430_vm1 = vcmask 523520  }
  0x15   : > { %s192_s27 = scalar_select %p191_p10, %s11566_s19, 1  ;;  %v10323_v15 = vld [vmem:[%s17568_s1 + $0xb8] sm:$0xff]  ;;  %v665_v17 = vld [vmem:[%s17568_s1 + $0x30] sm:$0xff]  ;;  %v664_v18 = vld [vmem:[%s17568_s1 + $0x28] sm:$0xff]  ;;  %199 = vst.msk [vmem:[#allocation2 + $0x10] sm:$0xff] %vm196_vm0, %v11517_v30  ;;  %vm463_vm2 = vcmask 261120  }
  0x16   : > { %1026 = vmatpush.msra.mxu1 %v669_v9  ;;  %816 = vmatpush.msra.mxu0 %v10323_v15  ;;  %v663_v20 = vld [vmem:[%s17568_s1 + $0x20] sm:$0xff]  ;;  %v10321_v21 = vld [vmem:[%s17568_s1 + $0xa8] sm:$0xff]  ;;  %v662_v22 = vld [vmem:[%s17568_s1 + $0x18] sm:$0xff]  ;;  %197 = vst.msk [vmem:[#allocation2] sm:$0xff] %vm196_vm0, %v11517_v30  ;;  %vm465_vm3 = vcmask 260096   ;;  %vm593_vm4 = vcmask 785921  }
  0x17   : > { %s11375_s28 = sshll.u32 %s192_s27, 8  ;;  %v661_v23 = vld [vmem:[%s17568_s1 + $0x10] sm:$0xff]  ;;  %v660_v25 = vld [vmem:[%s17568_s1 + $0x8] sm:$0xff]  ;;  %198 = vst.msk [vmem:[#allocation2 + $0x8] sm:$0xff] %vm196_vm0, %v11517_v30  ;;  %v10320_v31 = vld [vmem:[%s17568_s1 + $0xa0] sm:$0xff]  ;;  %vm595_vm5 = vcmask 785920  }
  0x18   : > { %s11598_s5 = scalar_lea.vmem %s17567_s0, %s11375_s28  ;;  %1027 = vmatpush.msra.mxu1 %v668_v12  ;;  %817 = vmatpush.msra.mxu0 %v10322_v16  ;;  %200 = vst.msk [vmem:[#allocation2 + $0x18] sm:$0xff] %vm196_vm0, %v11517_v30  ;;  %v659_v32 = vld [vmem:[%s17568_s1] sm:$0xff]  ;;  %v10399_v33 = vld [vmem:[%s17568_s1 + $0x118] sm:$0xff]  ;;  %v10398_v36 = vld [vmem:[%s17568_s1 + $0x110] sm:$0xff]  ;;  %s188_s28 = sand.u32 1, %s11505_s16  }
  0x19   : > { %v11601_v0 = vld [vmem:[%s11598_s5] sm:$0xff]  ;;  %v11608_v1 = vld [vmem:[%s11598_s5 + $0x10] sm:$0xff]  ;;  %v11613_v2 = vld [vmem:[%s11598_s5 + $0x8] sm:$0xff]  ;;  %201 = vst.msk [vmem:[#allocation2 + $0x20] sm:$0xff] %vm196_vm0, %v11517_v30  ;;  %1280 = vmatpush.msra.mxu2 %v10399_v33  ;;  %s10309_s29 = sshll.u32 %s188_s28, 8  ;;  %s11471_s22 = scalar_lea.hbm %s17571_s4, 512 }
  0x1a   : > { %497 = vrot.lane.b32.xlu1 %v11601_v0, %s11515_s6  ;;  %333 = vrot.lane.b32.xlu0 %v11601_v0, %s11516_s7  ;;  %v11620_v3 = vld [vmem:[%s11598_s5 + $0x18] sm:$0xff]  ;;  %v11629_v4 = vld [vmem:[%s11598_s5 + $0x20] sm:$0xff]  ;;  %202 = vst.msk [vmem:[#allocation2 + $0x28] sm:$0xff] %vm196_vm0, %v11517_v30  ;;  %s17293_s30 = scalar_lea.vmem [#allocation4], %s10309_s29 }
  0x1b   : > { %337 = vrot.lane.b32.xlu2 %v11608_v1, %s11516_s7  ;;  %v11634_v5 = vld [vmem:[%s11598_s5 + $0x28] sm:$0xff]  ;;  %v11643_v6 = vld [vmem:[%s11598_s5 + $0x30] sm:$0xff]  ;;  %v11646_v7 = vld [vmem:[%s11598_s5 + $0x38] sm:$0xff]  ;;  %1028 = vmatpush.msra.mxu1 %v667_v13  ;;  %203 = vst.msk [vmem:[#allocation2 + $0x30] sm:$0xff] %vm196_vm0, %v11517_v30  ;;  %s10240_s10 = sshll.u32 %s17293_s30, 4  ;;  %s10241_s10 = int_to_ptr.vmem [resolvable:$true] %s10240_s10 }
  0x1c   : > { %v11661_v10 = vld [vmem:[%s11598_s5 + $0x40] sm:$0xff]  ;;  %v11664_v11 = vld [vmem:[%s11598_s5 + $0x48] sm:$0xff]  ;;  %v11694_v19 = vld [vmem:[%s11598_s5 + $0x50] sm:$0xff]  ;;  %818 = vmatpush.msra.mxu0 %v10321_v21  ;;  %204 = vst.msk [vmem:[#allocation2 + $0x38] sm:$0xff] %vm196_vm0, %v11517_v30  ;;  %1281 = vmatpush.msra.mxu2 %v10398_v36 }
  0x1d   : > { %1029 = vmatpush.msra.mxu1 %v666_v14  ;;  %v11715_v24 = vld [vmem:[%s11598_s5 + $0x58] sm:$0xff]  ;;  %v11727_v26 = vld [vmem:[%s11598_s5 + $0x60] sm:$0xff]  ;;  %v11730_v27 = vld [vmem:[%s11598_s5 + $0x68] sm:$0xff]  ;;  %205 = vst.msk [vmem:[#allocation2 + $0x40] sm:$0xff] %vm196_vm0, %v11517_v30 }
  0x1e   : > { %v11739_v28 = vld [vmem:[%s11598_s5 + $0x70] sm:$0xff]  ;;  %v11746_v29 = vld [vmem:[%s11598_s5 + $0x78] sm:$0xff]  ;;  %819 = vmatpush.msra.mxu0 %v10320_v31  ;;  %v627_v34 = vld [vmem:[#allocation2] sm:$0xff]  ;;  %206 = vst.msk [vmem:[#allocation2 + $0x48] sm:$0xff] %vm196_vm0, %v11517_v30 }
  0x1f   : > { %1030 = vmatpush.msra.mxu1 %v665_v17  ;;  %v10319_v35 = vld [vmem:[%s17568_s1 + $0x98] sm:$0xff]  ;;  %207 = vst.msk [vmem:[#allocation2 + $0x50] sm:$0xff] %vm196_vm0, %v11517_v30  ;;  %v10318_v37 = vld [vmem:[%s17568_s1 + $0x90] sm:$0xff]  ;;  %v10397_v38 = vld [vmem:[%s17568_s1 + $0x108] sm:$0xff] }
  0x20   : > { %820 = vmatpush.msra.mxu0 %v10319_v35  ;;  %208 = vst.msk [vmem:[#allocation2 + $0x58] sm:$0xff] %vm196_vm0, %v11517_v30  ;;  %1282 = vmatpush.msra.mxu2 %v10397_v38  ;;  %v10317_v40 = vld [vmem:[%s17568_s1 + $0x88] sm:$0xff]  ;;  %v10396_v41 = vld [vmem:[%s17568_s1 + $0x100] sm:$0xff]  ;;  %v10395_v44 = vld [vmem:[%s17568_s1 + $0xf8] sm:$0xff] }
  0x21   : > { %1031 = vmatpush.msra.mxu1 %v664_v18  ;;  %209 = vst.msk [vmem:[#allocation2 + $0x60] sm:$0xff] %vm196_vm0, %v11517_v30  ;;  %v10316_v43 = vld [vmem:[%s17568_s1 + $0x80] sm:$0xff]  ;;  %v628_v45 = vld [vmem:[#allocation2 + $0x8] sm:$0xff]  ;;  %v10315_v46 = vld [vmem:[%s17568_s1 + $0x78] sm:$0xff] }
  0x22   : > { %499 = vrot.lane.b32.xlu1 %v11613_v2, %s11515_s6  ;;  %335 = vrot.lane.b32.xlu0 %v11613_v2, %s11516_s7  ;;  %210 = vst.msk [vmem:[#allocation2 + $0x68] sm:$0xff] %vm196_vm0, %v11517_v30  ;;  %v10394_v47 = vld [vmem:[%s17568_s1 + $0xf0] sm:$0xff]  ;;  %v11891_v48 = vld [vmem:[%s11598_s5 + $0x88] sm:$0xff] }
  0x23   : > { %339 = vrot.lane.b32.xlu2 %v11620_v3, %s11516_s7  ;;  %1032 = vmatpush.msra.mxu1 %v663_v20  ;;  %211 = vst.msk [vmem:[#allocation2 + $0x70] sm:$0xff] %vm196_vm0, %v11517_v30  ;;  %v10314_v49 = vld [vmem:[%s17568_s1 + $0x70] sm:$0xff]  ;;  %v10393_v50 = vld [vmem:[%s17568_s1 + $0xe8] sm:$0xff]  ;;  %v11906_v51 = vld [vmem:[%s11598_s5 + $0x80] sm:$0xff] }
  0x24   : > { %821 = vmatpush.msra.mxu0 %v10318_v37  ;;  %212 = vst.msk [vmem:[#allocation2 + $0x78] sm:$0xff] %vm196_vm0, %v11517_v30  ;;  %1283 = vmatpush.msra.mxu2 %v10396_v41  ;;  %v10313_v52 = vld [vmem:[%s17568_s1 + $0x68] sm:$0xff]  ;;  %v10392_v53 = vld [vmem:[%s17568_s1 + $0xe0] sm:$0xff]  ;;  %v10391_v56 = vld [vmem:[%s17568_s1 + $0xd8] sm:$0xff] }
  0x25   : > { %1033 = vmatpush.msra.mxu1 %v662_v22  ;;  %213 = vst.msk [vmem:[#allocation2 + $0x80] sm:$0xff] %vm196_vm0, %v11517_v30  ;;  %v10312_v55 = vld [vmem:[%s17568_s1 + $0x60] sm:$0xff]  ;;  %v10390_v59 = vld [vmem:[%s17568_s1 + $0xd0] sm:$0xff]  ;;  %v10389_v60 = vld [vmem:[%s17568_s1 + $0xc8] sm:$0xff] }
  0x26   : > { %214 = vst.msk [vmem:[#allocation2 + $0x88] sm:$0xff] %vm196_vm0, %v11517_v30  ;;  %822 = vmatpush.msra.mxu0 %v10317_v40  ;;  %1284 = vmatpush.msra.mxu2 %v10395_v44  ;;  %v11943_v61 = vld [vmem:[%s11598_s5 + $0x90] sm:$0xff]  ;;  %v10388_v62 = vld [vmem:[%s17568_s1 + $0xc0] sm:$0xff]  ;;  %v11969_v8 = vld [vmem:[%s11598_s5 + $0x98] sm:$0xff] }
  0x27   : > { %1034 = vmatpush.msra.mxu1 %v661_v23  ;;  %215 = vst.msk [vmem:[#allocation2 + $0x90] sm:$0xff] %vm196_vm0, %v11517_v30  ;;  %v11994_v14 = vld [vmem:[%s11598_s5 + $0xa0] sm:$0xff]  ;;  %v12014_v18 = vld [vmem:[%s11598_s5 + $0xa8] sm:$0xff]  ;;  %v12048_v33 = vld [vmem:[%s11598_s5 + $0xb8] sm:$0xff] }
  0x28   : > { %216 = vst.msk [vmem:[#allocation2 + $0x98] sm:$0xff] %vm196_vm0, %v11517_v30  ;;  %823 = vmatpush.msra.mxu0 %v10316_v43  ;;  %1285 = vmatpush.msra.mxu2 %v10394_v47  ;;  %v12051_v35 = vld [vmem:[%s11598_s5 + $0xb0] sm:$0xff]  ;;  %v10443_v36 = vld [vmem:[%s17568_s1 + $0x178] sm:$0xff]  ;;  %v12078_v41 = vld [vmem:[%s11598_s5 + $0xc0] sm:$0xff] }
  0x29   : > { %1035 = vmatpush.msra.mxu1 %v660_v25  ;;  %217 = vst.msk [vmem:[#allocation2 + $0xa0] sm:$0xff] %vm196_vm0, %v11517_v30  ;;  %v10531_v40 = vld [vmem:[%s17568_s1 + $0x238] sm:$0xff]  ;;  %v12089_v44 = vld [vmem:[%s11598_s5 + $0xc8] sm:$0xff] }
  0x2a   : > { %503 = vrot.lane.b32.xlu1 %v11620_v3, %s11515_s6  ;;  %501 = vrot.lane.b32.xlu0 %v11608_v1, %s11515_s6  ;;  %218 = vst.msk [vmem:[#allocation2 + $0xa8] sm:$0xff] %vm196_vm0, %v11517_v30 }
  0x2b   : > { %341 = vrot.lane.b32.xlu2 %v11629_v4, %s11516_s7  ;;  %1036 = vmatpush.msra.mxu1 %v659_v32  ;;  %219 = vst.msk [vmem:[#allocation2 + $0xb0] sm:$0xff] %vm196_vm0, %v11517_v30 }
  0x2c   : > { %10356 = vmatmul.msk.f32.vlgmr.msra.gmra.mxu1 %vm196_vm0, %v627_v34  ;;  %220 = vst.msk [vmem:[#allocation2 + $0xb8] sm:$0xff] %vm196_vm0, %v11517_v30  ;;  %824 = vmatpush.msra.mxu0 %v10315_v46 }
  0x2d   : > { %221 = vst.msk [vmem:[#allocation2 + $0xc0] sm:$0xff] %vm196_vm0, %v11517_v30  ;;  %1286 = vmatpush.msra.mxu2 %v10393_v50  ;;  %2500 = vmatpush.msrb.mxu1 %v10531_v40  ;;  %v10442_v50 = vld [vmem:[%s17568_s1 + $0x170] sm:$0xff] }
  0x2e   : > { %222 = vst.msk [vmem:[#allocation2 + $0xc8] sm:$0xff] %vm196_vm0, %v11517_v30  ;;  %825 = vmatpush.msra.mxu0 %v10314_v49 }
  0x2f   : > { %223 = vst.msk [vmem:[#allocation2 + $0xd0] sm:$0xff] %vm196_vm0, %v11517_v30  ;;  %1287 = vmatpush.msra.mxu2 %v10392_v53  ;;  %v10530_v53 = vld [vmem:[%s17568_s1 + $0x230] sm:$0xff] }
  0x30   : > { %224 = vst.msk [vmem:[#allocation2 + $0xd8] sm:$0xff] %vm196_vm0, %v11517_v30  ;;  %826 = vmatpush.msra.mxu0 %v10313_v52  ;;  %v12111_v52 = vld [vmem:[%s11598_s5 + $0xd0] sm:$0xff]  ;;  %2501 = vmatpush.msrb.mxu1 %v10530_v53  ;;  %v12220_v53 = vld [vmem:[%s11598_s5 + $0xf8] sm:$0xff] }
  0x31   : > { %225 = vst.msk [vmem:[#allocation2 + $0xe0] sm:$0xff] %vm196_vm0, %v11517_v30  ;;  %1288 = vmatpush.msra.mxu2 %v10391_v56  ;;  %v12125_v56 = vld [vmem:[%s11598_s5 + $0xd8] sm:$0xff] }
  0x32   : > { %343 = vrot.lane.b32.xlu0 %v11634_v5, %s11516_s7  ;;  %505 = vrot.lane.b32.xlu1 %v11629_v4, %s11515_s6  ;;  %226 = vst.msk [vmem:[#allocation2 + $0xe8] sm:$0xff] %vm196_vm0, %v11517_v30 }
  0x33   : > { %507 = vrot.lane.b32.xlu2 %v11634_v5, %s11515_s6  ;;  %227 = vst.msk [vmem:[#allocation2 + $0xf0] sm:$0xff] %vm196_vm0, %v11517_v30  ;;  %827 = vmatpush.msra.mxu0 %v10312_v55 }
  0x34   : > { %228 = vst.msk [vmem:[#allocation2 + $0xf8] sm:$0xff] %vm196_vm0, %v11517_v30  ;;  %10357 = vmatmul.msk.f32.gmra.mxu1 %vm196_vm0, %v628_v45  ;;  %1289 = vmatpush.msra.mxu2 %v10390_v59 }
  0x35   : > { %229 = vst.msk [vmem:[#allocation2 + $0x100] sm:$0xff] %vm196_vm0, %v11517_v30  ;;  %2245 = vmatpush.msrb.mxu0 %v10443_v36 }
  0x36   : > { %230 = vst.msk [vmem:[#allocation2 + $0x108] sm:$0xff] %vm196_vm0, %v11517_v30  ;;  %1290 = vmatpush.msra.mxu2 %v10389_v60 }
  0x37   : > { %231 = vst.msk [vmem:[#allocation2 + $0x110] sm:$0xff] %vm196_vm0, %v11517_v30  ;;  %2246 = vmatpush.msrb.mxu0 %v10442_v50 }
  0x38   : > { %232 = vst.msk [vmem:[#allocation2 + $0x118] sm:$0xff] %vm196_vm0, %v11517_v30  ;;  %1291 = vmatpush.msra.mxu2 %v10388_v62 }
  0x39   : > { %233 = vst.msk [vmem:[#allocation3] sm:$0xff] %vm196_vm0, %v11517_v30 }
  0x3a   : > { %345 = vrot.lane.b32.xlu0 %v11643_v6, %s11516_s7  ;;  %347 = vrot.lane.b32.xlu1 %v11646_v7, %s11516_s7  ;;  %234 = vst.msk [vmem:[#allocation3 + $0x8] sm:$0xff] %vm196_vm0, %v11517_v30 }
  0x3b   : > { %509 = vrot.lane.b32.xlu2 %v11643_v6, %s11515_s6  ;;  %235 = vst.msk [vmem:[#allocation3 + $0x10] sm:$0xff] %vm196_vm0, %v11517_v30 }
  0x3c   : > { %236 = vst.msk [vmem:[#allocation3 + $0x18] sm:$0xff] %vm196_vm0, %v11517_v30 }
  0x3d   : > { %237 = vst.msk [vmem:[#allocation3 + $0x20] sm:$0xff] %vm196_vm0, %v11517_v30 }
  0x3e   : > { %238 = vst.msk [vmem:[#allocation3 + $0x28] sm:$0xff] %vm196_vm0, %v11517_v30 }
  0x3f   : > { %239 = vst.msk [vmem:[#allocation3 + $0x30] sm:$0xff] %vm196_vm0, %v11517_v30 }
  0x40   : > { %240 = vst.msk [vmem:[#allocation3 + $0x38] sm:$0xff] %vm196_vm0, %v11517_v30 }
  0x41   : > { %241 = vst.msk [vmem:[#allocation3 + $0x40] sm:$0xff] %vm196_vm0, %v11517_v30 }
  0x42   : > { %511 = vrot.lane.b32.xlu0 %v11646_v7, %s11515_s6  ;;  %349 = vrot.lane.b32.xlu1 %v11661_v10, %s11516_s7  ;;  %242 = vst.msk [vmem:[#allocation3 + $0x48] sm:$0xff] %vm196_vm0, %v11517_v30 }
  0x43   : > { %351 = vrot.lane.b32.xlu2 %v11664_v11, %s11516_s7  ;;  %243 = vst.msk [vmem:[#allocation3 + $0x50] sm:$0xff] %vm196_vm0, %v11517_v30 }
  0x44   : > { %244 = vst.msk [vmem:[#allocation3 + $0x58] sm:$0xff] %vm196_vm0, %v11517_v30 }
  0x45   : > { %245 = vst.msk [vmem:[#allocation3 + $0x60] sm:$0xff] %vm196_vm0, %v11517_v30 }
  0x46   : > { %246 = vst.msk [vmem:[#allocation3 + $0x68] sm:$0xff] %vm196_vm0, %v11517_v30 }
  0x47   : > { %247 = vst.msk [vmem:[#allocation3 + $0x70] sm:$0xff] %vm196_vm0, %v11517_v30 }
  0x48   : > { %248 = vst.msk [vmem:[#allocation3 + $0x78] sm:$0xff] %vm196_vm0, %v11517_v30 }
  0x49   : > { %249 = vst.msk [vmem:[#allocation3 + $0x80] sm:$0xff] %vm196_vm0, %v11517_v30 }
  0x4a   : > { %515 = vrot.lane.b32.xlu1 %v11664_v11, %s11515_s6  ;;  %513 = vrot.lane.b32.xlu0 %v11661_v10, %s11515_s6  ;;  %250 = vst.msk [vmem:[#allocation3 + $0x88] sm:$0xff] %vm196_vm0, %v11517_v30 }
  0x4b   : > { %353 = vrot.lane.b32.xlu2 %v11694_v19, %s11516_s7  ;;  %251 = vst.msk [vmem:[#allocation3 + $0x90] sm:$0xff] %vm196_vm0, %v11517_v30 }
  0x4c   : > { %252 = vst.msk [vmem:[#allocation3 + $0x98] sm:$0xff] %vm196_vm0, %v11517_v30 }
  0x4d   : > { %253 = vst.msk [vmem:[#allocation3 + $0xa0] sm:$0xff] %vm196_vm0, %v11517_v30 }
  0x4e   : > { %254 = vst.msk [vmem:[#allocation3 + $0xa8] sm:$0xff] %vm196_vm0, %v11517_v30 }
  0x4f   : > { %255 = vst.msk [vmem:[#allocation3 + $0xb0] sm:$0xff] %vm196_vm0, %v11517_v30 }
  0x50   : > { %256 = vst.msk [vmem:[#allocation3 + $0xb8] sm:$0xff] %vm196_vm0, %v11517_v30 }
  0x51   : > { %257 = vst.msk [vmem:[#allocation3 + $0xc0] sm:$0xff] %vm196_vm0, %v11517_v30 }
  0x52   : > { %355 = vrot.lane.b32.xlu0 %v11715_v24, %s11516_s7  ;;  %517 = vrot.lane.b32.xlu1 %v11694_v19, %s11515_s6  ;;  %258 = vst.msk [vmem:[#allocation3 + $0xc8] sm:$0xff] %vm196_vm0, %v11517_v30 }
  0x53   : > { %519 = vrot.lane.b32.xlu2 %v11715_v24, %s11515_s6  ;;  %259 = vst.msk [vmem:[#allocation3 + $0xd0] sm:$0xff] %vm196_vm0, %v11517_v30 }
  0x54   : > { %260 = vst.msk [vmem:[#allocation3 + $0xd8] sm:$0xff] %vm196_vm0, %v11517_v30 }
  0x55   : > { %261 = vst.msk [vmem:[#allocation3 + $0xe0] sm:$0xff] %vm196_vm0, %v11517_v30 }
  0x56   : > { %262 = vst.msk [vmem:[#allocation3 + $0xe8] sm:$0xff] %vm196_vm0, %v11517_v30 }
  0x57   : > { %263 = vst.msk [vmem:[#allocation3 + $0xf0] sm:$0xff] %vm196_vm0, %v11517_v30 }
  0x58   : > { %264 = vst.msk [vmem:[#allocation3 + $0xf8] sm:$0xff] %vm196_vm0, %v11517_v30 }
  0x59   : > { %265 = vst.msk [vmem:[#allocation3 + $0x100] sm:$0xff] %vm196_vm0, %v11517_v30 }
  0x5a   : > { %357 = vrot.lane.b32.xlu0 %v11727_v26, %s11516_s7  ;;  %359 = vrot.lane.b32.xlu1 %v11730_v27, %s11516_s7  ;;  %266 = vst.msk [vmem:[#allocation3 + $0x108] sm:$0xff] %vm196_vm0, %v11517_v30 }
  0x5b   : > { %521 = vrot.lane.b32.xlu2 %v11727_v26, %s11515_s6  ;;  %267 = vst.msk [vmem:[#allocation3 + $0x110] sm:$0xff] %vm196_vm0, %v11517_v30 }
  0x5c   : > { %268 = vst.msk [vmem:[#allocation3 + $0x118] sm:$0xff] %vm196_vm0, %v11517_v30 }
  0x5d   : > { %17590 = vst [vmem:[#allocation9_spill] sm:$0xff] %v12220_v53 }
  0x62   : > { %523 = vrot.lane.b32.xlu0 %v11730_v27, %s11515_s6  ;;  %361 = vrot.lane.b32.xlu1 %v11739_v28, %s11516_s7 }
  0x63   : > { %363 = vrot.lane.b32.xlu2 %v11746_v29, %s11516_s7 }
  0x6a   : > { %527 = vrot.lane.b32.xlu1 %v11746_v29, %s11515_s6  ;;  %525 = vrot.lane.b32.xlu0 %v11739_v28, %s11515_s6 }
  0x6b   : > { %365 = vrot.lane.b32.xlu2 %v11906_v51, %s11516_s7 }
  0x72   : > { %367 = vrot.lane.b32.xlu0 %v11891_v48, %s11516_s7  ;;  %529 = vrot.lane.b32.xlu1 %v11906_v51, %s11515_s6 }
  0x73   : > { %531 = vrot.lane.b32.xlu2 %v11891_v48, %s11515_s6 }
  0x75   : > { %v338_v54 = vpop.permute.xlu2 %337 }
  0x76   : > { %433 = vst.msk [vmem:[#allocation2 + $0x20] sm:$0xff] %vm430_vm1, %v338_v54 }
  0x7a   : > { %369 = vrot.lane.b32.xlu0 %v11943_v61, %s11516_s7  ;;  %371 = vrot.lane.b32.xlu1 %v11969_v8, %s11516_s7 }
  0x7b   : > { %533 = vrot.lane.b32.xlu2 %v11943_v61, %s11515_s6 }
  0x7d   : > { %v340_v63 = vpop.permute.xlu2 %339 }
  0x7e   : > { %434 = vst.msk [vmem:[#allocation2 + $0x28] sm:$0xff] %vm430_vm1, %v340_v63 }
  0x7f   : > { %467 = vst.msk [vmem:[#allocation2 + $0x21] sm:$0xff] %vm463_vm2, %v11608_v1 }
  0x80   : > { %468 = vst.msk [vmem:[#allocation2 + $0x29] sm:$0x7f] %vm465_vm3, %v11620_v3 }
  0x82   : > { %535 = vrot.lane.b32.xlu0 %v11969_v8, %s11515_s6  ;;  %373 = vrot.lane.b32.xlu1 %v11994_v14, %s11516_s7 }
  0x83   : > { %375 = vrot.lane.b32.xlu2 %v12014_v18, %s11516_s7 }
  0x85   : > { %v342_v13 = vpop.permute.xlu2 %341 }
  0x86   : > { %435 = vst.msk [vmem:[#allocation2 + $0x30] sm:$0xff] %vm430_vm1, %v342_v13  ;;  %v10529_v13 = vld [vmem:[%s17568_s1 + $0x228] sm:$0xff] }
  0x87   : > { %2502 = vmatpush.msrb.mxu1 %v10529_v13 }
  0x8a   : > { %537 = vrot.lane.b32.xlu0 %v11994_v14, %s11515_s6  ;;  %539 = vrot.lane.b32.xlu1 %v12014_v18, %s11515_s6 }
  0x8b   : > { %377 = vrot.lane.b32.xlu2 %v12051_v35, %s11516_s7 }
  0x8c   : > { %v334_v39 = vpop.permute.xlu0 %333  ;;  %v11867_v42 = vpop.permute.xlu1 %497 }
  0x8d   : > { %431 = vst.msk [vmem:[#allocation2 + $0x10] sm:$0xff] %vm430_vm1, %v334_v39  ;;  %v508_v17 = vpop.permute.xlu2 %507 }
  0x92   : > { %379 = vrot.lane.b32.xlu0 %v12048_v33, %s11516_s7  ;;  %541 = vrot.lane.b32.xlu1 %v12051_v35, %s11515_s6 }
  0x93   : > { %543 = vrot.lane.b32.xlu2 %v12048_v33, %s11515_s6 }
  0x94   : > { %v500_v57 = vpop.permute.xlu1 %499  ;;  %v336_v58 = vpop.permute.xlu0 %335 }
  0x95   : > { %432 = vst.msk [vmem:[#allocation2 + $0x18] sm:$0xff] %vm430_vm1, %v336_v58  ;;  %v510_v23 = vpop.permute.xlu2 %509 }
  0x96   : > { %464 = vst.msk [vmem:[#allocation2 + $0x11] sm:$0xff] %vm463_vm2, %v11601_v0 }
  0x97   : > { %466 = vst.msk [vmem:[#allocation2 + $0x19] sm:$0x7f] %vm465_vm3, %v11613_v2 }
  0x98   : > { %594 = vst.msk [vmem:[#allocation2 + $0xf] sm:$0xfe] %vm593_vm4, %v11867_v42 }
  0x99   : > { %596 = vst.msk [vmem:[#allocation2 + $0x17] sm:$0xff] %vm595_vm5, %v500_v57 }
  0x9a   : > { %381 = vrot.lane.b32.xlu0 %v12078_v41, %s11516_s7  ;;  %383 = vrot.lane.b32.xlu1 %v12089_v44, %s11516_s7 }
  0x9b   : > { %545 = vrot.lane.b32.xlu2 %v12078_v41, %s11515_s6 }
  0x9c   : > { %v504_v9 = vpop.permute.xlu1 %503  ;;  %v502_v12 = vpop.permute.xlu0 %501 }
  0x9d   : > { %598 = vst.msk [vmem:[#allocation2 + $0x27] sm:$0xff] %vm595_vm5, %v504_v9  ;;  %v352_v34 = vpop.permute.xlu2 %351  ;;  %v10441_v9 = vld [vmem:[%s17568_s1 + $0x168] sm:$0xff] }
  0x9e   : > { %597 = vst.msk [vmem:[#allocation2 + $0x1f] sm:$0xfe] %vm593_vm4, %v502_v12  ;;  %v12147_v12 = vld [vmem:[%s11598_s5 + $0xe8] sm:$0xff]  ;;  %2247 = vmatpush.msrb.mxu0 %v10441_v9  ;;  %v10438_v9 = vld [vmem:[%s17568_s1 + $0x150] sm:$0xff] }
  0x9f   : > { %440 = vst.msk [vmem:[#allocation2 + $0x58] sm:$0xff] %vm430_vm1, %v352_v34  ;;  %v10528_v34 = vld [vmem:[%s17568_s1 + $0x220] sm:$0xff] }
  0xa0   : > { %v671_v22 = vld [vmem:[#allocation2 + $0x10] sm:$0xff]  ;;  %v672_v32 = vld [vmem:[#allocation2 + $0x18] sm:$0xff]  ;;  %474 = vst.msk [vmem:[#allocation2 + $0x59] sm:$0x7f] %vm465_vm3, %v11664_v11  ;;  %2503 = vmatpush.msrb.mxu1 %v10528_v34 }
  0xa1   : > { %10324 = vmatmul.msk.f32.vlgmr.msra.gmra.mxu0 %vm196_vm0, %v671_v22  ;;  %10358 = vmatmul.msk.f32.gmra.mxu1 %vm196_vm0, %v671_v22  ;;  %17588 = vst [vmem:[#allocation7_spill] sm:$0xff] %v12147_v12 }
  0xa2   : > { %547 = vrot.lane.b32.xlu0 %v12089_v44, %s11515_s6  ;;  %385 = vrot.lane.b32.xlu1 %v12111_v52, %s11516_s7 }
  0xa3   : > { %387 = vrot.lane.b32.xlu2 %v12125_v56, %s11516_s7 }
  0xa4   : > { %v506_v15 = vpop.permute.xlu1 %505  ;;  %v344_v16 = vpop.permute.xlu0 %343  ;;  %v1136_v38 = vld [vmem:[#allocation2 + $0x28] sm:$0xff] }
  0xa5   : > { %436 = vst.msk [vmem:[#allocation2 + $0x38] sm:$0xff] %vm430_vm1, %v344_v16  ;;  %v1135_v30 = vld [vmem:[#allocation2 + $0x20] sm:$0xff]  ;;  %v354_v42 = vpop.permute.xlu2 %353 }
  0xa6   : > { %469 = vst.msk [vmem:[#allocation2 + $0x31] sm:$0xff] %vm463_vm2, %v11629_v4  ;;  %10400 = vmatmul.msk.f32.vlgmr.msra.gmra.mxu2 %vm196_vm0, %v1135_v30  ;;  %v12156_v16 = vld [vmem:[%s11598_s5 + $0xe0] sm:$0xff] }
  0xa7   : > { %470 = vst.msk [vmem:[#allocation2 + $0x39] sm:$0x7f] %vm465_vm3, %v11634_v5 }
  0xa8   : > { %600 = vst.msk [vmem:[#allocation2 + $0x37] sm:$0xff] %vm595_vm5, %v508_v17 }
  0xa9   : > { %599 = vst.msk [vmem:[#allocation2 + $0x2f] sm:$0xfe] %vm593_vm4, %v506_v15  ;;  %10325 = vmatmul.msk.f32.gmra.mxu0 %vm196_vm0, %v672_v32  ;;  %10359 = vmatmul.msk.f32.gmra.mxu1 %vm196_vm0, %v672_v32  ;;  %v1038_v50 = vpop.f32.mrf.mxu1 }
  0xaa   : > { %441 = vst.msk [vmem:[#allocation2 + $0x60] sm:$0xff] %vm430_vm1, %v354_v42  ;;  %549 = vrot.lane.b32.xlu0 %v12111_v52, %s11515_s6  ;;  %551 = vrot.lane.b32.xlu1 %v12125_v56, %s11515_s6 }
  0xab   : > { %17589 = vst [vmem:[#allocation8_spill] sm:$0xff] %v12156_v16  ;;  %389 = vrot.lane.b32.xlu2 %v12156_v16, %s11516_s7 }
  0xac   : > { %v348_v20 = vpop.permute.xlu1 %347  ;;  %v346_v21 = vpop.permute.xlu0 %345 }
  0xad   : > { %437 = vst.msk [vmem:[#allocation2 + $0x40] sm:$0xff] %vm430_vm1, %v346_v21  ;;  %v520_v46 = vpop.permute.xlu2 %519 }
  0xae   : > { %438 = vst.msk [vmem:[#allocation2 + $0x48] sm:$0xff] %vm430_vm1, %v348_v20  ;;  %10401 = vmatmul.msk.f32.gmra.mxu2 %vm196_vm0, %v1136_v38 }
  0xaf   : > { %471 = vst.msk [vmem:[#allocation2 + $0x41] sm:$0xff] %vm463_vm2, %v11643_v6  ;;  %v1138_v47 = vld [vmem:[#allocation2 + $0x38] sm:$0xff] }
  0xb0   : > { %472 = vst.msk [vmem:[#allocation2 + $0x49] sm:$0x7f] %vm465_vm3, %v11646_v7  ;;  %v1137_v43 = vld [vmem:[#allocation2 + $0x30] sm:$0xff] }
  0xb1   : > { %601 = vst.msk [vmem:[#allocation2 + $0x3f] sm:$0xfe] %vm593_vm4, %v510_v23  ;;  %10326 = vmatmul.msk.f32.gmra.mxu0 %vm196_vm0, %v1135_v30  ;;  %10360 = vmatmul.msk.f32.gmra.mxu1 %vm196_vm0, %v1135_v30 }
  0xb2   : > { %391 = vrot.lane.b32.xlu0 %v12147_v12, %s11516_s7  ;;  %553 = vrot.lane.b32.xlu1 %v12156_v16, %s11515_s6 }
  0xb3   : > { %555 = vrot.lane.b32.xlu2 %v12147_v12, %s11515_s6 }
  0xb4   : > { %v350_v25 = vpop.permute.xlu1 %349  ;;  %v512_v31 = vpop.permute.xlu0 %511 }
  0xb5   : > { %602 = vst.msk [vmem:[#allocation2 + $0x47] sm:$0xff] %vm595_vm5, %v512_v31  ;;  %v522_v58 = vpop.permute.xlu2 %521 }
  0xb6   : > { %439 = vst.msk [vmem:[#allocation2 + $0x50] sm:$0xff] %vm430_vm1, %v350_v25  ;;  %10402 = vmatmul.msk.f32.gmra.mxu2 %vm196_vm0, %v1137_v43  ;;  %v10440_v25 = vld [vmem:[%s17568_s1 + $0x160] sm:$0xff] }
  0xb7   : > { %473 = vst.msk [vmem:[#allocation2 + $0x51] sm:$0xff] %vm463_vm2, %v11661_v10  ;;  %2248 = vmatpush.msrb.mxu0 %v10440_v25 }
  0xb9   : > { %10327 = vmatmul.msk.f32.gmra.mxu0 %vm196_vm0, %v1136_v38  ;;  %10361 = vmatmul.msk.f32.gmra.mxu1 %vm196_vm0, %v1136_v38 }
  0xbb   : > { %395 = vrot.lane.b32.xlu2 %v12220_v53, %s11516_s7 }
  0xbc   : > { %v516_v37 = vpop.permute.xlu1 %515  ;;  %v514_v39 = vpop.permute.xlu0 %513  ;;  %v1139_v55 = vld [vmem:[#allocation2 + $0x40] sm:$0xff]  ;;  %v1140_v59 = vld [vmem:[#allocation2 + $0x48] sm:$0xff] }
  0xbd   : > { %604 = vst.msk [vmem:[#allocation2 + $0x57] sm:$0xff] %vm595_vm5, %v516_v37  ;;  %v364_v15 = vpop.permute.xlu2 %363 }
  0xbe   : > { %603 = vst.msk [vmem:[#allocation2 + $0x4f] sm:$0xfe] %vm593_vm4, %v514_v39  ;;  %10403 = vmatmul.msk.f32.gmra.mxu2 %vm196_vm0, %v1138_v47 }
  0xbf   : > { %446 = vst.msk [vmem:[#allocation2 + $0x88] sm:$0xff] %vm430_vm1, %v364_v15  ;;  %v10526_v15 = vld [vmem:[%s17568_s1 + $0x210] sm:$0xff] }
  0xc0   : > { %480 = vst.msk [vmem:[#allocation2 + $0x89] sm:$0x7f] %vm465_vm3, %v11746_v29 }
  0xc1   : > { %10328 = vmatmul.msk.f32.gmra.mxu0 %vm196_vm0, %v1137_v43  ;;  %10362 = vmatmul.msk.f32.gmra.mxu1 %vm196_vm0, %v1137_v43 }
  0xc4   : > { %v356_v45 = vpop.permute.xlu0 %355  ;;  %v518_v49 = vpop.permute.xlu1 %517  ;;  %v1142_v21 = vld [vmem:[#allocation2 + $0x58] sm:$0xff] }
  0xc5   : > { %442 = vst.msk [vmem:[#allocation2 + $0x68] sm:$0xff] %vm430_vm1, %v356_v45  ;;  %v1141_v63 = vld [vmem:[#allocation2 + $0x50] sm:$0xff]  ;;  %v366_v22 = vpop.permute.xlu2 %365  ;;  %v10439_v45 = vld [vmem:[%s17568_s1 + $0x158] sm:$0xff] }
  0xc6   : > { %475 = vst.msk [vmem:[#allocation2 + $0x61] sm:$0xff] %vm463_vm2, %v11694_v19  ;;  %10404 = vmatmul.msk.f32.gmra.mxu2 %vm196_vm0, %v1139_v55  ;;  %2249 = vmatpush.msrb.mxu0 %v10439_v45  ;;  %v10437_v45 = vld [vmem:[%s17568_s1 + $0x148] sm:$0xff] }
  0xc7   : > { %476 = vst.msk [vmem:[#allocation2 + $0x69] sm:$0x7f] %vm465_vm3, %v11715_v24 }
  0xc8   : > { %606 = vst.msk [vmem:[#allocation2 + $0x67] sm:$0xff] %vm595_vm5, %v520_v46  ;;  %v10527_v46 = vld [vmem:[%s17568_s1 + $0x218] sm:$0xff]  ;;  %2250 = vmatpush.msrb.mxu0 %v10438_v9 }
  0xc9   : > { %605 = vst.msk [vmem:[#allocation2 + $0x5f] sm:$0xfe] %vm593_vm4, %v518_v49  ;;  %10329 = vmatmul.msk.f32.gmra.mxu0 %vm196_vm0, %v1138_v47  ;;  %10363 = vmatmul.msk.f32.gmra.mxu1 %vm196_vm0, %v1138_v47 }
  0xca   : > { %447 = vst.msk [vmem:[#allocation2 + $0x90] sm:$0xff] %vm430_vm1, %v366_v22  ;;  %2504 = vmatpush.msrb.mxu1 %v10527_v46  ;;  %2251 = vmatpush.msrb.mxu0 %v10437_v45 }
  0xcc   : > { %v358_v54 = vpop.permute.xlu0 %357  ;;  %v360_v57 = vpop.permute.xlu1 %359  ;;  %2505 = vmatpush.msrb.mxu1 %v10526_v15 }
  0xcd   : > { %443 = vst.msk [vmem:[#allocation2 + $0x70] sm:$0xff] %vm430_vm1, %v358_v54  ;;  %v532_v32 = vpop.permute.xlu2 %531 }
  0xce   : > { %444 = vst.msk [vmem:[#allocation2 + $0x78] sm:$0xff] %vm430_vm1, %v360_v57  ;;  %10405 = vmatmul.msk.f32.gmra.mxu2 %vm196_vm0, %v1140_v59 }
  0xcf   : > { %477 = vst.msk [vmem:[#allocation2 + $0x71] sm:$0xff] %vm463_vm2, %v11727_v26  ;;  %v1144_v30 = vld [vmem:[#allocation2 + $0x68] sm:$0xff] }
  0xd0   : > { %478 = vst.msk [vmem:[#allocation2 + $0x79] sm:$0x7f] %vm465_vm3, %v11730_v27  ;;  %v1143_v23 = vld [vmem:[#allocation2 + $0x60] sm:$0xff] }
  0xd1   : > { %607 = vst.msk [vmem:[#allocation2 + $0x6f] sm:$0xfe] %vm593_vm4, %v522_v58  ;;  %10330 = vmatmul.msk.f32.gmra.mxu0 %vm196_vm0, %v1139_v55  ;;  %10364 = vmatmul.msk.f32.gmra.mxu1 %vm196_vm0, %v1139_v55 }
  0xd4   : > { %v524_v60 = vpop.permute.xlu0 %523  ;;  %v362_v62 = vpop.permute.xlu1 %361 }
  0xd5   : > { %608 = vst.msk [vmem:[#allocation2 + $0x77] sm:$0xff] %vm595_vm5, %v524_v60  ;;  %v534_v42 = vpop.permute.xlu2 %533 }
  0xd6   : > { %445 = vst.msk [vmem:[#allocation2 + $0x80] sm:$0xff] %vm430_vm1, %v362_v62  ;;  %10406 = vmatmul.msk.f32.gmra.mxu2 %vm196_vm0, %v1141_v63  ;;  %v1041_v62 = vpop.f32.mrf.mxu1 }
  0xd7   : > { %479 = vst.msk [vmem:[#allocation2 + $0x81] sm:$0xff] %vm463_vm2, %v11739_v28 }
  0xd9   : > { %10331 = vmatmul.msk.f32.gmra.mxu0 %vm196_vm0, %v1140_v59  ;;  %10365 = vmatmul.msk.f32.gmra.mxu1 %vm196_vm0, %v1140_v59  ;;  %v12235_v59 = vld [vmem:[%s11598_s5 + $0xf0] sm:$0xff] }
  0xda   : > { %17591 = vst [vmem:[#allocation10_spill] sm:$0xff] %v12235_v59  ;;  %393 = vrot.lane.b32.xlu1 %v12235_v59, %s11516_s7 }
  0xdc   : > { %v526_v17 = vpop.permute.xlu0 %525  ;;  %v528_v20 = vpop.permute.xlu1 %527  ;;  %v1145_v37 = vld [vmem:[#allocation2 + $0x70] sm:$0xff]  ;;  %v1146_v39 = vld [vmem:[#allocation2 + $0x78] sm:$0xff] }
  0xdd   : > { %610 = vst.msk [vmem:[#allocation2 + $0x87] sm:$0xff] %vm595_vm5, %v528_v20  ;;  %v376_v55 = vpop.permute.xlu2 %375 }
  0xde   : > { %609 = vst.msk [vmem:[#allocation2 + $0x7f] sm:$0xfe] %vm593_vm4, %v526_v17  ;;  %10407 = vmatmul.msk.f32.gmra.mxu2 %vm196_vm0, %v1142_v21 }
  0xdf   : > { %452 = vst.msk [vmem:[#allocation2 + $0xb8] sm:$0xff] %vm430_vm1, %v376_v55  ;;  %v10525_v55 = vld [vmem:[%s17568_s1 + $0x208] sm:$0xff] }
  0xe0   : > { %486 = vst.msk [vmem:[#allocation2 + $0xb9] sm:$0x7f] %vm465_vm3, %v12014_v18  ;;  %2506 = vmatpush.msrb.mxu1 %v10525_v55  ;;  %v10436_v55 = vld [vmem:[%s17568_s1 + $0x140] sm:$0xff] }
  0xe1   : > { %10332 = vmatmul.msk.f32.gmra.mxu0 %vm196_vm0, %v1141_v63  ;;  %10366 = vmatmul.msk.f32.gmra.mxu1 %vm196_vm0, %v1141_v63 }
  0xe2   : > { %2252 = vmatpush.msrb.mxu0 %v10436_v55 }
  0xe4   : > { %v368_v31 = vpop.permute.xlu0 %367  ;;  %v530_v36 = vpop.permute.xlu1 %529  ;;  %v1148_v54 = vld [vmem:[#allocation2 + $0x88] sm:$0xff] }
  0xe5   : > { %448 = vst.msk [vmem:[#allocation2 + $0x98] sm:$0xff] %vm430_vm1, %v368_v31  ;;  %v1147_v47 = vld [vmem:[#allocation2 + $0x80] sm:$0xff]  ;;  %v378_v63 = vpop.permute.xlu2 %377 }
  0xe6   : > { %10408 = vmatmul.msk.f32.gmra.mxu2 %vm196_vm0, %v1143_v23  ;;  %481 = vst.msk [vmem:[#allocation2 + $0x91] sm:$0xff] %vm463_vm2, %v11906_v51 }
  0xe7   : > { %482 = vst.msk [vmem:[#allocation2 + $0x99] sm:$0x7f] %vm465_vm3, %v11891_v48 }
  0xe8   : > { %612 = vst.msk [vmem:[#allocation2 + $0x97] sm:$0xff] %vm595_vm5, %v532_v32 }
  0xe9   : > { %10333 = vmatmul.msk.f32.gmra.mxu0 %vm196_vm0, %v1142_v21  ;;  %10367 = vmatmul.msk.f32.gmra.mxu1 %vm196_vm0, %v1142_v21  ;;  %611 = vst.msk [vmem:[#allocation2 + $0x8f] sm:$0xfe] %vm593_vm4, %v530_v36  ;;  %v12265_v36 = vld [vmem:[%s17569_s2] ss:$0 sm:$0xff] }
  0xea   : > { %453 = vst.msk [vmem:[#allocation2 + $0xc0] sm:$0xff] %vm430_vm1, %v378_v63 }
  0xec   : > { %v370_v38 = vpop.permute.xlu0 %369  ;;  %v372_v40 = vpop.permute.xlu1 %371 }
  0xed   : > { %449 = vst.msk [vmem:[#allocation2 + $0xa0] sm:$0xff] %vm430_vm1, %v370_v38  ;;  %v544_v20 = vpop.permute.xlu2 %543 }
  0xee   : > { %10409 = vmatmul.msk.f32.gmra.mxu2 %vm196_vm0, %v1144_v30  ;;  %450 = vst.msk [vmem:[#allocation2 + $0xa8] sm:$0xff] %vm430_vm1, %v372_v40 }
  0xef   : > { %483 = vst.msk [vmem:[#allocation2 + $0xa1] sm:$0xff] %vm463_vm2, %v11943_v61  ;;  %v1150_v13 = vld [vmem:[#allocation2 + $0x98] sm:$0xff] }
  0xf0   : > { %484 = vst.msk [vmem:[#allocation2 + $0xa9] sm:$0x7f] %vm465_vm3, %v11969_v8  ;;  %v1149_v60 = vld [vmem:[#allocation2 + $0x90] sm:$0xff] }
  0xf1   : > { %10334 = vmatmul.msk.f32.gmra.mxu0 %vm196_vm0, %v1143_v23  ;;  %10368 = vmatmul.msk.f32.gmra.mxu1 %vm196_vm0, %v1143_v23  ;;  %613 = vst.msk [vmem:[#allocation2 + $0x9f] sm:$0xfe] %vm593_vm4, %v534_v42 }
  0xf4   : > { %v536_v43 = vpop.permute.xlu0 %535  ;;  %v374_v49 = vpop.permute.xlu1 %373 }
  0xf5   : > { %614 = vst.msk [vmem:[#allocation2 + $0xa7] sm:$0xff] %vm595_vm5, %v536_v43  ;;  %v546_v46 = vpop.permute.xlu2 %545 }
  0xf6   : > { %10410 = vmatmul.msk.f32.gmra.mxu2 %vm196_vm0, %v1145_v37  ;;  %451 = vst.msk [vmem:[#allocation2 + $0xb0] sm:$0xff] %vm430_vm1, %v374_v49 }
  0xf7   : > { %485 = vst.msk [vmem:[#allocation2 + $0xb1] sm:$0xff] %vm463_vm2, %v11994_v14 }
  0xf9   : > { %10335 = vmatmul.msk.f32.gmra.mxu0 %vm196_vm0, %v1144_v30  ;;  %10369 = vmatmul.msk.f32.gmra.mxu1 %vm196_vm0, %v1144_v30 }
  0xfc   : > { %v540_v57 = vpop.permute.xlu1 %539  ;;  %v538_v58 = vpop.permute.xlu0 %537  ;;  %v1151_v25 = vld [vmem:[#allocation2 + $0xa0] sm:$0xff]  ;;  %v1152_v40 = vld [vmem:[#allocation2 + $0xa8] sm:$0xff] }
  0xfd   : > { %616 = vst.msk [vmem:[#allocation2 + $0xb7] sm:$0xff] %vm595_vm5, %v540_v57 }
  0xfe   : > { %10411 = vmatmul.msk.f32.gmra.mxu2 %vm196_vm0, %v1146_v39  ;;  %615 = vst.msk [vmem:[#allocation2 + $0xaf] sm:$0xfe] %vm593_vm4, %v538_v58 }
 0x101   : > { %10336 = vmatmul.msk.f32.gmra.mxu0 %vm196_vm0, %v1145_v37  ;;  %10370 = vmatmul.msk.f32.gmra.mxu1 %vm196_vm0, %v1145_v37 }
 0x104   : > { %v380_v17 = vpop.permute.xlu0 %379  ;;  %v542_v21 = vpop.permute.xlu1 %541 }
 0x105   : > { %454 = vst.msk [vmem:[#allocation2 + $0xc8] sm:$0xff] %vm430_vm1, %v380_v17 }
 0x106   : > { %10412 = vmatmul.msk.f32.gmra.mxu2 %vm196_vm0, %v1147_v47  ;;  %487 = vst.msk [vmem:[#allocation2 + $0xc1] sm:$0xff] %vm463_vm2, %v12051_v35 }
 0x107   : > { %488 = vst.msk [vmem:[#allocation2 + $0xc9] sm:$0x7f] %vm465_vm3, %v12048_v33 }
 0x108   : > { %618 = vst.msk [vmem:[#allocation2 + $0xc7] sm:$0xff] %vm595_vm5, %v544_v20 }
 0x109   : > { %10337 = vmatmul.msk.f32.gmra.mxu0 %vm196_vm0, %v1146_v39  ;;  %10371 = vmatmul.msk.f32.gmra.mxu1 %vm196_vm0, %v1146_v39  ;;  %617 = vst.msk [vmem:[#allocation2 + $0xbf] sm:$0xfe] %vm593_vm4, %v542_v21  ;;  %v12273_v39 = vld [vmem:[%s17570_s3] ss:$0 sm:$0xff] }
 0x10c   : > { %v382_v32 = vpop.permute.xlu0 %381  ;;  %v384_v43 = vpop.permute.xlu1 %383 }
 0x10d   : > { %455 = vst.msk [vmem:[#allocation2 + $0xd0] sm:$0xff] %vm430_vm1, %v382_v32  ;;  %v1154_v32 = vld [vmem:[#allocation2 + $0xb8] sm:$0xff] }
 0x10e   : > { %10413 = vmatmul.msk.f32.gmra.mxu2 %vm196_vm0, %v1148_v54  ;;  %456 = vst.msk [vmem:[#allocation2 + $0xd8] sm:$0xff] %vm430_vm1, %v384_v43 }
 0x10f   : > { %489 = vst.msk [vmem:[#allocation2 + $0xd1] sm:$0xff] %vm463_vm2, %v12078_v41 }
 0x110   : > { %490 = vst.msk [vmem:[#allocation2 + $0xd9] sm:$0x7f] %vm465_vm3, %v12089_v44 }
 0x111   : > { %10338 = vmatmul.msk.f32.gmra.mxu0 %vm196_vm0, %v1147_v47  ;;  %10372 = vmatmul.msk.f32.gmra.mxu1 %vm196_vm0, %v1147_v47  ;;  %619 = vst.msk [vmem:[#allocation2 + $0xcf] sm:$0xfe] %vm593_vm4, %v546_v46 }
 0x116   : > { %10414 = vmatmul.msk.f32.gmra.mxu2 %vm196_vm0, %v1149_v60 }
 0x119   : > { %10339 = vmatmul.msk.f32.gmra.mxu0 %vm196_vm0, %v1148_v54  ;;  %10373 = vmatmul.msk.f32.gmra.mxu1 %vm196_vm0, %v1148_v54  ;;  %v548_v54 = vpop.permute.xlu0 %547 }
 0x11a   : > { %620 = vst.msk [vmem:[#allocation2 + $0xd7] sm:$0xff] %vm595_vm5, %v548_v54 }
 0x11e   : > { %v829_v22 = vpop.f32.mrf.mxu0  ;;  %v1044_v23 = vpop.f32.mrf.mxu1  ;;  %10415 = vmatmul.msk.f32.gmra.mxu2 %vm196_vm0, %v1150_v13 }
 0x11f   : > { %v1039_v34 = vadd.f32 %v1038_v50, %v829_v22 }
 0x121   : > { %10340 = vmatmul.msk.f32.gmra.mxu0 %vm196_vm0, %v1149_v60  ;;  %10374 = vmatmul.msk.f32.gmra.mxu1 %vm196_vm0, %v1149_v60  ;;  %v550_v43 = vpop.permute.xlu0 %549 }
 0x126   : > { %v832_v30 = vpop.f32.mrf.mxu0  ;;  %v12259_v31 = vpop.f32.mrf.mxu1  ;;  %10416 = vmatmul.msk.f32.gmra.mxu2 %vm196_vm0, %v1151_v25 }
 0x127   : > { %v1042_v57 = vadd.f32 %v1041_v62, %v832_v30  ;;  %v1153_v62 = vld [vmem:[#allocation2 + $0xb0] sm:$0xff] }
 0x129   : > { %v1293_v37 = vpop.f32.mrf.mxu2  ;;  %10341 = vmatmul.msk.f32.gmra.mxu0 %vm196_vm0, %v1150_v13  ;;  %10375 = vmatmul.msk.f32.gmra.mxu1 %vm196_vm0, %v1150_v13  ;;  %v386_v13 = vpop.permute.xlu1 %385 }
 0x12a   : > { %v1389_v38 = vadd.f32 %v1293_v37, %v1039_v34  ;;  %457 = vst.msk [vmem:[#allocation2 + $0xe0] sm:$0xff] %vm430_vm1, %v386_v13  ;;  %v388_v37 = vpop.permute.xlu2 %387 }
 0x12b   : > { %458 = vst.msk [vmem:[#allocation2 + $0xe8] sm:$0xff] %vm430_vm1, %v388_v37 }
 0x12c   : > { %v1425_v42 = vmul.f32 %v12265_v36, %v1389_v38  ;;  %491 = vst.msk [vmem:[#allocation2 + $0xe1] sm:$0xff] %vm463_vm2, %v12111_v52 }
 0x12d   : > { %492 = vst.msk [vmem:[#allocation2 + $0xe9] sm:$0x7f] %vm465_vm3, %v12125_v56 }
 0x12e   : > { %v835_v47 = vpop.f32.mrf.mxu0  ;;  %v12280_v49 = vpop.f32.mrf.mxu1  ;;  %10417 = vmatmul.msk.f32.gmra.mxu2 %vm196_vm0, %v1152_v40  ;;  %v1461_v50 = vadd.f32 %v12273_v39, %v1425_v42  ;;  %621 = vst.msk [vmem:[#allocation2 + $0xdf] sm:$0xfe] %vm593_vm4, %v550_v43 }
 0x12f   : > { %v1045_v21 = vadd.f32 %v1044_v23, %v835_v47 }
 0x130   : > { %v12291_v58 = vmax.f32 %v1461_v50, 0.0 }
 0x131   : > { %v1296_v60 = vpop.f32.mrf.mxu2  ;;  %10342 = vmatmul.msk.f32.gmra.mxu0 %vm196_vm0, %v1151_v25  ;;  %10376 = vmatmul.msk.f32.gmra.mxu1 %vm196_vm0, %v1151_v25  ;;  %v552_v23 = vpop.permute.xlu1 %551 }
 0x132   : > { %v1390_v63 = vadd.f32 %v1296_v60, %v1042_v57  ;;  %1718 = vrot.lane.b32.xlu2 %v12291_v58, %s11515_s6  ;;  %1557 = vrot.lane.b32.xlu0 %v12291_v58, %s11516_s7  ;;  %622 = vst.msk [vmem:[#allocation2 + $0xe7] sm:$0xff] %vm595_vm5, %v552_v23  ;;  %v10524_v57 = vld [vmem:[%s17568_s1 + $0x200] sm:$0xff]  ;;  %v390_v60 = vpop.permute.xlu2 %389 }
 0x133   : > { %2507 = vmatpush.msrb.mxu1 %v10524_v57  ;;  %459 = vst.msk [vmem:[#allocation2 + $0xf0] sm:$0xff] %vm430_vm1, %v390_v60 }
 0x134   : > { %v1426_v9 = vmul.f32 %v12265_v36, %v1390_v63 }
 0x136   : > { %v838_v15 = vpop.f32.mrf.mxu0  ;;  %v12303_v17 = vpop.f32.mrf.mxu1  ;;  %10418 = vmatmul.msk.f32.gmra.mxu2 %vm196_vm0, %v1153_v62  ;;  %v1462_v20 = vadd.f32 %v12273_v39, %v1426_v9 }
 0x137   : > { %v1048_v45 = vadd.f32 %v12259_v31, %v838_v15  ;;  %v1155_v31 = vld [vmem:[#allocation2 + $0xc0] sm:$0xff] }
 0x138   : > { %v12307_v22 = vmax.f32 %v1462_v20, 0.0 }
 0x139   : > { %v1299_v25 = vpop.f32.mrf.mxu2  ;;  %10343 = vmatmul.msk.f32.gmra.mxu0 %vm196_vm0, %v1152_v40  ;;  %10377 = vmatmul.msk.f32.gmra.mxu1 %vm196_vm0, %v1152_v40  ;;  %v554_v37 = vpop.permute.xlu1 %553 }
 0x13a   : > { %v1391_v30 = vadd.f32 %v1299_v25, %v1045_v21  ;;  %1720 = vrot.lane.b32.xlu0 %v12307_v22, %s11515_s6  ;;  %1559 = vrot.lane.b32.xlu1 %v12307_v22, %s11516_s7  ;;  %v1156_v25 = vld [vmem:[#allocation2 + $0xc8] sm:$0xff] }
 0x13c   : > { %v1427_v34 = vmul.f32 %v12265_v36, %v1391_v30  ;;  %v392_v30 = vpop.permute.xlu0 %391 }
 0x13d   : > { %460 = vst.msk [vmem:[#allocation2 + $0xf8] sm:$0xff] %vm430_vm1, %v392_v30 }
 0x13e   : > { %v841_v38 = vpop.f32.mrf.mxu0  ;;  %v12317_v42 = vpop.f32.mrf.mxu1  ;;  %10419 = vmatmul.msk.f32.gmra.mxu2 %vm196_vm0, %v1154_v32  ;;  %v1463_v40 = vadd.f32 %v12273_v39, %v1427_v34  ;;  %493 = vst.msk [vmem:[#allocation2 + $0xf1] sm:$0xff] %vm463_vm2, %v12156_v16 }
 0x13f   : > { %v1051_v13 = vadd.f32 %v12280_v49, %v841_v38  ;;  %v556_v34 = vpop.permute.xlu2 %555  ;;  %494 = vst.msk [vmem:[#allocation2 + $0xf9] sm:$0x7f] %vm465_vm3, %v12147_v12 }
 0x140   : > { %v12326_v46 = vmax.f32 %v1463_v40, 0.0  ;;  %624 = vst.msk [vmem:[#allocation2 + $0xf7] sm:$0xff] %vm595_vm5, %v556_v34 }
 0x141   : > { %v1302_v47 = vpop.f32.mrf.mxu2  ;;  %10344 = vmatmul.msk.f32.gmra.mxu0 %vm196_vm0, %v1153_v62  ;;  %10378 = vmatmul.msk.f32.gmra.mxu1 %vm196_vm0, %v1153_v62  ;;  %623 = vst.msk [vmem:[#allocation2 + $0xef] sm:$0xfe] %vm593_vm4, %v554_v37 }
 0x142   : > { %v1392_v50 = vadd.f32 %v1302_v47, %v1048_v45  ;;  %557 = vrot.lane.b32.xlu0 %v12235_v59, %s11515_s6  ;;  %559 = vrot.lane.b32.xlu1 %v12220_v53, %s11515_s6 }
 0x143   : > { %1561 = vrot.lane.b32.xlu2 %v12326_v46, %s11516_s7 }
 0x144   : > { %v1428_v54 = vmul.f32 %v12265_v36, %v1392_v50  ;;  %v1157_v50 = vld [vmem:[#allocation2 + $0xd0] sm:$0xff] }
 0x146   : > { %v844_v63 = vpop.f32.mrf.mxu0  ;;  %v1059_v62 = vpop.f32.mrf.mxu1  ;;  %10420 = vmatmul.msk.f32.gmra.mxu2 %vm196_vm0, %v1155_v31  ;;  %v1464_v9 = vadd.f32 %v12273_v39, %v1428_v54 }
 0x147   : > { %v1054_v40 = vadd.f32 %v12303_v17, %v844_v63 }
 0x148   : > { %v12349_v15 = vmax.f32 %v1464_v9, 0.0 }
 0x149   : > { %v1305_v20 = vpop.f32.mrf.mxu2  ;;  %10345 = vmatmul.msk.f32.gmra.mxu0 %vm196_vm0, %v1154_v32  ;;  %10379 = vmatmul.msk.f32.gmra.mxu1 %vm196_vm0, %v1154_v32 }
 0x14a   : > { %v1393_v21 = vadd.f32 %v1305_v20, %v1051_v13  ;;  %1722 = vrot.lane.b32.xlu1 %v12326_v46, %s11515_s6  ;;  %1563 = vrot.lane.b32.xlu0 %v12349_v15, %s11516_s7  ;;  %v1158_v20 = vld [vmem:[#allocation2 + $0xd8] sm:$0xff] }
 0x14b   : > { %1724 = vrot.lane.b32.xlu2 %v12349_v15, %s11515_s6 }
 0x14c   : > { %v1429_v49 = vmul.f32 %v12265_v36, %v1393_v21 }
 0x14e   : > { %v847_v23 = vpop.f32.mrf.mxu0  ;;  %v1062_v32 = vpop.f32.mrf.mxu1  ;;  %10421 = vmatmul.msk.f32.gmra.mxu2 %vm196_vm0, %v1156_v25  ;;  %v1465_v38 = vadd.f32 %v12273_v39, %v1429_v49 }
 0x14f   : > { %v1057_v60 = vadd.f32 %v12317_v42, %v847_v23  ;;  %v10523_v42 = vld [vmem:[%s17568_s1 + $0x1f8] sm:$0xff] }
 0x150   : > { %v12368_v43 = vmax.f32 %v1465_v38, 0.0  ;;  %2508 = vmatpush.msrb.mxu1 %v10523_v42 }
 0x151   : > { %v1308_v45 = vpop.f32.mrf.mxu2  ;;  %10346 = vmatmul.msk.f32.gmra.mxu0 %vm196_vm0, %v1155_v31  ;;  %10380 = vmatmul.msk.f32.gmra.mxu1 %vm196_vm0, %v1155_v31  ;;  %v10435_v31 = vld [vmem:[%s17568_s1 + $0x138] sm:$0xff] }
 0x152   : > { %v1394_v47 = vadd.f32 %v1308_v45, %v1054_v40  ;;  %1565 = vrot.lane.b32.xlu0 %v12368_v43, %s11516_s7  ;;  %2253 = vmatpush.msrb.mxu0 %v10435_v31  ;;  %v1159_v40 = vld [vmem:[#allocation2 + $0xe0] sm:$0xff] }
 0x153   : > { %1726 = vrot.lane.b32.xlu2 %v12368_v43, %s11515_s6 }
 0x154   : > { %v1430_v17 = vmul.f32 %v12265_v36, %v1394_v47  ;;  %v396_v47 = vpop.permute.xlu2 %395 }
 0x155   : > { %462 = vst.msk [vmem:[#allocation2 + $0x108] sm:$0xff] %vm430_vm1, %v396_v47 }
 0x156   : > { %v850_v54 = vpop.f32.mrf.mxu0  ;;  %v1065_v55 = vpop.f32.mrf.mxu1  ;;  %10422 = vmatmul.msk.f32.gmra.mxu2 %vm196_vm0, %v1157_v50  ;;  %v1466_v57 = vadd.f32 %v12273_v39, %v1430_v17  ;;  %496 = vst.msk [vmem:[#allocation2 + $0x109] sm:$0x7f] %vm465_vm3, %v12220_v53 }
 0x157   : > { %v1060_v34 = vadd.f32 %v1059_v62, %v850_v54 }
 0x158   : > { %v12385_v63 = vmax.f32 %v1466_v57, 0.0 }
 0x159   : > { %v1311_v9 = vpop.f32.mrf.mxu2  ;;  %10347 = vmatmul.msk.f32.gmra.mxu0 %vm196_vm0, %v1156_v25  ;;  %10381 = vmatmul.msk.f32.gmra.mxu1 %vm196_vm0, %v1156_v25 }
 0x15a   : > { %v1395_v13 = vadd.f32 %v1311_v9, %v1057_v60  ;;  %1728 = vrot.lane.b32.xlu0 %v12385_v63, %s11515_s6  ;;  %1567 = vrot.lane.b32.xlu1 %v12385_v63, %s11516_s7  ;;  %v1160_v9 = vld [vmem:[#allocation2 + $0xe8] sm:$0xff] }
 0x15c   : > { %v1431_v21 = vmul.f32 %v12265_v36, %v1395_v13 }
 0x15e   : > { %v853_v49 = vpop.f32.mrf.mxu0  ;;  %10423 = vmatmul.msk.f32.gmra.mxu2 %vm196_vm0, %v1158_v20  ;;  %v1467_v25 = vadd.f32 %v12273_v39, %v1431_v21  ;;  %v1068_v30 = vpop.f32.mrf.mxu1  ;;  %v10522_v21 = vld [vmem:[%s17568_s1 + $0x1f0] sm:$0xff] }
 0x15f   : > { %2509 = vmatpush.msrb.mxu1 %v10522_v21 }
 0x160   : > { %v12399_v37 = vmax.f32 %v1467_v25, 0.0 }
 0x161   : > { %v1314_v23 = vpop.f32.mrf.mxu2  ;;  %10348 = vmatmul.msk.f32.gmra.mxu0 %vm196_vm0, %v1157_v50  ;;  %10382 = vmatmul.msk.f32.gmra.mxu1 %vm196_vm0, %v1157_v50  ;;  %v1063_v50 = vadd.f32 %v1062_v32, %v853_v49  ;;  %v10434_v32 = vld [vmem:[%s17568_s1 + $0x130] sm:$0xff] }
 0x162   : > { %v1396_v38 = vadd.f32 %v1314_v23, %v1060_v34  ;;  %1730 = vrot.lane.b32.xlu0 %v12399_v37, %s11515_s6  ;;  %1569 = vrot.lane.b32.xlu1 %v12399_v37, %s11516_s7 }
 0x163   : > { %2254 = vmatpush.msrb.mxu0 %v10434_v32 }
 0x164   : > { %v1432_v45 = vmul.f32 %v12265_v36, %v1396_v38 }
 0x166   : > { %v856_v17 = vpop.f32.mrf.mxu0  ;;  %10424 = vmatmul.msk.f32.gmra.mxu2 %vm196_vm0, %v1159_v40  ;;  %v1468_v62 = vadd.f32 %v12273_v39, %v1432_v45  ;;  %v1071_v54 = vpop.f32.mrf.mxu1  ;;  %v1161_v45 = vld [vmem:[#allocation2 + $0xf0] sm:$0xff] }
 0x167   : > { %v1066_v25 = vadd.f32 %v1065_v55, %v856_v17 }
 0x168   : > { %v12413_v57 = vmax.f32 %v1468_v62, 0.0 }
 0x169   : > { %v1317_v31 = vpop.f32.mrf.mxu2  ;;  %10349 = vmatmul.msk.f32.gmra.mxu0 %vm196_vm0, %v1158_v20  ;;  %10383 = vmatmul.msk.f32.gmra.mxu1 %vm196_vm0, %v1158_v20 }
 0x16a   : > { %v1397_v60 = vadd.f32 %v1317_v31, %v1063_v50  ;;  %1732 = vrot.lane.b32.xlu1 %v12413_v57, %s11515_s6  ;;  %1571 = vrot.lane.b32.xlu2 %v12413_v57, %s11516_s7 }
 0x16c   : > { %v1433_v13 = vmul.f32 %v12265_v36, %v1397_v60 }
 0x16e   : > { %10425 = vmatmul.msk.f32.gmra.mxu2 %vm196_vm0, %v1160_v9  ;;  %v1469_v20 = vadd.f32 %v12273_v39, %v1433_v13  ;;  %v859_v42 = vpop.f32.mrf.mxu0  ;;  %v1074_v49 = vpop.f32.mrf.mxu1  ;;  %v1162_v13 = vld [vmem:[#allocation2 + $0xf8] sm:$0xff] }
 0x16f   : > { %v1069_v55 = vadd.f32 %v1068_v30, %v859_v42 }
 0x170   : > { %v12430_v34 = vmax.f32 %v1469_v20, 0.0 }
 0x171   : > { %v1320_v23 = vpop.f32.mrf.mxu2  ;;  %10350 = vmatmul.msk.f32.gmra.mxu0 %vm196_vm0, %v1159_v40  ;;  %10384 = vmatmul.msk.f32.gmra.mxu1 %vm196_vm0, %v1159_v40 }
 0x172   : > { %v1398_v38 = vadd.f32 %v1320_v23, %v1066_v25  ;;  %1734 = vrot.lane.b32.xlu1 %v12430_v34, %s11515_s6  ;;  %1573 = vrot.lane.b32.xlu2 %v12430_v34, %s11516_s7 }
 0x174   : > { %v1434_v47 = vmul.f32 %v12265_v36, %v1398_v38 }
 0x176   : > { %10426 = vmatmul.msk.f32.gmra.mxu2 %vm196_vm0, %v1161_v45  ;;  %v1470_v17 = vadd.f32 %v12273_v39, %v1434_v47  ;;  %v862_v62 = vpop.f32.mrf.mxu0  ;;  %v1077_v50 = vpop.f32.mrf.mxu1 }
 0x177   : > { %v1072_v32 = vadd.f32 %v1071_v54, %v862_v62  ;;  %v10454_v54 = vld [vmem:[%s17568_s1 + $0x1d0] sm:$0xff]  ;;  %v10521_v62 = vld [vmem:[%s17568_s1 + $0x1e8] sm:$0xff] }
 0x178   : > { %v12441_v31 = vmax.f32 %v1470_v17, 0.0  ;;  %v394_v17 = vpop.permute.xlu1 %393  ;;  %2510 = vmatpush.msrb.mxu1 %v10521_v62 }
 0x179   : > { %v1323_v40 = vpop.f32.mrf.mxu2  ;;  %10351 = vmatmul.msk.f32.gmra.mxu0 %vm196_vm0, %v1160_v9  ;;  %10385 = vmatmul.msk.f32.gmra.mxu1 %vm196_vm0, %v1160_v9  ;;  %v10455_v9 = vld [vmem:[%s17568_s1 + $0x1d8] sm:$0xff]  ;;  %461 = vst.msk [vmem:[#allocation2 + $0x100] sm:$0xff] %vm430_vm1, %v394_v17 }
 0x17a   : > { %v1399_v60 = vadd.f32 %v1323_v40, %v1069_v55  ;;  %1736 = vrot.lane.b32.xlu2 %v12441_v31, %s11515_s6  ;;  %1575 = vrot.lane.b32.xlu0 %v12441_v31, %s11516_s7  ;;  %v10433_v55 = vld [vmem:[%s17568_s1 + $0x128] sm:$0xff]  ;;  %v10452_v40 = vld [vmem:[%s17568_s1 + $0x1c0] sm:$0xff]  ;;  %495 = vst.msk [vmem:[#allocation2 + $0x101] sm:$0xff] %vm463_vm2, %v12235_v59 }
 0x17b   : > { %2036 = vmatpush.msra.mxu3 %v10455_v9  ;;  %2255 = vmatpush.msrb.mxu0 %v10433_v55  ;;  %v10451_v9 = vld [vmem:[%s17568_s1 + $0x1b8] sm:$0xff] }
 0x17c   : > { %v1435_v30 = vmul.f32 %v12265_v36, %v1399_v60 }
 0x17d   : > { %2037 = vmatpush.msra.mxu3 %v10454_v54 }
 0x17e   : > { %10427 = vmatmul.msk.f32.gmra.mxu2 %vm196_vm0, %v1162_v13  ;;  %v1471_v21 = vadd.f32 %v12273_v39, %v1435_v30  ;;  %v865_v20 = vpop.f32.mrf.mxu0  ;;  %v1080_v42 = vpop.f32.mrf.mxu1 }
 0x17f   : > { %v1075_v60 = vadd.f32 %v1074_v49, %v865_v20  ;;  %v10450_v20 = vld [vmem:[%s17568_s1 + $0x1b0] sm:$0xff] }
 0x180   : > { %v12455_v25 = vmax.f32 %v1471_v21, 0.0 }
 0x181   : > { %v1326_v23 = vpop.f32.mrf.mxu2  ;;  %10352 = vmatmul.msk.f32.gmra.mxu0 %vm196_vm0, %v1161_v45  ;;  %10386 = vmatmul.msk.f32.gmra.mxu1 %vm196_vm0, %v1161_v45  ;;  %v10453_v45 = vld [vmem:[%s17568_s1 + $0x1c8] sm:$0xff] }
 0x182   : > { %v1400_v38 = vadd.f32 %v1326_v23, %v1072_v32  ;;  %1577 = vrot.lane.b32.xlu0 %v12455_v25, %s11516_s7  ;;  %1738 = vrot.lane.b32.xlu2 %v12455_v25, %s11515_s6 }
 0x183   : > { %2038 = vmatpush.msra.mxu3 %v10453_v45 }
 0x184   : > { %v1436_v47 = vmul.f32 %v12265_v36, %v1400_v38 }
 0x185   : > { %2039 = vmatpush.msra.mxu3 %v10452_v40  ;;  %v10448_v40 = vld [vmem:[%s17568_s1 + $0x1a0] sm:$0xff] }
 0x186   : > { %v1472_v30 = vadd.f32 %v12273_v39, %v1436_v47  ;;  %v868_v32 = vpop.f32.mrf.mxu0  ;;  %v1083_v21 = vpop.f32.mrf.mxu1  ;;  %v10449_v47 = vld [vmem:[%s17568_s1 + $0x1a8] sm:$0xff] }
 0x187   : > { %2040 = vmatpush.msra.mxu3 %v10451_v9  ;;  %v1078_v55 = vadd.f32 %v1077_v50, %v868_v32  ;;  %v10446_v50 = vld [vmem:[%s17568_s1 + $0x190] sm:$0xff] }
 0x188   : > { %v12486_v23 = vmax.f32 %v1472_v30, 0.0  ;;  %v10447_v30 = vld [vmem:[%s17568_s1 + $0x198] sm:$0xff] }
 0x189   : > { %v1329_v38 = vpop.f32.mrf.mxu2  ;;  %10353 = vmatmul.msk.f32.gmra.mxu0 %vm196_vm0, %v1162_v13  ;;  %2041 = vmatpush.msra.mxu3 %v10450_v20 }
 0x18a   : > { %v1401_v49 = vadd.f32 %v1329_v38, %v1075_v60  ;;  %1579 = vrot.lane.b32.xlu1 %v12486_v23, %s11516_s7  ;;  %1740 = vrot.lane.b32.xlu0 %v12486_v23, %s11515_s6  ;;  %v10445_v38 = vld [vmem:[%s17568_s1 + $0x188] sm:$0xff] }
 0x18b   : > { %10387 = vmatmul.msk.f32.gmra.mxu1 %vm196_vm0, %v1162_v13  ;;  %2042 = vmatpush.msra.mxu3 %v10449_v47 }
 0x18c   : > { %v1437_v54 = vmul.f32 %v12265_v36, %v1401_v49  ;;  %v1719_v49 = vpop.permute.xlu2 %1718 }
 0x18d   : > { %2043 = vmatpush.msra.mxu3 %v10448_v40 }
 0x18e   : > { %v1473_v45 = vadd.f32 %v12273_v39, %v1437_v54  ;;  %v871_v17 = vpop.f32.mrf.mxu0  ;;  %v1086_v62 = vpop.f32.mrf.mxu1 }
 0x18f   : > { %2044 = vmatpush.msra.mxu3 %v10447_v30  ;;  %v1081_v20 = vadd.f32 %v1080_v42, %v871_v17  ;;  %v10432_v30 = vld [vmem:[%s17568_s1 + $0x120] sm:$0xff] }
 0x190   : > { %v12505_v60 = vmax.f32 %v1473_v45, 0.0  ;;  %v10444_v45 = vld [vmem:[%s17568_s1 + $0x180] sm:$0xff]  ;;  %2256 = vmatpush.msrb.mxu0 %v10432_v30 }
 0x191   : > { %v1332_v13 = vpop.f32.mrf.mxu2  ;;  %2045 = vmatpush.msra.mxu3 %v10446_v50  ;;  %v10520_v17 = vld [vmem:[%s17568_s1 + $0x1e0] sm:$0xff] }
 0x192   : > { %v1402_v9 = vadd.f32 %v1332_v13, %v1078_v55  ;;  %1581 = vrot.lane.b32.xlu1 %v12505_v60, %s11516_s7  ;;  %1742 = vrot.lane.b32.xlu0 %v12505_v60, %s11515_s6 }
 0x193   : > { %2046 = vmatpush.msra.mxu3 %v10445_v38  ;;  %2511 = vmatpush.msrb.mxu1 %v10520_v17 }
 0x194   : > { %v1438_v32 = vmul.f32 %v12265_v36, %v1402_v9 }
 0x195   : > { %2047 = vmatpush.msra.mxu3 %v10444_v45 }
 0x196   : > { %v1474_v54 = vadd.f32 %v12273_v39, %v1438_v32  ;;  %v874_v47 = vpop.f32.mrf.mxu0  ;;  %v1089_v55 = vpop.f32.mrf.mxu1 }
 0x197   : > { %v1084_v32 = vadd.f32 %v1083_v21, %v874_v47 }
 0x198   : > { %v12525_v40 = vmax.f32 %v1474_v54, 0.0 }
 0x199   : > { %v1335_v13 = vpop.f32.mrf.mxu2 }
 0x19a   : > { %v1403_v9 = vadd.f32 %v1335_v13, %v1081_v20  ;;  %1744 = vrot.lane.b32.xlu1 %v12525_v40, %s11515_s6  ;;  %1583 = vrot.lane.b32.xlu2 %v12525_v40, %s11516_s7 }
 0x19c   : > { %v1439_v42 = vmul.f32 %v12265_v36, %v1403_v9 }
 0x19d   : > { %v1562_v50 = vpop.permute.xlu2 %1561 }
 0x19e   : > { %1656 = vst.msk [vmem:[#allocation3 + $0x20] sm:$0xff] %vm430_vm1, %v1562_v50  ;;  %v1475_v38 = vadd.f32 %v12273_v39, %v1439_v42  ;;  %v877_v20 = vpop.f32.mrf.mxu0  ;;  %v1092_v54 = vpop.f32.mrf.mxu1 }
 0x19f   : > { %v1087_v21 = vadd.f32 %v1086_v62, %v877_v20 }
 0x1a0   : > { %v12540_v45 = vmax.f32 %v1475_v38, 0.0 }
 0x1a1   : > { %v1338_v13 = vpop.f32.mrf.mxu2 }
 0x1a2   : > { %v1404_v53 = vadd.f32 %v1338_v13, %v1084_v32  ;;  %1585 = vrot.lane.b32.xlu2 %v12540_v45, %s11516_s7  ;;  %1746 = vrot.lane.b32.xlu1 %v12540_v45, %s11515_s6 }
 0x1a4   : > { %v1440_v30 = vmul.f32 %v12265_v36, %v1404_v53  ;;  %v1558_v9 = vpop.permute.xlu0 %1557 }
 0x1a5   : > { %1654 = vst.msk [vmem:[#allocation3 + $0x10] sm:$0xff] %vm430_vm1, %v1558_v9 }
 0x1a6   : > { %v1476_v47 = vadd.f32 %v12273_v39, %v1440_v30  ;;  %v880_v42 = vpop.f32.mrf.mxu0  ;;  %v1095_v38 = vpop.f32.mrf.mxu1 }
 0x1a7   : > { %v1090_v62 = vadd.f32 %v1089_v55, %v880_v42 }
 0x1a8   : > { %v12549_v17 = vmax.f32 %v1476_v47, 0.0  ;;  %v1725_v47 = vpop.permute.xlu2 %1724 }
 0x1a9   : > { %v1341_v50 = vpop.f32.mrf.mxu2 }
 0x1aa   : > { %v1405_v32 = vadd.f32 %v1341_v50, %v1087_v21  ;;  %1587 = vrot.lane.b32.xlu0 %v12549_v17, %s11516_s7  ;;  %1748 = vrot.lane.b32.xlu2 %v12549_v17, %s11515_s6 }
 0x1ac   : > { %v1441_v53 = vmul.f32 %v12265_v36, %v1405_v32  ;;  %v1560_v13 = vpop.permute.xlu1 %1559  ;;  %v1721_v59 = vpop.permute.xlu0 %1720 }
 0x1ad   : > { %1655 = vst.msk [vmem:[#allocation3 + $0x18] sm:$0xff] %vm430_vm1, %v1560_v13 }
 0x1ae   : > { %1686 = vst.msk [vmem:[#allocation3 + $0x11] sm:$0xff] %vm463_vm2, %v12291_v58  ;;  %v1477_v20 = vadd.f32 %v12273_v39, %v1441_v53  ;;  %v883_v30 = vpop.f32.mrf.mxu0  ;;  %v1098_v58 = vpop.f32.mrf.mxu1 }
 0x1af   : > { %1687 = vst.msk [vmem:[#allocation3 + $0x19] sm:$0x7f] %vm465_vm3, %v12307_v22 }
 0x1b0   : > { %1814 = vst.msk [vmem:[#allocation3 + $0xf] sm:$0xfe] %vm593_vm4, %v1719_v49  ;;  %v12563_v9 = vmax.f32 %v1477_v20, 0.0  ;;  %v1093_v49 = vadd.f32 %v1092_v54, %v883_v30 }
 0x1b1   : > { %1815 = vst.msk [vmem:[#allocation3 + $0x17] sm:$0xff] %vm595_vm5, %v1721_v59  ;;  %v1344_v21 = vpop.f32.mrf.mxu2 }
 0x1b2   : > { %v1406_v50 = vadd.f32 %v1344_v21, %v1090_v62  ;;  %1589 = vrot.lane.b32.xlu0 %v12563_v9, %s11516_s7  ;;  %1750 = vrot.lane.b32.xlu2 %v12563_v9, %s11515_s6  ;;  %v1727_v21 = vpop.permute.xlu2 %1726 }
 0x1b4   : > { %v1442_v55 = vmul.f32 %v12265_v36, %v1406_v50  ;;  %v560_v42 = vpop.permute.xlu1 %559  ;;  %v558_v22 = vpop.permute.xlu0 %557 }
 0x1b5   : > { %626 = vst.msk [vmem:[#allocation2 + $0x107] sm:$0xff] %vm595_vm5, %v560_v42 }
 0x1b6   : > { %625 = vst.msk [vmem:[#allocation2 + $0xff] sm:$0xfe] %vm593_vm4, %v558_v22  ;;  %v1478_v59 = vadd.f32 %v12273_v39, %v1442_v55  ;;  %v886_v32 = vpop.f32.mrf.mxu0 }
 0x1b7   : > { %v1096_v55 = vadd.f32 %v1095_v38, %v886_v32 }
 0x1b8   : > { %v12574_v53 = vld [vmem:[#allocation3 + $0x10] sm:$0xff]  ;;  %v12576_v13 = vmax.f32 %v1478_v59, 0.0 }
 0x1b9   : > { %10456 = vmatmul.msk.f32.vlgmr.msra.gmra.mxu3 %vm196_vm0, %v12574_v53  ;;  %v1347_v62 = vpop.f32.mrf.mxu2 }
 0x1ba   : > { %v1407_v20 = vadd.f32 %v1347_v62, %v1093_v49  ;;  %1591 = vrot.lane.b32.xlu1 %v12576_v13, %s11516_s7  ;;  %1752 = vrot.lane.b32.xlu0 %v12576_v13, %s11515_s6  ;;  %v1101_v49 = vpop.f32.mrf.mxu1  ;;  %v12594_v62 = vld [vmem:[#allocation3 + $0x18] sm:$0xff] }
 0x1bc   : > { %v1443_v54 = vmul.f32 %v12265_v36, %v1407_v20  ;;  %v1564_v30 = vpop.permute.xlu0 %1563  ;;  %v1723_v59 = vpop.permute.xlu1 %1722 }
 0x1bd   : > { %1657 = vst.msk [vmem:[#allocation3 + $0x28] sm:$0xff] %vm430_vm1, %v1564_v30  ;;  %v701_v50 = vld [vmem:[#allocation2 + $0x100] sm:$0xff]  ;;  %v702_v30 = vld [vmem:[#allocation2 + $0x108] sm:$0xff] }
 0x1be   : > { %1688 = vst.msk [vmem:[#allocation3 + $0x21] sm:$0xff] %vm463_vm2, %v12326_v46  ;;  %10354 = vmatmul.msk.f32.gmra.mxu0 %vm196_vm0, %v701_v50  ;;  %10428 = vmatmul.msk.f32.gmra.mxu2 %vm196_vm0, %v701_v50  ;;  %v1479_v42 = vadd.f32 %v12273_v39, %v1443_v54  ;;  %v889_v22 = vpop.f32.mrf.mxu0 }
 0x1bf   : > { %1689 = vst.msk [vmem:[#allocation3 + $0x29] sm:$0x7f] %vm465_vm3, %v12349_v15 }
 0x1c0   : > { %1816 = vst.msk [vmem:[#allocation3 + $0x1f] sm:$0xfe] %vm593_vm4, %v1723_v59  ;;  %v12596_v20 = vmax.f32 %v1479_v42, 0.0 }
 0x1c1   : > { %1817 = vst.msk [vmem:[#allocation3 + $0x27] sm:$0xff] %vm595_vm5, %v1725_v47  ;;  %10457 = vmatmul.msk.f32.gmra.mxu3 %vm196_vm0, %v12594_v62  ;;  %v1350_v46 = vpop.f32.mrf.mxu2  ;;  %v1099_v47 = vadd.f32 %v1098_v58, %v889_v22  ;;  %v1165_v58 = vld [vmem:[#allocation2 + $0x110] sm:$0xff]  ;;  %v1846_v22 = vld [vmem:[#allocation3] sm:$0xff] }
 0x1c2   : > { %v1408_v38 = vadd.f32 %v1350_v46, %v1096_v55  ;;  %1593 = vrot.lane.b32.xlu1 %v12596_v20, %s11516_s7  ;;  %1754 = vrot.lane.b32.xlu0 %v12596_v20, %s11515_s6  ;;  %v1104_v46 = vpop.f32.mrf.mxu1 }
 0x1c4   : > { %v1444_v15 = vmul.f32 %v12265_v36, %v1408_v38  ;;  %v1572_v32 = vpop.permute.xlu2 %1571  ;;  %v1566_v54 = vpop.permute.xlu0 %1565 }
 0x1c5   : > { %1661 = vst.msk [vmem:[#allocation3 + $0x48] sm:$0xff] %vm430_vm1, %v1572_v32 }
 0x1c6   : > { %1693 = vst.msk [vmem:[#allocation3 + $0x49] sm:$0x7f] %vm465_vm3, %v12413_v57  ;;  %10355 = vmatmul.msk.f32.gmra.mxu0 %vm196_vm0, %v702_v30  ;;  %10429 = vmatmul.msk.f32.gmra.mxu2 %vm196_vm0, %v702_v30  ;;  %v1480_v50 = vadd.f32 %v12273_v39, %v1444_v15  ;;  %v892_v55 = vpop.f32.mrf.mxu0 }
 0x1c7   : > { %1658 = vst.msk [vmem:[#allocation3 + $0x30] sm:$0xff] %vm430_vm1, %v1566_v54 }
 0x1c8   : > { %v12613_v42 = vld [vmem:[#allocation3 + $0x20] sm:$0xff]  ;;  %v12615_v59 = vmax.f32 %v1480_v50, 0.0 }
 0x1c9   : > { %10458 = vmatmul.msk.f32.gmra.mxu3 %vm196_vm0, %v12613_v42  ;;  %10532 = vmatmul.msk.f32.vlgmr.msrb.gmra.mxu1 %vm196_vm0, %v12613_v42  ;;  %v1353_v57 = vpop.f32.mrf.mxu2 }
 0x1ca   : > { %v1409_v38 = vadd.f32 %v1353_v57, %v1099_v47  ;;  %1756 = vrot.lane.b32.xlu1 %v12615_v59, %s11515_s6  ;;  %1595 = vrot.lane.b32.xlu2 %v12615_v59, %s11516_s7  ;;  %v1102_v47 = vadd.f32 %v1101_v49, %v892_v55  ;;  %v1847_v55 = vld [vmem:[#allocation3 + $0x8] sm:$0xff] }
 0x1cc   : > { %v1445_v15 = vmul.f32 %v12265_v36, %v1409_v38  ;;  %v1568_v32 = vpop.permute.xlu1 %1567  ;;  %v1729_v54 = vpop.permute.xlu0 %1728  ;;  %v12635_v38 = vld [vmem:[#allocation3 + $0x28] sm:$0xff] }
 0x1cd   : > { %1659 = vst.msk [vmem:[#allocation3 + $0x38] sm:$0xff] %vm430_vm1, %v1568_v32  ;;  %v1574_v30 = vpop.permute.xlu2 %1573 }
 0x1ce   : > { %1690 = vst.msk [vmem:[#allocation3 + $0x31] sm:$0xff] %vm463_vm2, %v12368_v43  ;;  %10430 = vmatmul.msk.f32.gmra.mxu2 %vm196_vm0, %v1165_v58  ;;  %10488 = vmatmul.msk.f32.vlgmr.msrb.gmra.mxu0 %vm196_vm0, %v1846_v22  ;;  %v895_v50 = vpop.f32.mrf.mxu0  ;;  %v1481_v57 = vadd.f32 %v12273_v39, %v1445_v15 }
 0x1cf   : > { %1691 = vst.msk [vmem:[#allocation3 + $0x39] sm:$0x7f] %vm465_vm3, %v12385_v63  ;;  %v1107_v63 = vpop.f32.mrf.mxu1 }
 0x1d0   : > { %1818 = vst.msk [vmem:[#allocation3 + $0x2f] sm:$0xfe] %vm593_vm4, %v1727_v21  ;;  %v12637_v32 = vmax.f32 %v1481_v57, 0.0  ;;  %v1166_v21 = vld [vmem:[#allocation2 + $0x118] sm:$0xff] }
 0x1d1   : > { %1662 = vst.msk [vmem:[#allocation3 + $0x50] sm:$0xff] %vm430_vm1, %v1574_v30  ;;  %10459 = vmatmul.msk.f32.gmra.mxu3 %vm196_vm0, %v12635_v38  ;;  %10533 = vmatmul.msk.f32.gmra.mxu1 %vm196_vm0, %v12635_v38  ;;  %v1356_v43 = vpop.f32.mrf.mxu2 }
 0x1d2   : > { %1819 = vst.msk [vmem:[#allocation3 + $0x37] sm:$0xff] %vm595_vm5, %v1729_v54  ;;  %v1410_v49 = vadd.f32 %v1356_v43, %v1102_v47  ;;  %1758 = vrot.lane.b32.xlu1 %v12637_v32, %s11515_s6  ;;  %1597 = vrot.lane.b32.xlu2 %v12637_v32, %s11516_s7  ;;  %v1105_v54 = vadd.f32 %v1104_v46, %v895_v50 }
 0x1d4   : > { %v1446_v58 = vmul.f32 %v12265_v36, %v1410_v49  ;;  %v1570_v22 = vpop.permute.xlu1 %1569  ;;  %v1731_v15 = vpop.permute.xlu0 %1730 }
 0x1d5   : > { %1660 = vst.msk [vmem:[#allocation3 + $0x40] sm:$0xff] %vm430_vm1, %v1570_v22 }
 0x1d6   : > { %1692 = vst.msk [vmem:[#allocation3 + $0x41] sm:$0xff] %vm463_vm2, %v12399_v37  ;;  %10431 = vmatmul.msk.f32.gmra.mxu2 %vm196_vm0, %v1166_v21  ;;  %10489 = vmatmul.msk.f32.gmra.mxu0 %vm196_vm0, %v1847_v55  ;;  %v1482_v30 = vadd.f32 %v12273_v39, %v1446_v58  ;;  %v898_v47 = vpop.f32.mrf.mxu0 }
 0x1d7   : > { %1820 = vst.msk [vmem:[#allocation3 + $0x3f] sm:$0xfe] %vm593_vm4, %v1731_v15  ;;  %v1110_v21 = vpop.f32.mrf.mxu1  ;;  %v1108_v55 = vadd.f32 %v1107_v63, %v898_v47 }
 0x1d8   : > { %v12657_v57 = vmax.f32 %v1482_v30, 0.0 }
 0x1d9   : > { %v12659_v43 = vld [vmem:[#allocation3 + $0x30] sm:$0xff]  ;;  %v1359_v49 = vpop.f32.mrf.mxu2 }
 0x1da   : > { %10460 = vmatmul.msk.f32.gmra.mxu3 %vm196_vm0, %v12659_v43  ;;  %10534 = vmatmul.msk.f32.gmra.mxu1 %vm196_vm0, %v12659_v43  ;;  %v1411_v37 = vadd.f32 %v1359_v49, %v1105_v54  ;;  %v12676_v54 = vld [vmem:[#allocation3 + $0x38] sm:$0xff] }
 0x1db   : > { %1599 = vrot.lane.b32.xlu0 %v12657_v57, %s11516_s7  ;;  %1760 = vrot.lane.b32.xlu2 %v12657_v57, %s11515_s6 }
 0x1dc   : > { %v1447_v46 = vmul.f32 %v12265_v36, %v1411_v37  ;;  %v1733_v50 = vpop.permute.xlu1 %1732 }
 0x1dd   : > { %1821 = vst.msk [vmem:[#allocation3 + $0x47] sm:$0xff] %vm595_vm5, %v1733_v50 }
 0x1de   : > { %10490 = vmatmul.msk.f32.gmra.mxu0 %vm196_vm0, %v12574_v53  ;;  %v1483_v58 = vadd.f32 %v12273_v39, %v1447_v46  ;;  %v901_v22 = vpop.f32.mrf.mxu0  ;;  %v1737_v53 = vpop.permute.xlu2 %1736 }
 0x1df   : > { %v1111_v47 = vadd.f32 %v1110_v21, %v901_v22  ;;  %v1113_v46 = vpop.f32.mrf.mxu1  ;;  %v10577_v21 = vld [vmem:[%s17568_s1 + $0x298] sm:$0xff] }
 0x1e0   : > { %v12674_v15 = vmax.f32 %v1483_v58, 0.0  ;;  %3498 = vmatpush.msrb.mxu3 %v10577_v21 }
 0x1e1   : > { %v1362_v30 = vpop.f32.mrf.mxu2 }
 0x1e2   : > { %10461 = vmatmul.msk.f32.gmra.mxu3 %vm196_vm0, %v12676_v54  ;;  %10535 = vmatmul.msk.f32.gmra.mxu1 %vm196_vm0, %v12676_v54  ;;  %v1412_v49 = vadd.f32 %v1362_v30, %v1108_v55 }
 0x1e3   : > { %1601 = vrot.lane.b32.xlu0 %v12674_v15, %s11516_s7  ;;  %1762 = vrot.lane.b32.xlu2 %v12674_v15, %s11515_s6 }
 0x1e4   : > { %v1448_v63 = vmul.f32 %v12265_v36, %v1412_v49  ;;  %v12692_v55 = vld [vmem:[#allocation3 + $0x40] sm:$0xff]  ;;  %v1735_v12 = vpop.permute.xlu1 %1734  ;;  %v12721_v21 = vld [vmem:[#allocation3 + $0x48] sm:$0xff] }
 0x1e6   : > { %10491 = vmatmul.msk.f32.gmra.mxu0 %vm196_vm0, %v12594_v62  ;;  %v1484_v37 = vadd.f32 %v12273_v39, %v1448_v63  ;;  %v904_v50 = vpop.f32.mrf.mxu0  ;;  %v10589_v62 = vld [vmem:[%s17568_s1 + $0x2f8] sm:$0xff]  ;;  %v1739_v22 = vpop.permute.xlu2 %1738 }
 0x1e7   : > { %3289 = vmatpush.msrb.mxu2 %v10589_v62  ;;  %v1116_v62 = vpop.f32.mrf.mxu1 }
 0x1e8   : > { %v12690_v58 = vmax.f32 %v1484_v37, 0.0 }
 0x1e9   : > { %v1365_v30 = vpop.f32.mrf.mxu2 }
 0x1ea   : > { %10462 = vmatmul.msk.f32.gmra.mxu3 %vm196_vm0, %v12692_v55  ;;  %10536 = vmatmul.msk.f32.gmra.mxu1 %vm196_vm0, %v12692_v55  ;;  %v1413_v49 = vadd.f32 %v1365_v30, %v1111_v47  ;;  %v1114_v47 = vadd.f32 %v1113_v46, %v904_v50 }
 0x1eb   : > { %1603 = vrot.lane.b32.xlu1 %v12690_v58, %s11516_s7  ;;  %1764 = vrot.lane.b32.xlu0 %v12690_v58, %s11515_s6 }
 0x1ec   : > { %v1449_v63 = vmul.f32 %v12265_v36, %v1413_v49  ;;  %v1576_v37 = vpop.permute.xlu0 %1575 }
 0x1ed   : > { %1663 = vst.msk [vmem:[#allocation3 + $0x58] sm:$0xff] %vm430_vm1, %v1576_v37 }
 0x1ee   : > { %1694 = vst.msk [vmem:[#allocation3 + $0x51] sm:$0xff] %vm463_vm2, %v12430_v34  ;;  %10492 = vmatmul.msk.f32.gmra.mxu0 %vm196_vm0, %v12613_v42  ;;  %v1485_v30 = vadd.f32 %v12273_v39, %v1449_v63  ;;  %v907_v37 = vpop.f32.mrf.mxu0 }
 0x1ef   : > { %1695 = vst.msk [vmem:[#allocation3 + $0x59] sm:$0x7f] %vm465_vm3, %v12441_v31  ;;  %v1117_v50 = vadd.f32 %v1116_v62, %v907_v37  ;;  %v1119_v62 = vpop.f32.mrf.mxu1 }
 0x1f0   : > { %1822 = vst.msk [vmem:[#allocation3 + $0x4f] sm:$0xfe] %vm593_vm4, %v1735_v12  ;;  %v12718_v49 = vmax.f32 %v1485_v30, 0.0  ;;  %v10665_v12 = vld [vmem:[%s17568_s1 + $0x358] sm:$0xff] }
 0x1f1   : > { %1823 = vst.msk [vmem:[#allocation3 + $0x57] sm:$0xff] %vm595_vm5, %v1737_v53  ;;  %v1368_v34 = vpop.f32.mrf.mxu2  ;;  %3752 = vmatpush.msra.mxu0 %v10665_v12 }
 0x1f2   : > { %10463 = vmatmul.msk.f32.gmra.mxu3 %vm196_vm0, %v12721_v21  ;;  %10537 = vmatmul.msk.f32.gmra.mxu1 %vm196_vm0, %v12721_v21  ;;  %v1414_v42 = vadd.f32 %v1368_v34, %v1114_v47 }
 0x1f3   : > { %1605 = vrot.lane.b32.xlu1 %v12718_v49, %s11516_s7  ;;  %1766 = vrot.lane.b32.xlu0 %v12718_v49, %s11515_s6 }
 0x1f4   : > { %v1450_v31 = vmul.f32 %v12265_v36, %v1414_v42  ;;  %v1584_v53 = vpop.permute.xlu2 %1583  ;;  %v1578_v46 = vpop.permute.xlu0 %1577 }
 0x1f5   : > { %1667 = vst.msk [vmem:[#allocation3 + $0x78] sm:$0xff] %vm430_vm1, %v1584_v53 }
 0x1f6   : > { %1699 = vst.msk [vmem:[#allocation3 + $0x79] sm:$0x7f] %vm465_vm3, %v12525_v40  ;;  %10493 = vmatmul.msk.f32.gmra.mxu0 %vm196_vm0, %v12635_v38  ;;  %v1486_v63 = vadd.f32 %v12273_v39, %v1450_v31  ;;  %v910_v38 = vpop.f32.mrf.mxu0 }
 0x1f7   : > { %1664 = vst.msk [vmem:[#allocation3 + $0x60] sm:$0xff] %vm430_vm1, %v1578_v46  ;;  %v1120_v31 = vadd.f32 %v1119_v62, %v910_v38  ;;  %v12798_v38 = vld [vmem:[%s17570_s3] ss:$0 sm:$0xff] }
 0x1f8   : > { %v12742_v47 = vld [vmem:[#allocation3 + $0x50] sm:$0xff]  ;;  %v12744_v30 = vmax.f32 %v1486_v63, 0.0 }
 0x1f9   : > { %v1371_v34 = vpop.f32.mrf.mxu2 }
 0x1fa   : > { %10464 = vmatmul.msk.f32.gmra.mxu3 %vm196_vm0, %v12742_v47  ;;  %10538 = vmatmul.msk.f32.gmra.mxu1 %vm196_vm0, %v12742_v47  ;;  %v1415_v40 = vadd.f32 %v1371_v34, %v1117_v50  ;;  %v12767_v50 = vld [vmem:[#allocation3 + $0x58] sm:$0xff] }
 0x1fb   : > { %1768 = vrot.lane.b32.xlu1 %v12744_v30, %s11515_s6  ;;  %1607 = vrot.lane.b32.xlu2 %v12744_v30, %s11516_s7 }
 0x1fc   : > { %v1451_v37 = vmul.f32 %v12265_v36, %v1415_v40  ;;  %v1580_v42 = vpop.permute.xlu1 %1579  ;;  %v1741_v12 = vpop.permute.xlu0 %1740 }
 0x1fd   : > { %1665 = vst.msk [vmem:[#allocation3 + $0x68] sm:$0xff] %vm430_vm1, %v1580_v42  ;;  %v1586_v46 = vpop.permute.xlu2 %1585 }
 0x1fe   : > { %1696 = vst.msk [vmem:[#allocation3 + $0x61] sm:$0xff] %vm463_vm2, %v12455_v25  ;;  %10494 = vmatmul.msk.f32.gmra.mxu0 %vm196_vm0, %v12659_v43  ;;  %v1487_v53 = vadd.f32 %v12273_v39, %v1451_v37  ;;  %v10588_v25 = vld [vmem:[%s17568_s1 + $0x2f0] sm:$0xff]  ;;  %v12787_v43 = vld [vmem:[%s17569_s2] ss:$0 sm:$0xff] }
 0x1ff   : > { %1697 = vst.msk [vmem:[#allocation3 + $0x69] sm:$0x7f] %vm465_vm3, %v12486_v23  ;;  %v10576_v23 = vld [vmem:[%s17568_s1 + $0x290] sm:$0xff]  ;;  %3290 = vmatpush.msrb.mxu2 %v10588_v25  ;;  %v10663_v25 = vld [vmem:[%s17568_s1 + $0x348] sm:$0xff] }
 0x200   : > { %1824 = vst.msk [vmem:[#allocation3 + $0x5f] sm:$0xfe] %vm593_vm4, %v1739_v22  ;;  %v12764_v36 = vmax.f32 %v1487_v53, 0.0  ;;  %3499 = vmatpush.msrb.mxu3 %v10576_v23  ;;  %v10587_v53 = vld [vmem:[%s17568_s1 + $0x2e8] sm:$0xff]  ;;  %v1122_v23 = vpop.f32.mrf.mxu1 }
 0x201   : > { %1668 = vst.msk [vmem:[#allocation3 + $0x80] sm:$0xff] %vm430_vm1, %v1586_v46  ;;  %v1374_v63 = vpop.f32.mrf.mxu2  ;;  %v10575_v46 = vld [vmem:[%s17568_s1 + $0x288] sm:$0xff]  ;;  %3291 = vmatpush.msrb.mxu2 %v10587_v53 }
 0x202   : > { %1825 = vst.msk [vmem:[#allocation3 + $0x67] sm:$0xff] %vm595_vm5, %v1741_v12  ;;  %10465 = vmatmul.msk.f32.gmra.mxu3 %vm196_vm0, %v12767_v50  ;;  %10539 = vmatmul.msk.f32.gmra.mxu1 %vm196_vm0, %v12767_v50  ;;  %v1416_v39 = vadd.f32 %v1374_v63, %v1120_v31 }
 0x203   : > { %1770 = vrot.lane.b32.xlu1 %v12764_v36, %s11515_s6  ;;  %1609 = vrot.lane.b32.xlu2 %v12764_v36, %s11516_s7 }
 0x204   : > { %v1452_v22 = vmul.f32 %v12787_v43, %v1416_v39  ;;  %v1582_v34 = vpop.permute.xlu1 %1581  ;;  %v1743_v40 = vpop.permute.xlu0 %1742  ;;  %3500 = vmatpush.msrb.mxu3 %v10575_v46 }
 0x205   : > { %1666 = vst.msk [vmem:[#allocation3 + $0x70] sm:$0xff] %vm430_vm1, %v1582_v34  ;;  %v1749_v31 = vpop.permute.xlu2 %1748  ;;  %v913_v34 = vpop.f32.mrf.mxu0 }
 0x206   : > { %1698 = vst.msk [vmem:[#allocation3 + $0x71] sm:$0xff] %vm463_vm2, %v12505_v60  ;;  %10495 = vmatmul.msk.f32.gmra.mxu0 %vm196_vm0, %v12676_v54  ;;  %v1488_v62 = vadd.f32 %v12798_v38, %v1452_v22  ;;  %v10664_v60 = vld [vmem:[%s17568_s1 + $0x350] sm:$0xff] }
 0x207   : > { %1826 = vst.msk [vmem:[#allocation3 + $0x6f] sm:$0xfe] %vm593_vm4, %v1743_v40  ;;  %3753 = vmatpush.msra.mxu0 %v10664_v60 }
 0x208   : > { %v12802_v37 = vmax.f32 %v1488_v62, 0.0  ;;  %v1125_v40 = vpop.f32.mrf.mxu1 }
 0x209   : > { %v1901_v42 = vld [vmem:[#allocation3 + $0x60] sm:$0xff]  ;;  %v1902_v12 = vld [vmem:[#allocation3 + $0x68] sm:$0xff]  ;;  %3754 = vmatpush.msra.mxu0 %v10663_v25  ;;  %v1123_v25 = vadd.f32 %v1122_v23, %v913_v34 }
 0x20a   : > { %10466 = vmatmul.msk.f32.gmra.mxu3 %vm196_vm0, %v1901_v42  ;;  %10540 = vmatmul.msk.f32.gmra.mxu1 %vm196_vm0, %v1901_v42 }
 0x20b   : > { %1611 = vrot.lane.b32.xlu0 %v12802_v37, %s11516_s7  ;;  %1772 = vrot.lane.b32.xlu2 %v12802_v37, %s11515_s6 }
 0x20c   : > { %v1745_v54 = vpop.permute.xlu1 %1744 }
 0x20d   : > { %1827 = vst.msk [vmem:[#allocation3 + $0x77] sm:$0xff] %vm595_vm5, %v1745_v54 }
 0x20e   : > { %10496 = vmatmul.msk.f32.gmra.mxu0 %vm196_vm0, %v12692_v55  ;;  %v1751_v55 = vpop.permute.xlu2 %1750 }
 0x210   : > { %v12883_v54 = vpop.f32.mrf.mxu1 }
 0x212   : > { %10467 = vmatmul.msk.f32.gmra.mxu3 %vm196_vm0, %v1902_v12  ;;  %10541 = vmatmul.msk.f32.gmra.mxu1 %vm196_vm0, %v1902_v12 }
 0x214   : > { %v12826_v63 = vld [vmem:[#allocation3 + $0x70] sm:$0xff]  ;;  %v1747_v39 = vpop.permute.xlu1 %1746  ;;  %v12844_v22 = vld [vmem:[#allocation3 + $0x78] sm:$0xff] }
 0x216   : > { %10497 = vmatmul.msk.f32.gmra.mxu0 %vm196_vm0, %v12721_v21 }
 0x21a   : > { %10468 = vmatmul.msk.f32.gmra.mxu3 %vm196_vm0, %v12826_v63  ;;  %10542 = vmatmul.msk.f32.gmra.mxu1 %vm196_vm0, %v12826_v63 }
 0x21c   : > { %v1588_v21 = vpop.permute.xlu0 %1587 }
 0x21d   : > { %1669 = vst.msk [vmem:[#allocation3 + $0x88] sm:$0xff] %vm430_vm1, %v1588_v21 }
 0x21e   : > { %1700 = vst.msk [vmem:[#allocation3 + $0x81] sm:$0xff] %vm463_vm2, %v12540_v45  ;;  %10498 = vmatmul.msk.f32.gmra.mxu0 %vm196_vm0, %v12742_v47 }
 0x21f   : > { %1701 = vst.msk [vmem:[#allocation3 + $0x89] sm:$0x7f] %vm465_vm3, %v12549_v17 }
 0x220   : > { %1829 = vst.msk [vmem:[#allocation3 + $0x87] sm:$0xff] %vm595_vm5, %v1749_v31 }
 0x221   : > { %1828 = vst.msk [vmem:[#allocation3 + $0x7f] sm:$0xfe] %vm593_vm4, %v1747_v39 }
 0x222   : > { %10469 = vmatmul.msk.f32.gmra.mxu3 %vm196_vm0, %v12844_v22  ;;  %10543 = vmatmul.msk.f32.gmra.mxu1 %vm196_vm0, %v12844_v22 }
 0x224   : > { %v1596_v45 = vpop.permute.xlu2 %1595  ;;  %v1590_v47 = vpop.permute.xlu0 %1589 }
 0x225   : > { %1673 = vst.msk [vmem:[#allocation3 + $0xa8] sm:$0xff] %vm430_vm1, %v1596_v45 }
 0x226   : > { %1705 = vst.msk [vmem:[#allocation3 + $0xa9] sm:$0x7f] %vm465_vm3, %v12615_v59  ;;  %10499 = vmatmul.msk.f32.gmra.mxu0 %vm196_vm0, %v12767_v50 }
 0x227   : > { %1670 = vst.msk [vmem:[#allocation3 + $0x90] sm:$0xff] %vm430_vm1, %v1590_v47  ;;  %v12870_v59 = vld [vmem:[#allocation3 + $0x88] sm:$0xff] }
 0x228   : > { %v12856_v17 = vld [vmem:[#allocation3 + $0x80] sm:$0xff] }
 0x22a   : > { %10470 = vmatmul.msk.f32.gmra.mxu3 %vm196_vm0, %v12856_v17  ;;  %10544 = vmatmul.msk.f32.gmra.mxu1 %vm196_vm0, %v12856_v17 }
 0x22c   : > { %v1592_v62 = vpop.permute.xlu1 %1591  ;;  %v1753_v60 = vpop.permute.xlu0 %1752 }
 0x22d   : > { %1671 = vst.msk [vmem:[#allocation3 + $0x98] sm:$0xff] %vm430_vm1, %v1592_v62  ;;  %v1598_v50 = vpop.permute.xlu2 %1597 }
 0x22e   : > { %1702 = vst.msk [vmem:[#allocation3 + $0x91] sm:$0xff] %vm463_vm2, %v12563_v9  ;;  %10500 = vmatmul.msk.f32.gmra.mxu0 %vm196_vm0, %v1901_v42  ;;  %v10586_v9 = vld [vmem:[%s17568_s1 + $0x2e0] sm:$0xff]  ;;  %v916_v42 = vpop.f32.mrf.mxu0 }
 0x22f   : > { %1703 = vst.msk [vmem:[#allocation3 + $0x99] sm:$0x7f] %vm465_vm3, %v12576_v13  ;;  %v10574_v13 = vld [vmem:[%s17568_s1 + $0x280] sm:$0xff]  ;;  %3292 = vmatpush.msrb.mxu2 %v10586_v9 }
 0x230   : > { %1830 = vst.msk [vmem:[#allocation3 + $0x8f] sm:$0xfe] %vm593_vm4, %v1751_v55  ;;  %3501 = vmatpush.msrb.mxu3 %v10574_v13  ;;  %v10662_v55 = vld [vmem:[%s17568_s1 + $0x340] sm:$0xff] }
 0x231   : > { %1831 = vst.msk [vmem:[#allocation3 + $0x97] sm:$0xff] %vm595_vm5, %v1753_v60  ;;  %3755 = vmatpush.msra.mxu0 %v10662_v55  ;;  %v10585_v60 = vld [vmem:[%s17568_s1 + $0x2d8] sm:$0xff]  ;;  %v1126_v55 = vadd.f32 %v1125_v40, %v916_v42 }
 0x232   : > { %10471 = vmatmul.msk.f32.gmra.mxu3 %vm196_vm0, %v12870_v59  ;;  %10545 = vmatmul.msk.f32.gmra.mxu1 %vm196_vm0, %v12870_v59  ;;  %1674 = vst.msk [vmem:[#allocation3 + $0xb0] sm:$0xff] %vm430_vm1, %v1598_v50  ;;  %v10573_v50 = vld [vmem:[%s17568_s1 + $0x278] sm:$0xff] }
 0x233   : > { %3293 = vmatpush.msrb.mxu2 %v10585_v60  ;;  %3502 = vmatpush.msrb.mxu3 %v10573_v50 }
 0x234   : > { %v1594_v31 = vpop.permute.xlu1 %1593  ;;  %v1755_v53 = vpop.permute.xlu0 %1754 }
 0x235   : > { %1672 = vst.msk [vmem:[#allocation3 + $0xa0] sm:$0xff] %vm430_vm1, %v1594_v31 }
 0x236   : > { %1704 = vst.msk [vmem:[#allocation3 + $0xa1] sm:$0xff] %vm463_vm2, %v12596_v20  ;;  %10501 = vmatmul.msk.f32.gmra.mxu0 %vm196_vm0, %v1902_v12  ;;  %v12902_v12 = vpop.f32.mrf.mxu1 }
 0x237   : > { %1832 = vst.msk [vmem:[#allocation3 + $0x9f] sm:$0xfe] %vm593_vm4, %v1755_v53 }
 0x238   : > { %v12890_v46 = vld [vmem:[#allocation3 + $0x90] sm:$0xff]  ;;  %v12906_v45 = vld [vmem:[#allocation3 + $0x98] sm:$0xff] }
 0x23a   : > { %10472 = vmatmul.msk.f32.gmra.mxu3 %vm196_vm0, %v12890_v46  ;;  %10546 = vmatmul.msk.f32.gmra.mxu1 %vm196_vm0, %v12890_v46 }
 0x23b   : > { %v12899_v21 = vpop.f32.mrf.mxu0 }
 0x23c   : > { %v2049_v20 = vpop.f32.mrf.mxu3  ;;  %v1757_v39 = vpop.permute.xlu1 %1756 }
 0x23d   : > { %1833 = vst.msk [vmem:[#allocation3 + $0xa7] sm:$0xff] %vm595_vm5, %v1757_v39 }
 0x23e   : > { %10502 = vmatmul.msk.f32.gmra.mxu0 %vm196_vm0, %v12826_v63  ;;  %v1761_v63 = vpop.permute.xlu2 %1760 }
 0x241   : > { %v1377_v47 = vpop.f32.mrf.mxu2 }
 0x242   : > { %10473 = vmatmul.msk.f32.gmra.mxu3 %vm196_vm0, %v12906_v45  ;;  %10547 = vmatmul.msk.f32.gmra.mxu1 %vm196_vm0, %v12906_v45  ;;  %v1417_v62 = vadd.f32 %v1377_v47, %v1123_v25 }
 0x243   : > { %v12918_v23 = vpop.f32.mrf.mxu0 }
 0x244   : > { %v1453_v34 = vmul.f32 %v12787_v43, %v1417_v62  ;;  %v2052_v9 = vpop.f32.mrf.mxu3  ;;  %v12924_v53 = vld [vmem:[#allocation3 + $0xa0] sm:$0xff]  ;;  %v10661_v62 = vld [vmem:[%s17568_s1 + $0x338] sm:$0xff] }
 0x245   : > { %3756 = vmatpush.msra.mxu0 %v10661_v62 }
 0x246   : > { %v2513_v13 = vpop.f32.mrf.mxu1  ;;  %10503 = vmatmul.msk.f32.gmra.mxu0 %vm196_vm0, %v12844_v22  ;;  %v1489_v31 = vadd.f32 %v12798_v38, %v1453_v34  ;;  %v12939_v40 = vpop.permute.xlu2 %1762  ;;  %v12945_v34 = vld [vmem:[%s17569_s2 + $0x1] ss:$0 sm:$0xff] }
 0x248   : > { %v12926_v39 = vmax.f32 %v1489_v31, 0.0 }
 0x249   : > { %v1380_v25 = vpop.f32.mrf.mxu2 }
 0x24a   : > { %10474 = vmatmul.msk.f32.gmra.mxu3 %vm196_vm0, %v12924_v53  ;;  %10548 = vmatmul.msk.f32.gmra.mxu1 %vm196_vm0, %v12924_v53  ;;  %v1418_v47 = vadd.f32 %v1380_v25, %v1126_v55  ;;  %v12950_v25 = vld [vmem:[%s17570_s3 + $0x1] ss:$0 sm:$0xff] }
 0x24b   : > { %1774 = vrot.lane.b32.xlu0 %v12926_v39, %s11515_s6  ;;  %1613 = vrot.lane.b32.xlu1 %v12926_v39, %s11516_s7  ;;  %v2258_v22 = vpop.f32.mrf.mxu0 }
 0x24c   : > { %v1454_v42 = vmul.f32 %v12787_v43, %v1418_v47  ;;  %v2055_v60 = vpop.f32.mrf.mxu3  ;;  %v2259_v50 = vadd.f32 %v2258_v22, %v2049_v20  ;;  %v1759_v47 = vpop.permute.xlu1 %1758  ;;  %v12964_v22 = vld [vmem:[#allocation3 + $0xa8] sm:$0xff] }
 0x24d   : > { %v1600_v31 = vpop.permute.xlu0 %1599 }
 0x24e   : > { %v2609_v55 = vadd.f32 %v2513_v13, %v2259_v50  ;;  %v2516_v16 = vpop.f32.mrf.mxu1  ;;  %1675 = vst.msk [vmem:[#allocation3 + $0xb8] sm:$0xff] %vm430_vm1, %v1600_v31  ;;  %10504 = vmatmul.msk.f32.gmra.mxu0 %vm196_vm0, %v12856_v17  ;;  %v1490_v20 = vadd.f32 %v12798_v38, %v1454_v42 }
 0x24f   : > { %1706 = vst.msk [vmem:[#allocation3 + $0xb1] sm:$0xff] %vm463_vm2, %v12637_v32 }
 0x250   : > { %v2646_v62 = vmul.f32 %v12945_v34, %v2609_v55  ;;  %1707 = vst.msk [vmem:[#allocation3 + $0xb9] sm:$0x7f] %vm465_vm3, %v12657_v57  ;;  %v12961_v13 = vmax.f32 %v1490_v20, 0.0 }
 0x251   : > { %1835 = vst.msk [vmem:[#allocation3 + $0xb7] sm:$0xff] %vm595_vm5, %v1761_v63 }
 0x252   : > { %v2683_v50 = vadd.f32 %v12950_v25, %v2646_v62  ;;  %1834 = vst.msk [vmem:[#allocation3 + $0xaf] sm:$0xfe] %vm593_vm4, %v1759_v47  ;;  %10475 = vmatmul.msk.f32.gmra.mxu3 %vm196_vm0, %v12964_v22  ;;  %10549 = vmatmul.msk.f32.gmra.mxu1 %vm196_vm0, %v12964_v22 }
 0x253   : > { %1615 = vrot.lane.b32.xlu2 %v12961_v13, %s11516_s7  ;;  %v2261_v32 = vpop.f32.mrf.mxu0 }
 0x254   : > { %v2058_v57 = vpop.f32.mrf.mxu3  ;;  %v2262_v17 = vadd.f32 %v2261_v32, %v2052_v9  ;;  %v2715_v63 = vadd.f32 %v2683_v50, %v11601_v0  ;;  %v1383_v50 = vpop.f32.mrf.mxu2 }
 0x255   : > { %v1608_v42 = vpop.permute.xlu2 %1607  ;;  %v1602_v31 = vpop.permute.xlu0 %1601 }
 0x256   : > { %v2610_v55 = vadd.f32 %v2516_v16, %v2262_v17  ;;  %1679 = vst.msk [vmem:[#allocation3 + $0xd8] sm:$0xff] %vm430_vm1, %v1608_v42  ;;  %10505 = vmatmul.msk.f32.gmra.mxu0 %vm196_vm0, %v12870_v59  ;;  %v12978_v20 = vmax.f32 %v2715_v63, 0.0  ;;  %v10572_v59 = vld [vmem:[%s17568_s1 + $0x270] sm:$0xff] }
 0x257   : > { %1711 = vst.msk [vmem:[#allocation3 + $0xd9] sm:$0x7f] %vm465_vm3, %v12744_v30  ;;  %v2519_v47 = vpop.f32.mrf.mxu1  ;;  %v10584_v30 = vld [vmem:[%s17568_s1 + $0x2d0] sm:$0xff]  ;;  %3503 = vmatpush.msrb.mxu3 %v10572_v59 }
 0x258   : > { %v2647_v62 = vmul.f32 %v12945_v34, %v2610_v55  ;;  %1676 = vst.msk [vmem:[#allocation3 + $0xc0] sm:$0xff] %vm430_vm1, %v1602_v31  ;;  %2811 = vrot.lane.b32.xlu0 %v12978_v20, %s11516_s7  ;;  %3294 = vmatpush.msrb.mxu2 %v10584_v30 }
 0x259   : > { %v12986_v0 = vld [vmem:[#allocation3 + $0xb0] sm:$0xff] }
 0x25a   : > { %v2684_v16 = vadd.f32 %v12950_v25, %v2647_v62  ;;  %10476 = vmatmul.msk.f32.gmra.mxu3 %vm196_vm0, %v12986_v0  ;;  %10550 = vmatmul.msk.f32.gmra.mxu1 %vm196_vm0, %v12986_v0 }
 0x25b   : > { %2971 = vrot.lane.b32.xlu2 %v12978_v20, %s11515_s6  ;;  %v2264_v9 = vpop.f32.mrf.mxu0 }
 0x25c   : > { %v2265_v32 = vadd.f32 %v2264_v9, %v2055_v60  ;;  %v2716_v17 = vadd.f32 %v2684_v16, %v11613_v2  ;;  %v13018_v2 = vld [vmem:[#allocation3 + $0xb8] sm:$0xff] }
 0x25d   : > { %v2061_v63 = vpop.f32.mrf.mxu3  ;;  %v1604_v42 = vpop.permute.xlu1 %1603 }
 0x25e   : > { %v2611_v31 = vadd.f32 %v2519_v47, %v2265_v32  ;;  %1677 = vst.msk [vmem:[#allocation3 + $0xc8] sm:$0xff] %vm430_vm1, %v1604_v42  ;;  %10506 = vmatmul.msk.f32.gmra.mxu0 %vm196_vm0, %v12890_v46  ;;  %v1765_v55 = vpop.permute.xlu0 %1764  ;;  %v13005_v62 = vmax.f32 %v2716_v17, 0.0 }
 0x25f   : > { %1708 = vst.msk [vmem:[#allocation3 + $0xc1] sm:$0xff] %vm463_vm2, %v12674_v15  ;;  %v2522_v30 = vpop.f32.mrf.mxu1  ;;  %v1610_v15 = vpop.permute.xlu2 %1609 }
 0x260   : > { %v2648_v60 = vmul.f32 %v12945_v34, %v2611_v31  ;;  %1709 = vst.msk [vmem:[#allocation3 + $0xc9] sm:$0x7f] %vm465_vm3, %v12690_v58  ;;  %2973 = vrot.lane.b32.xlu0 %v13005_v62, %s11515_s6  ;;  %2813 = vrot.lane.b32.xlu1 %v13005_v62, %s11516_s7  ;;  %v10660_v58 = vld [vmem:[%s17568_s1 + $0x330] sm:$0xff]  ;;  %v1386_v31 = vpop.f32.mrf.mxu2 }
 0x261   : > { %1836 = vst.msk [vmem:[#allocation3 + $0xbf] sm:$0xfe] %vm593_vm4, %v12939_v40  ;;  %3757 = vmatpush.msra.mxu0 %v10660_v58 }
 0x262   : > { %v2685_v46 = vadd.f32 %v12950_v25, %v2648_v60  ;;  %1837 = vst.msk [vmem:[#allocation3 + $0xc7] sm:$0xff] %vm595_vm5, %v1765_v55  ;;  %10477 = vmatmul.msk.f32.gmra.mxu3 %vm196_vm0, %v13018_v2  ;;  %10551 = vmatmul.msk.f32.gmra.mxu1 %vm196_vm0, %v13018_v2 }
 0x263   : > { %v2267_v47 = vpop.f32.mrf.mxu0  ;;  %1680 = vst.msk [vmem:[#allocation3 + $0xe0] sm:$0xff] %vm430_vm1, %v1610_v15 }
 0x264   : > { %v2268_v40 = vadd.f32 %v2267_v47, %v2058_v57  ;;  %v2717_v16 = vadd.f32 %v2685_v46, %v11608_v1  ;;  %v1129_v57 = vadd.f32 %v12883_v54, %v12899_v21  ;;  %v1132_v1 = vadd.f32 %v12902_v12, %v12918_v23 }
 0x265   : > { %v2064_v59 = vpop.f32.mrf.mxu3  ;;  %v1606_v9 = vpop.permute.xlu1 %1605 }
 0x266   : > { %v2612_v32 = vadd.f32 %v2522_v30, %v2268_v40  ;;  %1678 = vst.msk [vmem:[#allocation3 + $0xd0] sm:$0xff] %vm430_vm1, %v1606_v9  ;;  %10507 = vmatmul.msk.f32.gmra.mxu0 %vm196_vm0, %v12906_v45  ;;  %v13034_v17 = vmax.f32 %v2717_v16, 0.0  ;;  %v1767_v42 = vpop.permute.xlu0 %1766  ;;  %v1420_v60 = vadd.f32 %v1386_v31, %v1132_v1  ;;  %v10583_v9 = vld [vmem:[%s17568_s1 + $0x2c8] sm:$0xff] }
 0x267   : > { %1710 = vst.msk [vmem:[#allocation3 + $0xd1] sm:$0xff] %vm463_vm2, %v12718_v49  ;;  %v2525_v55 = vpop.f32.mrf.mxu1  ;;  %v1419_v49 = vadd.f32 %v1383_v50, %v1129_v57  ;;  %3295 = vmatpush.msrb.mxu2 %v10583_v9 }
 0x268   : > { %v2649_v30 = vmul.f32 %v12945_v34, %v2612_v32  ;;  %1776 = vrot.lane.b32.xlu1 %v12961_v13, %s11515_s6  ;;  %2815 = vrot.lane.b32.xlu2 %v13034_v17, %s11516_s7  ;;  %1838 = vst.msk [vmem:[#allocation3 + $0xcf] sm:$0xfe] %vm593_vm4, %v1767_v42  ;;  %v1456_v47 = vmul.f32 %v12787_v43, %v1420_v60  ;;  %v10571_v32 = vld [vmem:[%s17568_s1 + $0x268] sm:$0xff] }
 0x269   : > { %v13048_v45 = vld [vmem:[#allocation3 + $0xc0] sm:$0xff]  ;;  %v1455_v58 = vmul.f32 %v12787_v43, %v1419_v49  ;;  %3504 = vmatpush.msrb.mxu3 %v10571_v32 }
 0x26a   : > { %v2686_v46 = vadd.f32 %v12950_v25, %v2649_v30  ;;  %10478 = vmatmul.msk.f32.gmra.mxu3 %vm196_vm0, %v13048_v45  ;;  %10552 = vmatmul.msk.f32.gmra.mxu1 %vm196_vm0, %v13048_v45 }
 0x26b   : > { %v2270_v54 = vpop.f32.mrf.mxu0 }
 0x26c   : > { %v2271_v21 = vadd.f32 %v2270_v54, %v2061_v63  ;;  %v2718_v12 = vadd.f32 %v2686_v46, %v11620_v3  ;;  %v13069_v3 = vld [vmem:[#allocation3 + $0xc8] sm:$0xff]  ;;  %v1491_v63 = vadd.f32 %v12798_v38, %v1455_v58 }
 0x26d   : > { %v2067_v23 = vpop.f32.mrf.mxu3  ;;  %v1769_v15 = vpop.permute.xlu1 %1768  ;;  %v10659_v54 = vld [vmem:[%s17568_s1 + $0x328] sm:$0xff] }
 0x26e   : > { %v2613_v50 = vadd.f32 %v2525_v55, %v2271_v21  ;;  %1839 = vst.msk [vmem:[#allocation3 + $0xd7] sm:$0xff] %vm595_vm5, %v1769_v15  ;;  %10508 = vmatmul.msk.f32.gmra.mxu0 %vm196_vm0, %v12924_v53  ;;  %v13061_v40 = vmax.f32 %v2718_v12, 0.0  ;;  %v1492_v53 = vadd.f32 %v12798_v38, %v1456_v47  ;;  %v13089_v30 = vmax.f32 %v1491_v63, 0.0  ;;  %v10570_v63 = vld [vmem:[%s17568_s1 + $0x260] sm:$0xff] }
 0x26f   : > { %v2528_v16 = vpop.f32.mrf.mxu1  ;;  %3758 = vmatpush.msra.mxu0 %v10659_v54  ;;  %3505 = vmatpush.msrb.mxu3 %v10570_v63 }
 0x270   : > { %2975 = vrot.lane.b32.xlu1 %v13034_v17, %s11515_s6  ;;  %2977 = vrot.lane.b32.xlu2 %v13061_v40, %s11515_s6  ;;  %v2650_v43 = vmul.f32 %v12945_v34, %v2613_v50  ;;  %v13087_v38 = vmax.f32 %v1492_v53, 0.0 }
 0x271   : > { %2817 = vrot.lane.b32.xlu0 %v13061_v40, %s11516_s7 }
 0x272   : > { %10479 = vmatmul.msk.f32.gmra.mxu3 %vm196_vm0, %v13069_v3  ;;  %10553 = vmatmul.msk.f32.gmra.mxu1 %vm196_vm0, %v13069_v3  ;;  %v2687_v57 = vadd.f32 %v12950_v25, %v2650_v43 }
 0x273   : > { %v2273_v42 = vpop.f32.mrf.mxu0 }
 0x274   : > { %v2274_v31 = vadd.f32 %v2273_v42, %v2064_v59  ;;  %v2719_v59 = vadd.f32 %v2687_v57, %v11629_v4 }
 0x275   : > { %v2070_v55 = vpop.f32.mrf.mxu3  ;;  %v13091_v60 = vld [vmem:[#allocation3 + $0xd0] sm:$0xff]  ;;  %v1771_v53 = vpop.permute.xlu1 %1770 }
 0x276   : > { %v2614_v1 = vadd.f32 %v2528_v16, %v2274_v31  ;;  %10509 = vmatmul.msk.f32.gmra.mxu0 %vm196_vm0, %v12964_v22  ;;  %v13113_v16 = vmax.f32 %v2719_v59, 0.0 }
 0x277   : > { %v2531_v49 = vpop.f32.mrf.mxu1 }
 0x278   : > { %v2651_v46 = vmul.f32 %v12945_v34, %v2614_v1  ;;  %1619 = vrot.lane.b32.xlu1 %v13087_v38, %s11516_s7  ;;  %1778 = vrot.lane.b32.xlu2 %v13089_v30, %s11515_s6 }
 0x279   : > { %1617 = vrot.lane.b32.xlu0 %v13089_v30, %s11516_s7 }
 0x27a   : > { %v2688_v22 = vadd.f32 %v12950_v25, %v2651_v46  ;;  %10480 = vmatmul.msk.f32.gmra.mxu3 %vm196_vm0, %v13091_v60  ;;  %10554 = vmatmul.msk.f32.gmra.mxu1 %vm196_vm0, %v13091_v60 }
 0x27b   : > { %v2276_v21 = vpop.f32.mrf.mxu0 }
 0x27c   : > { %v2277_v12 = vadd.f32 %v2276_v21, %v2067_v23  ;;  %v2720_v15 = vadd.f32 %v2688_v22, %v11634_v5  ;;  %v1773_v23 = vpop.permute.xlu2 %1772 }
 0x27d   : > { %v2073_v58 = vpop.f32.mrf.mxu3  ;;  %v1612_v47 = vpop.permute.xlu0 %1611 }
 0x27e   : > { %v2615_v50 = vadd.f32 %v2531_v49, %v2277_v12  ;;  %1681 = vst.msk [vmem:[#allocation3 + $0xe8] sm:$0xff] %vm430_vm1, %v1612_v47  ;;  %10510 = vmatmul.msk.f32.gmra.mxu0 %vm196_vm0, %v12986_v0  ;;  %v13115_v4 = vmax.f32 %v2720_v15, 0.0  ;;  %v13129_v0 = vld [vmem:[#allocation3 + $0xd8] sm:$0xff] }
 0x27f   : > { %v2534_v43 = vpop.f32.mrf.mxu1  ;;  %1712 = vst.msk [vmem:[#allocation3 + $0xe1] sm:$0xff] %vm463_vm2, %v12764_v36 }
 0x280   : > { %v2652_v5 = vmul.f32 %v12945_v34, %v2615_v50  ;;  %1713 = vst.msk [vmem:[#allocation3 + $0xe9] sm:$0x7f] %vm465_vm3, %v12802_v37  ;;  %2819 = vrot.lane.b32.xlu1 %v13113_v16, %s11516_s7  ;;  %2821 = vrot.lane.b32.xlu2 %v13115_v4, %s11516_s7  ;;  %v10582_v37 = vld [vmem:[%s17568_s1 + $0x2c0] sm:$0xff] }
 0x281   : > { %1841 = vst.msk [vmem:[#allocation3 + $0xe7] sm:$0xff] %vm595_vm5, %v1773_v23  ;;  %1780 = vrot.lane.b32.xlu0 %v13087_v38, %s11515_s6  ;;  %3296 = vmatpush.msrb.mxu2 %v10582_v37 }
 0x282   : > { %v2689_v36 = vadd.f32 %v12950_v25, %v2652_v5  ;;  %1840 = vst.msk [vmem:[#allocation3 + $0xdf] sm:$0xfe] %vm593_vm4, %v1771_v53  ;;  %10481 = vmatmul.msk.f32.gmra.mxu3 %vm196_vm0, %v13129_v0  ;;  %10555 = vmatmul.msk.f32.gmra.mxu1 %vm196_vm0, %v13129_v0 }
 0x283   : > { %v2279_v9 = vpop.f32.mrf.mxu0 }
 0x284   : > { %v2280_v32 = vadd.f32 %v2279_v9, %v2070_v55  ;;  %v2721_v42 = vadd.f32 %v2689_v36, %v11643_v6 }
 0x285   : > { %v2076_v31 = vpop.f32.mrf.mxu3 }
 0x286   : > { %v2616_v57 = vadd.f32 %v2534_v43, %v2280_v32  ;;  %10511 = vmatmul.msk.f32.gmra.mxu0 %vm196_vm0, %v13018_v2  ;;  %v13146_v1 = vmax.f32 %v2721_v42, 0.0  ;;  %v10658_v2 = vld [vmem:[%s17568_s1 + $0x320] sm:$0xff] }
 0x287   : > { %v2537_v49 = vpop.f32.mrf.mxu1  ;;  %3759 = vmatpush.msra.mxu0 %v10658_v2 }
 0x288   : > { %v2653_v46 = vmul.f32 %v12945_v34, %v2616_v57  ;;  %2981 = vrot.lane.b32.xlu1 %v13115_v4, %s11515_s6  ;;  %2823 = vrot.lane.b32.xlu2 %v13146_v1, %s11516_s7 }
 0x289   : > { %2979 = vrot.lane.b32.xlu0 %v13113_v16, %s11515_s6  ;;  %v13155_v6 = vld [vmem:[#allocation3 + $0xe0] sm:$0xff] }
 0x28a   : > { %v2690_v55 = vadd.f32 %v12950_v25, %v2653_v46  ;;  %10482 = vmatmul.msk.f32.gmra.mxu3 %vm196_vm0, %v13155_v6  ;;  %10556 = vmatmul.msk.f32.gmra.mxu1 %vm196_vm0, %v13155_v6 }
 0x28b   : > { %v2282_v22 = vpop.f32.mrf.mxu0 }
 0x28c   : > { %v2283_v59 = vadd.f32 %v2282_v22, %v2073_v58  ;;  %v2722_v54 = vadd.f32 %v2690_v55, %v11646_v7  ;;  %v13177_v7 = vld [vmem:[#allocation3 + $0xe8] sm:$0xff] }
 0x28d   : > { %v2079_v21 = vpop.f32.mrf.mxu3 }
 0x28e   : > { %v2617_v12 = vadd.f32 %v2537_v49, %v2283_v59  ;;  %10512 = vmatmul.msk.f32.gmra.mxu0 %vm196_vm0, %v13048_v45  ;;  %v13168_v15 = vmax.f32 %v2722_v54, 0.0 }
 0x28f   : > { %v2540_v47 = vpop.f32.mrf.mxu1 }
 0x290   : > { %v2654_v50 = vmul.f32 %v12945_v34, %v2617_v12  ;;  %2983 = vrot.lane.b32.xlu1 %v13146_v1, %s11515_s6  ;;  %2985 = vrot.lane.b32.xlu2 %v13168_v15, %s11515_s6 }
 0x291   : > { %2825 = vrot.lane.b32.xlu0 %v13168_v15, %s11516_s7 }
 0x292   : > { %v2691_v58 = vadd.f32 %v12950_v25, %v2654_v50  ;;  %10483 = vmatmul.msk.f32.gmra.mxu3 %vm196_vm0, %v13177_v7  ;;  %10557 = vmatmul.msk.f32.gmra.mxu1 %vm196_vm0, %v13177_v7 }
 0x293   : > { %v2285_v45 = vpop.f32.mrf.mxu0 }
 0x294   : > { %v2286_v43 = vadd.f32 %v2285_v45, %v2076_v31  ;;  %v2723_v53 = vadd.f32 %v2691_v58, %v11661_v10  ;;  %v10581_v10 = vld [vmem:[%s17568_s1 + $0x2b8] sm:$0xff] }
 0x295   : > { %v2082_v23 = vpop.f32.mrf.mxu3  ;;  %3297 = vmatpush.msrb.mxu2 %v10581_v10  ;;  %v10568_v10 = vld [vmem:[%s17568_s1 + $0x250] sm:$0xff] }
 0x296   : > { %v2618_v5 = vadd.f32 %v2540_v47, %v2286_v43  ;;  %10513 = vmatmul.msk.f32.gmra.mxu0 %vm196_vm0, %v13069_v3  ;;  %v13187_v36 = vmax.f32 %v2723_v53, 0.0  ;;  %v10569_v3 = vld [vmem:[%s17568_s1 + $0x258] sm:$0xff] }
 0x297   : > { %v2543_v37 = vpop.f32.mrf.mxu1  ;;  %3506 = vmatpush.msrb.mxu3 %v10569_v3 }
 0x298   : > { %v2655_v63 = vmul.f32 %v12945_v34, %v2618_v5  ;;  %2987 = vrot.lane.b32.xlu2 %v13187_v36, %s11515_s6 }
 0x299   : > { %2827 = vrot.lane.b32.xlu0 %v13187_v36, %s11516_s7  ;;  %3507 = vmatpush.msrb.mxu3 %v10568_v10 }
 0x29a   : > { %v2692_v9 = vadd.f32 %v12950_v25, %v2655_v63 }
 0x29b   : > { %v2288_v32 = vpop.f32.mrf.mxu0 }
 0x29c   : > { %v2289_v42 = vadd.f32 %v2288_v32, %v2079_v21  ;;  %v2724_v31 = vadd.f32 %v2692_v9, %v11664_v11  ;;  %v10657_v11 = vld [vmem:[%s17568_s1 + $0x318] sm:$0xff] }
 0x29d   : > { %v2085_v57 = vpop.f32.mrf.mxu3  ;;  %3760 = vmatpush.msra.mxu0 %v10657_v11 }
 0x29e   : > { %v2619_v49 = vadd.f32 %v2543_v37, %v2289_v42  ;;  %10514 = vmatmul.msk.f32.gmra.mxu0 %vm196_vm0, %v13091_v60  ;;  %v13204_v46 = vmax.f32 %v2724_v31, 0.0 }
 0x29f   : > { %v2546_v55 = vpop.f32.mrf.mxu1 }
 0x2a0   : > { %v2656_v2 = vmul.f32 %v12945_v34, %v2619_v49  ;;  %2829 = vrot.lane.b32.xlu1 %v13204_v46, %s11516_s7 }
 0x2a1   : > { %2989 = vrot.lane.b32.xlu0 %v13204_v46, %s11515_s6 }
 0x2a2   : > { %v2693_v22 = vadd.f32 %v12950_v25, %v2656_v2 }
 0x2a3   : > { %v2291_v59 = vpop.f32.mrf.mxu0 }
 0x2a4   : > { %v2292_v60 = vadd.f32 %v2291_v59, %v2082_v23  ;;  %v2725_v54 = vadd.f32 %v2693_v22, %v11694_v19 }
 0x2a5   : > { %v2088_v21 = vpop.f32.mrf.mxu3 }
 0x2a6   : > { %v2620_v12 = vadd.f32 %v2546_v55, %v2292_v60  ;;  %10515 = vmatmul.msk.f32.gmra.mxu0 %vm196_vm0, %v13129_v0  ;;  %v13218_v47 = vmax.f32 %v2725_v54, 0.0 }
 0x2a7   : > { %v2549_v50 = vpop.f32.mrf.mxu1 }
 0x2a8   : > { %v2657_v58 = vmul.f32 %v12945_v34, %v2620_v12  ;;  %2831 = vrot.lane.b32.xlu1 %v13218_v47, %s11516_s7 }
 0x2a9   : > { %2991 = vrot.lane.b32.xlu0 %v13218_v47, %s11515_s6 }
 0x2aa   : > { %v2694_v45 = vadd.f32 %v12950_v25, %v2657_v58  ;;  %v10578_v58 = vld [vmem:[%s17568_s1 + $0x2a0] sm:$0xff] }
 0x2ab   : > { %v2294_v43 = vpop.f32.mrf.mxu0 }
 0x2ac   : > { %v2295_v19 = vadd.f32 %v2294_v43, %v2085_v57  ;;  %v2726_v53 = vadd.f32 %v2694_v45, %v11715_v24 }
 0x2ad   : > { %v2091_v23 = vpop.f32.mrf.mxu3  ;;  %v1616_v5 = vpop.permute.xlu2 %1615 }
 0x2ae   : > { %v2621_v0 = vadd.f32 %v2549_v50, %v2295_v19  ;;  %1683 = vst.msk [vmem:[#allocation3 + $0xf8] sm:$0xff] %vm430_vm1, %v1616_v5  ;;  %10516 = vmatmul.msk.f32.gmra.mxu0 %vm196_vm0, %v13155_v6  ;;  %v13230_v37 = vmax.f32 %v2726_v53, 0.0  ;;  %v10580_v6 = vld [vmem:[%s17568_s1 + $0x2b0] sm:$0xff] }
 0x2af   : > { %1715 = vst.msk [vmem:[#allocation3 + $0xf9] sm:$0x7f] %vm465_vm3, %v12961_v13  ;;  %v2552_v63 = vpop.f32.mrf.mxu1  ;;  %3298 = vmatpush.msrb.mxu2 %v10580_v6 }
 0x2b0   : > { %v2658_v9 = vmul.f32 %v12945_v34, %v2621_v0  ;;  %2993 = vrot.lane.b32.xlu1 %v13230_v37, %s11515_s6  ;;  %2833 = vrot.lane.b32.xlu2 %v13230_v37, %s11516_s7 }
 0x2b2   : > { %v2695_v24 = vadd.f32 %v12950_v25, %v2658_v9 }
 0x2b3   : > { %v2297_v13 = vpop.f32.mrf.mxu0 }
 0x2b4   : > { %v2298_v3 = vadd.f32 %v2297_v13, %v2088_v21  ;;  %v2727_v32 = vadd.f32 %v2695_v24, %v11727_v26  ;;  %v10656_v26 = vld [vmem:[%s17568_s1 + $0x310] sm:$0xff] }
 0x2b5   : > { %v2094_v42 = vpop.f32.mrf.mxu3  ;;  %v13257_v22 = vpop.permute.xlu2 %2971  ;;  %3761 = vmatpush.msra.mxu0 %v10656_v26 }
 0x2b6   : > { %v2622_v31 = vadd.f32 %v2552_v63, %v2298_v3  ;;  %10517 = vmatmul.msk.f32.gmra.mxu0 %vm196_vm0, %v13177_v7  ;;  %v13249_v57 = vmax.f32 %v2727_v32, 0.0  ;;  %v10579_v7 = vld [vmem:[%s17568_s1 + $0x2a8] sm:$0xff] }
 0x2b7   : > { %v2555_v49 = vpop.f32.mrf.mxu1  ;;  %3299 = vmatpush.msrb.mxu2 %v10579_v7 }
 0x2b8   : > { %v2659_v55 = vmul.f32 %v12945_v34, %v2622_v31  ;;  %2995 = vrot.lane.b32.xlu1 %v13249_v57, %s11515_s6  ;;  %2835 = vrot.lane.b32.xlu2 %v13249_v57, %s11516_s7 }
 0x2b9   : > { %3300 = vmatpush.msrb.mxu2 %v10578_v58 }
 0x2ba   : > { %v2696_v2 = vadd.f32 %v12950_v25, %v2659_v55 }
 0x2bb   : > { %v2300_v11 = vpop.f32.mrf.mxu0 }
 0x2bc   : > { %v2301_v59 = vadd.f32 %v2300_v11, %v2091_v23  ;;  %v2728_v60 = vadd.f32 %v2696_v2, %v11730_v27 }
 0x2bd   : > { %v2097_v54 = vpop.f32.mrf.mxu3  ;;  %v1614_v21 = vpop.permute.xlu1 %1613 }
 0x2be   : > { %v2623_v12 = vadd.f32 %v2555_v49, %v2301_v59  ;;  %1682 = vst.msk [vmem:[#allocation3 + $0xf0] sm:$0xff] %vm430_vm1, %v1614_v21  ;;  %v13267_v50 = vmax.f32 %v2728_v60, 0.0  ;;  %v1775_v45 = vpop.permute.xlu0 %1774 }
 0x2bf   : > { %1714 = vst.msk [vmem:[#allocation3 + $0xf1] sm:$0xff] %vm463_vm2, %v12926_v39  ;;  %v2558_v43 = vpop.f32.mrf.mxu1  ;;  %v10567_v39 = vld [vmem:[%s17568_s1 + $0x248] sm:$0xff] }
 0x2c0   : > { %v2660_v19 = vmul.f32 %v12945_v34, %v2623_v12  ;;  %1842 = vst.msk [vmem:[#allocation3 + $0xef] sm:$0xfe] %vm593_vm4, %v1775_v45  ;;  %2997 = vrot.lane.b32.xlu2 %v13267_v50, %s11515_s6  ;;  %2837 = vrot.lane.b32.xlu0 %v13267_v50, %s11516_s7 }
 0x2c1   : > { %3508 = vmatpush.msrb.mxu3 %v10567_v39 }
 0x2c2   : > { %v2697_v27 = vadd.f32 %v12950_v25, %v2660_v19  ;;  %v2816_v53 = vpop.permute.xlu2 %2815 }
 0x2c3   : > { %2909 = vst.msk [vmem:[#allocation2 + $0x20] sm:$0xff] %vm430_vm1, %v2816_v53  ;;  %v2303_v23 = vpop.f32.mrf.mxu0 }
 0x2c4   : > { %v2304_v5 = vadd.f32 %v2303_v23, %v2094_v42  ;;  %v2729_v0 = vadd.f32 %v2697_v27, %v11739_v28  ;;  %v10655_v28 = vld [vmem:[%s17568_s1 + $0x308] sm:$0xff] }
 0x2c5   : > { %v2100_v63 = vpop.f32.mrf.mxu3  ;;  %3762 = vmatpush.msra.mxu0 %v10655_v28 }
 0x2c6   : > { %v2624_v9 = vadd.f32 %v2558_v43, %v2304_v5  ;;  %v13286_v24 = vmax.f32 %v2729_v0, 0.0 }
 0x2c7   : > { %v2561_v6 = vpop.f32.mrf.mxu1 }
 0x2c8   : > { %v2661_v10 = vmul.f32 %v12945_v34, %v2624_v9  ;;  %2999 = vrot.lane.b32.xlu2 %v13286_v24, %s11515_s6  ;;  %2839 = vrot.lane.b32.xlu0 %v13286_v24, %s11516_s7 }
 0x2ca   : > { %v2698_v13 = vadd.f32 %v12950_v25, %v2661_v10  ;;  %v13294_v3 = vpop.permute.xlu2 %2977  ;;  %v2812_v32 = vpop.permute.xlu0 %2811 }
 0x2cb   : > { %2907 = vst.msk [vmem:[#allocation2 + $0x10] sm:$0xff] %vm430_vm1, %v2812_v32  ;;  %v2306_v42 = vpop.f32.mrf.mxu0 }
 0x2cc   : > { %v2307_v31 = vadd.f32 %v2306_v42, %v2097_v54  ;;  %v2730_v49 = vadd.f32 %v2698_v13, %v11746_v29  ;;  %v10654_v29 = vld [vmem:[%s17568_s1 + $0x300] sm:$0xff] }
 0x2cd   : > { %v2103_v55 = vpop.f32.mrf.mxu3  ;;  %3763 = vmatpush.msra.mxu0 %v10654_v29 }
 0x2ce   : > { %v2625_v2 = vadd.f32 %v2561_v6, %v2307_v31  ;;  %v13301_v26 = vmax.f32 %v2730_v49, 0.0 }
 0x2cf   : > { %v2564_v7 = vpop.f32.mrf.mxu1 }
 0x2d0   : > { %v2662_v11 = vmul.f32 %v12945_v34, %v2625_v2  ;;  %3001 = vrot.lane.b32.xlu0 %v13301_v26, %s11515_s6  ;;  %2841 = vrot.lane.b32.xlu1 %v13301_v26, %s11516_s7 }
 0x2d2   : > { %v2699_v59 = vadd.f32 %v12950_v25, %v2662_v11  ;;  %v2814_v60 = vpop.permute.xlu1 %2813  ;;  %v13309_v21 = vpop.permute.xlu2 %1778 }
 0x2d3   : > { %2908 = vst.msk [vmem:[#allocation2 + $0x18] sm:$0xff] %vm430_vm1, %v2814_v60  ;;  %v2309_v54 = vpop.f32.mrf.mxu0  ;;  %v2974_v43 = vpop.permute.xlu0 %2973 }
 0x2d4   : > { %2939 = vst.msk [vmem:[#allocation2 + $0x11] sm:$0xff] %vm463_vm2, %v12978_v20  ;;  %v2310_v12 = vadd.f32 %v2309_v54, %v2100_v63  ;;  %v2731_v58 = vadd.f32 %v2699_v59, %v11906_v51 }
 0x2d5   : > { %2940 = vst.msk [vmem:[#allocation2 + $0x19] sm:$0x7f] %vm465_vm3, %v13005_v62  ;;  %v2106_v45 = vpop.f32.mrf.mxu3 }
 0x2d6   : > { %3067 = vst.msk [vmem:[#allocation2 + $0xf] sm:$0xfe] %vm593_vm4, %v13257_v22  ;;  %v2626_v19 = vadd.f32 %v2564_v7, %v2310_v12  ;;  %v13322_v27 = vmax.f32 %v2731_v58, 0.0  ;;  %v10566_v22 = vld [vmem:[%s17568_s1 + $0x240] sm:$0xff] }
 0x2d7   : > { %3068 = vst.msk [vmem:[#allocation2 + $0x17] sm:$0xff] %vm595_vm5, %v2974_v43  ;;  %v2567_v53 = vpop.f32.mrf.mxu1  ;;  %3509 = vmatpush.msrb.mxu3 %v10566_v22 }
 0x2d8   : > { %v2663_v39 = vmul.f32 %v12945_v34, %v2626_v19  ;;  %3003 = vrot.lane.b32.xlu0 %v13322_v27, %s11515_s6  ;;  %2843 = vrot.lane.b32.xlu1 %v13322_v27, %s11516_s7 }
 0x2da   : > { %v2700_v51 = vadd.f32 %v12950_v25, %v2663_v39  ;;  %v1777_v23 = vpop.permute.xlu1 %1776  ;;  %v2822_v5 = vpop.permute.xlu2 %2821 }
 0x2db   : > { %1843 = vst.msk [vmem:[#allocation3 + $0xf7] sm:$0xff] %vm595_vm5, %v1777_v23  ;;  %v2312_v0 = vpop.f32.mrf.mxu0 }
 0x2dc   : > { %2912 = vst.msk [vmem:[#allocation2 + $0x38] sm:$0xff] %vm430_vm1, %v2822_v5  ;;  %v2313_v63 = vadd.f32 %v2312_v0, %v2103_v55  ;;  %v2732_v9 = vadd.f32 %v2700_v51, %v11891_v48 }
 0x2dd   : > { %2944 = vst.msk [vmem:[#allocation2 + $0x39] sm:$0x7f] %vm465_vm3, %v13115_v4  ;;  %v2109_v6 = vpop.f32.mrf.mxu3 }
 0x2de   : > { %v2627_v10 = vadd.f32 %v2567_v53, %v2313_v63  ;;  %v13339_v13 = vld [vmem:[#allocation2 + $0x10] sm:$0xff]  ;;  %v13341_v32 = vmax.f32 %v2732_v9, 0.0  ;;  %v13361_v29 = vld [vmem:[#allocation2 + $0x18] sm:$0xff] }
 0x2df   : > { %v2570_v28 = vpop.f32.mrf.mxu1  ;;  %10590 = vmatmul.msk.f32.vlgmr.msrb.gmra.mxu2 %vm196_vm0, %v13339_v13 }
 0x2e0   : > { %v2664_v42 = vmul.f32 %v12945_v34, %v2627_v10  ;;  %3005 = vrot.lane.b32.xlu1 %v13341_v32, %s11515_s6  ;;  %2845 = vrot.lane.b32.xlu2 %v13341_v32, %s11516_s7 }
 0x2e2   : > { %v2701_v48 = vadd.f32 %v12950_v25, %v2664_v42  ;;  %v2976_v31 = vpop.permute.xlu1 %2975  ;;  %v2824_v49 = vpop.permute.xlu2 %2823  ;;  %v1919_v55 = vld [vmem:[#allocation3 + $0xf0] sm:$0xff]  ;;  %v1920_v19 = vld [vmem:[#allocation3 + $0xf8] sm:$0xff] }
 0x2e3   : > { %2913 = vst.msk [vmem:[#allocation2 + $0x40] sm:$0xff] %vm430_vm1, %v2824_v49  ;;  %v2818_v2 = vpop.permute.xlu0 %2817  ;;  %10484 = vmatmul.msk.f32.gmra.mxu3 %vm196_vm0, %v1919_v55  ;;  %v2315_v7 = vpop.f32.mrf.mxu0  ;;  %10518 = vmatmul.msk.f32.gmra.mxu0 %vm196_vm0, %v1919_v55 }
 0x2e4   : > { %2910 = vst.msk [vmem:[#allocation2 + $0x28] sm:$0xff] %vm430_vm1, %v2818_v2  ;;  %v2316_v11 = vadd.f32 %v2315_v7, %v2106_v45  ;;  %10558 = vmatmul.msk.f32.gmra.mxu1 %vm196_vm0, %v1919_v55  ;;  %v2733_v59 = vadd.f32 %v2701_v48, %v11943_v61 }
 0x2e5   : > { %2941 = vst.msk [vmem:[#allocation2 + $0x21] sm:$0xff] %vm463_vm2, %v13034_v17  ;;  %v2112_v61 = vpop.f32.mrf.mxu3 }
 0x2e6   : > { %2942 = vst.msk [vmem:[#allocation2 + $0x29] sm:$0x7f] %vm465_vm3, %v13061_v40  ;;  %v2628_v60 = vadd.f32 %v2570_v28, %v2316_v11  ;;  %v13363_v54 = vmax.f32 %v2733_v59, 0.0 }
 0x2e7   : > { %3069 = vst.msk [vmem:[#allocation2 + $0x1f] sm:$0xfe] %vm593_vm4, %v2976_v31  ;;  %v2573_v12 = vpop.f32.mrf.mxu1  ;;  %10591 = vmatmul.msk.f32.gmra.mxu2 %vm196_vm0, %v13361_v29 }
 0x2e8   : > { %3070 = vst.msk [vmem:[#allocation2 + $0x27] sm:$0xff] %vm595_vm5, %v13294_v3  ;;  %v2665_v58 = vmul.f32 %v12945_v34, %v2628_v60  ;;  %3007 = vrot.lane.b32.xlu1 %v13363_v54, %s11515_s6  ;;  %2847 = vrot.lane.b32.xlu2 %v13363_v54, %s11516_s7 }
 0x2ea   : > { %v2702_v45 = vadd.f32 %v12950_v25, %v2665_v58  ;;  %v1620_v43 = vpop.permute.xlu1 %1619  ;;  %v2986_v49 = vpop.permute.xlu2 %2985 }
 0x2eb   : > { %1685 = vst.msk [vmem:[#allocation3 + $0x108] sm:$0xff] %vm430_vm1, %v1620_v43  ;;  %v1618_v53 = vpop.permute.xlu0 %1617  ;;  %10485 = vmatmul.msk.f32.gmra.mxu3 %vm196_vm0, %v1920_v19  ;;  %v2318_v39 = vpop.f32.mrf.mxu0  ;;  %10519 = vmatmul.msk.f32.gmra.mxu0 %vm196_vm0, %v1920_v19 }
 0x2ec   : > { %1717 = vst.msk [vmem:[#allocation3 + $0x109] sm:$0x7f] %vm465_vm3, %v13087_v38  ;;  %v2319_v3 = vadd.f32 %v2318_v39, %v2109_v6  ;;  %10559 = vmatmul.msk.f32.gmra.mxu1 %vm196_vm0, %v1920_v19  ;;  %v2734_v51 = vadd.f32 %v2702_v45, %v11969_v8 }
 0x2ed   : > { %1684 = vst.msk [vmem:[#allocation3 + $0x100] sm:$0xff] %vm430_vm1, %v1618_v53  ;;  %v2115_v8 = vpop.f32.mrf.mxu3 }
 0x2ee   : > { %1716 = vst.msk [vmem:[#allocation3 + $0x101] sm:$0xff] %vm463_vm2, %v13089_v30  ;;  %v2629_v23 = vadd.f32 %v2573_v12, %v2319_v3  ;;  %v13386_v5 = vmax.f32 %v2734_v51, 0.0 }
 0x2ef   : > { %1844 = vst.msk [vmem:[#allocation3 + $0xff] sm:$0xfe] %vm593_vm4, %v13309_v21  ;;  %v2576_v22 = vpop.f32.mrf.mxu1  ;;  %v13390_v0 = vld [vmem:[#allocation2 + $0x20] sm:$0xff]  ;;  %v13409_v31 = vld [vmem:[#allocation2 + $0x28] sm:$0xff] }
 0x2f0   : > { %v2666_v38 = vmul.f32 %v12945_v34, %v2629_v23  ;;  %10592 = vmatmul.msk.f32.gmra.mxu2 %vm196_vm0, %v13390_v0  ;;  %3009 = vrot.lane.b32.xlu2 %v13386_v5, %s11515_s6 }
 0x2f1   : > { %2849 = vrot.lane.b32.xlu0 %v13386_v5, %s11516_s7 }
 0x2f2   : > { %v2703_v30 = vadd.f32 %v12950_v25, %v2666_v38  ;;  %v2820_v63 = vpop.permute.xlu1 %2819  ;;  %v13433_v53 = vpop.permute.xlu2 %2987 }
 0x2f3   : > { %2911 = vst.msk [vmem:[#allocation2 + $0x30] sm:$0xff] %vm430_vm1, %v2820_v63  ;;  %v1781_v21 = vpop.permute.xlu0 %1780  ;;  %v2321_v9 = vpop.f32.mrf.mxu0  ;;  %10666 = vmatmul.msk.f32.vlgmr.msra.gmra.mxu0 %vm196_vm0, %v13390_v0 }
 0x2f4   : > { %2943 = vst.msk [vmem:[#allocation2 + $0x31] sm:$0xff] %vm463_vm2, %v13113_v16  ;;  %v2322_v6 = vadd.f32 %v2321_v9, %v2112_v61  ;;  %v2735_v10 = vadd.f32 %v2703_v30, %v11994_v14 }
 0x2f5   : > { %1845 = vst.msk [vmem:[#allocation3 + $0x107] sm:$0xff] %vm595_vm5, %v1781_v21  ;;  %v2118_v61 = vpop.f32.mrf.mxu3 }
 0x2f6   : > { %v2630_v28 = vadd.f32 %v2576_v22, %v2322_v6  ;;  %v13407_v42 = vmax.f32 %v2735_v10, 0.0 }
 0x2f7   : > { %v2579_v48 = vpop.f32.mrf.mxu1 }
 0x2f8   : > { %v2667_v55 = vmul.f32 %v12945_v34, %v2630_v28  ;;  %10593 = vmatmul.msk.f32.gmra.mxu2 %vm196_vm0, %v13409_v31  ;;  %3011 = vrot.lane.b32.xlu2 %v13407_v42, %s11515_s6  ;;  %v2385_v28 = vld [vmem:[#allocation3 + $0x110] sm:$0xff] }
 0x2f9   : > { %2851 = vrot.lane.b32.xlu0 %v13407_v42, %s11516_s7 }
 0x2fa   : > { %v2704_v14 = vadd.f32 %v12950_v25, %v2667_v55  ;;  %v2982_v2 = vpop.permute.xlu1 %2981 }
 0x2fb   : > { %3072 = vst.msk [vmem:[#allocation2 + $0x37] sm:$0xff] %vm595_vm5, %v2982_v2  ;;  %v2980_v7 = vpop.permute.xlu0 %2979  ;;  %v2324_v11 = vpop.f32.mrf.mxu0  ;;  %10667 = vmatmul.msk.f32.gmra.mxu0 %vm196_vm0, %v13409_v31 }
 0x2fc   : > { %3071 = vst.msk [vmem:[#allocation2 + $0x2f] sm:$0xfe] %vm593_vm4, %v2980_v7  ;;  %v1921_v59 = vld [vmem:[#allocation3 + $0x100] sm:$0xff]  ;;  %v2325_v60 = vadd.f32 %v2324_v11, %v2115_v8  ;;  %v2736_v12 = vadd.f32 %v2704_v14, %v12014_v18  ;;  %v1922_v23 = vld [vmem:[#allocation3 + $0x108] sm:$0xff]  ;;  %v10711_v11 = vld [vmem:[%s17568_s1 + $0x3b8] sm:$0xff] }
 0x2fd   : > { %10486 = vmatmul.msk.f32.gmra.mxu3 %vm196_vm0, %v1921_v59  ;;  %10560 = vmatmul.msk.f32.gmra.mxu1 %vm196_vm0, %v1921_v59  ;;  %v2121_v21 = vpop.f32.mrf.mxu3  ;;  %v10799_v59 = vld [vmem:[%s17568_s1 + $0x478] sm:$0xff] }
 0x2fe   : > { %v2631_v58 = vadd.f32 %v2579_v48, %v2325_v60  ;;  %v13426_v45 = vmax.f32 %v2736_v12, 0.0  ;;  %v3099_v48 = vld [vmem:[#allocation2] sm:$0xff]  ;;  %v10723_v60 = vld [vmem:[%s17568_s1 + $0x418] sm:$0xff]  ;;  %4718 = vmatpush.msra.mxu2 %v10711_v11  ;;  %4972 = vmatpush.msra.mxu3 %v10799_v59  ;;  %v10722_v11 = vld [vmem:[%s17568_s1 + $0x410] sm:$0xff] }
 0x2ff   : > { %v2582_v19 = vpop.f32.mrf.mxu1  ;;  %4509 = vmatpush.msra.mxu1 %v10723_v60 }
 0x300   : > { %v2668_v43 = vmul.f32 %v12945_v34, %v2631_v58  ;;  %2853 = vrot.lane.b32.xlu1 %v13426_v45, %s11516_s7 }
 0x301   : > { %3013 = vrot.lane.b32.xlu0 %v13426_v45, %s11515_s6  ;;  %4510 = vmatpush.msra.mxu1 %v10722_v11 }
 0x302   : > { %v2705_v18 = vadd.f32 %v12950_v25, %v2668_v43  ;;  %v2984_v8 = vpop.permute.xlu1 %2983  ;;  %v13461_v2 = vld [vmem:[#allocation2 + $0x38] sm:$0xff] }
 0x303   : > { %v2826_v39 = vpop.permute.xlu0 %2825  ;;  %v2327_v3 = vpop.f32.mrf.mxu0  ;;  %v13436_v51 = vld [vmem:[#allocation2 + $0x30] sm:$0xff] }
 0x304   : > { %2914 = vst.msk [vmem:[#allocation2 + $0x48] sm:$0xff] %vm430_vm1, %v2826_v39  ;;  %v2328_v22 = vadd.f32 %v2327_v3, %v2118_v61  ;;  %10594 = vmatmul.msk.f32.gmra.mxu2 %vm196_vm0, %v13436_v51  ;;  %10668 = vmatmul.msk.f32.gmra.mxu0 %vm196_vm0, %v13436_v51  ;;  %v2737_v38 = vadd.f32 %v2705_v18, %v12051_v35  ;;  %v2386_v39 = vld [vmem:[#allocation3 + $0x118] sm:$0xff]  ;;  %v3100_v3 = vld [vmem:[#allocation2 + $0x8] sm:$0xff] }
 0x305   : > { %2945 = vst.msk [vmem:[#allocation2 + $0x41] sm:$0xff] %vm463_vm2, %v13146_v1  ;;  %10487 = vmatmul.msk.f32.gmra.mxu3 %vm196_vm0, %v1922_v23  ;;  %10561 = vmatmul.msk.f32.gmra.mxu1 %vm196_vm0, %v1922_v23  ;;  %v2124_v58 = vpop.f32.mrf.mxu3 }
 0x306   : > { %2946 = vst.msk [vmem:[#allocation2 + $0x49] sm:$0x7f] %vm465_vm3, %v13168_v15  ;;  %v2632_v30 = vadd.f32 %v2582_v19, %v2328_v22  ;;  %v13450_v63 = vmax.f32 %v2737_v38, 0.0 }
 0x307   : > { %3073 = vst.msk [vmem:[#allocation2 + $0x3f] sm:$0xfe] %vm593_vm4, %v2984_v8  ;;  %v2585_v6 = vpop.f32.mrf.mxu1 }
 0x308   : > { %3074 = vst.msk [vmem:[#allocation2 + $0x47] sm:$0xff] %vm595_vm5, %v2986_v49  ;;  %v2669_v35 = vmul.f32 %v12945_v34, %v2632_v30  ;;  %2855 = vrot.lane.b32.xlu1 %v13450_v63, %s11516_s7 }
 0x309   : > { %3015 = vrot.lane.b32.xlu0 %v13450_v63, %s11515_s6 }
 0x30a   : > { %v2706_v9 = vadd.f32 %v12950_v25, %v2669_v35  ;;  %v2834_v10 = vpop.permute.xlu2 %2833 }
 0x30b   : > { %2918 = vst.msk [vmem:[#allocation2 + $0x68] sm:$0xff] %vm430_vm1, %v2834_v10  ;;  %v2828_v55 = vpop.permute.xlu0 %2827  ;;  %v2330_v14 = vpop.f32.mrf.mxu0 }
 0x30c   : > { %2915 = vst.msk [vmem:[#allocation2 + $0x50] sm:$0xff] %vm430_vm1, %v2828_v55  ;;  %v2331_v49 = vadd.f32 %v2330_v14, %v2121_v21  ;;  %10595 = vmatmul.msk.f32.gmra.mxu2 %vm196_vm0, %v13461_v2  ;;  %10669 = vmatmul.msk.f32.gmra.mxu0 %vm196_vm0, %v13461_v2  ;;  %v2738_v7 = vadd.f32 %v2706_v9, %v12048_v33  ;;  %v13523_v9 = vld [vmem:[%s17570_s3 + $0x1] ss:$0 sm:$0xff]  ;;  %v10710_v55 = vld [vmem:[%s17568_s1 + $0x3b0] sm:$0xff] }
 0x30d   : > { %2950 = vst.msk [vmem:[#allocation2 + $0x69] sm:$0x7f] %vm465_vm3, %v13230_v37  ;;  %10562 = vmatmul.msk.f32.gmra.mxu1 %vm196_vm0, %v2385_v28  ;;  %10622 = vmatmul.msk.f32.vlgmr.msrb.gmra.mxu3 %vm196_vm0, %v3099_v48 }
 0x30e   : > { %v2633_v33 = vadd.f32 %v2585_v6, %v2331_v49  ;;  %v13482_v12 = vmax.f32 %v2738_v7, 0.0  ;;  %4719 = vmatpush.msra.mxu2 %v10710_v55  ;;  %v10798_v7 = vld [vmem:[%s17568_s1 + $0x470] sm:$0xff] }
 0x30f   : > { %v13491_v38 = vld [vmem:[#allocation2 + $0x40] sm:$0xff]  ;;  %v2588_v8 = vpop.f32.mrf.mxu1  ;;  %v13527_v10 = vld [vmem:[#allocation2 + $0x48] sm:$0xff]  ;;  %4973 = vmatpush.msra.mxu3 %v10798_v7 }
 0x310   : > { %v2670_v61 = vmul.f32 %v12945_v34, %v2633_v33  ;;  %3017 = vrot.lane.b32.xlu1 %v13482_v12, %s11515_s6  ;;  %2857 = vrot.lane.b32.xlu2 %v13482_v12, %s11516_s7 }
 0x312   : > { %v2707_v43 = vadd.f32 %v12950_v25, %v2670_v61  ;;  %v2830_v19 = vpop.permute.xlu1 %2829  ;;  %v2836_v18 = vpop.permute.xlu2 %2835 }
 0x313   : > { %2916 = vst.msk [vmem:[#allocation2 + $0x58] sm:$0xff] %vm430_vm1, %v2830_v19  ;;  %v2990_v23 = vpop.permute.xlu0 %2989  ;;  %v2333_v22 = vpop.f32.mrf.mxu0 }
 0x314   : > { %2919 = vst.msk [vmem:[#allocation2 + $0x70] sm:$0xff] %vm430_vm1, %v2836_v18  ;;  %v2334_v34 = vadd.f32 %v2333_v22, %v2124_v58  ;;  %10596 = vmatmul.msk.f32.gmra.mxu2 %vm196_vm0, %v13491_v38  ;;  %10670 = vmatmul.msk.f32.gmra.mxu0 %vm196_vm0, %v13491_v38  ;;  %v2739_v25 = vadd.f32 %v2707_v43, %v12078_v41  ;;  %v13513_v41 = vld [vmem:[%s17569_s2 + $0x1] ss:$0 sm:$0xff]  ;;  %v10797_v58 = vld [vmem:[%s17568_s1 + $0x468] sm:$0xff] }
 0x315   : > { %2947 = vst.msk [vmem:[#allocation2 + $0x51] sm:$0xff] %vm463_vm2, %v13187_v36  ;;  %10563 = vmatmul.msk.f32.gmra.mxu1 %vm196_vm0, %v2386_v39  ;;  %10623 = vmatmul.msk.f32.gmra.mxu3 %vm196_vm0, %v3100_v3  ;;  %v10721_v39 = vld [vmem:[%s17568_s1 + $0x408] sm:$0xff] }
 0x316   : > { %2948 = vst.msk [vmem:[#allocation2 + $0x59] sm:$0x7f] %vm465_vm3, %v13204_v46  ;;  %v2634_v30 = vadd.f32 %v2588_v8, %v2334_v34  ;;  %v13505_v21 = vmax.f32 %v2739_v25, 0.0  ;;  %4974 = vmatpush.msra.mxu3 %v10797_v58  ;;  %4511 = vmatpush.msra.mxu1 %v10721_v39 }
 0x317   : > { %3075 = vst.msk [vmem:[#allocation2 + $0x4f] sm:$0xfe] %vm593_vm4, %v13433_v53 }
 0x318   : > { %3076 = vst.msk [vmem:[#allocation2 + $0x57] sm:$0xff] %vm595_vm5, %v2990_v23  ;;  %v2671_v35 = vmul.f32 %v13513_v41, %v2634_v30  ;;  %3019 = vrot.lane.b32.xlu1 %v13505_v21, %s11515_s6  ;;  %2859 = vrot.lane.b32.xlu2 %v13505_v21, %s11516_s7 }
 0x31a   : > { %v2708_v53 = vadd.f32 %v13523_v9, %v2671_v35  ;;  %v2832_v6 = vpop.permute.xlu1 %2831  ;;  %v10708_v35 = vld [vmem:[%s17568_s1 + $0x3a0] sm:$0xff] }
 0x31b   : > { %2917 = vst.msk [vmem:[#allocation2 + $0x60] sm:$0xff] %vm430_vm1, %v2832_v6  ;;  %v2992_v28 = vpop.permute.xlu0 %2991  ;;  %v2336_v43 = vpop.f32.mrf.mxu0 }
 0x31c   : > { %2949 = vst.msk [vmem:[#allocation2 + $0x61] sm:$0xff] %vm463_vm2, %v13218_v47  ;;  %10597 = vmatmul.msk.f32.gmra.mxu2 %vm196_vm0, %v13527_v10  ;;  %10671 = vmatmul.msk.f32.gmra.mxu0 %vm196_vm0, %v13527_v10  ;;  %v2740_v48 = vadd.f32 %v2708_v53, %v12089_v44  ;;  %v10796_v53 = vld [vmem:[%s17568_s1 + $0x460] sm:$0xff] }
 0x31d   : > { %3077 = vst.msk [vmem:[#allocation2 + $0x5f] sm:$0xfe] %vm593_vm4, %v2992_v28  ;;  %10624 = vmatmul.msk.f32.gmra.mxu3 %vm196_vm0, %v13339_v13  ;;  %v2998_v13 = vpop.permute.xlu2 %2997 }
 0x31e   : > { %v13542_v14 = vmax.f32 %v2740_v48, 0.0  ;;  %4975 = vmatpush.msra.mxu3 %v10796_v53 }
 0x31f   : > { %v13549_v44 = vld [vmem:[#allocation2 + $0x50] sm:$0xff]  ;;  %v13563_v59 = vld [vmem:[#allocation2 + $0x58] sm:$0xff] }
 0x320   : > { %3021 = vrot.lane.b32.xlu2 %v13542_v14, %s11515_s6  ;;  %2861 = vrot.lane.b32.xlu0 %v13542_v14, %s11516_s7 }
 0x322   : > { %v2994_v49 = vpop.permute.xlu1 %2993 }
 0x323   : > { %3078 = vst.msk [vmem:[#allocation2 + $0x67] sm:$0xff] %vm595_vm5, %v2994_v49  ;;  %v2339_v25 = vpop.f32.mrf.mxu0 }
 0x324   : > { %10598 = vmatmul.msk.f32.gmra.mxu2 %vm196_vm0, %v13549_v44  ;;  %10672 = vmatmul.msk.f32.gmra.mxu0 %vm196_vm0, %v13549_v44 }
 0x325   : > { %10625 = vmatmul.msk.f32.gmra.mxu3 %vm196_vm0, %v13361_v29  ;;  %v3000_v29 = vpop.permute.xlu2 %2999 }
 0x32a   : > { %v13572_v33 = vld [vmem:[#allocation2 + $0x60] sm:$0xff]  ;;  %v2996_v61 = vpop.permute.xlu1 %2995 }
 0x32c   : > { %10599 = vmatmul.msk.f32.gmra.mxu2 %vm196_vm0, %v13563_v59  ;;  %10673 = vmatmul.msk.f32.gmra.mxu0 %vm196_vm0, %v13563_v59 }
 0x32d   : > { %10626 = vmatmul.msk.f32.gmra.mxu3 %vm196_vm0, %v13390_v0  ;;  %v10709_v0 = vld [vmem:[%s17568_s1 + $0x3a8] sm:$0xff] }
 0x32e   : > { %4720 = vmatpush.msra.mxu2 %v10709_v0 }
 0x330   : > { %4721 = vmatpush.msra.mxu2 %v10708_v35 }
 0x332   : > { %v2838_v60 = vpop.permute.xlu0 %2837 }
 0x333   : > { %2920 = vst.msk [vmem:[#allocation2 + $0x78] sm:$0xff] %vm430_vm1, %v2838_v60 }
 0x334   : > { %2951 = vst.msk [vmem:[#allocation2 + $0x71] sm:$0xff] %vm463_vm2, %v13249_v57  ;;  %10600 = vmatmul.msk.f32.gmra.mxu2 %vm196_vm0, %v13572_v33  ;;  %10674 = vmatmul.msk.f32.gmra.mxu0 %vm196_vm0, %v13572_v33 }
 0x335   : > { %2952 = vst.msk [vmem:[#allocation2 + $0x79] sm:$0x7f] %vm465_vm3, %v13267_v50  ;;  %10627 = vmatmul.msk.f32.gmra.mxu3 %vm196_vm0, %v13409_v31  ;;  %v13593_v31 = vld [vmem:[#allocation2 + $0x68] sm:$0xff] }
 0x336   : > { %3079 = vst.msk [vmem:[#allocation2 + $0x6f] sm:$0xfe] %vm593_vm4, %v2996_v61 }
 0x337   : > { %3080 = vst.msk [vmem:[#allocation2 + $0x77] sm:$0xff] %vm595_vm5, %v2998_v13  ;;  %v2127_v13 = vpop.f32.mrf.mxu3 }
 0x338   : > { %v2337_v7 = vadd.f32 %v2336_v43, %v2127_v13 }
 0x33a   : > { %v2846_v19 = vpop.permute.xlu2 %2845  ;;  %v2840_v18 = vpop.permute.xlu0 %2839 }
 0x33b   : > { %2924 = vst.msk [vmem:[#allocation2 + $0x98] sm:$0xff] %vm430_vm1, %v2846_v19 }
 0x33c   : > { %2921 = vst.msk [vmem:[#allocation2 + $0x80] sm:$0xff] %vm430_vm1, %v2840_v18  ;;  %10601 = vmatmul.msk.f32.gmra.mxu2 %vm196_vm0, %v13593_v31  ;;  %10675 = vmatmul.msk.f32.gmra.mxu0 %vm196_vm0, %v13593_v31 }
 0x33d   : > { %2956 = vst.msk [vmem:[#allocation2 + $0x99] sm:$0x7f] %vm465_vm3, %v13341_v32  ;;  %10628 = vmatmul.msk.f32.gmra.mxu3 %vm196_vm0, %v13436_v51 }
 0x33e   : > { %v13608_v34 = vld [vmem:[#allocation2 + $0x70] sm:$0xff]  ;;  %v13624_v8 = vld [vmem:[#allocation2 + $0x78] sm:$0xff] }
 0x342   : > { %v2842_v3 = vpop.permute.xlu1 %2841  ;;  %v2848_v23 = vpop.permute.xlu2 %2847 }
 0x343   : > { %2922 = vst.msk [vmem:[#allocation2 + $0x88] sm:$0xff] %vm430_vm1, %v2842_v3  ;;  %v3002_v22 = vpop.permute.xlu0 %3001 }
 0x344   : > { %2925 = vst.msk [vmem:[#allocation2 + $0xa0] sm:$0xff] %vm430_vm1, %v2848_v23  ;;  %10602 = vmatmul.msk.f32.gmra.mxu2 %vm196_vm0, %v13608_v34  ;;  %10676 = vmatmul.msk.f32.gmra.mxu0 %vm196_vm0, %v13608_v34 }
 0x345   : > { %2953 = vst.msk [vmem:[#allocation2 + $0x81] sm:$0xff] %vm463_vm2, %v13286_v24  ;;  %10629 = vmatmul.msk.f32.gmra.mxu3 %vm196_vm0, %v13461_v2  ;;  %v13635_v2 = vpop.f32.mrf.mxu0 }
 0x346   : > { %2954 = vst.msk [vmem:[#allocation2 + $0x89] sm:$0x7f] %vm465_vm3, %v13301_v26 }
 0x347   : > { %3081 = vst.msk [vmem:[#allocation2 + $0x7f] sm:$0xfe] %vm593_vm4, %v3000_v29 }
 0x348   : > { %3082 = vst.msk [vmem:[#allocation2 + $0x87] sm:$0xff] %vm595_vm5, %v3002_v22 }
 0x34a   : > { %v2844_v51 = vpop.permute.xlu1 %2843  ;;  %v3010_v55 = vpop.permute.xlu2 %3009 }
 0x34b   : > { %2923 = vst.msk [vmem:[#allocation2 + $0x90] sm:$0xff] %vm430_vm1, %v2844_v51  ;;  %v3004_v30 = vpop.permute.xlu0 %3003  ;;  %v10795_v51 = vld [vmem:[%s17568_s1 + $0x458] sm:$0xff] }
 0x34c   : > { %2955 = vst.msk [vmem:[#allocation2 + $0x91] sm:$0xff] %vm463_vm2, %v13322_v27  ;;  %10603 = vmatmul.msk.f32.gmra.mxu2 %vm196_vm0, %v13624_v8  ;;  %10677 = vmatmul.msk.f32.gmra.mxu0 %vm196_vm0, %v13624_v8 }
 0x34d   : > { %3083 = vst.msk [vmem:[#allocation2 + $0x8f] sm:$0xfe] %vm593_vm4, %v3004_v30  ;;  %10630 = vmatmul.msk.f32.gmra.mxu3 %vm196_vm0, %v13491_v38  ;;  %v10720_v38 = vld [vmem:[%s17568_s1 + $0x400] sm:$0xff]  ;;  %v13655_v48 = vpop.f32.mrf.mxu0 }
 0x34e   : > { %4512 = vmatpush.msra.mxu1 %v10720_v38  ;;  %4976 = vmatpush.msra.mxu3 %v10795_v51 }
 0x34f   : > { %v13644_v28 = vld [vmem:[#allocation2 + $0x80] sm:$0xff]  ;;  %v13657_v49 = vld [vmem:[#allocation2 + $0x88] sm:$0xff] }
 0x352   : > { %v3006_v6 = vpop.permute.xlu1 %3005  ;;  %v3012_v29 = vpop.permute.xlu2 %3011 }
 0x353   : > { %3084 = vst.msk [vmem:[#allocation2 + $0x97] sm:$0xff] %vm595_vm5, %v3006_v6 }
 0x354   : > { %10604 = vmatmul.msk.f32.gmra.mxu2 %vm196_vm0, %v13644_v28  ;;  %10678 = vmatmul.msk.f32.gmra.mxu0 %vm196_vm0, %v13644_v28 }
 0x355   : > { %10631 = vmatmul.msk.f32.gmra.mxu3 %vm196_vm0, %v13527_v10 }
 0x35a   : > { %v13669_v58 = vld [vmem:[#allocation2 + $0x90] sm:$0xff]  ;;  %v3008_v43 = vpop.permute.xlu1 %3007  ;;  %v13704_v6 = vld [vmem:[#allocation2 + $0x98] sm:$0xff] }
 0x35c   : > { %10605 = vmatmul.msk.f32.gmra.mxu2 %vm196_vm0, %v13657_v49  ;;  %10679 = vmatmul.msk.f32.gmra.mxu0 %vm196_vm0, %v13657_v49 }
 0x35d   : > { %10632 = vmatmul.msk.f32.gmra.mxu3 %vm196_vm0, %v13549_v44  ;;  %v2130_v44 = vpop.f32.mrf.mxu3 }
 0x35e   : > { %v2340_v39 = vadd.f32 %v2339_v25, %v2130_v44 }
 0x360   : > { %v13665_v11 = vpop.f32.mrf.mxu0 }
 0x361   : > { %v2591_v10 = vpop.f32.mrf.mxu1 }
 0x362   : > { %v2635_v60 = vadd.f32 %v2591_v10, %v2337_v7  ;;  %v13667_v61 = vpop.f32.mrf.mxu2 }
 0x363   : > { %v2850_v0 = vpop.permute.xlu0 %2849 }
 0x364   : > { %v2672_v19 = vmul.f32 %v13513_v41, %v2635_v60  ;;  %2926 = vst.msk [vmem:[#allocation2 + $0xa8] sm:$0xff] %vm430_vm1, %v2850_v0  ;;  %10606 = vmatmul.msk.f32.gmra.mxu2 %vm196_vm0, %v13669_v58  ;;  %10680 = vmatmul.msk.f32.gmra.mxu0 %vm196_vm0, %v13669_v58  ;;  %v10719_v60 = vld [vmem:[%s17568_s1 + $0x3f8] sm:$0xff] }
 0x365   : > { %2957 = vst.msk [vmem:[#allocation2 + $0xa1] sm:$0xff] %vm463_vm2, %v13363_v54  ;;  %10633 = vmatmul.msk.f32.gmra.mxu3 %vm196_vm0, %v13563_v59  ;;  %v10707_v59 = vld [vmem:[%s17568_s1 + $0x398] sm:$0xff]  ;;  %4513 = vmatpush.msra.mxu1 %v10719_v60 }
 0x366   : > { %v2709_v18 = vadd.f32 %v13523_v9, %v2672_v19  ;;  %2958 = vst.msk [vmem:[#allocation2 + $0xa9] sm:$0x7f] %vm465_vm3, %v13386_v5  ;;  %4722 = vmatpush.msra.mxu2 %v10707_v59 }
 0x367   : > { %3085 = vst.msk [vmem:[#allocation2 + $0x9f] sm:$0xfe] %vm593_vm4, %v3008_v43 }
 0x368   : > { %v2741_v3 = vadd.f32 %v2709_v18, %v12111_v52  ;;  %3086 = vst.msk [vmem:[#allocation2 + $0xa7] sm:$0xff] %vm595_vm5, %v3010_v55  ;;  %v13687_v23 = vpop.f32.mrf.mxu0  ;;  %v2133_v55 = vpop.f32.mrf.mxu3 }
 0x369   : > { %v2594_v22 = vpop.f32.mrf.mxu1 }
 0x36a   : > { %v2636_v30 = vadd.f32 %v2594_v22, %v2340_v39  ;;  %v2858_v35 = vpop.permute.xlu2 %2857  ;;  %v13695_v53 = vmax.f32 %v2741_v3, 0.0  ;;  %v13706_v38 = vpop.f32.mrf.mxu2  ;;  %v2343_v3 = vadd.f32 %v13635_v2, %v2133_v55  ;;  %v10718_v55 = vld [vmem:[%s17568_s1 + $0x3f0] sm:$0xff] }
 0x36b   : > { %2930 = vst.msk [vmem:[#allocation2 + $0xc8] sm:$0xff] %vm430_vm1, %v2858_v35  ;;  %v2852_v52 = vpop.permute.xlu0 %2851  ;;  %v10706_v35 = vld [vmem:[%s17568_s1 + $0x390] sm:$0xff]  ;;  %4514 = vmatpush.msra.mxu1 %v10718_v55 }
 0x36c   : > { %v2673_v25 = vmul.f32 %v13513_v41, %v2636_v30  ;;  %2927 = vst.msk [vmem:[#allocation2 + $0xb0] sm:$0xff] %vm430_vm1, %v2852_v52  ;;  %3023 = vrot.lane.b32.xlu2 %v13695_v53, %s11515_s6  ;;  %2863 = vrot.lane.b32.xlu0 %v13695_v53, %s11516_s7 }
 0x36d   : > { %2962 = vst.msk [vmem:[#allocation2 + $0xc9] sm:$0x7f] %vm465_vm3, %v13482_v12  ;;  %10607 = vmatmul.msk.f32.gmra.mxu2 %vm196_vm0, %v13704_v6  ;;  %10634 = vmatmul.msk.f32.gmra.mxu3 %vm196_vm0, %v13572_v33 }
 0x36e   : > { %v2710_v13 = vadd.f32 %v13523_v9, %v2673_v25  ;;  %10681 = vmatmul.msk.f32.gmra.mxu0 %vm196_vm0, %v13704_v6  ;;  %4723 = vmatpush.msra.mxu2 %v10706_v35  ;;  %v10794_v25 = vld [vmem:[%s17568_s1 + $0x450] sm:$0xff] }
 0x36f   : > { %v13753_v30 = vld [vmem:[#allocation2 + $0xa8] sm:$0xff]  ;;  %4977 = vmatpush.msra.mxu3 %v10794_v25 }
 0x370   : > { %v2742_v7 = vadd.f32 %v2710_v13, %v12125_v56  ;;  %v13718_v10 = vpop.f32.mrf.mxu0  ;;  %v13731_v56 = vld [vmem:[#allocation2 + $0xa0] sm:$0xff]  ;;  %v2136_v18 = vpop.f32.mrf.mxu3  ;;  %v17592_v13 = vld [vmem:[#allocation8_spill] sm:$0xff] }
 0x372   : > { %v2854_v0 = vpop.permute.xlu1 %2853  ;;  %v2860_v19 = vpop.permute.xlu2 %2859  ;;  %v13723_v44 = vmax.f32 %v2742_v7, 0.0 }
 0x373   : > { %2928 = vst.msk [vmem:[#allocation2 + $0xb8] sm:$0xff] %vm430_vm1, %v2854_v0  ;;  %v3014_v33 = vpop.permute.xlu0 %3013  ;;  %v13743_v43 = vpop.f32.mrf.mxu2 }
 0x374   : > { %2931 = vst.msk [vmem:[#allocation2 + $0xd0] sm:$0xff] %vm430_vm1, %v2860_v19  ;;  %3025 = vrot.lane.b32.xlu0 %v13723_v44, %s11515_s6  ;;  %2865 = vrot.lane.b32.xlu1 %v13723_v44, %s11516_s7 }
 0x375   : > { %2959 = vst.msk [vmem:[#allocation2 + $0xb1] sm:$0xff] %vm463_vm2, %v13407_v42  ;;  %10608 = vmatmul.msk.f32.gmra.mxu2 %vm196_vm0, %v13731_v56  ;;  %10635 = vmatmul.msk.f32.gmra.mxu3 %vm196_vm0, %v13593_v31 }
 0x376   : > { %2960 = vst.msk [vmem:[#allocation2 + $0xb9] sm:$0x7f] %vm465_vm3, %v13426_v45  ;;  %10682 = vmatmul.msk.f32.gmra.mxu0 %vm196_vm0, %v13731_v56 }
 0x377   : > { %3087 = vst.msk [vmem:[#allocation2 + $0xaf] sm:$0xfe] %vm593_vm4, %v3012_v29 }
 0x378   : > { %3088 = vst.msk [vmem:[#allocation2 + $0xb7] sm:$0xff] %vm595_vm5, %v3014_v33  ;;  %v13747_v39 = vpop.f32.mrf.mxu0 }
 0x37a   : > { %v2597_v22 = vpop.f32.mrf.mxu1  ;;  %v2856_v59 = vpop.permute.xlu1 %2855 }
 0x37b   : > { %v2637_v31 = vadd.f32 %v2597_v22, %v2343_v3  ;;  %2929 = vst.msk [vmem:[#allocation2 + $0xc0] sm:$0xff] %vm430_vm1, %v2856_v59  ;;  %v3016_v51 = vpop.permute.xlu0 %3015  ;;  %v13775_v60 = vpop.f32.mrf.mxu2 }
 0x37c   : > { %2961 = vst.msk [vmem:[#allocation2 + $0xc1] sm:$0xff] %vm463_vm2, %v13450_v63 }
 0x37d   : > { %v2674_v29 = vmul.f32 %v13513_v41, %v2637_v31  ;;  %3089 = vst.msk [vmem:[#allocation2 + $0xbf] sm:$0xfe] %vm593_vm4, %v3016_v51  ;;  %10609 = vmatmul.msk.f32.gmra.mxu2 %vm196_vm0, %v13753_v30  ;;  %10636 = vmatmul.msk.f32.gmra.mxu3 %vm196_vm0, %v13608_v34  ;;  %v2346_v34 = vadd.f32 %v13655_v48, %v2136_v18 }
 0x37e   : > { %10683 = vmatmul.msk.f32.gmra.mxu0 %vm196_vm0, %v13753_v30 }
 0x37f   : > { %v2711_v2 = vadd.f32 %v13523_v9, %v2674_v29  ;;  %v13787_v48 = vld [vmem:[#allocation2 + $0xb0] sm:$0xff]  ;;  %v17594_v29 = vld [vmem:[#allocation7_spill] sm:$0xff] }
 0x380   : > { %v2139_v52 = vpop.f32.mrf.mxu3 }
 0x381   : > { %v2743_v7 = vadd.f32 %v2711_v2, %v17592_v13  ;;  %v13777_v0 = vpop.f32.mrf.mxu0  ;;  %v2349_v51 = vadd.f32 %v13665_v11, %v2139_v52  ;;  %v10705_v52 = vld [vmem:[%s17568_s1 + $0x388] sm:$0xff] }
 0x382   : > { %v2600_v19 = vpop.f32.mrf.mxu1  ;;  %v3018_v33 = vpop.permute.xlu1 %3017  ;;  %4724 = vmatpush.msra.mxu2 %v10705_v52 }
 0x383   : > { %v2638_v3 = vadd.f32 %v2600_v19, %v2346_v34  ;;  %3090 = vst.msk [vmem:[#allocation2 + $0xc7] sm:$0xff] %vm595_vm5, %v3018_v33  ;;  %v13780_v22 = vmax.f32 %v2743_v7, 0.0  ;;  %v13809_v7 = vld [vmem:[#allocation2 + $0xb8] sm:$0xff] }
 0x385   : > { %17593 = vst [vmem:[#allocation8_spill] sm:$0xff] %v13780_v22  ;;  %v2675_v59 = vmul.f32 %v13513_v41, %v2638_v3  ;;  %3027 = vrot.lane.b32.xlu0 %v13780_v22, %s11515_s6  ;;  %2867 = vrot.lane.b32.xlu1 %v13780_v22, %s11516_s7  ;;  %v17596_v3 = vld [vmem:[#allocation10_spill] sm:$0xff] }
 0x386   : > { %10610 = vmatmul.msk.f32.gmra.mxu2 %vm196_vm0, %v13787_v48  ;;  %10637 = vmatmul.msk.f32.gmra.mxu3 %vm196_vm0, %v13624_v8 }
 0x387   : > { %v2712_v18 = vadd.f32 %v13523_v9, %v2675_v59  ;;  %10684 = vmatmul.msk.f32.gmra.mxu0 %vm196_vm0, %v13787_v48  ;;  %v13800_v25 = vpop.f32.mrf.mxu2 }
 0x388   : > { %v2142_v31 = vpop.f32.mrf.mxu3 }
 0x389   : > { %v2744_v2 = vadd.f32 %v2712_v18, %v17594_v29  ;;  %v13798_v35 = vpop.f32.mrf.mxu0  ;;  %v2352_v33 = vadd.f32 %v13687_v23, %v2142_v31  ;;  %v3022_v31 = vpop.permute.xlu2 %3021 }
 0x38a   : > { %v2603_v55 = vpop.f32.mrf.mxu1 }
 0x38b   : > { %v2639_v34 = vadd.f32 %v2603_v55, %v2349_v51  ;;  %v13802_v13 = vmax.f32 %v2744_v2, 0.0 }
 0x38d   : > { %17595 = vst [vmem:[#allocation7_spill] sm:$0xff] %v13802_v13  ;;  %v2676_v8 = vmul.f32 %v13513_v41, %v2639_v34  ;;  %3029 = vrot.lane.b32.xlu1 %v13802_v13, %s11515_s6  ;;  %2869 = vrot.lane.b32.xlu2 %v13802_v13, %s11516_s7 }
 0x38e   : > { %10611 = vmatmul.msk.f32.gmra.mxu2 %vm196_vm0, %v13809_v7  ;;  %10638 = vmatmul.msk.f32.gmra.mxu3 %vm196_vm0, %v13644_v28 }
 0x38f   : > { %v2713_v11 = vadd.f32 %v13523_v9, %v2676_v8  ;;  %10685 = vmatmul.msk.f32.gmra.mxu0 %vm196_vm0, %v13809_v7  ;;  %v13829_v34 = vpop.f32.mrf.mxu2  ;;  %v3020_v8 = vpop.permute.xlu1 %3019 }
 0x390   : > { %v3511_v19 = vpop.f32.mrf.mxu3 }
 0x391   : > { %v2745_v59 = vadd.f32 %v2713_v11, %v17596_v3  ;;  %v13823_v18 = vpop.f32.mrf.mxu0  ;;  %v3512_v28 = vadd.f32 %v3511_v19, %v13667_v61  ;;  %v13840_v61 = vld [vmem:[#allocation2 + $0xc0] sm:$0xff]  ;;  %v10793_v19 = vld [vmem:[%s17568_s1 + $0x448] sm:$0xff] }
 0x392   : > { %v2606_v51 = vpop.f32.mrf.mxu1  ;;  %v2862_v29 = vpop.permute.xlu0 %2861  ;;  %v13851_v11 = vld [vmem:[%s17569_s2 + $0x2] ss:$0 sm:$0xff]  ;;  %4978 = vmatpush.msra.mxu3 %v10793_v19 }
 0x393   : > { %v2640_v2 = vadd.f32 %v2606_v51, %v2352_v33  ;;  %2932 = vst.msk [vmem:[#allocation2 + $0xd8] sm:$0xff] %vm430_vm1, %v2862_v29  ;;  %v13827_v55 = vmax.f32 %v2745_v59, 0.0  ;;  %v17597_v33 = vld [vmem:[#allocation9_spill] sm:$0xff]  ;;  %v13871_v29 = vld [vmem:[%s17570_s3 + $0x2] ss:$0 sm:$0xff] }
 0x394   : > { %2963 = vst.msk [vmem:[#allocation2 + $0xd1] sm:$0xff] %vm463_vm2, %v13505_v21 }
 0x395   : > { %v2677_v23 = vmul.f32 %v13513_v41, %v2640_v2  ;;  %2964 = vst.msk [vmem:[#allocation2 + $0xd9] sm:$0x7f] %vm465_vm3, %v13542_v14  ;;  %3031 = vrot.lane.b32.xlu1 %v13827_v55, %s11515_s6  ;;  %2871 = vrot.lane.b32.xlu2 %v13827_v55, %s11516_s7  ;;  %v3861_v41 = vadd.f32 %v13718_v10, %v3512_v28 }
 0x396   : > { %3091 = vst.msk [vmem:[#allocation2 + $0xcf] sm:$0xfe] %vm593_vm4, %v3020_v8  ;;  %10612 = vmatmul.msk.f32.gmra.mxu2 %vm196_vm0, %v13840_v61  ;;  %10639 = vmatmul.msk.f32.gmra.mxu3 %vm196_vm0, %v13657_v49  ;;  %v10717_v49 = vld [vmem:[%s17568_s1 + $0x3e8] sm:$0xff] }
 0x397   : > { %v2714_v52 = vadd.f32 %v13523_v9, %v2677_v23  ;;  %3092 = vst.msk [vmem:[#allocation2 + $0xd7] sm:$0xff] %vm595_vm5, %v3022_v31  ;;  %10686 = vmatmul.msk.f32.gmra.mxu0 %vm196_vm0, %v13840_v61  ;;  %4515 = vmatpush.msra.mxu1 %v10717_v49  ;;  %v3898_v51 = vmul.f32 %v13851_v11, %v3861_v41  ;;  %v13883_v23 = vpop.f32.mrf.mxu2 }
 0x398   : > { %v3514_v10 = vpop.f32.mrf.mxu3 }
 0x399   : > { %v2746_v3 = vadd.f32 %v2714_v52, %v17597_v33  ;;  %v3515_v9 = vadd.f32 %v3514_v10, %v13706_v38  ;;  %v13865_v59 = vpop.f32.mrf.mxu0  ;;  %v13881_v38 = vld [vmem:[#allocation2 + $0xc8] sm:$0xff] }
 0x39b   : > { %v3862_v28 = vadd.f32 %v13747_v39, %v3515_v9  ;;  %v13874_v2 = vmax.f32 %v2746_v3, 0.0  ;;  %v3935_v39 = vadd.f32 %v13871_v29, %v3898_v51  ;;  %v10704_v3 = vld [vmem:[%s17568_s1 + $0x380] sm:$0xff] }
 0x39c   : > { %v10792_v9 = vld [vmem:[%s17568_s1 + $0x440] sm:$0xff]  ;;  %4725 = vmatpush.msra.mxu2 %v10704_v3 }
 0x39d   : > { %v3899_v8 = vmul.f32 %v13851_v11, %v3862_v28  ;;  %3033 = vrot.lane.b32.xlu2 %v13874_v2, %s11515_s6  ;;  %2873 = vrot.lane.b32.xlu0 %v13874_v2, %s11516_s7 }
 0x39e   : > { %10613 = vmatmul.msk.f32.gmra.mxu2 %vm196_vm0, %v13881_v38  ;;  %10640 = vmatmul.msk.f32.gmra.mxu3 %vm196_vm0, %v13669_v58  ;;  %v13901_v58 = vmax.f32 %v3935_v39, 0.0 }
 0x39f   : > { %v3936_v31 = vadd.f32 %v13871_v29, %v3899_v8  ;;  %10687 = vmatmul.msk.f32.gmra.mxu0 %vm196_vm0, %v13881_v38  ;;  %v3323_v51 = vpop.f32.mrf.mxu2  ;;  %4979 = vmatpush.msra.mxu3 %v10792_v9 }
 0x3a0   : > { %v3517_v41 = vpop.f32.mrf.mxu3 }
 0x3a1   : > { %v3518_v52 = vadd.f32 %v3517_v41, %v13743_v43  ;;  %v13894_v19 = vpop.f32.mrf.mxu0  ;;  %v13896_v49 = vmax.f32 %v3936_v31, 0.0  ;;  %v13908_v43 = vld [vmem:[#allocation2 + $0xd0] sm:$0xff] }
 0x3a3   : > { %v3863_v10 = vadd.f32 %v13777_v0, %v3518_v52  ;;  %4033 = vrot.lane.b32.xlu1 %v13896_v49, %s11516_s7  ;;  %v13932_v52 = vld [vmem:[#allocation2 + $0xd8] sm:$0xff] }
 0x3a5   : > { %v3900_v33 = vmul.f32 %v13851_v11, %v3863_v10  ;;  %4191 = vrot.lane.b32.xlu2 %v13901_v58, %s11515_s6  ;;  %4031 = vrot.lane.b32.xlu0 %v13901_v58, %s11516_s7 }
 0x3a6   : > { %10614 = vmatmul.msk.f32.gmra.mxu2 %vm196_vm0, %v13908_v43  ;;  %10641 = vmatmul.msk.f32.gmra.mxu3 %vm196_vm0, %v13704_v6 }
 0x3a7   : > { %v3937_v0 = vadd.f32 %v13871_v29, %v3900_v33  ;;  %10688 = vmatmul.msk.f32.gmra.mxu0 %vm196_vm0, %v13908_v43  ;;  %v3326_v3 = vpop.f32.mrf.mxu2 }
 0x3a8   : > { %v3520_v28 = vpop.f32.mrf.mxu3 }
 0x3a9   : > { %v3521_v8 = vadd.f32 %v3520_v28, %v13775_v60  ;;  %v13924_v6 = vmax.f32 %v3937_v0, 0.0  ;;  %v3786_v31 = vpop.f32.mrf.mxu0 }
 0x3ab   : > { %v3864_v39 = vadd.f32 %v13798_v35, %v3521_v8  ;;  %4035 = vrot.lane.b32.xlu1 %v13924_v6, %s11516_s7  ;;  %v10716_v35 = vld [vmem:[%s17568_s1 + $0x3e0] sm:$0xff] }
 0x3ac   : > { %4516 = vmatpush.msra.mxu1 %v10716_v35 }
 0x3ad   : > { %v3901_v41 = vmul.f32 %v13851_v11, %v3864_v39  ;;  %4193 = vrot.lane.b32.xlu0 %v13896_v49, %s11515_s6 }
 0x3ae   : > { %10615 = vmatmul.msk.f32.gmra.mxu2 %vm196_vm0, %v13932_v52  ;;  %10642 = vmatmul.msk.f32.gmra.mxu3 %vm196_vm0, %v13731_v56 }
 0x3af   : > { %v3938_v60 = vadd.f32 %v13871_v29, %v3901_v41  ;;  %10689 = vmatmul.msk.f32.gmra.mxu0 %vm196_vm0, %v13932_v52 }
 0x3b0   : > { %v3523_v10 = vpop.f32.mrf.mxu3 }
 0x3b1   : > { %v3524_v33 = vadd.f32 %v3523_v10, %v13800_v25  ;;  %v13945_v0 = vmax.f32 %v3938_v60, 0.0  ;;  %v3789_v28 = vpop.f32.mrf.mxu0  ;;  %v3329_v60 = vpop.f32.mrf.mxu2 }
 0x3b3   : > { %v3865_v9 = vadd.f32 %v13823_v18, %v3524_v33  ;;  %4197 = vrot.lane.b32.xlu1 %v13945_v0, %s11515_s6  ;;  %4037 = vrot.lane.b32.xlu2 %v13945_v0, %s11516_s7  ;;  %v10715_v33 = vld [vmem:[%s17568_s1 + $0x3d8] sm:$0xff] }
 0x3b4   : > { %4517 = vmatpush.msra.mxu1 %v10715_v33 }
 0x3b5   : > { %v3902_v56 = vmul.f32 %v13851_v11, %v3865_v9  ;;  %4195 = vrot.lane.b32.xlu0 %v13924_v6, %s11515_s6 }
 0x3b6   : > { %10643 = vmatmul.msk.f32.gmra.mxu3 %vm196_vm0, %v13753_v30 }
 0x3b7   : > { %v3939_v25 = vadd.f32 %v13871_v29, %v3902_v56 }
 0x3b8   : > { %v3526_v8 = vpop.f32.mrf.mxu3 }
 0x3b9   : > { %v3527_v18 = vadd.f32 %v3526_v8, %v13829_v34  ;;  %v13959_v39 = vmax.f32 %v3939_v25, 0.0  ;;  %v3792_v10 = vpop.f32.mrf.mxu0  ;;  %v10703_v34 = vld [vmem:[%s17568_s1 + $0x378] sm:$0xff] }
 0x3ba   : > { %4726 = vmatpush.msra.mxu2 %v10703_v34 }
 0x3bb   : > { %v3866_v41 = vadd.f32 %v13865_v59, %v3527_v18  ;;  %4199 = vrot.lane.b32.xlu1 %v13959_v39, %s11515_s6  ;;  %4039 = vrot.lane.b32.xlu2 %v13959_v39, %s11516_s7  ;;  %v10791_v59 = vld [vmem:[%s17568_s1 + $0x438] sm:$0xff]  ;;  %v3332_v18 = vpop.f32.mrf.mxu2 }
 0x3bc   : > { %4980 = vmatpush.msra.mxu3 %v10791_v59 }
 0x3bd   : > { %v3903_v35 = vmul.f32 %v13851_v11, %v3866_v41 }
 0x3be   : > { %10644 = vmatmul.msk.f32.gmra.mxu3 %vm196_vm0, %v13787_v48 }
 0x3bf   : > { %v3940_v30 = vadd.f32 %v13871_v29, %v3903_v35 }
 0x3c0   : > { %v3529_v9 = vpop.f32.mrf.mxu3 }
 0x3c1   : > { %v3530_v48 = vadd.f32 %v3529_v9, %v13883_v23  ;;  %v13980_v56 = vmax.f32 %v3940_v30, 0.0  ;;  %v3795_v35 = vpop.f32.mrf.mxu0 }
 0x3c3   : > { %v3867_v25 = vadd.f32 %v13894_v19, %v3530_v48  ;;  %4201 = vrot.lane.b32.xlu2 %v13980_v56, %s11515_s6  ;;  %4041 = vrot.lane.b32.xlu0 %v13980_v56, %s11516_s7  ;;  %v3335_v33 = vpop.f32.mrf.mxu2 }
 0x3c5   : > { %v3904_v8 = vmul.f32 %v13851_v11, %v3867_v25 }
 0x3c6   : > { %10645 = vmatmul.msk.f32.gmra.mxu3 %vm196_vm0, %v13809_v7 }
 0x3c7   : > { %v3941_v41 = vadd.f32 %v13871_v29, %v3904_v8 }
 0x3c8   : > { %v3532_v23 = vpop.f32.mrf.mxu3 }
 0x3c9   : > { %v3533_v30 = vadd.f32 %v3532_v23, %v3323_v51  ;;  %v13991_v34 = vmax.f32 %v3941_v41, 0.0  ;;  %v10702_v51 = vld [vmem:[%s17568_s1 + $0x370] sm:$0xff]  ;;  %v3798_v25 = vpop.f32.mrf.mxu0 }
 0x3ca   : > { %4727 = vmatpush.msra.mxu2 %v10702_v51 }
 0x3cb   : > { %v3868_v19 = vadd.f32 %v3786_v31, %v3533_v30  ;;  %4203 = vrot.lane.b32.xlu2 %v13991_v34, %s11515_s6  ;;  %4043 = vrot.lane.b32.xlu0 %v13991_v34, %s11516_s7 }
 0x3cd   : > { %v3905_v59 = vmul.f32 %v13851_v11, %v3868_v19 }
 0x3ce   : > { %10646 = vmatmul.msk.f32.gmra.mxu3 %vm196_vm0, %v13840_v61 }
 0x3cf   : > { %v3942_v7 = vadd.f32 %v13871_v29, %v3905_v59  ;;  %v3338_v59 = vpop.f32.mrf.mxu2 }
 0x3d0   : > { %v3535_v9 = vpop.f32.mrf.mxu3 }
 0x3d1   : > { %v3536_v31 = vadd.f32 %v3535_v9, %v3326_v3  ;;  %v14004_v48 = vmax.f32 %v3942_v7, 0.0  ;;  %v10790_v3 = vld [vmem:[%s17568_s1 + $0x430] sm:$0xff] }
 0x3d2   : > { %4981 = vmatpush.msra.mxu3 %v10790_v3 }
 0x3d3   : > { %v3869_v8 = vadd.f32 %v3789_v28, %v3536_v31  ;;  %4205 = vrot.lane.b32.xlu0 %v14004_v48, %s11515_s6  ;;  %4045 = vrot.lane.b32.xlu1 %v14004_v48, %s11516_s7  ;;  %v10714_v28 = vld [vmem:[%s17568_s1 + $0x3d0] sm:$0xff]  ;;  %v3024_v31 = vpop.permute.xlu2 %3023 }
 0x3d4   : > { %4518 = vmatpush.msra.mxu1 %v10714_v28 }
 0x3d5   : > { %v3906_v61 = vmul.f32 %v13851_v11, %v3869_v8 }
 0x3d6   : > { %10647 = vmatmul.msk.f32.gmra.mxu3 %vm196_vm0, %v13881_v38  ;;  %v3801_v38 = vpop.f32.mrf.mxu0 }
 0x3d7   : > { %v3943_v41 = vadd.f32 %v13871_v29, %v3906_v61  ;;  %v3341_v3 = vpop.f32.mrf.mxu2 }
 0x3d8   : > { %v3538_v23 = vpop.f32.mrf.mxu3 }
 0x3d9   : > { %v3539_v30 = vadd.f32 %v3538_v23, %v3329_v60  ;;  %v14020_v19 = vmax.f32 %v3943_v41, 0.0 }
 0x3db   : > { %v3870_v7 = vadd.f32 %v3792_v10, %v3539_v30  ;;  %4207 = vrot.lane.b32.xlu0 %v14020_v19, %s11515_s6  ;;  %4047 = vrot.lane.b32.xlu1 %v14020_v19, %s11516_s7 }
 0x3dd   : > { %v3907_v51 = vmul.f32 %v13851_v11, %v3870_v7  ;;  %v10701_v7 = vld [vmem:[%s17568_s1 + $0x368] sm:$0xff] }
 0x3de   : > { %10648 = vmatmul.msk.f32.gmra.mxu3 %vm196_vm0, %v13908_v43  ;;  %v2864_v9 = vpop.permute.xlu0 %2863  ;;  %v3804_v23 = vpop.f32.mrf.mxu0  ;;  %4728 = vmatpush.msra.mxu2 %v10701_v7 }
 0x3df   : > { %v3944_v60 = vadd.f32 %v13871_v29, %v3907_v51  ;;  %2933 = vst.msk [vmem:[#allocation2 + $0xe0] sm:$0xff] %vm430_vm1, %v2864_v9  ;;  %v10789_v51 = vld [vmem:[%s17568_s1 + $0x428] sm:$0xff] }
 0x3e0   : > { %v3541_v8 = vpop.f32.mrf.mxu3  ;;  %4982 = vmatpush.msra.mxu3 %v10789_v51 }
 0x3e1   : > { %v3542_v10 = vadd.f32 %v3541_v8, %v3332_v18  ;;  %v14031_v61 = vmax.f32 %v3944_v60, 0.0 }
 0x3e3   : > { %v3871_v41 = vadd.f32 %v3795_v35, %v3542_v10  ;;  %4209 = vrot.lane.b32.xlu1 %v14031_v61, %s11515_s6  ;;  %4049 = vrot.lane.b32.xlu2 %v14031_v61, %s11516_s7  ;;  %v3344_v10 = vpop.f32.mrf.mxu2 }
 0x3e5   : > { %v3908_v43 = vmul.f32 %v13851_v11, %v3871_v41 }
 0x3e6   : > { %10649 = vmatmul.msk.f32.gmra.mxu3 %vm196_vm0, %v13932_v52  ;;  %v2866_v28 = vpop.permute.xlu1 %2865  ;;  %v3026_v60 = vpop.permute.xlu0 %3025 }
 0x3e7   : > { %v3945_v30 = vadd.f32 %v13871_v29, %v3908_v43  ;;  %2934 = vst.msk [vmem:[#allocation2 + $0xe8] sm:$0xff] %vm430_vm1, %v2866_v28  ;;  %v2870_v18 = vpop.permute.xlu2 %2869  ;;  %v3807_v28 = vpop.f32.mrf.mxu0 }
 0x3e8   : > { %2936 = vst.msk [vmem:[#allocation2 + $0xf8] sm:$0xff] %vm430_vm1, %v2870_v18  ;;  %v3544_v35 = vpop.f32.mrf.mxu3 }
 0x3e9   : > { %2965 = vst.msk [vmem:[#allocation2 + $0xe1] sm:$0xff] %vm463_vm2, %v13695_v53  ;;  %v3545_v52 = vadd.f32 %v3544_v35, %v3335_v33  ;;  %v14051_v9 = vmax.f32 %v3945_v30, 0.0 }
 0x3ea   : > { %2966 = vst.msk [vmem:[#allocation2 + $0xe9] sm:$0x7f] %vm465_vm3, %v13723_v44 }
 0x3eb   : > { %3093 = vst.msk [vmem:[#allocation2 + $0xdf] sm:$0xfe] %vm593_vm4, %v3024_v31  ;;  %v3872_v8 = vadd.f32 %v3798_v25, %v3545_v52  ;;  %4211 = vrot.lane.b32.xlu1 %v14051_v9, %s11515_s6  ;;  %4051 = vrot.lane.b32.xlu2 %v14051_v9, %s11516_s7  ;;  %v10713_v31 = vld [vmem:[%s17568_s1 + $0x3c8] sm:$0xff] }
 0x3ec   : > { %3094 = vst.msk [vmem:[#allocation2 + $0xe7] sm:$0xff] %vm595_vm5, %v3026_v60  ;;  %4519 = vmatpush.msra.mxu1 %v10713_v31  ;;  %v3347_v60 = vpop.f32.mrf.mxu2 }
 0x3ed   : > { %2968 = vst.msk [vmem:[#allocation2 + $0xf9] sm:$0x7f] %vm465_vm3, %v13802_v13  ;;  %v3909_v33 = vmul.f32 %v13851_v11, %v3872_v8 }
 0x3ef   : > { %v3946_v41 = vadd.f32 %v13871_v29, %v3909_v33  ;;  %v2872_v43 = vpop.permute.xlu2 %2871 }
 0x3f0   : > { %2937 = vst.msk [vmem:[#allocation2 + $0x100] sm:$0xff] %vm430_vm1, %v2872_v43  ;;  %v3547_v25 = vpop.f32.mrf.mxu3  ;;  %v3810_v43 = vpop.f32.mrf.mxu0 }
 0x3f1   : > { %v3548_v30 = vadd.f32 %v3547_v25, %v3338_v59  ;;  %v14069_v18 = vmax.f32 %v3946_v41, 0.0 }
 0x3f3   : > { %v3873_v35 = vadd.f32 %v3801_v38, %v3548_v30  ;;  %v3170_v7 = vld [vmem:[#allocation2 + $0xe0] sm:$0xff]  ;;  %4213 = vrot.lane.b32.xlu2 %v14069_v18, %s11515_s6  ;;  %4053 = vrot.lane.b32.xlu0 %v14069_v18, %s11516_s7  ;;  %v3171_v31 = vld [vmem:[#allocation2 + $0xe8] sm:$0xff] }
 0x3f4   : > { %10616 = vmatmul.msk.f32.gmra.mxu2 %vm196_vm0, %v3170_v7  ;;  %10650 = vmatmul.msk.f32.gmra.mxu3 %vm196_vm0, %v3170_v7 }
 0x3f5   : > { %v3910_v51 = vmul.f32 %v13851_v11, %v3873_v35  ;;  %10690 = vmatmul.msk.f32.gmra.mxu0 %vm196_vm0, %v3170_v7 }
 0x3f7   : > { %v3947_v59 = vadd.f32 %v13871_v29, %v3910_v51  ;;  %v2868_v52 = vpop.permute.xlu1 %2867  ;;  %v3028_v38 = vpop.permute.xlu0 %3027  ;;  %v10700_v51 = vld [vmem:[%s17568_s1 + $0x360] sm:$0xff] }
 0x3f8   : > { %2935 = vst.msk [vmem:[#allocation2 + $0xf0] sm:$0xff] %vm430_vm1, %v2868_v52  ;;  %v3550_v8 = vpop.f32.mrf.mxu3  ;;  %v3034_v25 = vpop.permute.xlu2 %3033  ;;  %4729 = vmatpush.msra.mxu2 %v10700_v51 }
 0x3f9   : > { %2967 = vst.msk [vmem:[#allocation2 + $0xf1] sm:$0xff] %vm463_vm2, %v13780_v22  ;;  %v14083_v33 = vmax.f32 %v3947_v59, 0.0  ;;  %v3551_v41 = vadd.f32 %v3550_v8, %v3341_v3  ;;  %v10712_v59 = vld [vmem:[%s17568_s1 + $0x3c0] sm:$0xff] }
 0x3fa   : > { %3095 = vst.msk [vmem:[#allocation2 + $0xef] sm:$0xfe] %vm593_vm4, %v3028_v38  ;;  %v3350_v38 = vpop.f32.mrf.mxu2  ;;  %4520 = vmatpush.msra.mxu1 %v10712_v59 }
 0x3fb   : > { %4215 = vrot.lane.b32.xlu2 %v14083_v33, %s11515_s6  ;;  %4055 = vrot.lane.b32.xlu0 %v14083_v33, %s11516_s7  ;;  %v3874_v30 = vadd.f32 %v3804_v23, %v3551_v41  ;;  %v10788_v23 = vld [vmem:[%s17568_s1 + $0x420] sm:$0xff] }
 0x3fc   : > { %10617 = vmatmul.msk.f32.gmra.mxu2 %vm196_vm0, %v3171_v31  ;;  %10651 = vmatmul.msk.f32.gmra.mxu3 %vm196_vm0, %v3171_v31 }
 0x3fd   : > { %10691 = vmatmul.msk.f32.gmra.mxu0 %vm196_vm0, %v3171_v31  ;;  %v3911_v35 = vmul.f32 %v13851_v11, %v3874_v30  ;;  %4983 = vmatpush.msra.mxu3 %v10788_v23  ;;  %v3813_v30 = vpop.f32.mrf.mxu0 }
 0x3ff   : > { %v3030_v7 = vpop.permute.xlu1 %3029  ;;  %v3948_v3 = vadd.f32 %v13871_v29, %v3911_v35 }
 0x400   : > { %3096 = vst.msk [vmem:[#allocation2 + $0xf7] sm:$0xff] %vm595_vm5, %v3030_v7  ;;  %v3553_v52 = vpop.f32.mrf.mxu3  ;;  %v4192_v35 = vpop.permute.xlu2 %4191 }
 0x401   : > { %v3554_v8 = vadd.f32 %v3553_v52, %v3344_v10  ;;  %v14105_v41 = vmax.f32 %v3948_v3, 0.0 }
 0x402   : > { %v3353_v23 = vpop.f32.mrf.mxu2 }
 0x403   : > { %v3875_v31 = vadd.f32 %v3807_v28, %v3554_v8  ;;  %4217 = vrot.lane.b32.xlu0 %v14105_v41, %s11515_s6  ;;  %4057 = vrot.lane.b32.xlu1 %v14105_v41, %s11516_s7 }
 0x405   : > { %v3912_v7 = vmul.f32 %v13851_v11, %v3875_v31 }
 0x407   : > { %v3172_v13 = vld [vmem:[#allocation2 + $0xf0] sm:$0xff]  ;;  %v3949_v51 = vadd.f32 %v13871_v29, %v3912_v7  ;;  %v3032_v52 = vpop.permute.xlu1 %3031  ;;  %v3816_v7 = vpop.f32.mrf.mxu0 }
 0x408   : > { %10618 = vmatmul.msk.f32.gmra.mxu2 %vm196_vm0, %v3172_v13  ;;  %10652 = vmatmul.msk.f32.gmra.mxu3 %vm196_vm0, %v3172_v13 }
 0x409   : > { %v3556_v10 = vpop.f32.mrf.mxu3  ;;  %10692 = vmatmul.msk.f32.gmra.mxu0 %vm196_vm0, %v3172_v13  ;;  %v14116_v3 = vmax.f32 %v3949_v51, 0.0  ;;  %v3173_v13 = vld [vmem:[#allocation2 + $0xf8] sm:$0xff] }
 0x40a   : > { %v3557_v28 = vadd.f32 %v3556_v10, %v3347_v60 }
 0x40b   : > { %4219 = vrot.lane.b32.xlu0 %v14116_v3, %s11515_s6  ;;  %4059 = vrot.lane.b32.xlu1 %v14116_v3, %s11516_s7 }
 0x40c   : > { %v3876_v59 = vadd.f32 %v3810_v43, %v3557_v28 }
 0x40d   : > { %v4038_v8 = vpop.permute.xlu2 %4037 }
 0x40e   : > { %v3913_v31 = vmul.f32 %v13851_v11, %v3876_v59  ;;  %4130 = vst.msk [vmem:[#allocation3 + $0x28] sm:$0xff] %vm430_vm1, %v4038_v8  ;;  %v3356_v59 = vpop.f32.mrf.mxu2 }
 0x40f   : > { %v2874_v22 = vpop.permute.xlu0 %2873  ;;  %4162 = vst.msk [vmem:[#allocation3 + $0x29] sm:$0x7f] %vm465_vm3, %v13945_v0 }
 0x410   : > { %v3950_v60 = vadd.f32 %v13871_v29, %v3913_v31  ;;  %2938 = vst.msk [vmem:[#allocation2 + $0x108] sm:$0xff] %vm430_vm1, %v2874_v22  ;;  %10619 = vmatmul.msk.f32.gmra.mxu2 %vm196_vm0, %v3173_v13  ;;  %10653 = vmatmul.msk.f32.gmra.mxu3 %vm196_vm0, %v3173_v13 }
 0x411   : > { %2969 = vst.msk [vmem:[#allocation2 + $0x101] sm:$0xff] %vm463_vm2, %v13827_v55  ;;  %v3559_v43 = vpop.f32.mrf.mxu3  ;;  %10693 = vmatmul.msk.f32.gmra.mxu0 %vm196_vm0, %v3173_v13 }
 0x412   : > { %2970 = vst.msk [vmem:[#allocation2 + $0x109] sm:$0x7f] %vm465_vm3, %v13874_v2  ;;  %v3560_v51 = vadd.f32 %v3559_v43, %v3350_v38  ;;  %v14135_v0 = vmax.f32 %v3950_v60, 0.0 }
 0x413   : > { %3097 = vst.msk [vmem:[#allocation2 + $0xff] sm:$0xfe] %vm593_vm4, %v3032_v52 }
 0x414   : > { %3098 = vst.msk [vmem:[#allocation2 + $0x107] sm:$0xff] %vm595_vm5, %v3034_v25  ;;  %v3877_v22 = vadd.f32 %v3813_v30, %v3560_v51  ;;  %4221 = vrot.lane.b32.xlu1 %v14135_v0, %s11515_s6  ;;  %4061 = vrot.lane.b32.xlu2 %v14135_v0, %s11516_s7  ;;  %v3819_v30 = vpop.f32.mrf.mxu0 }
 0x415   : > { %v4034_v10 = vpop.permute.xlu1 %4033  ;;  %v4040_v28 = vpop.permute.xlu2 %4039 }
 0x416   : > { %v3914_v8 = vmul.f32 %v13851_v11, %v3877_v22  ;;  %4128 = vst.msk [vmem:[#allocation3 + $0x18] sm:$0xff] %vm430_vm1, %v4034_v10 }
 0x417   : > { %4160 = vst.msk [vmem:[#allocation3 + $0x19] sm:$0x7f] %vm465_vm3, %v13896_v49  ;;  %v4032_v38 = vpop.permute.xlu0 %4031 }
 0x418   : > { %v3951_v25 = vadd.f32 %v13871_v29, %v3914_v8  ;;  %4131 = vst.msk [vmem:[#allocation3 + $0x30] sm:$0xff] %vm430_vm1, %v4040_v28 }
 0x419   : > { %4127 = vst.msk [vmem:[#allocation3 + $0x10] sm:$0xff] %vm430_vm1, %v4032_v38  ;;  %v3562_v52 = vpop.f32.mrf.mxu3 }
 0x41a   : > { %4159 = vst.msk [vmem:[#allocation3 + $0x11] sm:$0xff] %vm463_vm2, %v13901_v58  ;;  %v3563_v31 = vadd.f32 %v3562_v52, %v3353_v23  ;;  %v14152_v13 = vmax.f32 %v3951_v25, 0.0  ;;  %v3359_v23 = vpop.f32.mrf.mxu2 }
 0x41b   : > { %4287 = vst.msk [vmem:[#allocation3 + $0xf] sm:$0xfe] %vm593_vm4, %v4192_v35  ;;  %v3174_v60 = vld [vmem:[#allocation2 + $0x100] sm:$0xff]  ;;  %v3175_v8 = vld [vmem:[#allocation2 + $0x108] sm:$0xff] }
 0x41c   : > { %v3878_v43 = vadd.f32 %v3816_v7, %v3563_v31  ;;  %10620 = vmatmul.msk.f32.gmra.mxu2 %vm196_vm0, %v3174_v60  ;;  %10694 = vmatmul.msk.f32.gmra.mxu0 %vm196_vm0, %v3174_v60  ;;  %v3822_v28 = vpop.f32.mrf.mxu0  ;;  %v3637_v60 = vld [vmem:[#allocation2 + $0x110] sm:$0xff] }
 0x41d   : > { %4223 = vrot.lane.b32.xlu1 %v14152_v13, %s11515_s6  ;;  %4063 = vrot.lane.b32.xlu2 %v14152_v13, %s11516_s7  ;;  %v4036_v49 = vpop.permute.xlu1 %4035 }
 0x41e   : > { %v3915_v58 = vmul.f32 %v13851_v11, %v3878_v43  ;;  %4129 = vst.msk [vmem:[#allocation3 + $0x20] sm:$0xff] %vm430_vm1, %v4036_v49  ;;  %v4319_v43 = vld [vmem:[#allocation3] sm:$0xff] }
 0x41f   : > { %4161 = vst.msk [vmem:[#allocation3 + $0x21] sm:$0xff] %vm463_vm2, %v13924_v6  ;;  %v4194_v35 = vpop.permute.xlu0 %4193 }
 0x420   : > { %v3952_v7 = vadd.f32 %v13871_v29, %v3915_v58  ;;  %4288 = vst.msk [vmem:[#allocation3 + $0x17] sm:$0xff] %vm595_vm5, %v4194_v35 }
 0x421   : > { %v3565_v51 = vpop.f32.mrf.mxu3 }
 0x422   : > { %v3566_v22 = vadd.f32 %v3565_v51, %v3356_v59  ;;  %v14167_v10 = vmax.f32 %v3952_v7, 0.0  ;;  %v3362_v49 = vpop.f32.mrf.mxu2  ;;  %v4202_v7 = vpop.permute.xlu2 %4201 }
 0x424   : > { %v3879_v38 = vadd.f32 %v3819_v30, %v3566_v22  ;;  %10621 = vmatmul.msk.f32.gmra.mxu2 %vm196_vm0, %v3175_v8  ;;  %10695 = vmatmul.msk.f32.gmra.mxu0 %vm196_vm0, %v3175_v8  ;;  %v3825_v22 = vpop.f32.mrf.mxu0 }
 0x425   : > { %4225 = vrot.lane.b32.xlu2 %v14167_v10, %s11515_s6  ;;  %4065 = vrot.lane.b32.xlu0 %v14167_v10, %s11516_s7  ;;  %v4198_v6 = vpop.permute.xlu1 %4197 }
 0x426   : > { %v3916_v25 = vmul.f32 %v13851_v11, %v3879_v38  ;;  %4290 = vst.msk [vmem:[#allocation3 + $0x27] sm:$0xff] %vm595_vm5, %v4198_v6 }
 0x427   : > { %v4196_v59 = vpop.permute.xlu0 %4195  ;;  %v4364_v52 = vld [vmem:[#allocation3 + $0x10] sm:$0xff]  ;;  %v4365_v38 = vld [vmem:[#allocation3 + $0x18] sm:$0xff] }
 0x428   : > { %v3953_v31 = vadd.f32 %v13871_v29, %v3916_v25  ;;  %4289 = vst.msk [vmem:[#allocation3 + $0x1f] sm:$0xfe] %vm593_vm4, %v4196_v59  ;;  %10724 = vmatmul.msk.f32.vlgmr.msra.gmra.mxu1 %vm196_vm0, %v4364_v52  ;;  %v3638_v25 = vld [vmem:[#allocation2 + $0x118] sm:$0xff]  ;;  %v4320_v59 = vld [vmem:[#allocation3 + $0x8] sm:$0xff] }
 0x429   : > { %v3568_v30 = vpop.f32.mrf.mxu3 }
 0x42a   : > { %v3569_v58 = vadd.f32 %v3568_v30, %v3359_v23  ;;  %v14180_v35 = vmax.f32 %v3953_v31, 0.0 }
 0x42c   : > { %v3880_v51 = vadd.f32 %v3822_v28, %v3569_v58  ;;  %10696 = vmatmul.msk.f32.gmra.mxu0 %vm196_vm0, %v3637_v60  ;;  %10756 = vmatmul.msk.f32.vlgmr.msra.gmra.mxu2 %vm196_vm0, %v4319_v43  ;;  %v3365_v60 = vpop.f32.mrf.mxu2  ;;  %v10933_v58 = vld [vmem:[%s17568_s1 + $0x598] sm:$0xff] }
 0x42d   : > { %4227 = vrot.lane.b32.xlu2 %v14180_v35, %s11515_s6  ;;  %4067 = vrot.lane.b32.xlu0 %v14180_v35, %s11516_s7 }
 0x42e   : > { %v3917_v8 = vmul.f32 %v13851_v11, %v3880_v51  ;;  %v4204_v51 = vpop.permute.xlu2 %4203  ;;  %6224 = vmatpush.msrb.mxu2 %v10933_v58 }
 0x42f   : > { %v14189_v6 = vld [vmem:[#allocation3 + $0x20] sm:$0xff] }
 0x430   : > { %v3954_v23 = vadd.f32 %v13871_v29, %v3917_v8  ;;  %10725 = vmatmul.msk.f32.gmra.mxu1 %vm196_vm0, %v4365_v38  ;;  %10800 = vmatmul.msk.f32.vlgmr.msra.gmra.mxu3 %vm196_vm0, %v14189_v6 }
 0x431   : > { %v3571_v28 = vpop.f32.mrf.mxu3 }
 0x432   : > { %v3572_v31 = vadd.f32 %v3571_v28, %v3362_v49  ;;  %v14195_v30 = vmax.f32 %v3954_v23, 0.0  ;;  %v10845_v23 = vld [vmem:[%s17568_s1 + $0x4d8] sm:$0xff]  ;;  %v3828_v28 = vpop.f32.mrf.mxu0 }
 0x433   : > { %5970 = vmatpush.msrb.mxu1 %v10845_v23 }
 0x434   : > { %v3881_v43 = vadd.f32 %v3825_v22, %v3572_v31  ;;  %10697 = vmatmul.msk.f32.gmra.mxu0 %vm196_vm0, %v3638_v25  ;;  %10757 = vmatmul.msk.f32.gmra.mxu2 %vm196_vm0, %v4320_v59  ;;  %v10857_v22 = vld [vmem:[%s17568_s1 + $0x538] sm:$0xff]  ;;  %v14216_v25 = vld [vmem:[#allocation3 + $0x28] sm:$0xff]  ;;  %v4200_v59 = vpop.permute.xlu1 %4199  ;;  %v3368_v23 = vpop.f32.mrf.mxu2 }
 0x435   : > { %4229 = vrot.lane.b32.xlu0 %v14195_v30, %s11515_s6  ;;  %4069 = vrot.lane.b32.xlu1 %v14195_v30, %s11516_s7  ;;  %v4042_v49 = vpop.permute.xlu0 %4041 }
 0x436   : > { %v3918_v8 = vmul.f32 %v13851_v11, %v3881_v43  ;;  %4132 = vst.msk [vmem:[#allocation3 + $0x38] sm:$0xff] %vm430_vm1, %v4042_v49  ;;  %5761 = vmatpush.msrb.mxu0 %v10857_v22 }
 0x437   : > { %4163 = vst.msk [vmem:[#allocation3 + $0x31] sm:$0xff] %vm463_vm2, %v13959_v39 }
 0x438   : > { %v3955_v31 = vadd.f32 %v13871_v29, %v3918_v8  ;;  %4164 = vst.msk [vmem:[#allocation3 + $0x39] sm:$0x7f] %vm465_vm3, %v13980_v56  ;;  %10726 = vmatmul.msk.f32.gmra.mxu1 %vm196_vm0, %v14189_v6  ;;  %10801 = vmatmul.msk.f32.gmra.mxu3 %vm196_vm0, %v14216_v25 }
 0x439   : > { %4291 = vst.msk [vmem:[#allocation3 + $0x2f] sm:$0xfe] %vm593_vm4, %v4200_v59  ;;  %v3574_v43 = vpop.f32.mrf.mxu3 }
 0x43a   : > { %4292 = vst.msk [vmem:[#allocation3 + $0x37] sm:$0xff] %vm595_vm5, %v4202_v7  ;;  %v3575_v39 = vadd.f32 %v3574_v43, %v3365_v60  ;;  %v14227_v58 = vmax.f32 %v3955_v31, 0.0 }
 0x43c   : > { %v3882_v49 = vadd.f32 %v3828_v28, %v3575_v39  ;;  %10758 = vmatmul.msk.f32.gmra.mxu2 %vm196_vm0, %v4364_v52  ;;  %v3831_v52 = vpop.f32.mrf.mxu0 }
 0x43d   : > { %4231 = vrot.lane.b32.xlu0 %v14227_v58, %s11515_s6  ;;  %4071 = vrot.lane.b32.xlu1 %v14227_v58, %s11516_s7  ;;  %v4050_v56 = vpop.permute.xlu2 %4049  ;;  %v4044_v8 = vpop.permute.xlu0 %4043 }
 0x43e   : > { %v3919_v22 = vmul.f32 %v13851_v11, %v3882_v49  ;;  %4136 = vst.msk [vmem:[#allocation3 + $0x58] sm:$0xff] %vm430_vm1, %v4050_v56 }
 0x43f   : > { %4133 = vst.msk [vmem:[#allocation3 + $0x40] sm:$0xff] %vm430_vm1, %v4044_v8 }
 0x440   : > { %v3956_v7 = vadd.f32 %v13871_v29, %v3919_v22  ;;  %4168 = vst.msk [vmem:[#allocation3 + $0x59] sm:$0x7f] %vm465_vm3, %v14031_v61  ;;  %10727 = vmatmul.msk.f32.gmra.mxu1 %vm196_vm0, %v14216_v25 }
 0x441   : > { %v3577_v60 = vpop.f32.mrf.mxu3  ;;  %v4829_v28 = vld [vmem:[#allocation3 + $0x30] sm:$0xff] }
 0x442   : > { %v3578_v59 = vadd.f32 %v3577_v60, %v3368_v23  ;;  %10802 = vmatmul.msk.f32.gmra.mxu3 %vm196_vm0, %v4829_v28  ;;  %v14243_v31 = vmax.f32 %v3956_v7, 0.0  ;;  %v4830_v23 = vld [vmem:[#allocation3 + $0x38] sm:$0xff] }
 0x444   : > { %v3883_v43 = vadd.f32 %v3831_v52, %v3578_v59  ;;  %10759 = vmatmul.msk.f32.gmra.mxu2 %vm196_vm0, %v4365_v38  ;;  %4073 = vrot.lane.b32.xlu2 %v14243_v31, %s11516_s7  ;;  %v3371_v38 = vpop.f32.mrf.mxu2  ;;  %v3834_v60 = vpop.f32.mrf.mxu0 }
 0x445   : > { %4233 = vrot.lane.b32.xlu1 %v14243_v31, %s11515_s6  ;;  %v4046_v61 = vpop.permute.xlu1 %4045  ;;  %v4052_v39 = vpop.permute.xlu2 %4051 }
 0x446   : > { %v3920_v49 = vmul.f32 %v13851_v11, %v3883_v43  ;;  %4134 = vst.msk [vmem:[#allocation3 + $0x48] sm:$0xff] %vm430_vm1, %v4046_v61  ;;  %v4206_v56 = vpop.permute.xlu0 %4205 }
 0x447   : > { %4137 = vst.msk [vmem:[#allocation3 + $0x60] sm:$0xff] %vm430_vm1, %v4052_v39 }
 0x448   : > { %v3957_v8 = vadd.f32 %v13871_v29, %v3920_v49  ;;  %4165 = vst.msk [vmem:[#allocation3 + $0x41] sm:$0xff] %vm463_vm2, %v13991_v34  ;;  %10728 = vmatmul.msk.f32.gmra.mxu1 %vm196_vm0, %v4829_v28  ;;  %v10932_v34 = vld [vmem:[%s17568_s1 + $0x590] sm:$0xff] }
 0x449   : > { %4166 = vst.msk [vmem:[#allocation3 + $0x49] sm:$0x7f] %vm465_vm3, %v14004_v48  ;;  %v3580_v22 = vpop.f32.mrf.mxu3  ;;  %v10856_v48 = vld [vmem:[%s17568_s1 + $0x530] sm:$0xff]  ;;  %6225 = vmatpush.msrb.mxu2 %v10932_v34 }
 0x44a   : > { %4293 = vst.msk [vmem:[#allocation3 + $0x3f] sm:$0xfe] %vm593_vm4, %v4204_v51  ;;  %v3581_v7 = vadd.f32 %v3580_v22, %v3371_v38  ;;  %10803 = vmatmul.msk.f32.gmra.mxu3 %vm196_vm0, %v4830_v23  ;;  %v14261_v52 = vmax.f32 %v3957_v8, 0.0  ;;  %v10844_v51 = vld [vmem:[%s17568_s1 + $0x4d0] sm:$0xff]  ;;  %5762 = vmatpush.msrb.mxu0 %v10856_v48 }
 0x44b   : > { %4294 = vst.msk [vmem:[#allocation3 + $0x47] sm:$0xff] %vm595_vm5, %v4206_v56  ;;  %5971 = vmatpush.msrb.mxu1 %v10844_v51 }
 0x44c   : > { %v3884_v59 = vadd.f32 %v3834_v60, %v3581_v7  ;;  %10760 = vmatmul.msk.f32.gmra.mxu2 %vm196_vm0, %v14189_v6  ;;  %4075 = vrot.lane.b32.xlu2 %v14261_v52, %s11516_s7  ;;  %v10855_v7 = vld [vmem:[%s17568_s1 + $0x528] sm:$0xff] }
 0x44d   : > { %4235 = vrot.lane.b32.xlu1 %v14261_v52, %s11515_s6  ;;  %v4048_v43 = vpop.permute.xlu1 %4047  ;;  %v4214_v38 = vpop.permute.xlu2 %4213  ;;  %5763 = vmatpush.msrb.mxu0 %v10855_v7 }
 0x44e   : > { %v3921_v61 = vmul.f32 %v13851_v11, %v3884_v59  ;;  %4135 = vst.msk [vmem:[#allocation3 + $0x50] sm:$0xff] %vm430_vm1, %v4048_v43  ;;  %v4208_v6 = vpop.permute.xlu0 %4207 }
 0x44f   : > { %4167 = vst.msk [vmem:[#allocation3 + $0x51] sm:$0xff] %vm463_vm2, %v14020_v19 }
 0x450   : > { %v3958_v39 = vadd.f32 %v13871_v29, %v3921_v61  ;;  %4295 = vst.msk [vmem:[#allocation3 + $0x4f] sm:$0xfe] %vm593_vm4, %v4208_v6  ;;  %10729 = vmatmul.msk.f32.gmra.mxu1 %vm196_vm0, %v4830_v23 }
 0x451   : > { %v3583_v48 = vpop.f32.mrf.mxu3 }
 0x452   : > { %v4831_v49 = vld [vmem:[#allocation3 + $0x40] sm:$0xff]  ;;  %v14286_v56 = vmax.f32 %v3958_v39, 0.0  ;;  %v4832_v8 = vld [vmem:[#allocation3 + $0x48] sm:$0xff] }
 0x453   : > { %10804 = vmatmul.msk.f32.gmra.mxu3 %vm196_vm0, %v4831_v49 }
 0x454   : > { %10761 = vmatmul.msk.f32.gmra.mxu2 %vm196_vm0, %v14216_v25  ;;  %4237 = vrot.lane.b32.xlu2 %v14286_v56, %s11515_s6  ;;  %v10931_v25 = vld [vmem:[%s17568_s1 + $0x588] sm:$0xff] }
 0x455   : > { %4077 = vrot.lane.b32.xlu0 %v14286_v56, %s11516_s7  ;;  %v4210_v19 = vpop.permute.xlu1 %4209  ;;  %6226 = vmatpush.msrb.mxu2 %v10931_v25  ;;  %v4216_v34 = vpop.permute.xlu2 %4215 }
 0x456   : > { %4296 = vst.msk [vmem:[#allocation3 + $0x57] sm:$0xff] %vm595_vm5, %v4210_v19 }
 0x458   : > { %10730 = vmatmul.msk.f32.gmra.mxu1 %vm196_vm0, %v4831_v49 }
 0x459   : > { %v3586_v19 = vpop.f32.mrf.mxu3 }
 0x45b   : > { %10805 = vmatmul.msk.f32.gmra.mxu3 %vm196_vm0, %v4832_v8 }
 0x45c   : > { %10762 = vmatmul.msk.f32.gmra.mxu2 %vm196_vm0, %v4829_v28  ;;  %v10843_v28 = vld [vmem:[%s17568_s1 + $0x4c8] sm:$0xff] }
 0x45d   : > { %v4833_v22 = vld [vmem:[#allocation3 + $0x50] sm:$0xff]  ;;  %5972 = vmatpush.msrb.mxu1 %v10843_v28  ;;  %v4212_v59 = vpop.permute.xlu1 %4211  ;;  %v4834_v51 = vld [vmem:[#allocation3 + $0x58] sm:$0xff] }
 0x460   : > { %10731 = vmatmul.msk.f32.gmra.mxu1 %vm196_vm0, %v4832_v8 }
 0x463   : > { %10806 = vmatmul.msk.f32.gmra.mxu3 %vm196_vm0, %v4833_v22 }
 0x464   : > { %10763 = vmatmul.msk.f32.gmra.mxu2 %vm196_vm0, %v4830_v23  ;;  %v3374_v23 = vpop.f32.mrf.mxu2 }
 0x465   : > { %v4054_v60 = vpop.permute.xlu0 %4053 }
 0x466   : > { %4138 = vst.msk [vmem:[#allocation3 + $0x68] sm:$0xff] %vm430_vm1, %v4054_v60 }
 0x467   : > { %4169 = vst.msk [vmem:[#allocation3 + $0x61] sm:$0xff] %vm463_vm2, %v14051_v9  ;;  %v3584_v9 = vadd.f32 %v3583_v48, %v3374_v23 }
 0x468   : > { %4170 = vst.msk [vmem:[#allocation3 + $0x69] sm:$0x7f] %vm465_vm3, %v14069_v18  ;;  %10732 = vmatmul.msk.f32.gmra.mxu1 %vm196_vm0, %v4833_v22 }
 0x469   : > { %4297 = vst.msk [vmem:[#allocation3 + $0x5f] sm:$0xfe] %vm593_vm4, %v4212_v59 }
 0x46a   : > { %4298 = vst.msk [vmem:[#allocation3 + $0x67] sm:$0xff] %vm595_vm5, %v4214_v38 }
 0x46b   : > { %10807 = vmatmul.msk.f32.gmra.mxu3 %vm196_vm0, %v4834_v51 }
 0x46c   : > { %10764 = vmatmul.msk.f32.gmra.mxu2 %vm196_vm0, %v4831_v49  ;;  %v3377_v39 = vpop.f32.mrf.mxu2 }
 0x46d   : > { %v4056_v43 = vpop.permute.xlu0 %4055 }
 0x46e   : > { %v4062_v61 = vpop.permute.xlu2 %4061  ;;  %4139 = vst.msk [vmem:[#allocation3 + $0x70] sm:$0xff] %vm430_vm1, %v4056_v43 }
 0x46f   : > { %4142 = vst.msk [vmem:[#allocation3 + $0x88] sm:$0xff] %vm430_vm1, %v4062_v61 }
 0x470   : > { %4174 = vst.msk [vmem:[#allocation3 + $0x89] sm:$0x7f] %vm465_vm3, %v14135_v0  ;;  %10733 = vmatmul.msk.f32.gmra.mxu1 %vm196_vm0, %v4834_v51  ;;  %v10930_v0 = vld [vmem:[%s17568_s1 + $0x580] sm:$0xff] }
 0x471   : > { %v14326_v18 = vld [vmem:[#allocation3 + $0x60] sm:$0xff]  ;;  %6227 = vmatpush.msrb.mxu2 %v10930_v0  ;;  %v4836_v61 = vld [vmem:[#allocation3 + $0x68] sm:$0xff] }
 0x472   : > { %v3837_v6 = vpop.f32.mrf.mxu0 }
 0x473   : > { %v3885_v38 = vadd.f32 %v3837_v6, %v3584_v9  ;;  %10808 = vmatmul.msk.f32.gmra.mxu3 %vm196_vm0, %v14326_v18 }
 0x474   : > { %10765 = vmatmul.msk.f32.gmra.mxu2 %vm196_vm0, %v4832_v8  ;;  %v3587_v8 = vadd.f32 %v3586_v19, %v3377_v39  ;;  %v10854_v39 = vld [vmem:[%s17568_s1 + $0x520] sm:$0xff] }
 0x475   : > { %v3922_v49 = vmul.f32 %v13851_v11, %v3885_v38  ;;  %v4058_v25 = vpop.permute.xlu1 %4057  ;;  %v4218_v7 = vpop.permute.xlu0 %4217  ;;  %5764 = vmatpush.msrb.mxu0 %v10854_v39  ;;  %v10841_v39 = vld [vmem:[%s17568_s1 + $0x4b8] sm:$0xff] }
 0x476   : > { %4140 = vst.msk [vmem:[#allocation3 + $0x78] sm:$0xff] %vm430_vm1, %v4058_v25 }
 0x477   : > { %v3959_v28 = vadd.f32 %v13871_v29, %v3922_v49  ;;  %v4064_v60 = vpop.permute.xlu2 %4063  ;;  %4171 = vst.msk [vmem:[#allocation3 + $0x71] sm:$0xff] %vm463_vm2, %v14083_v33  ;;  %v3380_v48 = vpop.f32.mrf.mxu2 }
 0x478   : > { %4143 = vst.msk [vmem:[#allocation3 + $0x90] sm:$0xff] %vm430_vm1, %v4064_v60  ;;  %10734 = vmatmul.msk.f32.gmra.mxu1 %vm196_vm0, %v14326_v18  ;;  %v3589_v33 = vpop.f32.mrf.mxu3 }
 0x479   : > { %v14340_v59 = vmax.f32 %v3959_v28, 0.0  ;;  %4172 = vst.msk [vmem:[#allocation3 + $0x79] sm:$0x7f] %vm465_vm3, %v14105_v41 }
 0x47a   : > { %v3840_v23 = vpop.f32.mrf.mxu0  ;;  %4299 = vst.msk [vmem:[#allocation3 + $0x6f] sm:$0xfe] %vm593_vm4, %v4216_v34 }
 0x47b   : > { %v3886_v43 = vadd.f32 %v3840_v23, %v3587_v8  ;;  %4239 = vrot.lane.b32.xlu2 %v14340_v59, %s11515_s6  ;;  %4079 = vrot.lane.b32.xlu0 %v14340_v59, %s11516_s7  ;;  %4300 = vst.msk [vmem:[#allocation3 + $0x77] sm:$0xff] %vm595_vm5, %v4218_v7  ;;  %v14380_v7 = vld [vmem:[%s17569_s2 + $0x2] ss:$0 sm:$0xff] }
 0x47c   : > { %10809 = vmatmul.msk.f32.gmra.mxu3 %vm196_vm0, %v4836_v61  ;;  %10766 = vmatmul.msk.f32.gmra.mxu2 %vm196_vm0, %v4833_v22  ;;  %v10842_v22 = vld [vmem:[%s17568_s1 + $0x4c0] sm:$0xff] }
 0x47d   : > { %v3923_v41 = vmul.f32 %v13851_v11, %v3886_v43  ;;  %v4060_v9 = vpop.permute.xlu1 %4059  ;;  %v4220_v6 = vpop.permute.xlu0 %4219  ;;  %5973 = vmatpush.msrb.mxu1 %v10842_v22 }
 0x47e   : > { %4141 = vst.msk [vmem:[#allocation3 + $0x80] sm:$0xff] %vm430_vm1, %v4060_v9 }
 0x47f   : > { %v3960_v34 = vadd.f32 %v13871_v29, %v3923_v41  ;;  %4173 = vst.msk [vmem:[#allocation3 + $0x81] sm:$0xff] %vm463_vm2, %v14116_v3  ;;  %v3590_v3 = vadd.f32 %v3589_v33, %v3380_v48  ;;  %v3383_v19 = vpop.f32.mrf.mxu2  ;;  %v4226_v23 = vpop.permute.xlu2 %4225  ;;  %5974 = vmatpush.msrb.mxu1 %v10841_v39 }
 0x480   : > { %10735 = vmatmul.msk.f32.gmra.mxu1 %vm196_vm0, %v4836_v61  ;;  %4301 = vst.msk [vmem:[#allocation3 + $0x7f] sm:$0xfe] %vm593_vm4, %v4220_v6  ;;  %v3592_v0 = vpop.f32.mrf.mxu3  ;;  %v10853_v6 = vld [vmem:[%s17568_s1 + $0x518] sm:$0xff] }
 0x481   : > { %v14366_v11 = vmax.f32 %v3960_v34, 0.0  ;;  %v3593_v48 = vadd.f32 %v3592_v0, %v3383_v19  ;;  %5765 = vmatpush.msrb.mxu0 %v10853_v6 }
 0x482   : > { %v4837_v29 = vld [vmem:[#allocation3 + $0x70] sm:$0xff]  ;;  %v14389_v8 = vld [vmem:[#allocation3 + $0x78] sm:$0xff] }
 0x483   : > { %4241 = vrot.lane.b32.xlu0 %v14366_v11, %s11515_s6  ;;  %4081 = vrot.lane.b32.xlu1 %v14366_v11, %s11516_s7 }
 0x484   : > { %10810 = vmatmul.msk.f32.gmra.mxu3 %vm196_vm0, %v4837_v29  ;;  %10767 = vmatmul.msk.f32.gmra.mxu2 %vm196_vm0, %v4834_v51  ;;  %v14386_v51 = vld [vmem:[%s17570_s3 + $0x2] ss:$0 sm:$0xff] }
 0x486   : > { %v4222_v38 = vpop.permute.xlu1 %4221  ;;  %v3843_v49 = vpop.f32.mrf.mxu0 }
 0x487   : > { %4302 = vst.msk [vmem:[#allocation3 + $0x87] sm:$0xff] %vm595_vm5, %v4222_v38  ;;  %v3887_v25 = vadd.f32 %v3843_v49, %v3590_v3  ;;  %v14421_v49 = vpop.permute.xlu2 %4227 }
 0x488   : > { %10736 = vmatmul.msk.f32.gmra.mxu1 %vm196_vm0, %v4837_v29  ;;  %v3595_v9 = vpop.f32.mrf.mxu3 }
 0x489   : > { %v3924_v28 = vmul.f32 %v14380_v7, %v3887_v25 }
 0x48b   : > { %v3961_v60 = vadd.f32 %v14386_v51, %v3924_v28  ;;  %v3386_v33 = vpop.f32.mrf.mxu2 }
 0x48c   : > { %10811 = vmatmul.msk.f32.gmra.mxu3 %vm196_vm0, %v14389_v8  ;;  %10768 = vmatmul.msk.f32.gmra.mxu2 %vm196_vm0, %v14326_v18  ;;  %v10929_v18 = vld [vmem:[%s17568_s1 + $0x578] sm:$0xff]  ;;  %v3596_v28 = vadd.f32 %v3595_v9, %v3386_v33 }
 0x48d   : > { %v14395_v43 = vmax.f32 %v3961_v60, 0.0  ;;  %6228 = vmatpush.msrb.mxu2 %v10929_v18 }
 0x48e   : > { %v3846_v41 = vpop.f32.mrf.mxu0  ;;  %v14414_v19 = vld [vmem:[#allocation3 + $0x80] sm:$0xff] }
 0x48f   : > { %v3888_v34 = vadd.f32 %v3846_v41, %v3593_v48  ;;  %4243 = vrot.lane.b32.xlu0 %v14395_v43, %s11515_s6  ;;  %4083 = vrot.lane.b32.xlu1 %v14395_v43, %s11516_s7  ;;  %v4224_v48 = vpop.permute.xlu1 %4223 }
 0x490   : > { %10737 = vmatmul.msk.f32.gmra.mxu1 %vm196_vm0, %v14389_v8  ;;  %v3598_v60 = vpop.f32.mrf.mxu3 }
 0x491   : > { %v3925_v22 = vmul.f32 %v14380_v7, %v3888_v34  ;;  %v14435_v34 = vld [vmem:[#allocation3 + $0x88] sm:$0xff] }
 0x493   : > { %v3962_v3 = vadd.f32 %v14386_v51, %v3925_v22  ;;  %v3389_v0 = vpop.f32.mrf.mxu2 }
 0x494   : > { %10812 = vmatmul.msk.f32.gmra.mxu3 %vm196_vm0, %v14414_v19  ;;  %10769 = vmatmul.msk.f32.gmra.mxu2 %vm196_vm0, %v4836_v61  ;;  %v3599_v6 = vadd.f32 %v3598_v60, %v3389_v0 }
 0x495   : > { %v14419_v38 = vmax.f32 %v3962_v3, 0.0  ;;  %v10928_v3 = vld [vmem:[%s17568_s1 + $0x570] sm:$0xff] }
 0x496   : > { %6229 = vmatpush.msrb.mxu2 %v10928_v3 }
 0x497   : > { %v4066_v25 = vpop.permute.xlu0 %4065  ;;  %4245 = vrot.lane.b32.xlu1 %v14419_v38, %s11515_s6  ;;  %4085 = vrot.lane.b32.xlu2 %v14419_v38, %s11516_s7 }
 0x498   : > { %4144 = vst.msk [vmem:[#allocation3 + $0x98] sm:$0xff] %vm430_vm1, %v4066_v25  ;;  %10738 = vmatmul.msk.f32.gmra.mxu1 %vm196_vm0, %v14414_v19  ;;  %v10852_v25 = vld [vmem:[%s17568_s1 + $0x510] sm:$0xff] }
 0x499   : > { %4175 = vst.msk [vmem:[#allocation3 + $0x91] sm:$0xff] %vm463_vm2, %v14152_v13  ;;  %v3849_v61 = vpop.f32.mrf.mxu0  ;;  %5766 = vmatpush.msrb.mxu0 %v10852_v25 }
 0x49a   : > { %4176 = vst.msk [vmem:[#allocation3 + $0x99] sm:$0x7f] %vm465_vm3, %v14167_v10  ;;  %v3889_v41 = vadd.f32 %v3849_v61, %v3596_v28  ;;  %v10840_v28 = vld [vmem:[%s17568_s1 + $0x4b0] sm:$0xff] }
 0x49b   : > { %4303 = vst.msk [vmem:[#allocation3 + $0x8f] sm:$0xfe] %vm593_vm4, %v4224_v48  ;;  %5975 = vmatpush.msrb.mxu1 %v10840_v28 }
 0x49c   : > { %4304 = vst.msk [vmem:[#allocation3 + $0x97] sm:$0xff] %vm595_vm5, %v4226_v23  ;;  %v3926_v33 = vmul.f32 %v14380_v7, %v3889_v41  ;;  %10813 = vmatmul.msk.f32.gmra.mxu3 %vm196_vm0, %v14435_v34  ;;  %10770 = vmatmul.msk.f32.gmra.mxu2 %vm196_vm0, %v4837_v29  ;;  %v3601_v23 = vpop.f32.mrf.mxu3 }
 0x49e   : > { %v3963_v13 = vadd.f32 %v14386_v51, %v3926_v33  ;;  %v4074_v9 = vpop.permute.xlu2 %4073 }
 0x49f   : > { %4148 = vst.msk [vmem:[#allocation3 + $0xb8] sm:$0xff] %vm430_vm1, %v4074_v9  ;;  %v3392_v10 = vpop.f32.mrf.mxu2  ;;  %v4068_v18 = vpop.permute.xlu0 %4067 }
 0x4a0   : > { %v14444_v39 = vmax.f32 %v3963_v13, 0.0  ;;  %4180 = vst.msk [vmem:[#allocation3 + $0xb9] sm:$0x7f] %vm465_vm3, %v14243_v31  ;;  %10739 = vmatmul.msk.f32.gmra.mxu1 %vm196_vm0, %v14435_v34  ;;  %v3602_v13 = vadd.f32 %v3601_v23, %v3392_v10 }
 0x4a1   : > { %4145 = vst.msk [vmem:[#allocation3 + $0xa0] sm:$0xff] %vm430_vm1, %v4068_v18  ;;  %v3852_v29 = vpop.f32.mrf.mxu0 }
 0x4a2   : > { %v3890_v22 = vadd.f32 %v3852_v29, %v3599_v6  ;;  %4247 = vrot.lane.b32.xlu1 %v14444_v39, %s11515_s6  ;;  %4087 = vrot.lane.b32.xlu2 %v14444_v39, %s11516_s7 }
 0x4a3   : > { %v14458_v0 = vld [vmem:[#allocation3 + $0x90] sm:$0xff]  ;;  %v14488_v23 = vld [vmem:[#allocation3 + $0x98] sm:$0xff] }
 0x4a4   : > { %v3927_v31 = vmul.f32 %v14380_v7, %v3890_v22  ;;  %10814 = vmatmul.msk.f32.gmra.mxu3 %vm196_vm0, %v14458_v0  ;;  %10771 = vmatmul.msk.f32.gmra.mxu2 %vm196_vm0, %v14389_v8  ;;  %v3604_v10 = vpop.f32.mrf.mxu3 }
 0x4a5   : > { %v4522_v60 = vpop.f32.mrf.mxu1 }
 0x4a6   : > { %v3964_v61 = vadd.f32 %v14386_v51, %v3927_v31  ;;  %v4076_v48 = vpop.permute.xlu2 %4075 }
 0x4a7   : > { %v4070_v41 = vpop.permute.xlu1 %4069  ;;  %4149 = vst.msk [vmem:[#allocation3 + $0xc0] sm:$0xff] %vm430_vm1, %v4076_v48  ;;  %v3395_v33 = vpop.f32.mrf.mxu2  ;;  %v14512_v48 = vld [vmem:[%s17569_s2 + $0x3] ss:$0 sm:$0xff] }
 0x4a8   : > { %v14473_v8 = vmax.f32 %v3964_v61, 0.0  ;;  %4146 = vst.msk [vmem:[#allocation3 + $0xa8] sm:$0xff] %vm430_vm1, %v4070_v41  ;;  %v4230_v9 = vpop.permute.xlu0 %4229  ;;  %10740 = vmatmul.msk.f32.gmra.mxu1 %vm196_vm0, %v14458_v0  ;;  %v3605_v31 = vadd.f32 %v3604_v10, %v3395_v33 }
 0x4a9   : > { %4177 = vst.msk [vmem:[#allocation3 + $0xa1] sm:$0xff] %vm463_vm2, %v14180_v35  ;;  %v3855_v18 = vpop.f32.mrf.mxu0 }
 0x4aa   : > { %4178 = vst.msk [vmem:[#allocation3 + $0xa9] sm:$0x7f] %vm465_vm3, %v14195_v30  ;;  %v3891_v6 = vadd.f32 %v3855_v18, %v3602_v13  ;;  %4249 = vrot.lane.b32.xlu2 %v14473_v8, %s11515_s6  ;;  %4089 = vrot.lane.b32.xlu0 %v14473_v8, %s11516_s7  ;;  %v14524_v13 = vld [vmem:[%s17570_s3 + $0x3] ss:$0 sm:$0xff] }
 0x4ab   : > { %4305 = vst.msk [vmem:[#allocation3 + $0x9f] sm:$0xfe] %vm593_vm4, %v14421_v49 }
 0x4ac   : > { %4306 = vst.msk [vmem:[#allocation3 + $0xa7] sm:$0xff] %vm595_vm5, %v4230_v9  ;;  %v3928_v35 = vmul.f32 %v14380_v7, %v3891_v6  ;;  %10815 = vmatmul.msk.f32.gmra.mxu3 %vm196_vm0, %v14488_v23  ;;  %10772 = vmatmul.msk.f32.gmra.mxu2 %vm196_vm0, %v14414_v19 }
 0x4ad   : > { %v4525_v30 = vpop.f32.mrf.mxu1 }
 0x4ae   : > { %v3965_v29 = vadd.f32 %v14386_v51, %v3928_v35 }
 0x4af   : > { %v4072_v22 = vpop.permute.xlu1 %4071  ;;  %v4731_v3 = vpop.f32.mrf.mxu2 }
 0x4b0   : > { %v14497_v25 = vmax.f32 %v3965_v29, 0.0  ;;  %4147 = vst.msk [vmem:[#allocation3 + $0xb0] sm:$0xff] %vm430_vm1, %v4072_v22  ;;  %10741 = vmatmul.msk.f32.gmra.mxu1 %vm196_vm0, %v14488_v23  ;;  %v4232_v49 = vpop.permute.xlu0 %4231  ;;  %v4732_v61 = vadd.f32 %v4731_v3, %v4522_v60 }
 0x4b1   : > { %4179 = vst.msk [vmem:[#allocation3 + $0xb1] sm:$0xff] %vm463_vm2, %v14227_v58  ;;  %v3858_v28 = vpop.f32.mrf.mxu0 }
 0x4b2   : > { %4307 = vst.msk [vmem:[#allocation3 + $0xaf] sm:$0xfe] %vm593_vm4, %v4232_v49  ;;  %v3892_v19 = vadd.f32 %v3858_v28, %v3605_v31  ;;  %4251 = vrot.lane.b32.xlu2 %v14497_v25, %s11515_s6  ;;  %4091 = vrot.lane.b32.xlu0 %v14497_v25, %s11516_s7  ;;  %v10851_v28 = vld [vmem:[%s17568_s1 + $0x508] sm:$0xff] }
 0x4b3   : > { %v14514_v41 = vld [vmem:[#allocation3 + $0xa0] sm:$0xff]  ;;  %v4985_v58 = vpop.f32.mrf.mxu3  ;;  %5767 = vmatpush.msrb.mxu0 %v10851_v28 }
 0x4b4   : > { %v3929_v33 = vmul.f32 %v14380_v7, %v3892_v19  ;;  %10816 = vmatmul.msk.f32.gmra.mxu3 %vm196_vm0, %v14514_v41  ;;  %10773 = vmatmul.msk.f32.gmra.mxu2 %vm196_vm0, %v14435_v34  ;;  %v5081_v60 = vadd.f32 %v4985_v58, %v4732_v61 }
 0x4b5   : > { %v4528_v9 = vpop.f32.mrf.mxu1 }
 0x4b6   : > { %v3966_v18 = vadd.f32 %v14386_v51, %v3929_v33  ;;  %v5118_v6 = vmul.f32 %v14512_v48, %v5081_v60  ;;  %v14538_v51 = vld [vmem:[#allocation3 + $0xa8] sm:$0xff] }
 0x4b7   : > { %v4234_v10 = vpop.permute.xlu1 %4233  ;;  %v4734_v35 = vpop.f32.mrf.mxu2 }
 0x4b8   : > { %v14528_v7 = vmax.f32 %v3966_v18, 0.0  ;;  %v5155_v29 = vadd.f32 %v14524_v13, %v5118_v6  ;;  %4308 = vst.msk [vmem:[#allocation3 + $0xb7] sm:$0xff] %vm595_vm5, %v4234_v10  ;;  %10742 = vmatmul.msk.f32.gmra.mxu1 %vm196_vm0, %v14514_v41  ;;  %v4735_v34 = vadd.f32 %v4734_v35, %v4525_v30  ;;  %v10927_v30 = vld [vmem:[%s17568_s1 + $0x568] sm:$0xff] }
 0x4b9   : > { %6230 = vmatpush.msrb.mxu2 %v10927_v30 }
 0x4ba   : > { %4253 = vrot.lane.b32.xlu0 %v14528_v7, %s11515_s6  ;;  %4093 = vrot.lane.b32.xlu1 %v14528_v7, %s11516_s7  ;;  %v5187_v3 = vadd.f32 %v5155_v29, %v12978_v20  ;;  %v10839_v20 = vld [vmem:[%s17568_s1 + $0x4a8] sm:$0xff] }
 0x4bb   : > { %v4988_v22 = vpop.f32.mrf.mxu3  ;;  %5976 = vmatpush.msrb.mxu1 %v10839_v20 }
 0x4bc   : > { %10817 = vmatmul.msk.f32.gmra.mxu3 %vm196_vm0, %v14538_v51  ;;  %10774 = vmatmul.msk.f32.gmra.mxu2 %vm196_vm0, %v14458_v0  ;;  %v5082_v31 = vadd.f32 %v4988_v22, %v4735_v34  ;;  %v14556_v58 = vmax.f32 %v5187_v3, 0.0  ;;  %v4238_v3 = vpop.permute.xlu2 %4237 }
 0x4bd   : > { %v4531_v49 = vpop.f32.mrf.mxu1 }
 0x4be   : > { %v5119_v61 = vmul.f32 %v14512_v48, %v5082_v31 }
 0x4bf   : > { %v4737_v19 = vpop.f32.mrf.mxu2  ;;  %v4845_v60 = vld [vmem:[#allocation3 + $0xb0] sm:$0xff]  ;;  %v4846_v31 = vld [vmem:[#allocation3 + $0xb8] sm:$0xff] }
 0x4c0   : > { %v5156_v0 = vadd.f32 %v14524_v13, %v5119_v61  ;;  %10743 = vmatmul.msk.f32.gmra.mxu1 %vm196_vm0, %v14538_v51  ;;  %v4738_v18 = vadd.f32 %v4737_v19, %v4528_v9 }
 0x4c2   : > { %v5188_v33 = vadd.f32 %v5156_v0, %v13005_v62  ;;  %5443 = vrot.lane.b32.xlu0 %v14556_v58, %s11515_s6  ;;  %5283 = vrot.lane.b32.xlu1 %v14556_v58, %s11516_s7 }
 0x4c4   : > { %10818 = vmatmul.msk.f32.gmra.mxu3 %vm196_vm0, %v4845_v60  ;;  %10775 = vmatmul.msk.f32.gmra.mxu2 %vm196_vm0, %v14488_v23  ;;  %v14568_v6 = vmax.f32 %v5188_v33, 0.0  ;;  %v4236_v23 = vpop.permute.xlu1 %4235 }
 0x4c5   : > { %v4991_v10 = vpop.f32.mrf.mxu3  ;;  %v4534_v35 = vpop.f32.mrf.mxu1 }
 0x4c6   : > { %v5083_v29 = vadd.f32 %v4991_v10, %v4738_v18  ;;  %5285 = vrot.lane.b32.xlu2 %v14568_v6, %s11516_s7 }
 0x4c7   : > { %v4740_v62 = vpop.f32.mrf.mxu2  ;;  %v4078_v34 = vpop.permute.xlu0 %4077 }
 0x4c8   : > { %v5120_v22 = vmul.f32 %v14512_v48, %v5083_v29  ;;  %4150 = vst.msk [vmem:[#allocation3 + $0xc8] sm:$0xff] %vm430_vm1, %v4078_v34  ;;  %10744 = vmatmul.msk.f32.gmra.mxu1 %vm196_vm0, %v4845_v60  ;;  %v4741_v28 = vadd.f32 %v4740_v62, %v4531_v49  ;;  %v10850_v29 = vld [vmem:[%s17568_s1 + $0x500] sm:$0xff] }
 0x4c9   : > { %4181 = vst.msk [vmem:[#allocation3 + $0xc1] sm:$0xff] %vm463_vm2, %v14261_v52  ;;  %v10838_v62 = vld [vmem:[%s17568_s1 + $0x4a0] sm:$0xff]  ;;  %5768 = vmatpush.msrb.mxu0 %v10850_v29  ;;  %v10849_v29 = vld [vmem:[%s17568_s1 + $0x4f8] sm:$0xff] }
 0x4ca   : > { %v5157_v9 = vadd.f32 %v14524_v13, %v5120_v22  ;;  %4182 = vst.msk [vmem:[#allocation3 + $0xc9] sm:$0x7f] %vm465_vm3, %v14286_v56  ;;  %5445 = vrot.lane.b32.xlu1 %v14568_v6, %s11515_s6  ;;  %v10926_v56 = vld [vmem:[%s17568_s1 + $0x560] sm:$0xff]  ;;  %5977 = vmatpush.msrb.mxu1 %v10838_v62  ;;  %v10837_v62 = vld [vmem:[%s17568_s1 + $0x498] sm:$0xff] }
 0x4cb   : > { %4309 = vst.msk [vmem:[#allocation3 + $0xbf] sm:$0xfe] %vm593_vm4, %v4236_v23  ;;  %6231 = vmatpush.msrb.mxu2 %v10926_v56  ;;  %5769 = vmatpush.msrb.mxu0 %v10849_v29 }
 0x4cc   : > { %v5189_v30 = vadd.f32 %v5157_v9, %v13034_v17  ;;  %4310 = vst.msk [vmem:[#allocation3 + $0xc7] sm:$0xff] %vm595_vm5, %v4238_v3  ;;  %10819 = vmatmul.msk.f32.gmra.mxu3 %vm196_vm0, %v4846_v31  ;;  %10776 = vmatmul.msk.f32.gmra.mxu2 %vm196_vm0, %v14514_v41 }
 0x4cd   : > { %v4994_v52 = vpop.f32.mrf.mxu3  ;;  %v4537_v20 = vpop.f32.mrf.mxu1  ;;  %5978 = vmatpush.msrb.mxu1 %v10837_v62 }
 0x4ce   : > { %v5084_v61 = vadd.f32 %v4994_v52, %v4741_v28  ;;  %v14591_v19 = vmax.f32 %v5189_v30, 0.0 }
 0x4cf   : > { %v4743_v0 = vpop.f32.mrf.mxu2 }
 0x4d0   : > { %v5121_v17 = vmul.f32 %v14512_v48, %v5084_v61  ;;  %5287 = vrot.lane.b32.xlu2 %v14591_v19, %s11516_s7  ;;  %10745 = vmatmul.msk.f32.gmra.mxu1 %vm196_vm0, %v4846_v31  ;;  %v4744_v18 = vadd.f32 %v4743_v0, %v4534_v35 }
 0x4d2   : > { %v5158_v41 = vadd.f32 %v14524_v13, %v5121_v17  ;;  %5447 = vrot.lane.b32.xlu1 %v14591_v19, %s11515_s6 }
 0x4d3   : > { %v4847_v49 = vld [vmem:[#allocation3 + $0xc0] sm:$0xff]  ;;  %v4848_v9 = vld [vmem:[#allocation3 + $0xc8] sm:$0xff] }
 0x4d4   : > { %v5190_v33 = vadd.f32 %v5158_v41, %v13061_v40  ;;  %10820 = vmatmul.msk.f32.gmra.mxu3 %vm196_vm0, %v4847_v49  ;;  %10777 = vmatmul.msk.f32.gmra.mxu2 %vm196_vm0, %v14538_v51 }
 0x4d5   : > { %v4540_v10 = vpop.f32.mrf.mxu1 }
 0x4d6   : > { %v4997_v34 = vpop.f32.mrf.mxu3  ;;  %v14610_v22 = vmax.f32 %v5190_v33, 0.0 }
 0x4d7   : > { %v5085_v40 = vadd.f32 %v4997_v34, %v4744_v18  ;;  %v4746_v23 = vpop.f32.mrf.mxu2  ;;  %v10925_v18 = vld [vmem:[%s17568_s1 + $0x558] sm:$0xff] }
 0x4d8   : > { %5449 = vrot.lane.b32.xlu2 %v14610_v22, %s11515_s6  ;;  %5289 = vrot.lane.b32.xlu0 %v14610_v22, %s11516_s7  ;;  %v4747_v30 = vadd.f32 %v4746_v23, %v4537_v20 }
 0x4d9   : > { %v5122_v51 = vmul.f32 %v14512_v48, %v5085_v40  ;;  %10746 = vmatmul.msk.f32.gmra.mxu1 %vm196_vm0, %v4847_v49  ;;  %6232 = vmatpush.msrb.mxu2 %v10925_v18 }
 0x4db   : > { %v5159_v35 = vadd.f32 %v14524_v13, %v5122_v51 }
 0x4dc   : > { %10821 = vmatmul.msk.f32.gmra.mxu3 %vm196_vm0, %v4848_v9  ;;  %10778 = vmatmul.msk.f32.gmra.mxu2 %vm196_vm0, %v4845_v60 }
 0x4dd   : > { %v5191_v3 = vadd.f32 %v5159_v35, %v13113_v16  ;;  %v4543_v28 = vpop.f32.mrf.mxu1 }
 0x4de   : > { %v5000_v52 = vpop.f32.mrf.mxu3 }
 0x4df   : > { %v5086_v56 = vadd.f32 %v5000_v52, %v4747_v30  ;;  %v4749_v61 = vpop.f32.mrf.mxu2  ;;  %v14622_v0 = vmax.f32 %v5191_v3, 0.0 }
 0x4e0   : > { %v4750_v20 = vadd.f32 %v4749_v61, %v4540_v10 }
 0x4e1   : > { %v5123_v17 = vmul.f32 %v14512_v48, %v5086_v56  ;;  %5451 = vrot.lane.b32.xlu2 %v14622_v0, %s11515_s6  ;;  %5291 = vrot.lane.b32.xlu0 %v14622_v0, %s11516_s7 }
 0x4e2   : > { %10747 = vmatmul.msk.f32.gmra.mxu1 %vm196_vm0, %v4848_v9 }
 0x4e3   : > { %v5160_v60 = vadd.f32 %v14524_v13, %v5123_v17 }
 0x4e4   : > { %10779 = vmatmul.msk.f32.gmra.mxu2 %vm196_vm0, %v4846_v31 }
 0x4e5   : > { %v5192_v16 = vadd.f32 %v5160_v60, %v13115_v4  ;;  %v4546_v41 = vpop.f32.mrf.mxu1  ;;  %v4240_v4 = vpop.permute.xlu2 %4239 }
 0x4e6   : > { %v5003_v33 = vpop.f32.mrf.mxu3 }
 0x4e7   : > { %v5087_v34 = vadd.f32 %v5003_v33, %v4750_v20  ;;  %v4752_v40 = vpop.f32.mrf.mxu2  ;;  %v14642_v31 = vmax.f32 %v5192_v16, 0.0 }
 0x4e8   : > { %v4753_v35 = vadd.f32 %v4752_v40, %v4543_v28 }
 0x4e9   : > { %v5124_v10 = vmul.f32 %v14512_v48, %v5087_v34  ;;  %5453 = vrot.lane.b32.xlu0 %v14642_v31, %s11515_s6  ;;  %5293 = vrot.lane.b32.xlu1 %v14642_v31, %s11516_s7 }
 0x4eb   : > { %v5161_v23 = vadd.f32 %v14524_v13, %v5124_v10  ;;  %v10848_v10 = vld [vmem:[%s17568_s1 + $0x4f0] sm:$0xff] }
 0x4ec   : > { %10780 = vmatmul.msk.f32.gmra.mxu2 %vm196_vm0, %v4847_v49  ;;  %5770 = vmatpush.msrb.mxu0 %v10848_v10 }
 0x4ed   : > { %v5193_v51 = vadd.f32 %v5161_v23, %v13146_v1  ;;  %v4080_v3 = vpop.permute.xlu0 %4079  ;;  %v4549_v30 = vpop.f32.mrf.mxu1  ;;  %v10836_v23 = vld [vmem:[%s17568_s1 + $0x490] sm:$0xff] }
 0x4ee   : > { %4151 = vst.msk [vmem:[#allocation3 + $0xd0] sm:$0xff] %vm430_vm1, %v4080_v3  ;;  %v5006_v52 = vpop.f32.mrf.mxu3  ;;  %5979 = vmatpush.msrb.mxu1 %v10836_v23 }
 0x4ef   : > { %v5088_v56 = vadd.f32 %v5006_v52, %v4753_v35  ;;  %v4755_v61 = vpop.f32.mrf.mxu2  ;;  %v14653_v17 = vmax.f32 %v5193_v51, 0.0 }
 0x4f0   : > { %v4756_v16 = vadd.f32 %v4755_v61, %v4546_v41 }
 0x4f1   : > { %v5125_v60 = vmul.f32 %v14512_v48, %v5088_v56  ;;  %5455 = vrot.lane.b32.xlu0 %v14653_v17, %s11515_s6  ;;  %5295 = vrot.lane.b32.xlu1 %v14653_v17, %s11516_s7  ;;  %v4086_v49 = vpop.permute.xlu2 %4085 }
 0x4f2   : > { %4154 = vst.msk [vmem:[#allocation3 + $0xe8] sm:$0xff] %vm430_vm1, %v4086_v49 }
 0x4f3   : > { %v5162_v1 = vadd.f32 %v14524_v13, %v5125_v60  ;;  %4186 = vst.msk [vmem:[#allocation3 + $0xe9] sm:$0x7f] %vm465_vm3, %v14419_v38 }
 0x4f4   : > { %10781 = vmatmul.msk.f32.gmra.mxu2 %vm196_vm0, %v4848_v9 }
 0x4f5   : > { %v5194_v28 = vadd.f32 %v5162_v1, %v13168_v15  ;;  %v4082_v20 = vpop.permute.xlu1 %4081  ;;  %v4552_v18 = vpop.f32.mrf.mxu1 }
 0x4f6   : > { %4152 = vst.msk [vmem:[#allocation3 + $0xd8] sm:$0xff] %vm430_vm1, %v4082_v20  ;;  %v5009_v33 = vpop.f32.mrf.mxu3  ;;  %v4242_v38 = vpop.permute.xlu0 %4241 }
 0x4f7   : > { %4183 = vst.msk [vmem:[#allocation3 + $0xd1] sm:$0xff] %vm463_vm2, %v14340_v59  ;;  %v5089_v29 = vadd.f32 %v5009_v33, %v4756_v16  ;;  %v4758_v62 = vpop.f32.mrf.mxu2  ;;  %v14669_v34 = vmax.f32 %v5194_v28, 0.0 }
 0x4f8   : > { %4184 = vst.msk [vmem:[#allocation3 + $0xd9] sm:$0x7f] %vm465_vm3, %v14366_v11  ;;  %v4759_v11 = vadd.f32 %v4758_v62, %v4549_v30 }
 0x4f9   : > { %4311 = vst.msk [vmem:[#allocation3 + $0xcf] sm:$0xfe] %vm593_vm4, %v4240_v4  ;;  %v5126_v15 = vmul.f32 %v14512_v48, %v5089_v29  ;;  %5457 = vrot.lane.b32.xlu1 %v14669_v34, %s11515_s6  ;;  %5297 = vrot.lane.b32.xlu2 %v14669_v34, %s11516_s7  ;;  %v10924_v4 = vld [vmem:[%s17568_s1 + $0x550] sm:$0xff] }
 0x4fa   : > { %4312 = vst.msk [vmem:[#allocation3 + $0xd7] sm:$0xff] %vm595_vm5, %v4242_v38  ;;  %6233 = vmatpush.msrb.mxu2 %v10924_v4 }
 0x4fb   : > { %v5163_v59 = vadd.f32 %v14524_v13, %v5126_v15 }
 0x4fc   : > { %v4088_v9 = vpop.permute.xlu2 %4087 }
 0x4fd   : > { %v5195_v41 = vadd.f32 %v5163_v59, %v13187_v36  ;;  %4155 = vst.msk [vmem:[#allocation3 + $0xf0] sm:$0xff] %vm430_vm1, %v4088_v9  ;;  %v4555_v40 = vpop.f32.mrf.mxu1 }
 0x4ff   : > { %v5012_v51 = vpop.f32.mrf.mxu3  ;;  %v4761_v35 = vpop.f32.mrf.mxu2  ;;  %v14692_v3 = vmax.f32 %v5195_v41, 0.0  ;;  %v10923_v41 = vld [vmem:[%s17568_s1 + $0x548] sm:$0xff] }
 0x500   : > { %v5090_v36 = vadd.f32 %v5012_v51, %v4759_v11  ;;  %v4762_v1 = vadd.f32 %v4761_v35, %v4552_v18  ;;  %6234 = vmatpush.msrb.mxu2 %v10923_v41 }
 0x501   : > { %v4388_v30 = vld [vmem:[#allocation3 + $0xd0] sm:$0xff]  ;;  %5459 = vrot.lane.b32.xlu1 %v14692_v3, %s11515_s6  ;;  %5299 = vrot.lane.b32.xlu2 %v14692_v3, %s11516_s7  ;;  %v4084_v52 = vpop.permute.xlu1 %4083  ;;  %v4244_v61 = vpop.permute.xlu0 %4243  ;;  %v4389_v62 = vld [vmem:[#allocation3 + $0xd8] sm:$0xff] }
 0x502   : > { %v5127_v56 = vmul.f32 %v14512_v48, %v5090_v36  ;;  %10748 = vmatmul.msk.f32.gmra.mxu1 %vm196_vm0, %v4388_v30  ;;  %10782 = vmatmul.msk.f32.gmra.mxu2 %vm196_vm0, %v4388_v30  ;;  %4153 = vst.msk [vmem:[#allocation3 + $0xe0] sm:$0xff] %vm430_vm1, %v4084_v52  ;;  %v10847_v52 = vld [vmem:[%s17568_s1 + $0x4e8] sm:$0xff] }
 0x503   : > { %10822 = vmatmul.msk.f32.gmra.mxu3 %vm196_vm0, %v4388_v30  ;;  %4185 = vst.msk [vmem:[#allocation3 + $0xe1] sm:$0xff] %vm463_vm2, %v14395_v43  ;;  %5771 = vmatpush.msrb.mxu0 %v10847_v52 }
 0x504   : > { %v5164_v60 = vadd.f32 %v14524_v13, %v5127_v56  ;;  %4313 = vst.msk [vmem:[#allocation3 + $0xdf] sm:$0xfe] %vm593_vm4, %v4244_v61  ;;  %v4250_v43 = vpop.permute.xlu2 %4249  ;;  %v10835_v56 = vld [vmem:[%s17568_s1 + $0x488] sm:$0xff] }
 0x505   : > { %v4558_v28 = vpop.f32.mrf.mxu1  ;;  %5980 = vmatpush.msrb.mxu1 %v10835_v56 }
 0x506   : > { %v5196_v49 = vadd.f32 %v5164_v60, %v13204_v46 }
 0x507   : > { %v5015_v16 = vpop.f32.mrf.mxu3  ;;  %v4764_v20 = vpop.f32.mrf.mxu2 }
 0x508   : > { %v5091_v33 = vadd.f32 %v5015_v16, %v4762_v1  ;;  %v14708_v29 = vmax.f32 %v5196_v49, 0.0  ;;  %v4765_v59 = vadd.f32 %v4764_v20, %v4555_v40 }
 0x509   : > { %v4246_v38 = vpop.permute.xlu1 %4245 }
 0x50a   : > { %v5128_v15 = vmul.f32 %v14512_v48, %v5091_v33  ;;  %10749 = vmatmul.msk.f32.gmra.mxu1 %vm196_vm0, %v4389_v62  ;;  %10783 = vmatmul.msk.f32.gmra.mxu2 %vm196_vm0, %v4389_v62  ;;  %4314 = vst.msk [vmem:[#allocation3 + $0xe7] sm:$0xff] %vm595_vm5, %v4246_v38 }
 0x50b   : > { %10823 = vmatmul.msk.f32.gmra.mxu3 %vm196_vm0, %v4389_v62  ;;  %5461 = vrot.lane.b32.xlu2 %v14708_v29, %s11515_s6 }
 0x50c   : > { %v5165_v46 = vadd.f32 %v14524_v13, %v5128_v15  ;;  %5301 = vrot.lane.b32.xlu0 %v14708_v29, %s11516_s7  ;;  %v14742_v49 = vpop.permute.xlu2 %4251 }
 0x50d   : > { %v4561_v9 = vpop.f32.mrf.mxu1 }
 0x50e   : > { %v5197_v18 = vadd.f32 %v5165_v46, %v13218_v47 }
 0x50f   : > { %v5018_v11 = vpop.f32.mrf.mxu3  ;;  %v4767_v4 = vpop.f32.mrf.mxu2 }
 0x510   : > { %v5092_v10 = vadd.f32 %v5018_v11, %v4765_v59  ;;  %v14724_v23 = vmax.f32 %v5197_v18, 0.0  ;;  %v4768_v36 = vadd.f32 %v4767_v4, %v4558_v28 }
 0x511   : > { %v4390_v51 = vld [vmem:[#allocation3 + $0xe0] sm:$0xff] }
 0x512   : > { %v5129_v35 = vmul.f32 %v14512_v48, %v5092_v10  ;;  %10750 = vmatmul.msk.f32.gmra.mxu1 %vm196_vm0, %v4390_v51  ;;  %10784 = vmatmul.msk.f32.gmra.mxu2 %vm196_vm0, %v4390_v51  ;;  %v10922_v10 = vld [vmem:[%s17568_s1 + $0x540] sm:$0xff] }
 0x513   : > { %5463 = vrot.lane.b32.xlu2 %v14724_v23, %s11515_s6  ;;  %10824 = vmatmul.msk.f32.gmra.mxu3 %vm196_vm0, %v4390_v51  ;;  %v10846_v51 = vld [vmem:[%s17568_s1 + $0x4e0] sm:$0xff] }
 0x514   : > { %v5166_v47 = vadd.f32 %v14524_v13, %v5129_v35  ;;  %5303 = vrot.lane.b32.xlu0 %v14724_v23, %s11516_s7  ;;  %v4248_v62 = vpop.permute.xlu1 %4247  ;;  %v10834_v35 = vld [vmem:[%s17568_s1 + $0x480] sm:$0xff]  ;;  %6235 = vmatpush.msrb.mxu2 %v10922_v10 }
 0x515   : > { %v4564_v30 = vpop.f32.mrf.mxu1  ;;  %5772 = vmatpush.msrb.mxu0 %v10846_v51  ;;  %5981 = vmatpush.msrb.mxu1 %v10834_v35 }
 0x516   : > { %v5198_v40 = vadd.f32 %v5166_v47, %v13230_v37  ;;  %v4391_v37 = vld [vmem:[#allocation3 + $0xe8] sm:$0xff] }
 0x517   : > { %v5021_v61 = vpop.f32.mrf.mxu3  ;;  %v4770_v60 = vpop.f32.mrf.mxu2 }
 0x518   : > { %v5093_v1 = vadd.f32 %v5021_v61, %v4768_v36  ;;  %v14744_v16 = vmax.f32 %v5198_v40, 0.0  ;;  %v4771_v15 = vadd.f32 %v4770_v60, %v4561_v9 }
 0x51a   : > { %v5130_v28 = vmul.f32 %v14512_v48, %v5093_v1  ;;  %5305 = vrot.lane.b32.xlu1 %v14744_v16, %s11516_s7  ;;  %10751 = vmatmul.msk.f32.gmra.mxu1 %vm196_vm0, %v4391_v37 }
 0x51b   : > { %10785 = vmatmul.msk.f32.gmra.mxu2 %vm196_vm0, %v4391_v37  ;;  %10825 = vmatmul.msk.f32.gmra.mxu3 %vm196_vm0, %v4391_v37 }
 0x51c   : > { %v5167_v20 = vadd.f32 %v14524_v13, %v5130_v28  ;;  %5465 = vrot.lane.b32.xlu0 %v14744_v16, %s11515_s6  ;;  %v4090_v33 = vpop.permute.xlu0 %4089 }
 0x51d   : > { %4156 = vst.msk [vmem:[#allocation3 + $0xf8] sm:$0xff] %vm430_vm1, %v4090_v33  ;;  %v4567_v41 = vpop.f32.mrf.mxu1 }
 0x51e   : > { %v5199_v38 = vadd.f32 %v5167_v20, %v13249_v57  ;;  %4187 = vst.msk [vmem:[#allocation3 + $0xf1] sm:$0xff] %vm463_vm2, %v14444_v39 }
 0x51f   : > { %4188 = vst.msk [vmem:[#allocation3 + $0xf9] sm:$0x7f] %vm465_vm3, %v14473_v8  ;;  %v5024_v46 = vpop.f32.mrf.mxu3  ;;  %v4773_v18 = vpop.f32.mrf.mxu2 }
 0x520   : > { %4315 = vst.msk [vmem:[#allocation3 + $0xef] sm:$0xfe] %vm593_vm4, %v4248_v62  ;;  %v5094_v59 = vadd.f32 %v5024_v46, %v4771_v15  ;;  %v14762_v11 = vmax.f32 %v5199_v38, 0.0  ;;  %v5286_v4 = vpop.permute.xlu2 %5285  ;;  %v4774_v9 = vadd.f32 %v4773_v18, %v4564_v30 }
 0x521   : > { %4316 = vst.msk [vmem:[#allocation3 + $0xf7] sm:$0xff] %vm595_vm5, %v4250_v43 }
 0x522   : > { %v5131_v57 = vmul.f32 %v14512_v48, %v5094_v59  ;;  %5307 = vrot.lane.b32.xlu1 %v14762_v11, %s11516_s7  ;;  %5380 = vst.msk [vmem:[#allocation2 + $0x18] sm:$0xff] %vm430_vm1, %v5286_v4 }
 0x523   : > { %5412 = vst.msk [vmem:[#allocation2 + $0x19] sm:$0x7f] %vm465_vm3, %v14568_v6 }
 0x524   : > { %v5168_v39 = vadd.f32 %v14524_v13, %v5131_v57  ;;  %5467 = vrot.lane.b32.xlu0 %v14762_v11, %s11515_s6  ;;  %v4092_v8 = vpop.permute.xlu0 %4091 }
 0x525   : > { %4157 = vst.msk [vmem:[#allocation3 + $0x100] sm:$0xff] %vm430_vm1, %v4092_v8  ;;  %v4570_v56 = vpop.f32.mrf.mxu1 }
 0x526   : > { %v5200_v43 = vadd.f32 %v5168_v39, %v13267_v50 }
 0x527   : > { %v5027_v47 = vpop.f32.mrf.mxu3  ;;  %v4776_v40 = vpop.f32.mrf.mxu2 }
 0x528   : > { %v5095_v36 = vadd.f32 %v5027_v47, %v4774_v9  ;;  %v4392_v52 = vld [vmem:[#allocation3 + $0xf0] sm:$0xff]  ;;  %v14785_v50 = vmax.f32 %v5200_v43, 0.0  ;;  %v4777_v20 = vadd.f32 %v4776_v40, %v4567_v41  ;;  %v4393_v15 = vld [vmem:[#allocation3 + $0xf8] sm:$0xff] }
 0x529   : > { %10752 = vmatmul.msk.f32.gmra.mxu1 %vm196_vm0, %v4392_v52  ;;  %10786 = vmatmul.msk.f32.gmra.mxu2 %vm196_vm0, %v4392_v52 }
 0x52a   : > { %v5132_v30 = vmul.f32 %v14512_v48, %v5095_v36  ;;  %10826 = vmatmul.msk.f32.gmra.mxu3 %vm196_vm0, %v4392_v52  ;;  %5469 = vrot.lane.b32.xlu1 %v14785_v50, %s11515_s6  ;;  %v5288_v61 = vpop.permute.xlu2 %5287 }
 0x52b   : > { %5309 = vrot.lane.b32.xlu2 %v14785_v50, %s11516_s7  ;;  %5381 = vst.msk [vmem:[#allocation2 + $0x20] sm:$0xff] %vm430_vm1, %v5288_v61 }
 0x52c   : > { %v5169_v60 = vadd.f32 %v14524_v13, %v5132_v30  ;;  %v4094_v1 = vpop.permute.xlu1 %4093  ;;  %v4254_v37 = vpop.permute.xlu0 %4253 }
 0x52d   : > { %4158 = vst.msk [vmem:[#allocation3 + $0x108] sm:$0xff] %vm430_vm1, %v4094_v1 }
 0x52e   : > { %v5201_v28 = vadd.f32 %v5169_v60, %v13286_v24  ;;  %4189 = vst.msk [vmem:[#allocation3 + $0x101] sm:$0xff] %vm463_vm2, %v14497_v25 }
 0x52f   : > { %4190 = vst.msk [vmem:[#allocation3 + $0x109] sm:$0x7f] %vm465_vm3, %v14528_v7  ;;  %v5030_v33 = vpop.f32.mrf.mxu3  ;;  %v4779_v62 = vpop.f32.mrf.mxu2 }
 0x530   : > { %4317 = vst.msk [vmem:[#allocation3 + $0xff] sm:$0xfe] %vm593_vm4, %v14742_v49  ;;  %v5096_v38 = vadd.f32 %v5030_v33, %v4777_v20  ;;  %v14805_v46 = vmax.f32 %v5201_v28, 0.0  ;;  %v4573_v7 = vpop.f32.mrf.mxu1  ;;  %v4780_v59 = vadd.f32 %v4779_v62, %v4570_v56  ;;  %v5571_v20 = vld [vmem:[#allocation2] sm:$0xff] }
 0x531   : > { %4318 = vst.msk [vmem:[#allocation3 + $0x107] sm:$0xff] %vm595_vm5, %v4254_v37  ;;  %10753 = vmatmul.msk.f32.gmra.mxu1 %vm196_vm0, %v4393_v15  ;;  %10787 = vmatmul.msk.f32.gmra.mxu2 %vm196_vm0, %v4393_v15 }
 0x532   : > { %v5133_v24 = vmul.f32 %v14512_v48, %v5096_v38  ;;  %10827 = vmatmul.msk.f32.gmra.mxu3 %vm196_vm0, %v4393_v15  ;;  %5471 = vrot.lane.b32.xlu1 %v14805_v46, %s11515_s6  ;;  %v5450_v61 = vpop.permute.xlu2 %5449  ;;  %v4857_v38 = vld [vmem:[#allocation3 + $0x110] sm:$0xff] }
 0x533   : > { %5311 = vrot.lane.b32.xlu2 %v14805_v46, %s11516_s7 }
 0x534   : > { %v5170_v25 = vadd.f32 %v14524_v13, %v5133_v24  ;;  %v5284_v49 = vpop.permute.xlu1 %5283  ;;  %v5444_v41 = vpop.permute.xlu0 %5443 }
 0x535   : > { %5379 = vst.msk [vmem:[#allocation2 + $0x10] sm:$0xff] %vm430_vm1, %v5284_v49 }
 0x536   : > { %v5202_v18 = vadd.f32 %v5170_v25, %v13301_v26  ;;  %5411 = vst.msk [vmem:[#allocation2 + $0x11] sm:$0xff] %vm463_vm2, %v14556_v58 }
 0x537   : > { %5539 = vst.msk [vmem:[#allocation2 + $0xf] sm:$0xfe] %vm593_vm4, %v5444_v41  ;;  %v5033_v4 = vpop.f32.mrf.mxu3  ;;  %v4782_v57 = vpop.f32.mrf.mxu2 }
 0x538   : > { %v5097_v39 = vadd.f32 %v5033_v4, %v4780_v59  ;;  %v4394_v8 = vld [vmem:[#allocation3 + $0x100] sm:$0xff]  ;;  %v14822_v43 = vmax.f32 %v5202_v18, 0.0  ;;  %v4576_v35 = vpop.f32.mrf.mxu1  ;;  %v4783_v47 = vadd.f32 %v4782_v57, %v4573_v7  ;;  %v4395_v30 = vld [vmem:[#allocation3 + $0x108] sm:$0xff] }
 0x539   : > { %10754 = vmatmul.msk.f32.gmra.mxu1 %vm196_vm0, %v4394_v8 }
 0x53a   : > { %v5134_v9 = vmul.f32 %v14512_v48, %v5097_v39  ;;  %10828 = vmatmul.msk.f32.gmra.mxu3 %vm196_vm0, %v4394_v8  ;;  %5313 = vrot.lane.b32.xlu0 %v14822_v43, %s11516_s7  ;;  %v5572_v39 = vld [vmem:[#allocation2 + $0x8] sm:$0xff] }
 0x53b   : > { %5473 = vrot.lane.b32.xlu2 %v14822_v43, %s11515_s6 }
 0x53c   : > { %v5171_v26 = vadd.f32 %v14524_v13, %v5134_v9  ;;  %v5446_v10 = vpop.permute.xlu1 %5445  ;;  %v4858_v9 = vld [vmem:[#allocation3 + $0x118] sm:$0xff] }
 0x53d   : > { %5540 = vst.msk [vmem:[#allocation2 + $0x17] sm:$0xff] %vm595_vm5, %v5446_v10 }
 0x53e   : > { %v5203_v51 = vadd.f32 %v5171_v26, %v13322_v27 }
 0x53f   : > { %v5036_v40 = vpop.f32.mrf.mxu3  ;;  %v4785_v36 = vpop.f32.mrf.mxu2 }
 0x540   : > { %v5098_v52 = vadd.f32 %v5036_v40, %v4783_v47  ;;  %v14834_v56 = vmax.f32 %v5203_v51, 0.0  ;;  %v4786_v28 = vadd.f32 %v4785_v36, %v4576_v35  ;;  %v4579_v15 = vpop.f32.mrf.mxu1 }
 0x541   : > { %10755 = vmatmul.msk.f32.gmra.mxu1 %vm196_vm0, %v4395_v30 }
 0x542   : > { %v5135_v60 = vmul.f32 %v14512_v48, %v5098_v52  ;;  %10829 = vmatmul.msk.f32.gmra.mxu3 %vm196_vm0, %v4395_v30  ;;  %5315 = vrot.lane.b32.xlu0 %v14834_v56, %s11516_s7 }
 0x543   : > { %5475 = vrot.lane.b32.xlu2 %v14834_v56, %s11515_s6 }
 0x544   : > { %v5172_v27 = vadd.f32 %v14524_v13, %v5135_v60  ;;  %v5616_v1 = vld [vmem:[#allocation2 + $0x10] sm:$0xff]  ;;  %v5617_v59 = vld [vmem:[#allocation2 + $0x18] sm:$0xff]  ;;  %v5448_v41 = vpop.permute.xlu1 %5447 }
 0x545   : > { %10858 = vmatmul.msk.f32.vlgmr.msrb.gmra.mxu0 %vm196_vm0, %v5616_v1 }
 0x546   : > { %v5204_v37 = vadd.f32 %v5172_v27, %v13341_v32  ;;  %v5452_v32 = vpop.permute.xlu2 %5451 }
 0x547   : > { %v5039_v33 = vpop.f32.mrf.mxu3  ;;  %v4788_v62 = vpop.f32.mrf.mxu2 }
 0x548   : > { %v5099_v24 = vadd.f32 %v5039_v33, %v4786_v28  ;;  %v14846_v25 = vmax.f32 %v5204_v37, 0.0  ;;  %v4789_v57 = vadd.f32 %v4788_v62, %v4579_v15  ;;  %v4582_v35 = vpop.f32.mrf.mxu1 }
 0x549   : > { %10890 = vmatmul.msk.f32.vlgmr.msrb.gmra.mxu1 %vm196_vm0, %v5571_v20 }
 0x54a   : > { %v5136_v7 = vmul.f32 %v14512_v48, %v5099_v24  ;;  %10830 = vmatmul.msk.f32.gmra.mxu3 %vm196_vm0, %v4857_v38  ;;  %5477 = vrot.lane.b32.xlu0 %v14846_v25, %s11515_s6  ;;  %v5290_v49 = vpop.permute.xlu0 %5289 }
 0x54b   : > { %5317 = vrot.lane.b32.xlu1 %v14846_v25, %s11516_s7  ;;  %5382 = vst.msk [vmem:[#allocation2 + $0x28] sm:$0xff] %vm430_vm1, %v5290_v49 }
 0x54c   : > { %v5173_v18 = vadd.f32 %v14524_v13, %v5136_v7  ;;  %5413 = vst.msk [vmem:[#allocation2 + $0x21] sm:$0xff] %vm463_vm2, %v14591_v19 }
 0x54d   : > { %5414 = vst.msk [vmem:[#allocation2 + $0x29] sm:$0x7f] %vm465_vm3, %v14610_v22  ;;  %10859 = vmatmul.msk.f32.gmra.mxu0 %vm196_vm0, %v5617_v59 }
 0x54e   : > { %v5205_v4 = vadd.f32 %v5173_v18, %v13363_v54  ;;  %5541 = vst.msk [vmem:[#allocation2 + $0x1f] sm:$0xfe] %vm593_vm4, %v5448_v41 }
 0x54f   : > { %5542 = vst.msk [vmem:[#allocation2 + $0x27] sm:$0xff] %vm595_vm5, %v5450_v61  ;;  %v5042_v8 = vpop.f32.mrf.mxu3  ;;  %v4791_v10 = vpop.f32.mrf.mxu2 }
 0x550   : > { %v5100_v26 = vadd.f32 %v5042_v8, %v4789_v57  ;;  %v14865_v51 = vmax.f32 %v5205_v4, 0.0  ;;  %v4792_v30 = vadd.f32 %v4791_v10, %v4582_v35  ;;  %v4585_v15 = vpop.f32.mrf.mxu1 }
 0x551   : > { %10891 = vmatmul.msk.f32.gmra.mxu1 %vm196_vm0, %v5572_v39 }
 0x552   : > { %v5137_v47 = vmul.f32 %v14512_v48, %v5100_v26  ;;  %10831 = vmatmul.msk.f32.gmra.mxu3 %vm196_vm0, %v4858_v9  ;;  %5479 = vrot.lane.b32.xlu0 %v14865_v51, %s11515_s6 }
 0x553   : > { %5319 = vrot.lane.b32.xlu1 %v14865_v51, %s11516_s7  ;;  %v5298_v54 = vpop.permute.xlu2 %5297  ;;  %v5292_v40 = vpop.permute.xlu0 %5291 }
 0x554   : > { %v5174_v36 = vadd.f32 %v14524_v13, %v5137_v47  ;;  %5386 = vst.msk [vmem:[#allocation2 + $0x48] sm:$0xff] %vm430_vm1, %v5298_v54 }
 0x555   : > { %5383 = vst.msk [vmem:[#allocation2 + $0x30] sm:$0xff] %vm430_vm1, %v5292_v40 }
 0x556   : > { %v5206_v52 = vadd.f32 %v5174_v36, %v13386_v5  ;;  %5418 = vst.msk [vmem:[#allocation2 + $0x49] sm:$0x7f] %vm465_vm3, %v14669_v34  ;;  %v5618_v61 = vld [vmem:[#allocation2 + $0x20] sm:$0xff]  ;;  %v5619_v7 = vld [vmem:[#allocation2 + $0x28] sm:$0xff] }
 0x557   : > { %v5045_v60 = vpop.f32.mrf.mxu3  ;;  %10860 = vmatmul.msk.f32.gmra.mxu0 %vm196_vm0, %v5618_v61  ;;  %10934 = vmatmul.msk.f32.vlgmr.msrb.gmra.mxu2 %vm196_vm0, %v5618_v61  ;;  %v4794_v20 = vpop.f32.mrf.mxu2 }
 0x558   : > { %v5101_v27 = vadd.f32 %v5045_v60, %v4792_v30  ;;  %v14882_v37 = vmax.f32 %v5206_v52, 0.0  ;;  %v4795_v24 = vadd.f32 %v4794_v20, %v4585_v15 }
 0x559   : > { %10892 = vmatmul.msk.f32.gmra.mxu1 %vm196_vm0, %v5616_v1 }
 0x55a   : > { %v5138_v28 = vmul.f32 %v14512_v48, %v5101_v27  ;;  %5321 = vrot.lane.b32.xlu2 %v14882_v37, %s11516_s7 }
 0x55b   : > { %5481 = vrot.lane.b32.xlu1 %v14882_v37, %s11515_s6  ;;  %v5294_v5 = vpop.permute.xlu1 %5293  ;;  %v5300_v33 = vpop.permute.xlu2 %5299 }
 0x55c   : > { %v5175_v62 = vadd.f32 %v14524_v13, %v5138_v28  ;;  %5384 = vst.msk [vmem:[#allocation2 + $0x38] sm:$0xff] %vm430_vm1, %v5294_v5  ;;  %v5454_v38 = vpop.permute.xlu0 %5453 }
 0x55d   : > { %5387 = vst.msk [vmem:[#allocation2 + $0x50] sm:$0xff] %vm430_vm1, %v5300_v33 }
 0x55e   : > { %v5207_v1 = vadd.f32 %v5175_v62, %v13407_v42  ;;  %5415 = vst.msk [vmem:[#allocation2 + $0x31] sm:$0xff] %vm463_vm2, %v14622_v0 }
 0x55f   : > { %5416 = vst.msk [vmem:[#allocation2 + $0x39] sm:$0x7f] %vm465_vm3, %v14642_v31  ;;  %v5048_v49 = vpop.f32.mrf.mxu3  ;;  %10861 = vmatmul.msk.f32.gmra.mxu0 %vm196_vm0, %v5619_v7  ;;  %10935 = vmatmul.msk.f32.gmra.mxu2 %vm196_vm0, %v5619_v7  ;;  %v4797_v40 = vpop.f32.mrf.mxu2 }
 0x560   : > { %5543 = vst.msk [vmem:[#allocation2 + $0x2f] sm:$0xfe] %vm593_vm4, %v5452_v32  ;;  %v5102_v18 = vadd.f32 %v5048_v49, %v4795_v24  ;;  %v14901_v41 = vmax.f32 %v5207_v1, 0.0 }
 0x561   : > { %5544 = vst.msk [vmem:[#allocation2 + $0x37] sm:$0xff] %vm595_vm5, %v5454_v38  ;;  %10893 = vmatmul.msk.f32.gmra.mxu1 %vm196_vm0, %v5617_v59 }
 0x562   : > { %v5139_v42 = vmul.f32 %v14512_v48, %v5102_v18  ;;  %5323 = vrot.lane.b32.xlu2 %v14901_v41, %s11516_s7 }
 0x563   : > { %5483 = vrot.lane.b32.xlu1 %v14901_v41, %s11515_s6  ;;  %v5296_v4 = vpop.permute.xlu1 %5295 }
 0x564   : > { %v5176_v57 = vadd.f32 %v14524_v13, %v5139_v42  ;;  %5385 = vst.msk [vmem:[#allocation2 + $0x40] sm:$0xff] %vm430_vm1, %v5296_v4  ;;  %v5456_v32 = vpop.permute.xlu0 %5455 }
 0x565   : > { %5417 = vst.msk [vmem:[#allocation2 + $0x41] sm:$0xff] %vm463_vm2, %v14653_v17  ;;  %v5462_v10 = vpop.permute.xlu2 %5461 }
 0x566   : > { %v5208_v39 = vadd.f32 %v5176_v57, %v13426_v45  ;;  %5545 = vst.msk [vmem:[#allocation2 + $0x3f] sm:$0xfe] %vm593_vm4, %v5456_v32  ;;  %v4588_v45 = vpop.f32.mrf.mxu1 }
 0x567   : > { %v4798_v60 = vadd.f32 %v4797_v40, %v4588_v45  ;;  %v4800_v33 = vpop.f32.mrf.mxu2 }
 0x568   : > { %v5620_v59 = vld [vmem:[#allocation2 + $0x30] sm:$0xff]  ;;  %v14916_v8 = vmax.f32 %v5208_v39, 0.0  ;;  %v5621_v26 = vld [vmem:[#allocation2 + $0x38] sm:$0xff] }
 0x569   : > { %10862 = vmatmul.msk.f32.gmra.mxu0 %vm196_vm0, %v5620_v59  ;;  %10936 = vmatmul.msk.f32.gmra.mxu2 %vm196_vm0, %v5620_v59 }
 0x56a   : > { %10894 = vmatmul.msk.f32.gmra.mxu1 %vm196_vm0, %v5618_v61  ;;  %5485 = vrot.lane.b32.xlu2 %v14916_v8, %s11515_s6 }
 0x56b   : > { %5325 = vrot.lane.b32.xlu0 %v14916_v8, %s11516_s7  ;;  %v5458_v9 = vpop.permute.xlu1 %5457 }
 0x56c   : > { %5546 = vst.msk [vmem:[#allocation2 + $0x47] sm:$0xff] %vm595_vm5, %v5458_v9 }
 0x56d   : > { %v5464_v54 = vpop.permute.xlu2 %5463 }
 0x56e   : > { %v4591_v47 = vpop.f32.mrf.mxu1 }
 0x56f   : > { %v4803_v39 = vpop.f32.mrf.mxu2 }
 0x571   : > { %10863 = vmatmul.msk.f32.gmra.mxu0 %vm196_vm0, %v5621_v26  ;;  %10937 = vmatmul.msk.f32.gmra.mxu2 %vm196_vm0, %v5621_v26 }
 0x572   : > { %10895 = vmatmul.msk.f32.gmra.mxu1 %vm196_vm0, %v5619_v7  ;;  %v4801_v7 = vadd.f32 %v4800_v33, %v4591_v47 }
 0x573   : > { %v5622_v35 = vld [vmem:[#allocation2 + $0x40] sm:$0xff]  ;;  %v5623_v52 = vld [vmem:[#allocation2 + $0x48] sm:$0xff]  ;;  %v5460_v30 = vpop.permute.xlu1 %5459 }
 0x579   : > { %10864 = vmatmul.msk.f32.gmra.mxu0 %vm196_vm0, %v5622_v35  ;;  %10938 = vmatmul.msk.f32.gmra.mxu2 %vm196_vm0, %v5622_v35 }
 0x57a   : > { %10896 = vmatmul.msk.f32.gmra.mxu1 %vm196_vm0, %v5620_v59 }
 0x57e   : > { %v5302_v36 = vpop.permute.xlu0 %5301 }
 0x57f   : > { %5388 = vst.msk [vmem:[#allocation2 + $0x58] sm:$0xff] %vm430_vm1, %v5302_v36  ;;  %v4594_v61 = vpop.f32.mrf.mxu1 }
 0x580   : > { %5419 = vst.msk [vmem:[#allocation2 + $0x51] sm:$0xff] %vm463_vm2, %v14692_v3 }
 0x581   : > { %5420 = vst.msk [vmem:[#allocation2 + $0x59] sm:$0x7f] %vm465_vm3, %v14708_v29  ;;  %10865 = vmatmul.msk.f32.gmra.mxu0 %vm196_vm0, %v5623_v52  ;;  %10939 = vmatmul.msk.f32.gmra.mxu2 %vm196_vm0, %v5623_v52 }
 0x582   : > { %5547 = vst.msk [vmem:[#allocation2 + $0x4f] sm:$0xfe] %vm593_vm4, %v5460_v30  ;;  %10897 = vmatmul.msk.f32.gmra.mxu1 %vm196_vm0, %v5621_v26  ;;  %v4804_v26 = vadd.f32 %v4803_v39, %v4594_v61  ;;  %v4806_v61 = vpop.f32.mrf.mxu2 }
 0x583   : > { %5548 = vst.msk [vmem:[#allocation2 + $0x57] sm:$0xff] %vm595_vm5, %v5462_v10 }
 0x585   : > { %v5310_v27 = vpop.permute.xlu2 %5309 }
 0x586   : > { %5392 = vst.msk [vmem:[#allocation2 + $0x78] sm:$0xff] %vm430_vm1, %v5310_v27  ;;  %v5051_v28 = vpop.f32.mrf.mxu3  ;;  %v5304_v20 = vpop.permute.xlu0 %5303 }
 0x587   : > { %5424 = vst.msk [vmem:[#allocation2 + $0x79] sm:$0x7f] %vm465_vm3, %v14785_v50  ;;  %v5103_v5 = vadd.f32 %v5051_v28, %v4798_v60  ;;  %v4597_v1 = vpop.f32.mrf.mxu1 }
 0x588   : > { %5389 = vst.msk [vmem:[#allocation2 + $0x60] sm:$0xff] %vm430_vm1, %v5304_v20  ;;  %v4807_v27 = vadd.f32 %v4806_v61, %v4597_v1  ;;  %v10990_v61 = vld [vmem:[%s17568_s1 + $0x650] sm:$0xff] }
 0x589   : > { %v5140_v62 = vmul.f32 %v14512_v48, %v5103_v5 }
 0x58a   : > { %v5624_v38 = vld [vmem:[#allocation2 + $0x50] sm:$0xff]  ;;  %10898 = vmatmul.msk.f32.gmra.mxu1 %vm196_vm0, %v5622_v35  ;;  %v5625_v59 = vld [vmem:[#allocation2 + $0x58] sm:$0xff]  ;;  %v4809_v1 = vpop.f32.mrf.mxu2 }
 0x58b   : > { %v5177_v15 = vadd.f32 %v14524_v13, %v5140_v62  ;;  %10866 = vmatmul.msk.f32.gmra.mxu0 %vm196_vm0, %v5624_v38  ;;  %10940 = vmatmul.msk.f32.gmra.mxu2 %vm196_vm0, %v5624_v38 }
 0x58c   : > { %v5306_v24 = vpop.permute.xlu1 %5305 }
 0x58d   : > { %v5209_v49 = vadd.f32 %v5177_v15, %v13450_v63  ;;  %5390 = vst.msk [vmem:[#allocation2 + $0x68] sm:$0xff] %vm430_vm1, %v5306_v24  ;;  %v5312_v18 = vpop.permute.xlu2 %5311 }
 0x58e   : > { %5393 = vst.msk [vmem:[#allocation2 + $0x80] sm:$0xff] %vm430_vm1, %v5312_v18  ;;  %v5054_v42 = vpop.f32.mrf.mxu3  ;;  %v5466_v4 = vpop.permute.xlu0 %5465  ;;  %v10979_v18 = vld [vmem:[%s17568_s1 + $0x5f8] sm:$0xff] }
 0x58f   : > { %5421 = vst.msk [vmem:[#allocation2 + $0x61] sm:$0xff] %vm463_vm2, %v14724_v23  ;;  %v5104_v57 = vadd.f32 %v5054_v42, %v4801_v7  ;;  %v14956_v32 = vmax.f32 %v5209_v49, 0.0  ;;  %v4600_v45 = vpop.f32.mrf.mxu1  ;;  %v10991_v7 = vld [vmem:[%s17568_s1 + $0x658] sm:$0xff]  ;;  %7190 = vmatpush.msra.mxu0 %v10979_v18 }
 0x590   : > { %5422 = vst.msk [vmem:[#allocation2 + $0x69] sm:$0x7f] %vm465_vm3, %v14744_v16  ;;  %6981 = vmatpush.msrb.mxu3 %v10991_v7  ;;  %v10978_v7 = vld [vmem:[%s17568_s1 + $0x5f0] sm:$0xff] }
 0x591   : > { %5549 = vst.msk [vmem:[#allocation2 + $0x5f] sm:$0xfe] %vm593_vm4, %v5464_v54  ;;  %v5141_v63 = vmul.f32 %v14512_v48, %v5104_v57  ;;  %5487 = vrot.lane.b32.xlu2 %v14956_v32, %s11515_s6  ;;  %5327 = vrot.lane.b32.xlu0 %v14956_v32, %s11516_s7 }
 0x592   : > { %5550 = vst.msk [vmem:[#allocation2 + $0x67] sm:$0xff] %vm595_vm5, %v5466_v4  ;;  %10899 = vmatmul.msk.f32.gmra.mxu1 %vm196_vm0, %v5623_v52  ;;  %v14994_v52 = vld [vmem:[%s17570_s3 + $0x3] ss:$0 sm:$0xff]  ;;  %6982 = vmatpush.msrb.mxu3 %v10990_v61 }
 0x593   : > { %v5178_v9 = vadd.f32 %v14524_v13, %v5141_v63  ;;  %10867 = vmatmul.msk.f32.gmra.mxu0 %vm196_vm0, %v5625_v59  ;;  %10941 = vmatmul.msk.f32.gmra.mxu2 %vm196_vm0, %v5625_v59 }
 0x594   : > { %v5308_v48 = vpop.permute.xlu1 %5307  ;;  %7191 = vmatpush.msra.mxu0 %v10978_v7 }
 0x595   : > { %v5210_v10 = vadd.f32 %v5178_v9, %v13482_v12  ;;  %5391 = vst.msk [vmem:[#allocation2 + $0x70] sm:$0xff] %vm430_vm1, %v5308_v48  ;;  %v14985_v12 = vld [vmem:[%s17569_s2 + $0x3] ss:$0 sm:$0xff]  ;;  %v5474_v15 = vpop.permute.xlu2 %5473  ;;  %v4812_v48 = vpop.f32.mrf.mxu2 }
 0x596   : > { %5423 = vst.msk [vmem:[#allocation2 + $0x71] sm:$0xff] %vm463_vm2, %v14762_v11  ;;  %v5468_v35 = vpop.permute.xlu0 %5467  ;;  %v5057_v47 = vpop.f32.mrf.mxu3 }
 0x597   : > { %5551 = vst.msk [vmem:[#allocation2 + $0x6f] sm:$0xfe] %vm593_vm4, %v5468_v35  ;;  %v14976_v54 = vmax.f32 %v5210_v10, 0.0  ;;  %v5105_v13 = vadd.f32 %v5057_v47, %v4804_v26  ;;  %v4603_v20 = vpop.f32.mrf.mxu1 }
 0x599   : > { %5489 = vrot.lane.b32.xlu0 %v14976_v54, %s11515_s6  ;;  %5329 = vrot.lane.b32.xlu1 %v14976_v54, %s11516_s7  ;;  %v5626_v40 = vld [vmem:[#allocation2 + $0x60] sm:$0xff]  ;;  %v5142_v36 = vmul.f32 %v14985_v12, %v5105_v13  ;;  %v5627_v24 = vld [vmem:[#allocation2 + $0x68] sm:$0xff] }
 0x59a   : > { %10900 = vmatmul.msk.f32.gmra.mxu1 %vm196_vm0, %v5624_v38 }
 0x59b   : > { %10868 = vmatmul.msk.f32.gmra.mxu0 %vm196_vm0, %v5626_v40  ;;  %10942 = vmatmul.msk.f32.gmra.mxu2 %vm196_vm0, %v5626_v40  ;;  %v5179_v30 = vadd.f32 %v14994_v52, %v5142_v36 }
 0x59c   : > { %v5470_v60 = vpop.permute.xlu1 %5469 }
 0x59d   : > { %v5211_v28 = vadd.f32 %v5179_v30, %v13505_v21  ;;  %5552 = vst.msk [vmem:[#allocation2 + $0x77] sm:$0xff] %vm595_vm5, %v5470_v60  ;;  %v5476_v63 = vpop.permute.xlu2 %5475 }
 0x59e   : > { %v5060_v5 = vpop.f32.mrf.mxu3 }
 0x59f   : > { %v5106_v33 = vadd.f32 %v5060_v5, %v4807_v27  ;;  %v14999_v62 = vmax.f32 %v5211_v28, 0.0  ;;  %v4815_v28 = vpop.f32.mrf.mxu2 }
 0x5a1   : > { %17598 = vst [vmem:[#allocation10_spill] sm:$0xff] %v14999_v62  ;;  %v5143_v38 = vmul.f32 %v14985_v12, %v5106_v33  ;;  %5491 = vrot.lane.b32.xlu0 %v14999_v62, %s11515_s6  ;;  %5331 = vrot.lane.b32.xlu1 %v14999_v62, %s11516_s7 }
 0x5a2   : > { %10901 = vmatmul.msk.f32.gmra.mxu1 %vm196_vm0, %v5625_v59  ;;  %v11067_v59 = vld [vmem:[%s17568_s1 + $0x6b8] sm:$0xff] }
 0x5a3   : > { %10869 = vmatmul.msk.f32.gmra.mxu0 %vm196_vm0, %v5627_v24  ;;  %10943 = vmatmul.msk.f32.gmra.mxu2 %vm196_vm0, %v5627_v24  ;;  %v5180_v21 = vadd.f32 %v14994_v52, %v5143_v38 }
 0x5a4   : > { %v5628_v57 = vld [vmem:[#allocation2 + $0x70] sm:$0xff]  ;;  %7444 = vmatpush.msra.mxu1 %v11067_v59  ;;  %v5472_v35 = vpop.permute.xlu1 %5471  ;;  %v5629_v13 = vld [vmem:[#allocation2 + $0x78] sm:$0xff] }
 0x5a5   : > { %v5212_v49 = vadd.f32 %v5180_v21, %v13542_v14  ;;  %v4810_v14 = vadd.f32 %v4809_v1, %v4600_v45 }
 0x5a6   : > { %v4606_v42 = vpop.f32.mrf.mxu1 }
 0x5a7   : > { %v15017_v4 = vmax.f32 %v5212_v49, 0.0 }
 0x5a9   : > { %17599 = vst [vmem:[#allocation9_spill] sm:$0xff] %v15017_v4  ;;  %5493 = vrot.lane.b32.xlu1 %v15017_v4, %s11515_s6  ;;  %5333 = vrot.lane.b32.xlu2 %v15017_v4, %s11516_s7 }
 0x5aa   : > { %10902 = vmatmul.msk.f32.gmra.mxu1 %vm196_vm0, %v5626_v40  ;;  %v4813_v40 = vadd.f32 %v4812_v48, %v4603_v20 }
 0x5ab   : > { %10870 = vmatmul.msk.f32.gmra.mxu0 %vm196_vm0, %v5628_v57  ;;  %10944 = vmatmul.msk.f32.gmra.mxu2 %vm196_vm0, %v5628_v57 }
 0x5ac   : > { %v5314_v39 = vpop.permute.xlu0 %5313 }
 0x5ad   : > { %v5063_v9 = vpop.f32.mrf.mxu3  ;;  %5394 = vst.msk [vmem:[#allocation2 + $0x88] sm:$0xff] %vm430_vm1, %v5314_v39 }
 0x5ae   : > { %v5107_v26 = vadd.f32 %v5063_v9, %v4810_v14  ;;  %5425 = vst.msk [vmem:[#allocation2 + $0x81] sm:$0xff] %vm463_vm2, %v14805_v46  ;;  %v4609_v10 = vpop.f32.mrf.mxu1  ;;  %v11066_v9 = vld [vmem:[%s17568_s1 + $0x6b0] sm:$0xff] }
 0x5af   : > { %5426 = vst.msk [vmem:[#allocation2 + $0x89] sm:$0x7f] %vm465_vm3, %v14822_v43  ;;  %7445 = vmatpush.msra.mxu1 %v11066_v9 }
 0x5b0   : > { %v5144_v45 = vmul.f32 %v14985_v12, %v5107_v26  ;;  %5553 = vst.msk [vmem:[#allocation2 + $0x7f] sm:$0xfe] %vm593_vm4, %v5472_v35 }
 0x5b1   : > { %5554 = vst.msk [vmem:[#allocation2 + $0x87] sm:$0xff] %vm595_vm5, %v5474_v15 }
 0x5b2   : > { %v5181_v47 = vadd.f32 %v14994_v52, %v5144_v45  ;;  %10903 = vmatmul.msk.f32.gmra.mxu1 %vm196_vm0, %v5627_v24  ;;  %v4816_v24 = vadd.f32 %v4815_v28, %v4606_v42 }
 0x5b3   : > { %10871 = vmatmul.msk.f32.gmra.mxu0 %vm196_vm0, %v5629_v13  ;;  %10945 = vmatmul.msk.f32.gmra.mxu2 %vm196_vm0, %v5629_v13 }
 0x5b4   : > { %v5213_v36 = vadd.f32 %v5181_v47, %v13695_v53  ;;  %v5322_v30 = vpop.permute.xlu2 %5321  ;;  %v5316_v27 = vpop.permute.xlu0 %5315  ;;  %v17602_v47 = vld [vmem:[#allocation8_spill] sm:$0xff] }
 0x5b5   : > { %5398 = vst.msk [vmem:[#allocation2 + $0xa8] sm:$0xff] %vm430_vm1, %v5322_v30  ;;  %v5066_v60 = vpop.f32.mrf.mxu3 }
 0x5b6   : > { %5430 = vst.msk [vmem:[#allocation2 + $0xa9] sm:$0x7f] %vm465_vm3, %v14882_v37  ;;  %v5108_v5 = vadd.f32 %v5066_v60, %v4813_v40  ;;  %v15048_v33 = vpop.f32.mrf.mxu1  ;;  %v15050_v20 = vmax.f32 %v5213_v36, 0.0 }
 0x5b7   : > { %5395 = vst.msk [vmem:[#allocation2 + $0x90] sm:$0xff] %vm430_vm1, %v5316_v27 }
 0x5b8   : > { %17600 = vst [vmem:[#allocation11_spill] sm:$0xff] %v15050_v20  ;;  %v5145_v53 = vmul.f32 %v14985_v12, %v5108_v5  ;;  %5495 = vrot.lane.b32.xlu1 %v15050_v20, %s11515_s6  ;;  %5335 = vrot.lane.b32.xlu2 %v15050_v20, %s11516_s7  ;;  %v5630_v38 = vld [vmem:[#allocation2 + $0x80] sm:$0xff]  ;;  %v5631_v26 = vld [vmem:[#allocation2 + $0x88] sm:$0xff] }
 0x5ba   : > { %v5182_v15 = vadd.f32 %v14994_v52, %v5145_v53  ;;  %10904 = vmatmul.msk.f32.gmra.mxu1 %vm196_vm0, %v5628_v57 }
 0x5bb   : > { %10872 = vmatmul.msk.f32.gmra.mxu0 %vm196_vm0, %v5630_v38  ;;  %10946 = vmatmul.msk.f32.gmra.mxu2 %vm196_vm0, %v5630_v38 }
 0x5bc   : > { %v5214_v21 = vadd.f32 %v5182_v15, %v13723_v44  ;;  %v5324_v1 = vpop.permute.xlu2 %5323  ;;  %v5478_v14 = vpop.permute.xlu0 %5477  ;;  %v10989_v15 = vld [vmem:[%s17568_s1 + $0x648] sm:$0xff] }
 0x5bd   : > { %v5318_v49 = vpop.permute.xlu1 %5317  ;;  %5399 = vst.msk [vmem:[#allocation2 + $0xb0] sm:$0xff] %vm430_vm1, %v5324_v1  ;;  %v5069_v18 = vpop.f32.mrf.mxu3  ;;  %6983 = vmatpush.msrb.mxu3 %v10989_v15 }
 0x5be   : > { %5396 = vst.msk [vmem:[#allocation2 + $0x98] sm:$0xff] %vm430_vm1, %v5318_v49  ;;  %v5109_v57 = vadd.f32 %v5069_v18, %v4816_v24  ;;  %v15068_v39 = vpop.f32.mrf.mxu1  ;;  %v15070_v59 = vmax.f32 %v5214_v21, 0.0  ;;  %v4818_v44 = vpop.f32.mrf.mxu2  ;;  %v17604_v24 = vld [vmem:[#allocation7_spill] sm:$0xff] }
 0x5bf   : > { %5427 = vst.msk [vmem:[#allocation2 + $0x91] sm:$0xff] %vm463_vm2, %v14834_v56  ;;  %v4819_v45 = vadd.f32 %v4818_v44, %v4609_v10 }
 0x5c0   : > { %17601 = vst [vmem:[#allocation12_spill] sm:$0xff] %v15070_v59  ;;  %v5146_v42 = vmul.f32 %v14985_v12, %v5109_v57  ;;  %5497 = vrot.lane.b32.xlu2 %v15070_v59, %s11515_s6  ;;  %5337 = vrot.lane.b32.xlu0 %v15070_v59, %s11516_s7  ;;  %v10977_v57 = vld [vmem:[%s17568_s1 + $0x5e8] sm:$0xff] }
 0x5c1   : > { %5428 = vst.msk [vmem:[#allocation2 + $0x99] sm:$0x7f] %vm465_vm3, %v14846_v25  ;;  %7192 = vmatpush.msra.mxu0 %v10977_v57 }
 0x5c2   : > { %5555 = vst.msk [vmem:[#allocation2 + $0x8f] sm:$0xfe] %vm593_vm4, %v5476_v63  ;;  %v5183_v48 = vadd.f32 %v14994_v52, %v5146_v42  ;;  %10905 = vmatmul.msk.f32.gmra.mxu1 %vm196_vm0, %v5629_v13  ;;  %v5774_v35 = vpop.f32.mrf.mxu0 }
 0x5c3   : > { %5556 = vst.msk [vmem:[#allocation2 + $0x97] sm:$0xff] %vm595_vm5, %v5478_v14  ;;  %10873 = vmatmul.msk.f32.gmra.mxu0 %vm196_vm0, %v5631_v26  ;;  %10947 = vmatmul.msk.f32.gmra.mxu2 %vm196_vm0, %v5631_v26  ;;  %v11065_v14 = vld [vmem:[%s17568_s1 + $0x6a8] sm:$0xff] }
 0x5c4   : > { %v5215_v40 = vadd.f32 %v5183_v48, %v17602_v47  ;;  %v5480_v13 = vpop.permute.xlu0 %5479  ;;  %7446 = vmatpush.msra.mxu1 %v11065_v14  ;;  %v15131_v48 = vld [vmem:[%s17569_s2 + $0x4] ss:$0 sm:$0xff] }
 0x5c5   : > { %v5320_v63 = vpop.permute.xlu1 %5319  ;;  %v5072_v36 = vpop.f32.mrf.mxu3 }
 0x5c6   : > { %5397 = vst.msk [vmem:[#allocation2 + $0xa0] sm:$0xff] %vm430_vm1, %v5320_v63  ;;  %v5110_v30 = vadd.f32 %v5072_v36, %v4819_v45  ;;  %v5983_v61 = vpop.f32.mrf.mxu1  ;;  %v15092_v60 = vmax.f32 %v5215_v40, 0.0  ;;  %v15096_v27 = vpop.f32.mrf.mxu2  ;;  %v15139_v40 = vld [vmem:[%s17570_s3 + $0x4] ss:$0 sm:$0xff] }
 0x5c7   : > { %5429 = vst.msk [vmem:[#allocation2 + $0xa1] sm:$0xff] %vm463_vm2, %v14865_v51  ;;  %v5984_v9 = vadd.f32 %v5983_v61, %v5774_v35 }
 0x5c8   : > { %17603 = vst [vmem:[#allocation8_spill] sm:$0xff] %v15092_v60  ;;  %v5147_v28 = vmul.f32 %v14985_v12, %v5110_v30  ;;  %5499 = vrot.lane.b32.xlu0 %v15092_v60, %s11515_s6  ;;  %5339 = vrot.lane.b32.xlu1 %v15092_v60, %s11516_s7 }
 0x5c9   : > { %5557 = vst.msk [vmem:[#allocation2 + $0x9f] sm:$0xfe] %vm593_vm4, %v5480_v13 }
 0x5ca   : > { %v5632_v10 = vld [vmem:[#allocation2 + $0x90] sm:$0xff]  ;;  %v5184_v5 = vadd.f32 %v14994_v52, %v5147_v28  ;;  %10906 = vmatmul.msk.f32.gmra.mxu1 %vm196_vm0, %v5630_v38  ;;  %v5777_v53 = vpop.f32.mrf.mxu0  ;;  %v5633_v18 = vld [vmem:[#allocation2 + $0x98] sm:$0xff]  ;;  %v5486_v28 = vpop.permute.xlu2 %5485 }
 0x5cb   : > { %10874 = vmatmul.msk.f32.gmra.mxu0 %vm196_vm0, %v5632_v10  ;;  %10948 = vmatmul.msk.f32.gmra.mxu2 %vm196_vm0, %v5632_v10 }
 0x5cc   : > { %v5216_v21 = vadd.f32 %v5184_v5, %v17604_v24 }
 0x5cd   : > { %v5482_v1 = vpop.permute.xlu1 %5481 }
 0x5ce   : > { %5558 = vst.msk [vmem:[#allocation2 + $0xa7] sm:$0xff] %vm595_vm5, %v5482_v1  ;;  %v5986_v7 = vpop.f32.mrf.mxu1  ;;  %v15113_v49 = vmax.f32 %v5216_v21, 0.0  ;;  %v15117_v38 = vpop.f32.mrf.mxu2  ;;  %v10988_v1 = vld [vmem:[%s17568_s1 + $0x640] sm:$0xff] }
 0x5cf   : > { %6984 = vmatpush.msrb.mxu3 %v10988_v1 }
 0x5d0   : > { %17605 = vst [vmem:[#allocation7_spill] sm:$0xff] %v15113_v49  ;;  %5341 = vrot.lane.b32.xlu2 %v15113_v49, %s11516_s7 }
 0x5d2   : > { %10907 = vmatmul.msk.f32.gmra.mxu1 %vm196_vm0, %v5631_v26 }
 0x5d3   : > { %10875 = vmatmul.msk.f32.gmra.mxu0 %vm196_vm0, %v5633_v18  ;;  %10949 = vmatmul.msk.f32.gmra.mxu2 %vm196_vm0, %v5633_v18 }
 0x5d4   : > { %v5780_v44 = vpop.f32.mrf.mxu0 }
 0x5d5   : > { %v5634_v26 = vld [vmem:[#allocation2 + $0xa0] sm:$0xff]  ;;  %v5484_v13 = vpop.permute.xlu1 %5483  ;;  %v5635_v15 = vld [vmem:[#allocation2 + $0xa8] sm:$0xff] }
 0x5d6   : > { %v5989_v42 = vpop.f32.mrf.mxu1 }
 0x5da   : > { %10908 = vmatmul.msk.f32.gmra.mxu1 %vm196_vm0, %v5632_v10  ;;  %v6237_v45 = vpop.f32.mrf.mxu2  ;;  %v5987_v10 = vadd.f32 %v5986_v7, %v5777_v53  ;;  %v5075_v53 = vpop.f32.mrf.mxu3 }
 0x5db   : > { %10876 = vmatmul.msk.f32.gmra.mxu0 %vm196_vm0, %v5634_v26  ;;  %10950 = vmatmul.msk.f32.gmra.mxu2 %vm196_vm0, %v5634_v26  ;;  %v6333_v47 = vadd.f32 %v6237_v45, %v5984_v9 }
 0x5dc   : > { %v5783_v35 = vpop.f32.mrf.mxu0 }
 0x5dd   : > { %v6370_v63 = vmul.f32 %v15131_v48, %v6333_v47  ;;  %v5326_v36 = vpop.permute.xlu0 %5325  ;;  %v5990_v47 = vadd.f32 %v5989_v42, %v5780_v44 }
 0x5de   : > { %5400 = vst.msk [vmem:[#allocation2 + $0xb8] sm:$0xff] %vm430_vm1, %v5326_v36  ;;  %v5992_v30 = vpop.f32.mrf.mxu1  ;;  %v11064_v36 = vld [vmem:[%s17568_s1 + $0x6a0] sm:$0xff] }
 0x5df   : > { %v6407_v61 = vadd.f32 %v15139_v40, %v6370_v63  ;;  %5431 = vst.msk [vmem:[#allocation2 + $0xb1] sm:$0xff] %vm463_vm2, %v14901_v41  ;;  %v10976_v63 = vld [vmem:[%s17568_s1 + $0x5e0] sm:$0xff]  ;;  %7447 = vmatpush.msra.mxu1 %v11064_v36 }
 0x5e0   : > { %5432 = vst.msk [vmem:[#allocation2 + $0xb9] sm:$0x7f] %vm465_vm3, %v14916_v8  ;;  %7193 = vmatpush.msra.mxu0 %v10976_v63 }
 0x5e1   : > { %v15148_v5 = vmax.f32 %v6407_v61, 0.0  ;;  %5559 = vst.msk [vmem:[#allocation2 + $0xaf] sm:$0xfe] %vm593_vm4, %v5484_v13 }
 0x5e2   : > { %5560 = vst.msk [vmem:[#allocation2 + $0xb7] sm:$0xff] %vm595_vm5, %v5486_v28  ;;  %10909 = vmatmul.msk.f32.gmra.mxu1 %vm196_vm0, %v5633_v18  ;;  %v6240_v24 = vpop.f32.mrf.mxu2 }
 0x5e3   : > { %10877 = vmatmul.msk.f32.gmra.mxu0 %vm196_vm0, %v5635_v15  ;;  %10951 = vmatmul.msk.f32.gmra.mxu2 %vm196_vm0, %v5635_v15  ;;  %v6334_v21 = vadd.f32 %v6240_v24, %v5987_v10  ;;  %v4825_v10 = vadd.f32 %v15117_v38, %v15068_v39  ;;  %v4822_v24 = vadd.f32 %v15096_v27, %v15048_v33 }
 0x5e4   : > { %6663 = vrot.lane.b32.xlu2 %v15148_v5, %s11515_s6  ;;  %6503 = vrot.lane.b32.xlu0 %v15148_v5, %s11516_s7 }
 0x5e5   : > { %v6371_v7 = vmul.f32 %v15131_v48, %v6334_v21 }
 0x5e6   : > { %v5786_v18 = vpop.f32.mrf.mxu0 }
 0x5e7   : > { %v6408_v57 = vadd.f32 %v15139_v40, %v6371_v7  ;;  %v5995_v14 = vpop.f32.mrf.mxu1 }
 0x5e9   : > { %v15164_v9 = vmax.f32 %v6408_v57, 0.0  ;;  %v5636_v45 = vld [vmem:[#allocation2 + $0xb0] sm:$0xff]  ;;  %v5637_v7 = vld [vmem:[#allocation2 + $0xb8] sm:$0xff]  ;;  %v5111_v57 = vadd.f32 %v5075_v53, %v4822_v24 }
 0x5ea   : > { %10910 = vmatmul.msk.f32.gmra.mxu1 %vm196_vm0, %v5634_v26  ;;  %v5078_v26 = vpop.f32.mrf.mxu3 }
 0x5eb   : > { %10878 = vmatmul.msk.f32.gmra.mxu0 %vm196_vm0, %v5636_v45  ;;  %10952 = vmatmul.msk.f32.gmra.mxu2 %vm196_vm0, %v5636_v45  ;;  %v5112_v1 = vadd.f32 %v5078_v26, %v4825_v10  ;;  %v5148_v38 = vmul.f32 %v14985_v12, %v5111_v57 }
 0x5ec   : > { %v6243_v61 = vpop.f32.mrf.mxu2  ;;  %6665 = vrot.lane.b32.xlu0 %v15164_v9, %s11515_s6  ;;  %6505 = vrot.lane.b32.xlu1 %v15164_v9, %s11516_s7 }
 0x5ed   : > { %v6335_v44 = vadd.f32 %v6243_v61, %v5990_v47  ;;  %v5993_v47 = vadd.f32 %v5992_v30, %v5783_v35  ;;  %v5149_v33 = vmul.f32 %v14985_v12, %v5112_v1  ;;  %v5185_v61 = vadd.f32 %v14994_v52, %v5148_v38  ;;  %v10987_v12 = vld [vmem:[%s17568_s1 + $0x638] sm:$0xff] }
 0x5ee   : > { %v5789_v42 = vpop.f32.mrf.mxu0  ;;  %6985 = vmatpush.msrb.mxu3 %v10987_v12 }
 0x5ef   : > { %v6372_v13 = vmul.f32 %v15131_v48, %v6335_v44  ;;  %v5998_v28 = vpop.f32.mrf.mxu1  ;;  %v5186_v53 = vadd.f32 %v14994_v52, %v5149_v33  ;;  %v5488_v44 = vpop.permute.xlu2 %5487  ;;  %v10975_v52 = vld [vmem:[%s17568_s1 + $0x5d8] sm:$0xff]  ;;  %v5217_v24 = vadd.f32 %v5185_v61, %v13827_v55 }
 0x5f0   : > { %7194 = vmatpush.msra.mxu0 %v10975_v52  ;;  %v11063_v55 = vld [vmem:[%s17568_s1 + $0x698] sm:$0xff]  ;;  %v10986_v52 = vld [vmem:[%s17568_s1 + $0x630] sm:$0xff] }
 0x5f1   : > { %v6409_v21 = vadd.f32 %v15139_v40, %v6372_v13  ;;  %v5996_v13 = vadd.f32 %v5995_v14, %v5786_v18  ;;  %v5218_v18 = vadd.f32 %v5186_v53, %v13874_v2  ;;  %7448 = vmatpush.msra.mxu1 %v11063_v55  ;;  %6986 = vmatpush.msrb.mxu3 %v10986_v52  ;;  %v11062_v55 = vld [vmem:[%s17568_s1 + $0x690] sm:$0xff] }
 0x5f2   : > { %10911 = vmatmul.msk.f32.gmra.mxu1 %vm196_vm0, %v5635_v15 }
 0x5f3   : > { %v15186_v63 = vmax.f32 %v6409_v21, 0.0  ;;  %10879 = vmatmul.msk.f32.gmra.mxu0 %vm196_vm0, %v5637_v7  ;;  %10953 = vmatmul.msk.f32.gmra.mxu2 %vm196_vm0, %v5637_v7  ;;  %v15219_v57 = vmax.f32 %v5218_v18, 0.0 }
 0x5f4   : > { %v6246_v36 = vpop.f32.mrf.mxu2  ;;  %5501 = vrot.lane.b32.xlu1 %v15113_v49, %s11515_s6  ;;  %7449 = vmatpush.msra.mxu1 %v11062_v55 }
 0x5f5   : > { %v6336_v39 = vadd.f32 %v6246_v36, %v5993_v47  ;;  %6507 = vrot.lane.b32.xlu2 %v15186_v63, %s11516_s7  ;;  %17606 = vst [vmem:[#allocation13_spill] sm:$0xff] %v15219_v57  ;;  %v5999_v47 = vadd.f32 %v5998_v28, %v5789_v42 }
 0x5f6   : > { %v5792_v27 = vpop.f32.mrf.mxu0 }
 0x5f7   : > { %v6373_v35 = vmul.f32 %v15131_v48, %v6336_v39  ;;  %v6001_v30 = vpop.f32.mrf.mxu1  ;;  %v15221_v39 = vmax.f32 %v5217_v24, 0.0 }
 0x5f9   : > { %v6410_v15 = vadd.f32 %v15139_v40, %v6373_v35  ;;  %17607 = vst [vmem:[#allocation14_spill] sm:$0xff] %v15221_v39 }
 0x5fa   : > { %10912 = vmatmul.msk.f32.gmra.mxu1 %vm196_vm0, %v5636_v45 }
 0x5fb   : > { %v15201_v26 = vmax.f32 %v6410_v15, 0.0 }
 0x5fc   : > { %v6249_v10 = vpop.f32.mrf.mxu2  ;;  %6667 = vrot.lane.b32.xlu1 %v15186_v63, %s11515_s6 }
 0x5fd   : > { %6669 = vrot.lane.b32.xlu2 %v15201_v26, %s11515_s6  ;;  %6509 = vrot.lane.b32.xlu0 %v15201_v26, %s11516_s7  ;;  %v6337_v14 = vadd.f32 %v6249_v10, %v5996_v13  ;;  %v6002_v10 = vadd.f32 %v6001_v30, %v5792_v27 }
 0x5fe   : > { %v5795_v45 = vpop.f32.mrf.mxu0 }
 0x5ff   : > { %v6004_v21 = vpop.f32.mrf.mxu1  ;;  %v6374_v1 = vmul.f32 %v15131_v48, %v6337_v14 }
 0x601   : > { %v6411_v42 = vadd.f32 %v15139_v40, %v6374_v1 }
 0x602   : > { %10913 = vmatmul.msk.f32.gmra.mxu1 %vm196_vm0, %v5637_v7 }
 0x603   : > { %v5328_v36 = vpop.permute.xlu0 %5327  ;;  %v5334_v33 = vpop.permute.xlu2 %5333  ;;  %v15239_v53 = vmax.f32 %v6411_v42, 0.0 }
 0x604   : > { %5401 = vst.msk [vmem:[#allocation2 + $0xc0] sm:$0xff] %vm430_vm1, %v5328_v36  ;;  %v6252_v2 = vpop.f32.mrf.mxu2  ;;  %5345 = vrot.lane.b32.xlu1 %v15219_v57, %s11516_s7 }
 0x605   : > { %v6338_v38 = vadd.f32 %v6252_v2, %v5999_v47  ;;  %5503 = vrot.lane.b32.xlu2 %v15221_v39, %s11515_s6  ;;  %5343 = vrot.lane.b32.xlu0 %v15221_v39, %s11516_s7  ;;  %5404 = vst.msk [vmem:[#allocation2 + $0xd8] sm:$0xff] %vm430_vm1, %v5334_v33  ;;  %v6005_v33 = vadd.f32 %v6004_v21, %v5795_v45 }
 0x606   : > { %5436 = vst.msk [vmem:[#allocation2 + $0xd9] sm:$0x7f] %vm465_vm3, %v15017_v4 }
 0x607   : > { %v6375_v28 = vmul.f32 %v15131_v48, %v6338_v38  ;;  %v6007_v7 = vpop.f32.mrf.mxu1  ;;  %v10974_v38 = vld [vmem:[%s17568_s1 + $0x5d0] sm:$0xff] }
 0x608   : > { %v5798_v35 = vpop.f32.mrf.mxu0  ;;  %7195 = vmatpush.msra.mxu0 %v10974_v38 }
 0x609   : > { %v6412_v15 = vadd.f32 %v15139_v40, %v6375_v28  ;;  %v6008_v52 = vadd.f32 %v6007_v7, %v5798_v35 }
 0x60b   : > { %v15241_v61 = vmax.f32 %v6412_v15, 0.0  ;;  %v5330_v13 = vpop.permute.xlu1 %5329  ;;  %v5490_v12 = vpop.permute.xlu0 %5489 }
 0x60c   : > { %5402 = vst.msk [vmem:[#allocation2 + $0xc8] sm:$0xff] %vm430_vm1, %v5330_v13  ;;  %6511 = vrot.lane.b32.xlu1 %v15239_v53, %s11516_s7 }
 0x60d   : > { %5433 = vst.msk [vmem:[#allocation2 + $0xc1] sm:$0xff] %vm463_vm2, %v14956_v32  ;;  %5505 = vrot.lane.b32.xlu0 %v15219_v57, %s11515_s6  ;;  %6513 = vrot.lane.b32.xlu2 %v15241_v61, %s11516_s7 }
 0x60e   : > { %5434 = vst.msk [vmem:[#allocation2 + $0xc9] sm:$0x7f] %vm465_vm3, %v14976_v54  ;;  %v6255_v18 = vpop.f32.mrf.mxu2 }
 0x60f   : > { %5561 = vst.msk [vmem:[#allocation2 + $0xbf] sm:$0xfe] %vm593_vm4, %v5488_v44  ;;  %v6339_v27 = vadd.f32 %v6255_v18, %v6002_v10  ;;  %v6010_v30 = vpop.f32.mrf.mxu1 }
 0x610   : > { %5562 = vst.msk [vmem:[#allocation2 + $0xc7] sm:$0xff] %vm595_vm5, %v5490_v12  ;;  %v5801_v14 = vpop.f32.mrf.mxu0 }
 0x611   : > { %v6376_v24 = vmul.f32 %v15131_v48, %v6339_v27 }
 0x612   : > { %v5336_v1 = vpop.permute.xlu2 %5335 }
 0x613   : > { %v6413_v47 = vadd.f32 %v15139_v40, %v6376_v24  ;;  %5405 = vst.msk [vmem:[#allocation2 + $0xe0] sm:$0xff] %vm430_vm1, %v5336_v1  ;;  %v5332_v36 = vpop.permute.xlu1 %5331  ;;  %v5492_v2 = vpop.permute.xlu0 %5491 }
 0x614   : > { %6673 = vrot.lane.b32.xlu1 %v15241_v61, %s11515_s6  ;;  %5403 = vst.msk [vmem:[#allocation2 + $0xd0] sm:$0xff] %vm430_vm1, %v5332_v36 }
 0x615   : > { %v15265_v44 = vmax.f32 %v6413_v47, 0.0  ;;  %6671 = vrot.lane.b32.xlu0 %v15239_v53, %s11515_s6  ;;  %5435 = vst.msk [vmem:[#allocation2 + $0xd1] sm:$0xff] %vm463_vm2, %v14999_v62 }
 0x616   : > { %v6258_v42 = vpop.f32.mrf.mxu2  ;;  %5563 = vst.msk [vmem:[#allocation2 + $0xcf] sm:$0xfe] %vm593_vm4, %v5492_v2  ;;  %v6011_v2 = vadd.f32 %v6010_v30, %v5801_v14 }
 0x617   : > { %v6340_v45 = vadd.f32 %v6258_v42, %v6005_v33  ;;  %6515 = vrot.lane.b32.xlu2 %v15265_v44, %s11516_s7  ;;  %v5638_v21 = vld [vmem:[#allocation2 + $0xc0] sm:$0xff]  ;;  %v6013_v28 = vpop.f32.mrf.mxu1  ;;  %v5639_v1 = vld [vmem:[#allocation2 + $0xc8] sm:$0xff] }
 0x618   : > { %10880 = vmatmul.msk.f32.gmra.mxu0 %vm196_vm0, %v5638_v21  ;;  %10914 = vmatmul.msk.f32.gmra.mxu1 %vm196_vm0, %v5638_v21  ;;  %v5804_v13 = vpop.f32.mrf.mxu0  ;;  %v10985_v42 = vld [vmem:[%s17568_s1 + $0x628] sm:$0xff] }
 0x619   : > { %v6377_v15 = vmul.f32 %v15131_v48, %v6340_v45  ;;  %10954 = vmatmul.msk.f32.gmra.mxu2 %vm196_vm0, %v5638_v21  ;;  %6987 = vmatpush.msrb.mxu3 %v10985_v42 }
 0x61a   : > { %v5498_v35 = vpop.permute.xlu2 %5497 }
 0x61b   : > { %v6414_v10 = vadd.f32 %v15139_v40, %v6377_v15  ;;  %v5494_v12 = vpop.permute.xlu1 %5493 }
 0x61c   : > { %6675 = vrot.lane.b32.xlu1 %v15265_v44, %s11515_s6  ;;  %5564 = vst.msk [vmem:[#allocation2 + $0xd7] sm:$0xff] %vm595_vm5, %v5494_v12  ;;  %v6014_v12 = vadd.f32 %v6013_v28, %v5804_v13 }
 0x61d   : > { %v15288_v18 = vmax.f32 %v6414_v10, 0.0 }
 0x61e   : > { %v6261_v27 = vpop.f32.mrf.mxu2 }
 0x61f   : > { %v6341_v24 = vadd.f32 %v6261_v27, %v6008_v52  ;;  %6677 = vrot.lane.b32.xlu2 %v15288_v18, %s11515_s6  ;;  %6517 = vrot.lane.b32.xlu0 %v15288_v18, %s11516_s7  ;;  %v6016_v7 = vpop.f32.mrf.mxu1 }
 0x620   : > { %10881 = vmatmul.msk.f32.gmra.mxu0 %vm196_vm0, %v5639_v1  ;;  %10915 = vmatmul.msk.f32.gmra.mxu1 %vm196_vm0, %v5639_v1  ;;  %v5807_v33 = vpop.f32.mrf.mxu0 }
 0x621   : > { %v6378_v47 = vmul.f32 %v15131_v48, %v6341_v24  ;;  %10955 = vmatmul.msk.f32.gmra.mxu2 %vm196_vm0, %v5639_v1  ;;  %v10973_v24 = vld [vmem:[%s17568_s1 + $0x5c8] sm:$0xff] }
 0x622   : > { %v11061_v1 = vld [vmem:[%s17568_s1 + $0x688] sm:$0xff]  ;;  %7196 = vmatpush.msra.mxu0 %v10973_v24 }
 0x623   : > { %v6415_v36 = vadd.f32 %v15139_v40, %v6378_v47  ;;  %v5640_v55 = vld [vmem:[#allocation2 + $0xd0] sm:$0xff]  ;;  %7450 = vmatpush.msra.mxu1 %v11061_v1  ;;  %v5641_v28 = vld [vmem:[#allocation2 + $0xd8] sm:$0xff] }
 0x625   : > { %v15299_v38 = vmax.f32 %v6415_v36, 0.0 }
 0x626   : > { %v6264_v45 = vpop.f32.mrf.mxu2 }
 0x627   : > { %v6342_v21 = vadd.f32 %v6264_v45, %v6011_v2  ;;  %6679 = vrot.lane.b32.xlu2 %v15299_v38, %s11515_s6  ;;  %6519 = vrot.lane.b32.xlu0 %v15299_v38, %s11516_s7  ;;  %v6019_v10 = vpop.f32.mrf.mxu1  ;;  %v6017_v45 = vadd.f32 %v6016_v7, %v5807_v33 }
 0x628   : > { %10882 = vmatmul.msk.f32.gmra.mxu0 %vm196_vm0, %v5640_v55  ;;  %10916 = vmatmul.msk.f32.gmra.mxu1 %vm196_vm0, %v5640_v55  ;;  %v5810_v27 = vpop.f32.mrf.mxu0 }
 0x629   : > { %v6379_v30 = vmul.f32 %v15131_v48, %v6342_v21  ;;  %10956 = vmatmul.msk.f32.gmra.mxu2 %vm196_vm0, %v5640_v55 }
 0x62a   : > { %v5342_v14 = vpop.permute.xlu2 %5341  ;;  %v5496_v2 = vpop.permute.xlu1 %5495 }
 0x62b   : > { %v6416_v15 = vadd.f32 %v15139_v40, %v6379_v30  ;;  %5408 = vst.msk [vmem:[#allocation2 + $0xf8] sm:$0xff] %vm430_vm1, %v5342_v14 }
 0x62c   : > { %5440 = vst.msk [vmem:[#allocation2 + $0xf9] sm:$0x7f] %vm465_vm3, %v15113_v49 }
 0x62d   : > { %v15316_v52 = vmax.f32 %v6416_v15, 0.0 }
 0x62e   : > { %v6267_v47 = vpop.f32.mrf.mxu2 }
 0x62f   : > { %v6343_v36 = vadd.f32 %v6267_v47, %v6014_v12  ;;  %6681 = vrot.lane.b32.xlu0 %v15316_v52, %s11515_s6  ;;  %6521 = vrot.lane.b32.xlu1 %v15316_v52, %s11516_s7  ;;  %v6022_v30 = vpop.f32.mrf.mxu1  ;;  %v6020_v47 = vadd.f32 %v6019_v10, %v5810_v27 }
 0x630   : > { %10883 = vmatmul.msk.f32.gmra.mxu0 %vm196_vm0, %v5641_v28  ;;  %10917 = vmatmul.msk.f32.gmra.mxu1 %vm196_vm0, %v5641_v28  ;;  %v5813_v15 = vpop.f32.mrf.mxu0 }
 0x631   : > { %v6380_v13 = vmul.f32 %v15131_v48, %v6343_v36  ;;  %10957 = vmatmul.msk.f32.gmra.mxu2 %vm196_vm0, %v5641_v28  ;;  %v10984_v36 = vld [vmem:[%s17568_s1 + $0x620] sm:$0xff] }
 0x632   : > { %v5338_v55 = vpop.permute.xlu0 %5337  ;;  %v10972_v28 = vld [vmem:[%s17568_s1 + $0x5c0] sm:$0xff]  ;;  %6988 = vmatpush.msrb.mxu3 %v10984_v36 }
 0x633   : > { %v6417_v42 = vadd.f32 %v15139_v40, %v6380_v13  ;;  %5406 = vst.msk [vmem:[#allocation2 + $0xe8] sm:$0xff] %vm430_vm1, %v5338_v55  ;;  %7197 = vmatpush.msra.mxu0 %v10972_v28 }
 0x634   : > { %5437 = vst.msk [vmem:[#allocation2 + $0xe1] sm:$0xff] %vm463_vm2, %v15050_v20 }
 0x635   : > { %v15336_v21 = vmax.f32 %v6417_v42, 0.0  ;;  %5438 = vst.msk [vmem:[#allocation2 + $0xe9] sm:$0x7f] %vm465_vm3, %v15070_v59 }
 0x636   : > { %5565 = vst.msk [vmem:[#allocation2 + $0xdf] sm:$0xfe] %vm593_vm4, %v5496_v2  ;;  %v6270_v14 = vpop.f32.mrf.mxu2 }
 0x637   : > { %5566 = vst.msk [vmem:[#allocation2 + $0xe7] sm:$0xff] %vm595_vm5, %v5498_v35  ;;  %v6344_v12 = vadd.f32 %v6270_v14, %v6017_v45  ;;  %6683 = vrot.lane.b32.xlu0 %v15336_v21, %s11515_s6  ;;  %6523 = vrot.lane.b32.xlu1 %v15336_v21, %s11516_s7  ;;  %v6025_v55 = vpop.f32.mrf.mxu1  ;;  %v6023_v14 = vadd.f32 %v6022_v30, %v5813_v15  ;;  %v10982_v15 = vld [vmem:[%s17568_s1 + $0x610] sm:$0xff] }
 0x638   : > { %v5816_v10 = vpop.f32.mrf.mxu0 }
 0x639   : > { %v6381_v7 = vmul.f32 %v15131_v48, %v6344_v12 }
 0x63a   : > { %v5340_v33 = vpop.permute.xlu1 %5339  ;;  %v5500_v1 = vpop.permute.xlu0 %5499 }
 0x63b   : > { %v6418_v24 = vadd.f32 %v15139_v40, %v6381_v7  ;;  %5407 = vst.msk [vmem:[#allocation2 + $0xf0] sm:$0xff] %vm430_vm1, %v5340_v33  ;;  %v11060_v7 = vld [vmem:[%s17568_s1 + $0x680] sm:$0xff]  ;;  %v10983_v33 = vld [vmem:[%s17568_s1 + $0x618] sm:$0xff] }
 0x63c   : > { %5439 = vst.msk [vmem:[#allocation2 + $0xf1] sm:$0xff] %vm463_vm2, %v15092_v60  ;;  %7451 = vmatpush.msra.mxu1 %v11060_v7  ;;  %6989 = vmatpush.msrb.mxu3 %v10983_v33 }
 0x63d   : > { %v15351_v35 = vmax.f32 %v6418_v24, 0.0  ;;  %5567 = vst.msk [vmem:[#allocation2 + $0xef] sm:$0xfe] %vm593_vm4, %v5500_v1 }
 0x63e   : > { %v6273_v13 = vpop.f32.mrf.mxu2  ;;  %v5642_v2 = vld [vmem:[#allocation2 + $0xe0] sm:$0xff]  ;;  %v15377_v1 = vpop.permute.xlu2 %6663  ;;  %v5643_v30 = vld [vmem:[#allocation2 + $0xe8] sm:$0xff]  ;;  %6990 = vmatpush.msrb.mxu3 %v10982_v15 }
 0x63f   : > { %v6345_v42 = vadd.f32 %v6273_v13, %v6020_v47  ;;  %6685 = vrot.lane.b32.xlu1 %v15351_v35, %s11515_s6  ;;  %6525 = vrot.lane.b32.xlu2 %v15351_v35, %s11516_s7  ;;  %v6028_v36 = vpop.f32.mrf.mxu1  ;;  %v10981_v13 = vld [vmem:[%s17568_s1 + $0x608] sm:$0xff] }
 0x640   : > { %10884 = vmatmul.msk.f32.gmra.mxu0 %vm196_vm0, %v5642_v2  ;;  %10918 = vmatmul.msk.f32.gmra.mxu1 %vm196_vm0, %v5642_v2 }
 0x641   : > { %v6382_v27 = vmul.f32 %v15131_v48, %v6345_v42  ;;  %10958 = vmatmul.msk.f32.gmra.mxu2 %vm196_vm0, %v5642_v2  ;;  %v5819_v2 = vpop.f32.mrf.mxu0  ;;  %6991 = vmatpush.msrb.mxu3 %v10981_v13  ;;  %v10971_v13 = vld [vmem:[%s17568_s1 + $0x5b8] sm:$0xff] }
 0x642   : > { %7198 = vmatpush.msra.mxu0 %v10971_v13  ;;  %v11057_v13 = vld [vmem:[%s17568_s1 + $0x668] sm:$0xff] }
 0x643   : > { %v6419_v45 = vadd.f32 %v15139_v40, %v6382_v27  ;;  %v10980_v27 = vld [vmem:[%s17568_s1 + $0x600] sm:$0xff] }
 0x644   : > { %6992 = vmatpush.msrb.mxu3 %v10980_v27 }
 0x645   : > { %v15369_v12 = vmax.f32 %v6419_v45, 0.0  ;;  %v6026_v45 = vadd.f32 %v6025_v55, %v5816_v10  ;;  %v6029_v55 = vadd.f32 %v6028_v36, %v5819_v2 }
 0x646   : > { %v6276_v24 = vpop.f32.mrf.mxu2 }
 0x647   : > { %v6346_v47 = vadd.f32 %v6276_v24, %v6023_v14  ;;  %6687 = vrot.lane.b32.xlu1 %v15369_v12, %s11515_s6  ;;  %6527 = vrot.lane.b32.xlu2 %v15369_v12, %s11516_s7 }
 0x648   : > { %10885 = vmatmul.msk.f32.gmra.mxu0 %vm196_vm0, %v5643_v30  ;;  %10919 = vmatmul.msk.f32.gmra.mxu1 %vm196_vm0, %v5643_v30 }
 0x649   : > { %v6383_v28 = vmul.f32 %v15131_v48, %v6346_v47  ;;  %10959 = vmatmul.msk.f32.gmra.mxu2 %vm196_vm0, %v5643_v30  ;;  %v6031_v30 = vpop.f32.mrf.mxu1  ;;  %v5822_v10 = vpop.f32.mrf.mxu0 }
 0x64b   : > { %v6420_v42 = vadd.f32 %v15139_v40, %v6383_v28 }
 0x64d   : > { %v15397_v14 = vmax.f32 %v6420_v42, 0.0  ;;  %v11059_v42 = vld [vmem:[%s17568_s1 + $0x678] sm:$0xff] }
 0x64e   : > { %v6279_v7 = vpop.f32.mrf.mxu2  ;;  %7452 = vmatpush.msra.mxu1 %v11059_v42 }
 0x64f   : > { %v6347_v33 = vadd.f32 %v6279_v7, %v6026_v45  ;;  %6689 = vrot.lane.b32.xlu2 %v15397_v14, %s11515_s6  ;;  %6529 = vrot.lane.b32.xlu0 %v15397_v14, %s11516_s7  ;;  %v6508_v24 = vpop.permute.xlu2 %6507 }
 0x650   : > { %6601 = vst.msk [vmem:[#allocation3 + $0x20] sm:$0xff] %vm430_vm1, %v6508_v24  ;;  %v6032_v24 = vadd.f32 %v6031_v30, %v5822_v10  ;;  %v11056_v10 = vld [vmem:[%s17568_s1 + $0x660] sm:$0xff] }
 0x651   : > { %v6384_v47 = vmul.f32 %v15131_v48, %v6347_v33 }
 0x653   : > { %v6421_v15 = vadd.f32 %v15139_v40, %v6384_v47  ;;  %v6034_v47 = vpop.f32.mrf.mxu1 }
 0x655   : > { %v15406_v28 = vmax.f32 %v6421_v15, 0.0 }
 0x656   : > { %v6282_v27 = vpop.f32.mrf.mxu2  ;;  %v6504_v45 = vpop.permute.xlu0 %6503 }
 0x657   : > { %v6348_v7 = vadd.f32 %v6282_v27, %v6029_v55  ;;  %6691 = vrot.lane.b32.xlu2 %v15406_v28, %s11515_s6  ;;  %6531 = vrot.lane.b32.xlu0 %v15406_v28, %s11516_s7  ;;  %v15418_v36 = vpop.permute.xlu2 %6669  ;;  %6599 = vst.msk [vmem:[#allocation3 + $0x10] sm:$0xff] %vm430_vm1, %v6504_v45  ;;  %v11058_v55 = vld [vmem:[%s17568_s1 + $0x670] sm:$0xff] }
 0x658   : > { %7453 = vmatpush.msra.mxu1 %v11058_v55 }
 0x659   : > { %v6385_v2 = vmul.f32 %v15131_v48, %v6348_v7  ;;  %v5825_v7 = vpop.f32.mrf.mxu0 }
 0x65a   : > { %7454 = vmatpush.msra.mxu1 %v11057_v13  ;;  %v6035_v55 = vadd.f32 %v6034_v47, %v5825_v7 }
 0x65b   : > { %v6422_v33 = vadd.f32 %v15139_v40, %v6385_v2  ;;  %v6037_v47 = vpop.f32.mrf.mxu1 }
 0x65c   : > { %7455 = vmatpush.msra.mxu1 %v11056_v10 }
 0x65d   : > { %v15423_v15 = vmax.f32 %v6422_v33, 0.0 }
 0x65e   : > { %v6285_v42 = vpop.f32.mrf.mxu2  ;;  %v6506_v27 = vpop.permute.xlu1 %6505 }
 0x65f   : > { %v6349_v45 = vadd.f32 %v6285_v42, %v6032_v24  ;;  %6693 = vrot.lane.b32.xlu0 %v15423_v15, %s11515_s6  ;;  %6533 = vrot.lane.b32.xlu1 %v15423_v15, %s11516_s7  ;;  %6600 = vst.msk [vmem:[#allocation3 + $0x18] sm:$0xff] %vm430_vm1, %v6506_v27  ;;  %v15436_v30 = vpop.permute.xlu2 %5503  ;;  %v6666_v33 = vpop.permute.xlu0 %6665 }
 0x660   : > { %6631 = vst.msk [vmem:[#allocation3 + $0x11] sm:$0xff] %vm463_vm2, %v15148_v5  ;;  %v10970_v5 = vld [vmem:[%s17568_s1 + $0x5b0] sm:$0xff] }
 0x661   : > { %v6386_v2 = vmul.f32 %v15131_v48, %v6349_v45  ;;  %6632 = vst.msk [vmem:[#allocation3 + $0x19] sm:$0x7f] %vm465_vm3, %v15164_v9  ;;  %7199 = vmatpush.msra.mxu0 %v10970_v5  ;;  %v5828_v10 = vpop.f32.mrf.mxu0 }
 0x662   : > { %6759 = vst.msk [vmem:[#allocation3 + $0xf] sm:$0xfe] %vm593_vm4, %v15377_v1 }
 0x663   : > { %v6423_v24 = vadd.f32 %v15139_v40, %v6386_v2  ;;  %6760 = vst.msk [vmem:[#allocation3 + $0x17] sm:$0xff] %vm595_vm5, %v6666_v33  ;;  %v6038_v33 = vadd.f32 %v6037_v47, %v5828_v10  ;;  %v6040_v47 = vpop.f32.mrf.mxu1 }
 0x665   : > { %v15450_v42 = vmax.f32 %v6423_v24, 0.0 }
 0x666   : > { %v6288_v13 = vpop.f32.mrf.mxu2  ;;  %v5502_v27 = vpop.permute.xlu1 %5501 }
 0x667   : > { %v6350_v9 = vadd.f32 %v6288_v13, %v6035_v55  ;;  %6695 = vrot.lane.b32.xlu0 %v15450_v42, %s11515_s6  ;;  %6535 = vrot.lane.b32.xlu1 %v15450_v42, %s11516_s7  ;;  %5568 = vst.msk [vmem:[#allocation2 + $0xf7] sm:$0xff] %vm595_vm5, %v5502_v27  ;;  %v6514_v1 = vpop.permute.xlu2 %6513 }
 0x668   : > { %6604 = vst.msk [vmem:[#allocation3 + $0x38] sm:$0xff] %vm430_vm1, %v6514_v1 }
 0x669   : > { %v6387_v45 = vmul.f32 %v15131_v48, %v6350_v9  ;;  %6636 = vst.msk [vmem:[#allocation3 + $0x39] sm:$0x7f] %vm465_vm3, %v15241_v61 }
 0x66a   : > { %v15464_v7 = vld [vmem:[#allocation3 + $0x10] sm:$0xff] }
 0x66b   : > { %v6424_v2 = vadd.f32 %v15139_v40, %v6387_v45  ;;  %10992 = vmatmul.msk.f32.vlgmr.msrb.gmra.mxu3 %vm196_vm0, %v15464_v7  ;;  %v15483_v45 = vld [vmem:[#allocation3 + $0x18] sm:$0xff] }
 0x66d   : > { %v15469_v24 = vmax.f32 %v6424_v2, 0.0  ;;  %v5831_v2 = vpop.f32.mrf.mxu0 }
 0x66e   : > { %v6291_v55 = vpop.f32.mrf.mxu2  ;;  %v6668_v5 = vpop.permute.xlu1 %6667  ;;  %v5644_v13 = vld [vmem:[#allocation2 + $0xf0] sm:$0xff] }
 0x66f   : > { %v6351_v27 = vadd.f32 %v6291_v55, %v6038_v33  ;;  %6697 = vrot.lane.b32.xlu1 %v15469_v24, %s11515_s6  ;;  %6537 = vrot.lane.b32.xlu2 %v15469_v24, %s11516_s7  ;;  %v6510_v61 = vpop.permute.xlu0 %6509  ;;  %v6041_v33 = vadd.f32 %v6040_v47, %v5831_v2 }
 0x670   : > { %6602 = vst.msk [vmem:[#allocation3 + $0x28] sm:$0xff] %vm430_vm1, %v6510_v61  ;;  %10886 = vmatmul.msk.f32.gmra.mxu0 %vm196_vm0, %v5644_v13  ;;  %10920 = vmatmul.msk.f32.gmra.mxu1 %vm196_vm0, %v5644_v13 }
 0x671   : > { %v6388_v9 = vmul.f32 %v15131_v48, %v6351_v27  ;;  %v6516_v1 = vpop.permute.xlu2 %6515  ;;  %6633 = vst.msk [vmem:[#allocation3 + $0x21] sm:$0xff] %vm463_vm2, %v15186_v63  ;;  %10960 = vmatmul.msk.f32.gmra.mxu2 %vm196_vm0, %v5644_v13  ;;  %v10969_v27 = vld [vmem:[%s17568_s1 + $0x5a8] sm:$0xff] }
 0x672   : > { %6605 = vst.msk [vmem:[#allocation3 + $0x40] sm:$0xff] %vm430_vm1, %v6516_v1  ;;  %7200 = vmatpush.msra.mxu0 %v10969_v27 }
 0x673   : > { %v6425_v10 = vadd.f32 %v15139_v40, %v6388_v9  ;;  %6634 = vst.msk [vmem:[#allocation3 + $0x29] sm:$0x7f] %vm465_vm3, %v15201_v26  ;;  %10993 = vmatmul.msk.f32.gmra.mxu3 %vm196_vm0, %v15483_v45 }
 0x674   : > { %6761 = vst.msk [vmem:[#allocation3 + $0x1f] sm:$0xfe] %vm593_vm4, %v6668_v5  ;;  %v5645_v5 = vld [vmem:[#allocation2 + $0xf8] sm:$0xff] }
 0x675   : > { %v15491_v63 = vmax.f32 %v6425_v10, 0.0  ;;  %6762 = vst.msk [vmem:[#allocation3 + $0x27] sm:$0xff] %vm595_vm5, %v15418_v36  ;;  %v10968_v36 = vld [vmem:[%s17568_s1 + $0x5a0] sm:$0xff] }
 0x676   : > { %v6294_v55 = vpop.f32.mrf.mxu2  ;;  %v5346_v13 = vpop.permute.xlu1 %5345  ;;  %7201 = vmatpush.msra.mxu0 %v10968_v36 }
 0x677   : > { %v6352_v61 = vadd.f32 %v6294_v55, %v6041_v33  ;;  %6699 = vrot.lane.b32.xlu1 %v15491_v63, %s11515_s6  ;;  %6539 = vrot.lane.b32.xlu2 %v15491_v63, %s11516_s7  ;;  %5410 = vst.msk [vmem:[#allocation2 + $0x108] sm:$0xff] %vm430_vm1, %v5346_v13  ;;  %v5344_v26 = vpop.permute.xlu0 %5343 }
 0x678   : > { %5442 = vst.msk [vmem:[#allocation2 + $0x109] sm:$0x7f] %vm465_vm3, %v15219_v57  ;;  %10887 = vmatmul.msk.f32.gmra.mxu0 %vm196_vm0, %v5645_v5  ;;  %10921 = vmatmul.msk.f32.gmra.mxu1 %vm196_vm0, %v5645_v5  ;;  %v6110_v57 = vld [vmem:[#allocation2 + $0x118] sm:$0xff] }
 0x679   : > { %v6389_v9 = vmul.f32 %v15131_v48, %v6352_v61  ;;  %5409 = vst.msk [vmem:[#allocation2 + $0x100] sm:$0xff] %vm430_vm1, %v5344_v26  ;;  %10961 = vmatmul.msk.f32.gmra.mxu2 %vm196_vm0, %v5645_v5  ;;  %v6678_v13 = vpop.permute.xlu2 %6677  ;;  %v6043_v26 = vpop.f32.mrf.mxu1 }
 0x67a   : > { %5441 = vst.msk [vmem:[#allocation2 + $0x101] sm:$0xff] %vm463_vm2, %v15221_v39  ;;  %v6792_v39 = vld [vmem:[#allocation3 + $0x8] sm:$0xff] }
 0x67b   : > { %v6426_v1 = vadd.f32 %v15139_v40, %v6389_v9  ;;  %5569 = vst.msk [vmem:[#allocation2 + $0xff] sm:$0xfe] %vm593_vm4, %v15436_v30 }
 0x67c   : > { %v15518_v47 = vld [vmem:[#allocation3 + $0x20] sm:$0xff]  ;;  %v15534_v30 = vld [vmem:[#allocation3 + $0x28] sm:$0xff] }
 0x67d   : > { %v15520_v10 = vmax.f32 %v6426_v1, 0.0  ;;  %10994 = vmatmul.msk.f32.gmra.mxu3 %vm196_vm0, %v15518_v47  ;;  %v5834_v1 = vpop.f32.mrf.mxu0 }
 0x67e   : > { %v6512_v2 = vpop.permute.xlu1 %6511 }
 0x67f   : > { %6701 = vrot.lane.b32.xlu2 %v15520_v10, %s11515_s6  ;;  %6541 = vrot.lane.b32.xlu0 %v15520_v10, %s11516_s7  ;;  %6603 = vst.msk [vmem:[#allocation3 + $0x30] sm:$0xff] %vm430_vm1, %v6512_v2  ;;  %v5506_v33 = vpop.permute.xlu0 %5505 }
 0x680   : > { %6635 = vst.msk [vmem:[#allocation3 + $0x31] sm:$0xff] %vm463_vm2, %v15239_v53  ;;  %11068 = vmatmul.msk.f32.vlgmr.msra.gmra.mxu1 %vm196_vm0, %v15518_v47 }
 0x681   : > { %5570 = vst.msk [vmem:[#allocation2 + $0x107] sm:$0xff] %vm595_vm5, %v5506_v33  ;;  %v6680_v36 = vpop.permute.xlu2 %6679  ;;  %v6109_v33 = vld [vmem:[#allocation2 + $0x110] sm:$0xff] }
 0x685   : > { %10995 = vmatmul.msk.f32.gmra.mxu3 %vm196_vm0, %v15534_v30 }
 0x686   : > { %v6674_v55 = vpop.permute.xlu1 %6673 }
 0x687   : > { %6764 = vst.msk [vmem:[#allocation3 + $0x37] sm:$0xff] %vm595_vm5, %v6674_v55  ;;  %v6672_v27 = vpop.permute.xlu0 %6671  ;;  %v6791_v55 = vld [vmem:[#allocation3] sm:$0xff] }
 0x688   : > { %6763 = vst.msk [vmem:[#allocation3 + $0x2f] sm:$0xfe] %vm593_vm4, %v6672_v27  ;;  %v5646_v61 = vld [vmem:[#allocation2 + $0x100] sm:$0xff]  ;;  %11069 = vmatmul.msk.f32.gmra.mxu1 %vm196_vm0, %v15534_v30  ;;  %v5647_v5 = vld [vmem:[#allocation2 + $0x108] sm:$0xff] }
 0x689   : > { %10888 = vmatmul.msk.f32.gmra.mxu0 %vm196_vm0, %v5646_v61  ;;  %10962 = vmatmul.msk.f32.gmra.mxu2 %vm196_vm0, %v5646_v61 }
 0x68e   : > { %v6676_v2 = vpop.permute.xlu1 %6675  ;;  %v15559_v27 = vld [vmem:[#allocation3 + $0x38] sm:$0xff] }
 0x68f   : > { %v15544_v53 = vld [vmem:[#allocation3 + $0x30] sm:$0xff] }
 0x690   : > { %10996 = vmatmul.msk.f32.gmra.mxu3 %vm196_vm0, %v15544_v53  ;;  %11070 = vmatmul.msk.f32.gmra.mxu1 %vm196_vm0, %v15544_v53 }
 0x691   : > { %v6518_v9 = vpop.permute.xlu0 %6517  ;;  %10889 = vmatmul.msk.f32.gmra.mxu0 %vm196_vm0, %v5647_v5  ;;  %10963 = vmatmul.msk.f32.gmra.mxu2 %vm196_vm0, %v5647_v5 }
 0x692   : > { %6606 = vst.msk [vmem:[#allocation3 + $0x48] sm:$0xff] %vm430_vm1, %v6518_v9 }
 0x693   : > { %6637 = vst.msk [vmem:[#allocation3 + $0x41] sm:$0xff] %vm463_vm2, %v15265_v44 }
 0x694   : > { %6638 = vst.msk [vmem:[#allocation3 + $0x49] sm:$0x7f] %vm465_vm3, %v15288_v18  ;;  %v6046_v18 = vpop.f32.mrf.mxu1 }
 0x695   : > { %6765 = vst.msk [vmem:[#allocation3 + $0x3f] sm:$0xfe] %vm593_vm4, %v6676_v2  ;;  %v5837_v2 = vpop.f32.mrf.mxu0 }
 0x696   : > { %6766 = vst.msk [vmem:[#allocation3 + $0x47] sm:$0xff] %vm595_vm5, %v6678_v13  ;;  %v6044_v13 = vadd.f32 %v6043_v26, %v5834_v1 }
 0x698   : > { %10997 = vmatmul.msk.f32.gmra.mxu3 %vm196_vm0, %v15559_v27  ;;  %11071 = vmatmul.msk.f32.gmra.mxu1 %vm196_vm0, %v15559_v27 }
 0x699   : > { %v6526_v44 = vpop.permute.xlu2 %6525  ;;  %v6520_v61 = vpop.permute.xlu0 %6519  ;;  %10964 = vmatmul.msk.f32.gmra.mxu2 %vm196_vm0, %v6109_v33  ;;  %11024 = vmatmul.msk.f32.vlgmr.msra.gmra.mxu0 %vm196_vm0, %v6791_v55  ;;  %v6047_v55 = vadd.f32 %v6046_v18, %v5837_v2 }
 0x69a   : > { %6610 = vst.msk [vmem:[#allocation3 + $0x68] sm:$0xff] %vm430_vm1, %v6526_v44 }
 0x69b   : > { %6607 = vst.msk [vmem:[#allocation3 + $0x50] sm:$0xff] %vm430_vm1, %v6520_v61 }
 0x69c   : > { %6642 = vst.msk [vmem:[#allocation3 + $0x69] sm:$0x7f] %vm465_vm3, %v15351_v35  ;;  %v6297_v5 = vpop.f32.mrf.mxu2  ;;  %v6049_v61 = vpop.f32.mrf.mxu1 }
 0x69d   : > { %v6353_v9 = vadd.f32 %v6297_v5, %v6044_v13  ;;  %v15572_v60 = vld [vmem:[#allocation3 + $0x40] sm:$0xff]  ;;  %v15596_v18 = vld [vmem:[#allocation3 + $0x48] sm:$0xff] }
 0x69f   : > { %v6390_v49 = vmul.f32 %v15131_v48, %v6353_v9 }
 0x6a0   : > { %10998 = vmatmul.msk.f32.gmra.mxu3 %vm196_vm0, %v15572_v60  ;;  %11072 = vmatmul.msk.f32.gmra.mxu1 %vm196_vm0, %v15572_v60 }
 0x6a1   : > { %v6427_v26 = vadd.f32 %v15139_v40, %v6390_v49  ;;  %v6522_v1 = vpop.permute.xlu1 %6521  ;;  %v6528_v33 = vpop.permute.xlu2 %6527  ;;  %10965 = vmatmul.msk.f32.gmra.mxu2 %vm196_vm0, %v6110_v57  ;;  %11025 = vmatmul.msk.f32.gmra.mxu0 %vm196_vm0, %v6792_v39 }
 0x6a2   : > { %6608 = vst.msk [vmem:[#allocation3 + $0x58] sm:$0xff] %vm430_vm1, %v6522_v1  ;;  %v6682_v35 = vpop.permute.xlu0 %6681  ;;  %v5840_v57 = vpop.f32.mrf.mxu0 }
 0x6a3   : > { %v15582_v44 = vmax.f32 %v6427_v26, 0.0  ;;  %6611 = vst.msk [vmem:[#allocation3 + $0x70] sm:$0xff] %vm430_vm1, %v6528_v33 }
 0x6a4   : > { %6639 = vst.msk [vmem:[#allocation3 + $0x51] sm:$0xff] %vm463_vm2, %v15299_v38  ;;  %v6300_v13 = vpop.f32.mrf.mxu2 }
 0x6a5   : > { %6640 = vst.msk [vmem:[#allocation3 + $0x59] sm:$0x7f] %vm465_vm3, %v15316_v52  ;;  %v6354_v49 = vadd.f32 %v6300_v13, %v6047_v55  ;;  %6703 = vrot.lane.b32.xlu2 %v15582_v44, %s11515_s6  ;;  %6543 = vrot.lane.b32.xlu0 %v15582_v44, %s11516_s7 }
 0x6a6   : > { %6767 = vst.msk [vmem:[#allocation3 + $0x4f] sm:$0xfe] %vm593_vm4, %v6680_v36  ;;  %v6050_v36 = vadd.f32 %v6049_v61, %v5840_v57 }
 0x6a7   : > { %6768 = vst.msk [vmem:[#allocation3 + $0x57] sm:$0xff] %vm595_vm5, %v6682_v35  ;;  %v6391_v39 = vmul.f32 %v15131_v48, %v6354_v49 }
 0x6a8   : > { %10999 = vmatmul.msk.f32.gmra.mxu3 %vm196_vm0, %v15596_v18  ;;  %11073 = vmatmul.msk.f32.gmra.mxu1 %vm196_vm0, %v15596_v18 }
 0x6a9   : > { %v6428_v38 = vadd.f32 %v15139_v40, %v6391_v39  ;;  %v6524_v52 = vpop.permute.xlu1 %6523  ;;  %11026 = vmatmul.msk.f32.gmra.mxu0 %vm196_vm0, %v15464_v7  ;;  %v6052_v7 = vpop.f32.mrf.mxu1 }
 0x6aa   : > { %6609 = vst.msk [vmem:[#allocation3 + $0x60] sm:$0xff] %vm430_vm1, %v6524_v52  ;;  %v6684_v9 = vpop.permute.xlu0 %6683  ;;  %v5843_v35 = vpop.f32.mrf.mxu0  ;;  %v15647_v52 = vld [vmem:[%s17570_s3 + $0x4] ss:$0 sm:$0xff] }
 0x6ab   : > { %v15606_v5 = vmax.f32 %v6428_v38, 0.0  ;;  %6641 = vst.msk [vmem:[#allocation3 + $0x61] sm:$0xff] %vm463_vm2, %v15336_v21  ;;  %v6053_v61 = vadd.f32 %v6052_v7, %v5843_v35  ;;  %v6690_v39 = vpop.permute.xlu2 %6689 }
 0x6ac   : > { %6769 = vst.msk [vmem:[#allocation3 + $0x5f] sm:$0xfe] %vm593_vm4, %v6684_v9  ;;  %v6303_v2 = vpop.f32.mrf.mxu2 }
 0x6ad   : > { %6705 = vrot.lane.b32.xlu0 %v15606_v5, %s11515_s6  ;;  %6545 = vrot.lane.b32.xlu1 %v15606_v5, %s11516_s7  ;;  %v6355_v26 = vadd.f32 %v6303_v2, %v6050_v36  ;;  %v11125_v2 = vld [vmem:[%s17568_s1 + $0x778] sm:$0xff] }
 0x6ae   : > { %v15616_v33 = vld [vmem:[#allocation3 + $0x50] sm:$0xff]  ;;  %v15638_v38 = vld [vmem:[#allocation3 + $0x58] sm:$0xff]  ;;  %8233 = vmatpush.msra.mxu2 %v11125_v2 }
 0x6af   : > { %v6392_v1 = vmul.f32 %v15131_v48, %v6355_v26  ;;  %v11113_v26 = vld [vmem:[%s17568_s1 + $0x718] sm:$0xff] }
 0x6b0   : > { %11000 = vmatmul.msk.f32.gmra.mxu3 %vm196_vm0, %v15616_v33  ;;  %11074 = vmatmul.msk.f32.gmra.mxu1 %vm196_vm0, %v15616_v33 }
 0x6b1   : > { %v6429_v21 = vadd.f32 %v15139_v40, %v6392_v1  ;;  %v6686_v55 = vpop.permute.xlu1 %6685  ;;  %11027 = vmatmul.msk.f32.gmra.mxu0 %vm196_vm0, %v15483_v45  ;;  %v6055_v57 = vpop.f32.mrf.mxu1  ;;  %v15635_v40 = vld [vmem:[%s17569_s2 + $0x4] ss:$0 sm:$0xff]  ;;  %8442 = vmatpush.msra.mxu3 %v11113_v26 }
 0x6b2   : > { %6770 = vst.msk [vmem:[#allocation3 + $0x67] sm:$0xff] %vm595_vm5, %v6686_v55  ;;  %v5846_v7 = vpop.f32.mrf.mxu0  ;;  %v11201_v55 = vld [vmem:[%s17568_s1 + $0x7d8] sm:$0xff] }
 0x6b3   : > { %v15626_v13 = vmax.f32 %v6429_v21, 0.0  ;;  %v6692_v35 = vpop.permute.xlu2 %6691  ;;  %8696 = vmatpush.msrb.mxu0 %v11201_v55 }
 0x6b4   : > { %v6306_v48 = vpop.f32.mrf.mxu2 }
 0x6b5   : > { %v6356_v49 = vadd.f32 %v6306_v48, %v6053_v61  ;;  %6707 = vrot.lane.b32.xlu0 %v15626_v13, %s11515_s6  ;;  %6547 = vrot.lane.b32.xlu1 %v15626_v13, %s11516_s7  ;;  %v6056_v61 = vadd.f32 %v6055_v57, %v5846_v7 }
 0x6b7   : > { %v6393_v45 = vmul.f32 %v15635_v40, %v6356_v49 }
 0x6b8   : > { %11001 = vmatmul.msk.f32.gmra.mxu3 %vm196_vm0, %v15638_v38  ;;  %11075 = vmatmul.msk.f32.gmra.mxu1 %vm196_vm0, %v15638_v38 }
 0x6b9   : > { %v6430_v36 = vadd.f32 %v15647_v52, %v6393_v45  ;;  %11028 = vmatmul.msk.f32.gmra.mxu0 %vm196_vm0, %v15518_v47  ;;  %v15664_v47 = vld [vmem:[#allocation3 + $0x60] sm:$0xff]  ;;  %v6058_v1 = vpop.f32.mrf.mxu1  ;;  %v6688_v48 = vpop.permute.xlu1 %6687 }
 0x6ba   : > { %v5849_v57 = vpop.f32.mrf.mxu0 }
 0x6bb   : > { %v15652_v9 = vmax.f32 %v6430_v36, 0.0  ;;  %v15683_v36 = vld [vmem:[#allocation3 + $0x68] sm:$0xff] }
 0x6bd   : > { %6709 = vrot.lane.b32.xlu1 %v15652_v9, %s11515_s6  ;;  %6549 = vrot.lane.b32.xlu2 %v15652_v9, %s11516_s7 }
 0x6c0   : > { %11002 = vmatmul.msk.f32.gmra.mxu3 %vm196_vm0, %v15664_v47  ;;  %11076 = vmatmul.msk.f32.gmra.mxu1 %vm196_vm0, %v15664_v47 }
 0x6c1   : > { %v6530_v21 = vpop.permute.xlu0 %6529  ;;  %11029 = vmatmul.msk.f32.gmra.mxu0 %vm196_vm0, %v15534_v30  ;;  %v15685_v2 = vpop.f32.mrf.mxu1 }
 0x6c2   : > { %6612 = vst.msk [vmem:[#allocation3 + $0x78] sm:$0xff] %vm430_vm1, %v6530_v21 }
 0x6c3   : > { %6643 = vst.msk [vmem:[#allocation3 + $0x71] sm:$0xff] %vm463_vm2, %v15369_v12 }
 0x6c4   : > { %6644 = vst.msk [vmem:[#allocation3 + $0x79] sm:$0x7f] %vm465_vm3, %v15397_v14  ;;  %v6309_v49 = vpop.f32.mrf.mxu2 }
 0x6c5   : > { %6771 = vst.msk [vmem:[#allocation3 + $0x6f] sm:$0xfe] %vm593_vm4, %v6688_v48  ;;  %v6357_v45 = vadd.f32 %v6309_v49, %v6056_v61 }
 0x6c6   : > { %6772 = vst.msk [vmem:[#allocation3 + $0x77] sm:$0xff] %vm595_vm5, %v6690_v39  ;;  %v6059_v39 = vadd.f32 %v6058_v1, %v5849_v57  ;;  %v11112_v57 = vld [vmem:[%s17568_s1 + $0x710] sm:$0xff] }
 0x6c7   : > { %v6394_v30 = vmul.f32 %v15635_v40, %v6357_v45  ;;  %8443 = vmatpush.msra.mxu3 %v11112_v57  ;;  %v11199_v57 = vld [vmem:[%s17568_s1 + $0x7c8] sm:$0xff] }
 0x6c8   : > { %11003 = vmatmul.msk.f32.gmra.mxu3 %vm196_vm0, %v15683_v36  ;;  %11077 = vmatmul.msk.f32.gmra.mxu1 %vm196_vm0, %v15683_v36 }
 0x6c9   : > { %v6431_v12 = vadd.f32 %v15647_v52, %v6394_v30  ;;  %v6538_v14 = vpop.permute.xlu2 %6537  ;;  %v6532_v26 = vpop.permute.xlu0 %6531  ;;  %11030 = vmatmul.msk.f32.gmra.mxu0 %vm196_vm0, %v15544_v53 }
 0x6ca   : > { %6616 = vst.msk [vmem:[#allocation3 + $0x98] sm:$0xff] %vm430_vm1, %v6538_v14  ;;  %v15715_v45 = vpop.f32.mrf.mxu1  ;;  %v11200_v14 = vld [vmem:[%s17568_s1 + $0x7d0] sm:$0xff] }
 0x6cb   : > { %v15695_v7 = vmax.f32 %v6431_v12, 0.0  ;;  %6613 = vst.msk [vmem:[#allocation3 + $0x80] sm:$0xff] %vm430_vm1, %v6532_v26  ;;  %8697 = vmatpush.msrb.mxu0 %v11200_v14 }
 0x6cc   : > { %6648 = vst.msk [vmem:[#allocation3 + $0x99] sm:$0x7f] %vm465_vm3, %v15469_v24  ;;  %v6312_v21 = vpop.f32.mrf.mxu2 }
 0x6cd   : > { %v6358_v55 = vadd.f32 %v6312_v21, %v6059_v39  ;;  %6711 = vrot.lane.b32.xlu1 %v15695_v7, %s11515_s6  ;;  %6551 = vrot.lane.b32.xlu2 %v15695_v7, %s11516_s7  ;;  %v15705_v61 = vld [vmem:[#allocation3 + $0x70] sm:$0xff] }
 0x6ce   : > { %8698 = vmatpush.msrb.mxu0 %v11199_v57 }
 0x6cf   : > { %v6395_v53 = vmul.f32 %v15635_v40, %v6358_v55  ;;  %v11123_v55 = vld [vmem:[%s17568_s1 + $0x768] sm:$0xff] }
 0x6d0   : > { %11004 = vmatmul.msk.f32.gmra.mxu3 %vm196_vm0, %v15705_v61  ;;  %11078 = vmatmul.msk.f32.gmra.mxu1 %vm196_vm0, %v15705_v61 }
 0x6d1   : > { %v6432_v24 = vadd.f32 %v15647_v52, %v6395_v53  ;;  %v6534_v1 = vpop.permute.xlu1 %6533  ;;  %v6540_v48 = vpop.permute.xlu2 %6539  ;;  %11031 = vmatmul.msk.f32.gmra.mxu0 %vm196_vm0, %v15559_v27  ;;  %v11124_v27 = vld [vmem:[%s17568_s1 + $0x770] sm:$0xff] }
 0x6d2   : > { %6614 = vst.msk [vmem:[#allocation3 + $0x88] sm:$0xff] %vm430_vm1, %v6534_v1  ;;  %v6694_v49 = vpop.permute.xlu0 %6693  ;;  %8234 = vmatpush.msra.mxu2 %v11124_v27 }
 0x6d3   : > { %v15717_v30 = vmax.f32 %v6432_v24, 0.0  ;;  %6617 = vst.msk [vmem:[#allocation3 + $0xa0] sm:$0xff] %vm430_vm1, %v6540_v48 }
 0x6d4   : > { %6645 = vst.msk [vmem:[#allocation3 + $0x81] sm:$0xff] %vm463_vm2, %v15406_v28  ;;  %v15736_v28 = vld [vmem:[#allocation3 + $0x78] sm:$0xff]  ;;  %8235 = vmatpush.msra.mxu2 %v11123_v55 }
 0x6d5   : > { %6646 = vst.msk [vmem:[#allocation3 + $0x89] sm:$0x7f] %vm465_vm3, %v15423_v15  ;;  %6713 = vrot.lane.b32.xlu2 %v15717_v30, %s11515_s6  ;;  %6553 = vrot.lane.b32.xlu0 %v15717_v30, %s11516_s7 }
 0x6d6   : > { %6773 = vst.msk [vmem:[#allocation3 + $0x7f] sm:$0xfe] %vm593_vm4, %v6692_v35  ;;  %v15745_v35 = vpop.f32.mrf.mxu1 }
 0x6d7   : > { %6774 = vst.msk [vmem:[#allocation3 + $0x87] sm:$0xff] %vm595_vm5, %v6694_v49 }
 0x6d8   : > { %11005 = vmatmul.msk.f32.gmra.mxu3 %vm196_vm0, %v15736_v28  ;;  %11079 = vmatmul.msk.f32.gmra.mxu1 %vm196_vm0, %v15736_v28 }
 0x6d9   : > { %v6536_v15 = vpop.permute.xlu1 %6535  ;;  %11032 = vmatmul.msk.f32.gmra.mxu0 %vm196_vm0, %v15572_v60  ;;  %v6702_v14 = vpop.permute.xlu2 %6701 }
 0x6da   : > { %6615 = vst.msk [vmem:[#allocation3 + $0x90] sm:$0xff] %vm430_vm1, %v6536_v15  ;;  %v6696_v12 = vpop.permute.xlu0 %6695 }
 0x6db   : > { %6647 = vst.msk [vmem:[#allocation3 + $0x91] sm:$0xff] %vm463_vm2, %v15450_v42  ;;  %v5852_v42 = vpop.f32.mrf.mxu0 }
 0x6dc   : > { %6775 = vst.msk [vmem:[#allocation3 + $0x8f] sm:$0xfe] %vm593_vm4, %v6696_v12 }
 0x6de   : > { %v15753_v26 = vld [vmem:[#allocation3 + $0x80] sm:$0xff]  ;;  %v15762_v39 = vpop.f32.mrf.mxu1  ;;  %v15764_v21 = vld [vmem:[#allocation3 + $0x88] sm:$0xff] }
 0x6e0   : > { %11006 = vmatmul.msk.f32.gmra.mxu3 %vm196_vm0, %v15753_v26  ;;  %11080 = vmatmul.msk.f32.gmra.mxu1 %vm196_vm0, %v15753_v26 }
 0x6e1   : > { %v6698_v60 = vpop.permute.xlu1 %6697  ;;  %11033 = vmatmul.msk.f32.gmra.mxu0 %vm196_vm0, %v15596_v18  ;;  %v11111_v18 = vld [vmem:[%s17568_s1 + $0x708] sm:$0xff] }
 0x6e2   : > { %6776 = vst.msk [vmem:[#allocation3 + $0x97] sm:$0xff] %vm595_vm5, %v6698_v60  ;;  %8444 = vmatpush.msra.mxu3 %v11111_v18 }
 0x6e3   : > { %v5855_v53 = vpop.f32.mrf.mxu0 }
 0x6e4   : > { %v6065_v55 = vadd.f32 %v15715_v45, %v5855_v53 }
 0x6e8   : > { %11007 = vmatmul.msk.f32.gmra.mxu3 %vm196_vm0, %v15764_v21  ;;  %11081 = vmatmul.msk.f32.gmra.mxu1 %vm196_vm0, %v15764_v21 }
 0x6e9   : > { %11034 = vmatmul.msk.f32.gmra.mxu0 %vm196_vm0, %v15616_v33  ;;  %v15780_v1 = vld [vmem:[#allocation3 + $0x90] sm:$0xff]  ;;  %v6062_v33 = vadd.f32 %v15685_v2, %v5852_v42  ;;  %v6700_v27 = vpop.permute.xlu1 %6699  ;;  %v15804_v2 = vld [vmem:[#allocation3 + $0x98] sm:$0xff] }
 0x6ed   : > { %v15778_v24 = vpop.f32.mrf.mxu1  ;;  %v5858_v15 = vpop.f32.mrf.mxu0 }
 0x6ee   : > { %v15782_v48 = vpop.f32.mrf.mxu3 }
 0x6f0   : > { %11008 = vmatmul.msk.f32.gmra.mxu3 %vm196_vm0, %v15780_v1  ;;  %11082 = vmatmul.msk.f32.gmra.mxu1 %vm196_vm0, %v15780_v1 }
 0x6f1   : > { %v6542_v49 = vpop.permute.xlu0 %6541  ;;  %11035 = vmatmul.msk.f32.gmra.mxu0 %vm196_vm0, %v15638_v38 }
 0x6f2   : > { %6618 = vst.msk [vmem:[#allocation3 + $0xa8] sm:$0xff] %vm430_vm1, %v6542_v49 }
 0x6f3   : > { %6649 = vst.msk [vmem:[#allocation3 + $0xa1] sm:$0xff] %vm463_vm2, %v15491_v63 }
 0x6f4   : > { %6650 = vst.msk [vmem:[#allocation3 + $0xa9] sm:$0x7f] %vm465_vm3, %v15520_v10  ;;  %v6315_v12 = vpop.f32.mrf.mxu2 }
 0x6f5   : > { %6777 = vst.msk [vmem:[#allocation3 + $0x9f] sm:$0xfe] %vm593_vm4, %v6700_v27  ;;  %v6359_v38 = vadd.f32 %v6315_v12, %v6062_v33  ;;  %v15800_v60 = vpop.f32.mrf.mxu1  ;;  %v5861_v57 = vpop.f32.mrf.mxu0 }
 0x6f6   : > { %6778 = vst.msk [vmem:[#allocation3 + $0xa7] sm:$0xff] %vm595_vm5, %v6702_v14  ;;  %v15813_v42 = vpop.f32.mrf.mxu3  ;;  %v11122_v14 = vld [vmem:[%s17568_s1 + $0x760] sm:$0xff] }
 0x6f7   : > { %v6396_v63 = vmul.f32 %v15635_v40, %v6359_v38  ;;  %v11110_v38 = vld [vmem:[%s17568_s1 + $0x700] sm:$0xff]  ;;  %8236 = vmatpush.msra.mxu2 %v11122_v14 }
 0x6f8   : > { %11009 = vmatmul.msk.f32.gmra.mxu3 %vm196_vm0, %v15804_v2  ;;  %11083 = vmatmul.msk.f32.gmra.mxu1 %vm196_vm0, %v15804_v2 }
 0x6f9   : > { %v6433_v10 = vadd.f32 %v15647_v52, %v6396_v63  ;;  %11036 = vmatmul.msk.f32.gmra.mxu0 %vm196_vm0, %v15664_v47  ;;  %8445 = vmatpush.msra.mxu3 %v11110_v38 }
 0x6fb   : > { %v15816_v18 = vmax.f32 %v6433_v10, 0.0 }
 0x6fc   : > { %v6318_v49 = vpop.f32.mrf.mxu2 }
 0x6fd   : > { %v6360_v33 = vadd.f32 %v6318_v49, %v6065_v55  ;;  %6715 = vrot.lane.b32.xlu2 %v15816_v18, %s11515_s6  ;;  %6555 = vrot.lane.b32.xlu0 %v15816_v18, %s11516_s7  ;;  %v15822_v27 = vpop.f32.mrf.mxu1  ;;  %v15825_v47 = vld [vmem:[#allocation3 + $0xa0] sm:$0xff]  ;;  %v15848_v55 = vld [vmem:[#allocation3 + $0xa8] sm:$0xff]  ;;  %v6068_v49 = vadd.f32 %v15745_v35, %v5858_v15 }
 0x6ff   : > { %v6397_v12 = vmul.f32 %v15635_v40, %v6360_v33  ;;  %v11198_v33 = vld [vmem:[%s17568_s1 + $0x7c0] sm:$0xff]  ;;  %v6704_v20 = vpop.permute.xlu2 %6703 }
 0x700   : > { %11010 = vmatmul.msk.f32.gmra.mxu3 %vm196_vm0, %v15825_v47  ;;  %11084 = vmatmul.msk.f32.gmra.mxu1 %vm196_vm0, %v15825_v47  ;;  %v15842_v63 = vpop.f32.mrf.mxu3 }
 0x701   : > { %v6434_v45 = vadd.f32 %v15647_v52, %v6397_v12  ;;  %11037 = vmatmul.msk.f32.gmra.mxu0 %vm196_vm0, %v15683_v36 }
 0x702   : > { %8699 = vmatpush.msrb.mxu0 %v11198_v33 }
 0x703   : > { %v15834_v53 = vmax.f32 %v6434_v45, 0.0 }
 0x705   : > { %6717 = vrot.lane.b32.xlu0 %v15834_v53, %s11515_s6  ;;  %6557 = vrot.lane.b32.xlu1 %v15834_v53, %s11516_s7  ;;  %v7460_v36 = vpop.f32.mrf.mxu1 }
 0x706   : > { %v5864_v10 = vpop.f32.mrf.mxu0 }
 0x708   : > { %11011 = vmatmul.msk.f32.gmra.mxu3 %vm196_vm0, %v15848_v55  ;;  %11085 = vmatmul.msk.f32.gmra.mxu1 %vm196_vm0, %v15848_v55  ;;  %v15862_v38 = vpop.f32.mrf.mxu3 }
 0x709   : > { %11038 = vmatmul.msk.f32.gmra.mxu0 %vm196_vm0, %v15705_v61  ;;  %v6071_v61 = vadd.f32 %v15762_v39, %v5861_v57 }
 0x70c   : > { %v6321_v12 = vpop.f32.mrf.mxu2 }
 0x70d   : > { %v6361_v45 = vadd.f32 %v6321_v12, %v6068_v49  ;;  %v15860_v14 = vpop.f32.mrf.mxu1 }
 0x70e   : > { %v5867_v59 = vpop.f32.mrf.mxu0 }
 0x70f   : > { %v6398_v4 = vmul.f32 %v15635_v40, %v6361_v45 }
 0x711   : > { %v6435_v62 = vadd.f32 %v15647_v52, %v6398_v4  ;;  %11039 = vmatmul.msk.f32.gmra.mxu0 %vm196_vm0, %v15736_v28  ;;  %v11121_v4 = vld [vmem:[%s17568_s1 + $0x758] sm:$0xff] }
 0x712   : > { %v11109_v28 = vld [vmem:[%s17568_s1 + $0x6f8] sm:$0xff]  ;;  %8237 = vmatpush.msra.mxu2 %v11121_v4 }
 0x713   : > { %v15869_v35 = vmax.f32 %v6435_v62, 0.0  ;;  %v15883_v62 = vpop.f32.mrf.mxu3  ;;  %8446 = vmatpush.msra.mxu3 %v11109_v28 }
 0x714   : > { %v6324_v15 = vpop.f32.mrf.mxu2 }
 0x715   : > { %v6362_v33 = vadd.f32 %v6324_v15, %v6071_v61  ;;  %6719 = vrot.lane.b32.xlu0 %v15869_v35, %s11515_s6  ;;  %6559 = vrot.lane.b32.xlu1 %v15869_v35, %s11516_s7  ;;  %v15875_v49 = vpop.f32.mrf.mxu1  ;;  %v6074_v15 = vadd.f32 %v15778_v24, %v5864_v10 }
 0x716   : > { %v7203_v39 = vpop.f32.mrf.mxu0 }
 0x717   : > { %v6399_v57 = vmul.f32 %v15635_v40, %v6362_v33  ;;  %v6544_v12 = vpop.permute.xlu0 %6543  ;;  %v6550_v45 = vpop.permute.xlu2 %6549 }
 0x718   : > { %6619 = vst.msk [vmem:[#allocation3 + $0xb0] sm:$0xff] %vm430_vm1, %v6544_v12 }
 0x719   : > { %v6436_v61 = vadd.f32 %v15647_v52, %v6399_v57  ;;  %6622 = vst.msk [vmem:[#allocation3 + $0xc8] sm:$0xff] %vm430_vm1, %v6550_v45  ;;  %11040 = vmatmul.msk.f32.gmra.mxu0 %vm196_vm0, %v15753_v26  ;;  %v11197_v57 = vld [vmem:[%s17568_s1 + $0x7b8] sm:$0xff] }
 0x71a   : > { %6654 = vst.msk [vmem:[#allocation3 + $0xc9] sm:$0x7f] %vm465_vm3, %v15652_v9  ;;  %8700 = vmatpush.msrb.mxu0 %v11197_v57  ;;  %v7204_v9 = vadd.f32 %v7203_v39, %v15782_v48  ;;  %v6077_v39 = vadd.f32 %v15800_v60, %v5867_v59  ;;  %v15928_v57 = vld [vmem:[%s17570_s3 + $0x5] ss:$0 sm:$0xff] }
 0x71b   : > { %v15894_v4 = vmax.f32 %v6436_v61, 0.0  ;;  %v15908_v61 = vpop.f32.mrf.mxu3 }
 0x71c   : > { %v6327_v28 = vpop.f32.mrf.mxu2 }
 0x71d   : > { %v6363_v33 = vadd.f32 %v6327_v28, %v6074_v15  ;;  %6721 = vrot.lane.b32.xlu1 %v15894_v4, %s11515_s6  ;;  %6561 = vrot.lane.b32.xlu2 %v15894_v4, %s11516_s7  ;;  %v15903_v12 = vpop.f32.mrf.mxu1  ;;  %v15914_v15 = vld [vmem:[%s17569_s2 + $0x5] ss:$0 sm:$0xff] }
 0x71e   : > { %v7206_v26 = vpop.f32.mrf.mxu0 }
 0x71f   : > { %v6400_v24 = vmul.f32 %v15635_v40, %v6363_v33  ;;  %v6546_v10 = vpop.permute.xlu1 %6545  ;;  %v7207_v45 = vadd.f32 %v7206_v26, %v15813_v42  ;;  %v6706_v42 = vpop.permute.xlu0 %6705  ;;  %v7553_v33 = vadd.f32 %v15822_v27, %v7204_v9 }
 0x720   : > { %6620 = vst.msk [vmem:[#allocation3 + $0xb8] sm:$0xff] %vm430_vm1, %v6546_v10 }
 0x721   : > { %v6437_v28 = vadd.f32 %v15647_v52, %v6400_v24  ;;  %6651 = vst.msk [vmem:[#allocation3 + $0xb1] sm:$0xff] %vm463_vm2, %v15582_v44  ;;  %v7554_v48 = vadd.f32 %v7460_v36, %v7207_v45  ;;  %11041 = vmatmul.msk.f32.gmra.mxu0 %vm196_vm0, %v15764_v21  ;;  %v7590_v60 = vmul.f32 %v15914_v15, %v7553_v33  ;;  %v11108_v33 = vld [vmem:[%s17568_s1 + $0x6f0] sm:$0xff] }
 0x722   : > { %6652 = vst.msk [vmem:[#allocation3 + $0xb9] sm:$0x7f] %vm465_vm3, %v15606_v5  ;;  %8447 = vmatpush.msra.mxu3 %v11108_v33 }
 0x723   : > { %v15930_v26 = vmax.f32 %v6437_v28, 0.0  ;;  %6779 = vst.msk [vmem:[#allocation3 + $0xaf] sm:$0xfe] %vm593_vm4, %v6704_v20  ;;  %v7591_v44 = vmul.f32 %v15914_v15, %v7554_v48 }
 0x724   : > { %6780 = vst.msk [vmem:[#allocation3 + $0xb7] sm:$0xff] %vm595_vm5, %v6706_v42  ;;  %v6330_v21 = vpop.f32.mrf.mxu2 }
 0x725   : > { %v7628_v5 = vadd.f32 %v15928_v57, %v7591_v44  ;;  %v6364_v36 = vadd.f32 %v6330_v21, %v6077_v39  ;;  %6723 = vrot.lane.b32.xlu1 %v15930_v26, %s11515_s6  ;;  %6563 = vrot.lane.b32.xlu2 %v15930_v26, %s11516_s7  ;;  %v15945_v45 = vpop.f32.mrf.mxu1 }
 0x726   : > { %v7209_v59 = vpop.f32.mrf.mxu0 }
 0x727   : > { %v6401_v27 = vmul.f32 %v15635_v40, %v6364_v36  ;;  %v6552_v20 = vpop.permute.xlu2 %6551  ;;  %v7210_v9 = vadd.f32 %v7209_v59, %v15842_v63  ;;  %v6548_v24 = vpop.permute.xlu1 %6547  ;;  %v7660_v10 = vadd.f32 %v7628_v5, %v14568_v6  ;;  %v7627_v6 = vadd.f32 %v15928_v57, %v7590_v60 }
 0x728   : > { %6623 = vst.msk [vmem:[#allocation3 + $0xd0] sm:$0xff] %vm430_vm1, %v6552_v20  ;;  %v15952_v40 = vpop.f32.mrf.mxu3  ;;  %v6708_v63 = vpop.permute.xlu0 %6707 }
 0x729   : > { %v6438_v28 = vadd.f32 %v15647_v52, %v6401_v27  ;;  %v7555_v48 = vadd.f32 %v15860_v14, %v7210_v9  ;;  %6621 = vst.msk [vmem:[#allocation3 + $0xc0] sm:$0xff] %vm430_vm1, %v6548_v24  ;;  %11042 = vmatmul.msk.f32.gmra.mxu0 %vm196_vm0, %v15780_v1  ;;  %v15963_v14 = vmax.f32 %v7660_v10, 0.0  ;;  %v11120_v1 = vld [vmem:[%s17568_s1 + $0x750] sm:$0xff]  ;;  %v7659_v36 = vadd.f32 %v7627_v6, %v14556_v58 }
 0x72a   : > { %6653 = vst.msk [vmem:[#allocation3 + $0xc1] sm:$0xff] %vm463_vm2, %v15626_v13  ;;  %8238 = vmatpush.msra.mxu2 %v11120_v1 }
 0x72b   : > { %v15957_v42 = vmax.f32 %v6438_v28, 0.0  ;;  %v7592_v39 = vmul.f32 %v15914_v15, %v7555_v48  ;;  %6781 = vst.msk [vmem:[#allocation3 + $0xbf] sm:$0xfe] %vm593_vm4, %v6708_v63  ;;  %v15961_v52 = vld [vmem:[#allocation3 + $0xb0] sm:$0xff]  ;;  %v15990_v9 = vld [vmem:[#allocation3 + $0xb8] sm:$0xff]  ;;  %v15992_v24 = vmax.f32 %v7659_v36, 0.0 }
 0x72c   : > { %11012 = vmatmul.msk.f32.gmra.mxu3 %vm196_vm0, %v15961_v52  ;;  %11086 = vmatmul.msk.f32.gmra.mxu1 %vm196_vm0, %v15961_v52 }
 0x72d   : > { %v7629_v13 = vadd.f32 %v15928_v57, %v7592_v39  ;;  %7757 = vrot.lane.b32.xlu1 %v15963_v14, %s11516_s7  ;;  %6725 = vrot.lane.b32.xlu2 %v15957_v42, %s11515_s6  ;;  %v7475_v27 = vpop.f32.mrf.mxu1 }
 0x72e   : > { %6565 = vrot.lane.b32.xlu0 %v15957_v42, %s11516_s7  ;;  %v7212_v44 = vpop.f32.mrf.mxu0 }
 0x72f   : > { %v7213_v21 = vadd.f32 %v7212_v44, %v15862_v38  ;;  %v6710_v5 = vpop.permute.xlu1 %6709  ;;  %v7661_v59 = vadd.f32 %v7629_v13, %v14591_v19 }
 0x730   : > { %6782 = vst.msk [vmem:[#allocation3 + $0xc7] sm:$0xff] %vm595_vm5, %v6710_v5  ;;  %v15996_v58 = vpop.f32.mrf.mxu3 }
 0x731   : > { %v7556_v60 = vadd.f32 %v15875_v49, %v7213_v21  ;;  %11043 = vmatmul.msk.f32.gmra.mxu0 %vm196_vm0, %v15804_v2  ;;  %v15994_v38 = vmax.f32 %v7661_v59, 0.0  ;;  %v11196_v2 = vld [vmem:[%s17568_s1 + $0x7b0] sm:$0xff] }
 0x732   : > { %8701 = vmatpush.msrb.mxu0 %v11196_v2 }
 0x733   : > { %v7593_v20 = vmul.f32 %v15914_v15, %v7556_v60 }
 0x734   : > { %11013 = vmatmul.msk.f32.gmra.mxu3 %vm196_vm0, %v15990_v9  ;;  %11087 = vmatmul.msk.f32.gmra.mxu1 %vm196_vm0, %v15990_v9 }
 0x735   : > { %v7630_v19 = vadd.f32 %v15928_v57, %v7593_v20  ;;  %7915 = vrot.lane.b32.xlu2 %v15992_v24, %s11515_s6  ;;  %7759 = vrot.lane.b32.xlu1 %v15994_v38, %s11516_s7  ;;  %v7478_v13 = vpop.f32.mrf.mxu1 }
 0x736   : > { %7755 = vrot.lane.b32.xlu0 %v15992_v24, %s11516_s7  ;;  %v7215_v49 = vpop.f32.mrf.mxu0 }
 0x737   : > { %v7216_v10 = vadd.f32 %v7215_v49, %v15883_v62  ;;  %v7662_v28 = vadd.f32 %v7630_v19, %v14610_v22  ;;  %v16015_v63 = vld [vmem:[#allocation3 + $0xc0] sm:$0xff]  ;;  %v11107_v62 = vld [vmem:[%s17568_s1 + $0x6e8] sm:$0xff] }
 0x738   : > { %8448 = vmatpush.msra.mxu3 %v11107_v62  ;;  %v16045_v36 = vld [vmem:[#allocation3 + $0xc8] sm:$0xff] }
 0x739   : > { %v7557_v48 = vadd.f32 %v15903_v12, %v7216_v10  ;;  %11044 = vmatmul.msk.f32.gmra.mxu0 %vm196_vm0, %v15825_v47  ;;  %v16020_v39 = vmax.f32 %v7662_v28, 0.0  ;;  %v11119_v47 = vld [vmem:[%s17568_s1 + $0x748] sm:$0xff]  ;;  %v7018_v12 = vpop.f32.mrf.mxu3  ;;  %v6714_v28 = vpop.permute.xlu2 %6713 }
 0x73a   : > { %8239 = vmatpush.msra.mxu2 %v11119_v47 }
 0x73b   : > { %v7594_v6 = vmul.f32 %v15914_v15, %v7557_v48 }
 0x73c   : > { %11014 = vmatmul.msk.f32.gmra.mxu3 %vm196_vm0, %v16015_v63  ;;  %11088 = vmatmul.msk.f32.gmra.mxu1 %vm196_vm0, %v16015_v63 }
 0x73d   : > { %v7631_v22 = vadd.f32 %v15928_v57, %v7594_v6  ;;  %7921 = vrot.lane.b32.xlu1 %v16020_v39, %s11515_s6  ;;  %7761 = vrot.lane.b32.xlu2 %v16020_v39, %s11516_s7 }
 0x73e   : > { %7917 = vrot.lane.b32.xlu0 %v15963_v14, %s11515_s6  ;;  %v7218_v1 = vpop.f32.mrf.mxu0 }
 0x73f   : > { %v7219_v33 = vadd.f32 %v7218_v1, %v15908_v61  ;;  %v7663_v44 = vadd.f32 %v7631_v22, %v14622_v0  ;;  %v7481_v61 = vpop.f32.mrf.mxu1  ;;  %v6712_v10 = vpop.permute.xlu1 %6711 }
 0x741   : > { %v7558_v21 = vadd.f32 %v15945_v45, %v7219_v33  ;;  %11045 = vmatmul.msk.f32.gmra.mxu0 %vm196_vm0, %v15848_v55  ;;  %v16047_v59 = vmax.f32 %v7663_v44, 0.0  ;;  %v11195_v55 = vld [vmem:[%s17568_s1 + $0x7a8] sm:$0xff]  ;;  %v7021_v2 = vpop.f32.mrf.mxu3 }
 0x742   : > { %8702 = vmatpush.msrb.mxu0 %v11195_v55 }
 0x743   : > { %v7595_v5 = vmul.f32 %v15914_v15, %v7558_v21 }
 0x744   : > { %11015 = vmatmul.msk.f32.gmra.mxu3 %vm196_vm0, %v16045_v36  ;;  %11089 = vmatmul.msk.f32.gmra.mxu1 %vm196_vm0, %v16045_v36 }
 0x745   : > { %v7632_v0 = vadd.f32 %v15928_v57, %v7595_v5  ;;  %7923 = vrot.lane.b32.xlu1 %v16047_v59, %s11515_s6  ;;  %7763 = vrot.lane.b32.xlu2 %v16047_v59, %s11516_s7 }
 0x746   : > { %7919 = vrot.lane.b32.xlu0 %v15994_v38, %s11515_s6  ;;  %v7221_v45 = vpop.f32.mrf.mxu0 }
 0x747   : > { %v6554_v60 = vpop.permute.xlu0 %6553  ;;  %v7222_v20 = vadd.f32 %v7221_v45, %v15952_v40  ;;  %v7664_v19 = vadd.f32 %v7632_v0, %v14642_v31 }
 0x748   : > { %6624 = vst.msk [vmem:[#allocation3 + $0xd8] sm:$0xff] %vm430_vm1, %v6554_v60 }
 0x749   : > { %6655 = vst.msk [vmem:[#allocation3 + $0xd1] sm:$0xff] %vm463_vm2, %v15695_v7  ;;  %v7559_v49 = vadd.f32 %v7475_v27, %v7222_v20  ;;  %11046 = vmatmul.msk.f32.gmra.mxu0 %vm196_vm0, %v15961_v52  ;;  %v16074_v31 = vmax.f32 %v7664_v19, 0.0  ;;  %v7484_v27 = vpop.f32.mrf.mxu1  ;;  %v7024_v22 = vpop.f32.mrf.mxu3 }
 0x74a   : > { %6656 = vst.msk [vmem:[#allocation3 + $0xd9] sm:$0x7f] %vm465_vm3, %v15717_v30 }
 0x74b   : > { %6783 = vst.msk [vmem:[#allocation3 + $0xcf] sm:$0xfe] %vm593_vm4, %v6712_v10  ;;  %v7596_v40 = vmul.f32 %v15914_v15, %v7559_v49 }
 0x74c   : > { %6784 = vst.msk [vmem:[#allocation3 + $0xd7] sm:$0xff] %vm595_vm5, %v6714_v28 }
 0x74d   : > { %v7633_v48 = vadd.f32 %v15928_v57, %v7596_v40  ;;  %7925 = vrot.lane.b32.xlu2 %v16074_v31, %s11515_s6 }
 0x74e   : > { %7765 = vrot.lane.b32.xlu0 %v16074_v31, %s11516_s7  ;;  %v7224_v7 = vpop.f32.mrf.mxu0 }
 0x74f   : > { %v7225_v30 = vadd.f32 %v7224_v7, %v15996_v58  ;;  %v7665_v52 = vadd.f32 %v7633_v48, %v14653_v17  ;;  %v11118_v17 = vld [vmem:[%s17568_s1 + $0x740] sm:$0xff] }
 0x750   : > { %8240 = vmatpush.msra.mxu2 %v11118_v17 }
 0x751   : > { %v7560_v6 = vadd.f32 %v7478_v13, %v7225_v30  ;;  %11047 = vmatmul.msk.f32.gmra.mxu0 %vm196_vm0, %v15990_v9  ;;  %v16087_v1 = vmax.f32 %v7665_v52, 0.0  ;;  %v11106_v9 = vld [vmem:[%s17568_s1 + $0x6e0] sm:$0xff]  ;;  %v7487_v0 = vpop.f32.mrf.mxu1  ;;  %v7027_v60 = vpop.f32.mrf.mxu3 }
 0x752   : > { %8449 = vmatpush.msra.mxu3 %v11106_v9 }
 0x753   : > { %v7597_v47 = vmul.f32 %v15914_v15, %v7560_v6  ;;  %v6860_v62 = vld [vmem:[#allocation3 + $0xd0] sm:$0xff]  ;;  %v6861_v45 = vld [vmem:[#allocation3 + $0xd8] sm:$0xff] }
 0x754   : > { %11016 = vmatmul.msk.f32.gmra.mxu3 %vm196_vm0, %v6860_v62  ;;  %11090 = vmatmul.msk.f32.gmra.mxu1 %vm196_vm0, %v6860_v62  ;;  %v11117_v6 = vld [vmem:[%s17568_s1 + $0x738] sm:$0xff] }
 0x755   : > { %v7634_v33 = vadd.f32 %v15928_v57, %v7597_v47  ;;  %7927 = vrot.lane.b32.xlu2 %v16087_v1, %s11515_s6  ;;  %8241 = vmatpush.msra.mxu2 %v11117_v6 }
 0x756   : > { %7767 = vrot.lane.b32.xlu0 %v16087_v1, %s11516_s7  ;;  %v7227_v58 = vpop.f32.mrf.mxu0 }
 0x757   : > { %v7228_v13 = vadd.f32 %v7227_v58, %v7018_v12  ;;  %v7666_v44 = vadd.f32 %v7634_v33, %v14669_v34  ;;  %v11194_v12 = vld [vmem:[%s17568_s1 + $0x7a0] sm:$0xff] }
 0x758   : > { %8703 = vmatpush.msrb.mxu0 %v11194_v12 }
 0x759   : > { %v7561_v21 = vadd.f32 %v7481_v61, %v7228_v13  ;;  %11048 = vmatmul.msk.f32.gmra.mxu0 %vm196_vm0, %v16015_v63  ;;  %v16105_v5 = vmax.f32 %v7666_v44, 0.0  ;;  %v7490_v28 = vpop.f32.mrf.mxu1  ;;  %v7030_v48 = vpop.f32.mrf.mxu3 }
 0x75b   : > { %v7598_v55 = vmul.f32 %v15914_v15, %v7561_v21  ;;  %7769 = vrot.lane.b32.xlu1 %v16105_v5, %s11516_s7 }
 0x75c   : > { %11017 = vmatmul.msk.f32.gmra.mxu3 %vm196_vm0, %v6861_v45  ;;  %11091 = vmatmul.msk.f32.gmra.mxu1 %vm196_vm0, %v6861_v45 }
 0x75d   : > { %v7635_v34 = vadd.f32 %v15928_v57, %v7598_v55 }
 0x75e   : > { %7929 = vrot.lane.b32.xlu0 %v16105_v5, %s11515_s6  ;;  %v7230_v63 = vpop.f32.mrf.mxu0 }
 0x75f   : > { %v7231_v61 = vadd.f32 %v7230_v63, %v7021_v2  ;;  %v7667_v20 = vadd.f32 %v7635_v34, %v14692_v3 }
 0x761   : > { %v7562_v19 = vadd.f32 %v7484_v27, %v7231_v61  ;;  %11049 = vmatmul.msk.f32.gmra.mxu0 %vm196_vm0, %v16045_v36  ;;  %v16121_v49 = vmax.f32 %v7667_v20, 0.0  ;;  %v7033_v58 = vpop.f32.mrf.mxu3 }
 0x763   : > { %v7599_v10 = vmul.f32 %v15914_v15, %v7562_v19  ;;  %7771 = vrot.lane.b32.xlu1 %v16121_v49, %s11516_s7 }
 0x765   : > { %v7636_v40 = vadd.f32 %v15928_v57, %v7599_v10 }
 0x766   : > { %7931 = vrot.lane.b32.xlu0 %v16121_v49, %s11515_s6  ;;  %v7233_v3 = vpop.f32.mrf.mxu0 }
 0x767   : > { %v7234_v2 = vadd.f32 %v7233_v3, %v7024_v22  ;;  %v7668_v7 = vadd.f32 %v7636_v40, %v14708_v29  ;;  %v11105_v29 = vld [vmem:[%s17568_s1 + $0x6d8] sm:$0xff]  ;;  %v7493_v22 = vpop.f32.mrf.mxu1 }
 0x768   : > { %8450 = vmatpush.msra.mxu3 %v11105_v29 }
 0x769   : > { %v7563_v30 = vadd.f32 %v7487_v0, %v7234_v2  ;;  %11050 = vmatmul.msk.f32.gmra.mxu0 %vm196_vm0, %v6860_v62  ;;  %v16131_v36 = vmax.f32 %v7668_v7, 0.0  ;;  %v6716_v62 = vpop.permute.xlu2 %6715  ;;  %v7036_v19 = vpop.f32.mrf.mxu3 }
 0x76b   : > { %v7600_v52 = vmul.f32 %v15914_v15, %v7563_v30  ;;  %7933 = vrot.lane.b32.xlu1 %v16131_v36, %s11515_s6  ;;  %7773 = vrot.lane.b32.xlu2 %v16131_v36, %s11516_s7 }
 0x76d   : > { %v7637_v27 = vadd.f32 %v15928_v57, %v7600_v52 }
 0x76e   : > { %v7236_v47 = vpop.f32.mrf.mxu0 }
 0x76f   : > { %v7237_v33 = vadd.f32 %v7236_v47, %v7027_v60  ;;  %v6556_v17 = vpop.permute.xlu0 %6555  ;;  %v7669_v9 = vadd.f32 %v7637_v27, %v14724_v23  ;;  %v11193_v23 = vld [vmem:[%s17568_s1 + $0x798] sm:$0xff]  ;;  %v7496_v12 = vpop.f32.mrf.mxu1 }
 0x770   : > { %6625 = vst.msk [vmem:[#allocation3 + $0xe0] sm:$0xff] %vm430_vm1, %v6556_v17  ;;  %8704 = vmatpush.msrb.mxu0 %v11193_v23 }
 0x771   : > { %v7564_v13 = vadd.f32 %v7490_v28, %v7237_v33  ;;  %11051 = vmatmul.msk.f32.gmra.mxu0 %vm196_vm0, %v6861_v45  ;;  %v16148_v44 = vmax.f32 %v7669_v9, 0.0 }
 0x773   : > { %v7601_v21 = vmul.f32 %v15914_v15, %v7564_v13  ;;  %7935 = vrot.lane.b32.xlu1 %v16148_v44, %s11515_s6  ;;  %7775 = vrot.lane.b32.xlu2 %v16148_v44, %s11516_s7  ;;  %v11192_v13 = vld [vmem:[%s17568_s1 + $0x790] sm:$0xff] }
 0x774   : > { %8705 = vmatpush.msrb.mxu0 %v11192_v13  ;;  %v11191_v13 = vld [vmem:[%s17568_s1 + $0x788] sm:$0xff] }
 0x775   : > { %v7638_v0 = vadd.f32 %v15928_v57, %v7601_v21 }
 0x776   : > { %v7239_v55 = vpop.f32.mrf.mxu0  ;;  %8706 = vmatpush.msrb.mxu0 %v11191_v13 }
 0x777   : > { %v7240_v60 = vadd.f32 %v7239_v55, %v7030_v48  ;;  %v6558_v45 = vpop.permute.xlu1 %6557  ;;  %v6562_v34 = vpop.permute.xlu2 %6561  ;;  %v7670_v63 = vadd.f32 %v7638_v0, %v14744_v16 }
 0x778   : > { %6626 = vst.msk [vmem:[#allocation3 + $0xe8] sm:$0xff] %vm430_vm1, %v6558_v45  ;;  %v6718_v16 = vpop.permute.xlu0 %6717  ;;  %v7499_v52 = vpop.f32.mrf.mxu1 }
 0x779   : > { %v7565_v61 = vadd.f32 %v7493_v22, %v7240_v60  ;;  %6628 = vst.msk [vmem:[#allocation3 + $0xf8] sm:$0xff] %vm430_vm1, %v6562_v34  ;;  %v16162_v20 = vmax.f32 %v7670_v63, 0.0 }
 0x77a   : > { %6657 = vst.msk [vmem:[#allocation3 + $0xe1] sm:$0xff] %vm463_vm2, %v15816_v18  ;;  %v11116_v18 = vld [vmem:[%s17568_s1 + $0x730] sm:$0xff] }
 0x77b   : > { %v7602_v10 = vmul.f32 %v15914_v15, %v7565_v61  ;;  %6658 = vst.msk [vmem:[#allocation3 + $0xe9] sm:$0x7f] %vm465_vm3, %v15834_v53  ;;  %7937 = vrot.lane.b32.xlu2 %v16162_v20, %s11515_s6  ;;  %7777 = vrot.lane.b32.xlu0 %v16162_v20, %s11516_s7  ;;  %v11104_v53 = vld [vmem:[%s17568_s1 + $0x6d0] sm:$0xff] }
 0x77c   : > { %6785 = vst.msk [vmem:[#allocation3 + $0xdf] sm:$0xfe] %vm593_vm4, %v6716_v62  ;;  %8242 = vmatpush.msra.mxu2 %v11116_v18  ;;  %8451 = vmatpush.msra.mxu3 %v11104_v53 }
 0x77d   : > { %v7639_v28 = vadd.f32 %v15928_v57, %v7602_v10  ;;  %6786 = vst.msk [vmem:[#allocation3 + $0xe7] sm:$0xff] %vm595_vm5, %v6718_v16 }
 0x77e   : > { %6660 = vst.msk [vmem:[#allocation3 + $0xf9] sm:$0x7f] %vm465_vm3, %v15894_v4  ;;  %v7242_v40 = vpop.f32.mrf.mxu0  ;;  %v7039_v4 = vpop.f32.mrf.mxu3 }
 0x77f   : > { %v7243_v48 = vadd.f32 %v7242_v40, %v7033_v58  ;;  %v6564_v3 = vpop.permute.xlu2 %6563  ;;  %v7671_v2 = vadd.f32 %v7639_v28, %v14762_v11 }
 0x780   : > { %6629 = vst.msk [vmem:[#allocation3 + $0x100] sm:$0xff] %vm430_vm1, %v6564_v3  ;;  %v11115_v3 = vld [vmem:[%s17568_s1 + $0x728] sm:$0xff] }
 0x781   : > { %v7566_v7 = vadd.f32 %v7496_v12, %v7243_v48  ;;  %v16186_v30 = vmax.f32 %v7671_v2, 0.0  ;;  %8243 = vmatpush.msra.mxu2 %v11115_v3 }
 0x783   : > { %v7603_v27 = vmul.f32 %v15914_v15, %v7566_v7  ;;  %7939 = vrot.lane.b32.xlu2 %v16186_v30, %s11515_s6  ;;  %7779 = vrot.lane.b32.xlu0 %v16186_v30, %s11516_s7  ;;  %v11103_v7 = vld [vmem:[%s17568_s1 + $0x6c8] sm:$0xff] }
 0x784   : > { %v6862_v6 = vld [vmem:[#allocation3 + $0xe0] sm:$0xff]  ;;  %8452 = vmatpush.msra.mxu3 %v11103_v7 }
 0x785   : > { %v7640_v29 = vadd.f32 %v15928_v57, %v7603_v27  ;;  %11018 = vmatmul.msk.f32.gmra.mxu3 %vm196_vm0, %v6862_v6  ;;  %11052 = vmatmul.msk.f32.gmra.mxu0 %vm196_vm0, %v6862_v6 }
 0x786   : > { %11092 = vmatmul.msk.f32.gmra.mxu1 %vm196_vm0, %v6862_v6  ;;  %v7245_v11 = vpop.f32.mrf.mxu0  ;;  %v7042_v23 = vpop.f32.mrf.mxu3 }
 0x787   : > { %v7246_v22 = vadd.f32 %v7245_v11, %v7036_v19  ;;  %v6560_v47 = vpop.permute.xlu1 %6559  ;;  %v16197_v62 = vpop.permute.xlu2 %6725  ;;  %v7672_v33 = vadd.f32 %v7640_v29, %v14785_v50  ;;  %v11102_v29 = vld [vmem:[%s17568_s1 + $0x6c0] sm:$0xff] }
 0x788   : > { %6627 = vst.msk [vmem:[#allocation3 + $0xf0] sm:$0xff] %vm430_vm1, %v6560_v47  ;;  %v6720_v9 = vpop.permute.xlu0 %6719  ;;  %v7502_v50 = vpop.f32.mrf.mxu1  ;;  %8453 = vmatpush.msra.mxu3 %v11102_v29 }
 0x789   : > { %v7567_v17 = vadd.f32 %v7499_v52, %v7246_v22  ;;  %6659 = vst.msk [vmem:[#allocation3 + $0xf1] sm:$0xff] %vm463_vm2, %v15869_v35  ;;  %v16203_v58 = vmax.f32 %v7672_v33, 0.0  ;;  %v6863_v35 = vld [vmem:[#allocation3 + $0xe8] sm:$0xff] }
 0x78a   : > { %6787 = vst.msk [vmem:[#allocation3 + $0xef] sm:$0xfe] %vm593_vm4, %v6720_v9 }
 0x78b   : > { %v7604_v21 = vmul.f32 %v15914_v15, %v7567_v17  ;;  %7941 = vrot.lane.b32.xlu0 %v16203_v58, %s11515_s6  ;;  %7781 = vrot.lane.b32.xlu1 %v16203_v58, %s11516_s7 }
 0x78d   : > { %v7641_v0 = vadd.f32 %v15928_v57, %v7604_v21  ;;  %11019 = vmatmul.msk.f32.gmra.mxu3 %vm196_vm0, %v6863_v35  ;;  %11053 = vmatmul.msk.f32.gmra.mxu0 %vm196_vm0, %v6863_v35 }
 0x78e   : > { %11093 = vmatmul.msk.f32.gmra.mxu1 %vm196_vm0, %v6863_v35  ;;  %v7248_v55 = vpop.f32.mrf.mxu0  ;;  %v7045_v2 = vpop.f32.mrf.mxu3 }
 0x78f   : > { %v7249_v60 = vadd.f32 %v7248_v55, %v7039_v4  ;;  %v6722_v45 = vpop.permute.xlu1 %6721  ;;  %v16218_v34 = vpop.permute.xlu2 %7915  ;;  %v7673_v63 = vadd.f32 %v7641_v0, %v14805_v46  ;;  %v11114_v4 = vld [vmem:[%s17568_s1 + $0x720] sm:$0xff] }
 0x790   : > { %6788 = vst.msk [vmem:[#allocation3 + $0xf7] sm:$0xff] %vm595_vm5, %v6722_v45  ;;  %v7505_v16 = vpop.f32.mrf.mxu1  ;;  %8244 = vmatpush.msra.mxu2 %v11114_v4  ;;  %v11190_v55 = vld [vmem:[%s17568_s1 + $0x780] sm:$0xff] }
 0x791   : > { %v7568_v12 = vadd.f32 %v7502_v50, %v7249_v60  ;;  %v16222_v61 = vmax.f32 %v7673_v63, 0.0  ;;  %8707 = vmatpush.msrb.mxu0 %v11190_v55 }
 0x793   : > { %v7605_v19 = vmul.f32 %v15914_v15, %v7568_v12  ;;  %7943 = vrot.lane.b32.xlu0 %v16222_v61, %s11515_s6  ;;  %7783 = vrot.lane.b32.xlu1 %v16222_v61, %s11516_s7 }
 0x795   : > { %v7642_v10 = vadd.f32 %v15928_v57, %v7605_v19 }
 0x796   : > { %v7251_v28 = vpop.f32.mrf.mxu0 }
 0x797   : > { %v7252_v18 = vadd.f32 %v7251_v28, %v7042_v23  ;;  %v6724_v53 = vpop.permute.xlu1 %6723  ;;  %v7762_v46 = vpop.permute.xlu2 %7761  ;;  %v6864_v40 = vld [vmem:[#allocation3 + $0xf0] sm:$0xff]  ;;  %v7674_v48 = vadd.f32 %v7642_v10, %v14822_v43  ;;  %v6865_v17 = vld [vmem:[#allocation3 + $0xf8] sm:$0xff] }
 0x798   : > { %7854 = vst.msk [vmem:[#allocation2 + $0x28] sm:$0xff] %vm430_vm1, %v7762_v46  ;;  %11020 = vmatmul.msk.f32.gmra.mxu3 %vm196_vm0, %v6864_v40  ;;  %11054 = vmatmul.msk.f32.gmra.mxu0 %vm196_vm0, %v6864_v40  ;;  %v7508_v21 = vpop.f32.mrf.mxu1 }
 0x799   : > { %v7569_v52 = vadd.f32 %v7505_v16, %v7252_v18  ;;  %7886 = vst.msk [vmem:[#allocation2 + $0x29] sm:$0x7f] %vm465_vm3, %v16020_v39  ;;  %11094 = vmatmul.msk.f32.gmra.mxu1 %vm196_vm0, %v6864_v40  ;;  %v16243_v43 = vmax.f32 %v7674_v48, 0.0 }
 0x79b   : > { %v7606_v27 = vmul.f32 %v15914_v15, %v7569_v52  ;;  %7945 = vrot.lane.b32.xlu1 %v16243_v43, %s11515_s6  ;;  %7785 = vrot.lane.b32.xlu2 %v16243_v43, %s11516_s7 }
 0x79d   : > { %v7643_v6 = vadd.f32 %v15928_v57, %v7606_v27 }
 0x79e   : > { %v7254_v11 = vpop.f32.mrf.mxu0 }
 0x79f   : > { %v7255_v22 = vadd.f32 %v7254_v11, %v7045_v2  ;;  %v7758_v47 = vpop.permute.xlu1 %7757  ;;  %v7764_v33 = vpop.permute.xlu2 %7763  ;;  %v7675_v9 = vadd.f32 %v7643_v6, %v14834_v56 }
 0x7a0   : > { %7852 = vst.msk [vmem:[#allocation2 + $0x18] sm:$0xff] %vm430_vm1, %v7758_v47  ;;  %v6566_v50 = vpop.permute.xlu0 %6565  ;;  %11021 = vmatmul.msk.f32.gmra.mxu3 %vm196_vm0, %v6865_v17  ;;  %11055 = vmatmul.msk.f32.gmra.mxu0 %vm196_vm0, %v6865_v17  ;;  %v7048_v56 = vpop.f32.mrf.mxu3 }
 0x7a1   : > { %v7570_v35 = vadd.f32 %v7508_v21, %v7255_v22  ;;  %7884 = vst.msk [vmem:[#allocation2 + $0x19] sm:$0x7f] %vm465_vm3, %v15963_v14  ;;  %11095 = vmatmul.msk.f32.gmra.mxu1 %vm196_vm0, %v6865_v17  ;;  %v16267_v0 = vmax.f32 %v7675_v9, 0.0 }
 0x7a2   : > { %7855 = vst.msk [vmem:[#allocation2 + $0x30] sm:$0xff] %vm430_vm1, %v7764_v33 }
 0x7a3   : > { %v7607_v23 = vmul.f32 %v15914_v15, %v7570_v35  ;;  %6630 = vst.msk [vmem:[#allocation3 + $0x108] sm:$0xff] %vm430_vm1, %v6566_v50  ;;  %7947 = vrot.lane.b32.xlu1 %v16267_v0, %s11515_s6  ;;  %7787 = vrot.lane.b32.xlu2 %v16267_v0, %s11516_s7  ;;  %v7329_v50 = vld [vmem:[#allocation3 + $0x110] sm:$0xff]  ;;  %v8043_v35 = vld [vmem:[#allocation2] sm:$0xff] }
 0x7a4   : > { %6661 = vst.msk [vmem:[#allocation3 + $0x101] sm:$0xff] %vm463_vm2, %v15930_v26 }
 0x7a5   : > { %v7644_v60 = vadd.f32 %v15928_v57, %v7607_v23  ;;  %6662 = vst.msk [vmem:[#allocation3 + $0x109] sm:$0x7f] %vm465_vm3, %v15957_v42 }
 0x7a6   : > { %6789 = vst.msk [vmem:[#allocation3 + $0xff] sm:$0xfe] %vm593_vm4, %v6724_v53  ;;  %v7257_v45 = vpop.f32.mrf.mxu0 }
 0x7a7   : > { %6790 = vst.msk [vmem:[#allocation3 + $0x107] sm:$0xff] %vm595_vm5, %v16197_v62  ;;  %v7258_v63 = vadd.f32 %v7257_v45, %v7048_v56  ;;  %v7760_v12 = vpop.permute.xlu1 %7759  ;;  %v7676_v19 = vadd.f32 %v7644_v60, %v14846_v25  ;;  %v7926_v52 = vpop.permute.xlu2 %7925 }
 0x7a8   : > { %7853 = vst.msk [vmem:[#allocation2 + $0x20] sm:$0xff] %vm430_vm1, %v7760_v12  ;;  %v7756_v10 = vpop.permute.xlu0 %7755  ;;  %v7051_v25 = vpop.f32.mrf.mxu3 }
 0x7a9   : > { %v7511_v26 = vpop.f32.mrf.mxu1  ;;  %7885 = vst.msk [vmem:[#allocation2 + $0x21] sm:$0xff] %vm463_vm2, %v15994_v38  ;;  %v16291_v16 = vmax.f32 %v7676_v19, 0.0 }
 0x7aa   : > { %v7571_v42 = vadd.f32 %v7511_v26, %v7258_v63  ;;  %7851 = vst.msk [vmem:[#allocation2 + $0x10] sm:$0xff] %vm430_vm1, %v7756_v10 }
 0x7ab   : > { %7883 = vst.msk [vmem:[#allocation2 + $0x11] sm:$0xff] %vm463_vm2, %v15992_v24  ;;  %7949 = vrot.lane.b32.xlu2 %v16291_v16, %s11515_s6  ;;  %7789 = vrot.lane.b32.xlu0 %v16291_v16, %s11516_s7 }
 0x7ac   : > { %v7608_v62 = vmul.f32 %v15914_v15, %v7571_v42  ;;  %8011 = vst.msk [vmem:[#allocation2 + $0xf] sm:$0xfe] %vm593_vm4, %v16218_v34 }
 0x7ae   : > { %v7645_v28 = vadd.f32 %v15928_v57, %v7608_v62  ;;  %v6866_v18 = vld [vmem:[#allocation3 + $0x100] sm:$0xff]  ;;  %v7260_v53 = vpop.f32.mrf.mxu0  ;;  %v6867_v29 = vld [vmem:[#allocation3 + $0x108] sm:$0xff]  ;;  %v7330_v62 = vld [vmem:[#allocation3 + $0x118] sm:$0xff] }
 0x7af   : > { %11022 = vmatmul.msk.f32.gmra.mxu3 %vm196_vm0, %v6866_v18  ;;  %11096 = vmatmul.msk.f32.gmra.mxu1 %vm196_vm0, %v6866_v18  ;;  %v7261_v46 = vadd.f32 %v7260_v53, %v7051_v25  ;;  %v7922_v40 = vpop.permute.xlu1 %7921  ;;  %v7928_v56 = vpop.permute.xlu2 %7927 }
 0x7b0   : > { %8014 = vst.msk [vmem:[#allocation2 + $0x27] sm:$0xff] %vm595_vm5, %v7922_v40  ;;  %v7918_v48 = vpop.permute.xlu0 %7917  ;;  %v7677_v3 = vadd.f32 %v7645_v28, %v14865_v51  ;;  %v7054_v27 = vpop.f32.mrf.mxu3  ;;  %v8044_v28 = vld [vmem:[#allocation2 + $0x8] sm:$0xff] }
 0x7b1   : > { %v7514_v2 = vpop.f32.mrf.mxu1  ;;  %8012 = vst.msk [vmem:[#allocation2 + $0x17] sm:$0xff] %vm595_vm5, %v7918_v48 }
 0x7b2   : > { %v7572_v7 = vadd.f32 %v7514_v2, %v7261_v46  ;;  %v16309_v34 = vmax.f32 %v7677_v3, 0.0 }
 0x7b4   : > { %v7609_v4 = vmul.f32 %v15914_v15, %v7572_v7  ;;  %7951 = vrot.lane.b32.xlu2 %v16309_v34, %s11515_s6  ;;  %7791 = vrot.lane.b32.xlu0 %v16309_v34, %s11516_s7 }
 0x7b6   : > { %v7646_v6 = vadd.f32 %v15928_v57, %v7609_v4  ;;  %v7263_v51 = vpop.f32.mrf.mxu0 }
 0x7b7   : > { %11023 = vmatmul.msk.f32.gmra.mxu3 %vm196_vm0, %v6867_v29  ;;  %11097 = vmatmul.msk.f32.gmra.mxu1 %vm196_vm0, %v6867_v29  ;;  %v7264_v11 = vadd.f32 %v7263_v51, %v7054_v27  ;;  %v7924_v25 = vpop.permute.xlu1 %7923  ;;  %v8552_v40 = vld [vmem:[#allocation2 + $0x28] sm:$0xff] }
 0x7b8   : > { %v7920_v22 = vpop.permute.xlu0 %7919  ;;  %v8088_v47 = vld [vmem:[#allocation2 + $0x10] sm:$0xff]  ;;  %v7678_v33 = vadd.f32 %v7646_v6, %v14882_v37  ;;  %v7057_v37 = vpop.f32.mrf.mxu3  ;;  %v8089_v63 = vld [vmem:[#allocation2 + $0x18] sm:$0xff] }
 0x7b9   : > { %v7517_v17 = vpop.f32.mrf.mxu1  ;;  %8013 = vst.msk [vmem:[#allocation2 + $0x1f] sm:$0xfe] %vm593_vm4, %v7920_v22  ;;  %11126 = vmatmul.msk.f32.vlgmr.msra.gmra.mxu2 %vm196_vm0, %v8088_v47 }
 0x7ba   : > { %v7573_v9 = vadd.f32 %v7517_v17, %v7264_v11  ;;  %v16322_v13 = vmax.f32 %v7678_v33, 0.0 }
 0x7bc   : > { %v7610_v21 = vmul.f32 %v15914_v15, %v7573_v9  ;;  %7953 = vrot.lane.b32.xlu0 %v16322_v13, %s11515_s6  ;;  %7793 = vrot.lane.b32.xlu1 %v16322_v13, %s11516_s7 }
 0x7be   : > { %v7647_v23 = vadd.f32 %v15928_v57, %v7610_v21  ;;  %v7266_v55 = vpop.f32.mrf.mxu0 }
 0x7bf   : > { %11098 = vmatmul.msk.f32.gmra.mxu1 %vm196_vm0, %v7329_v50  ;;  %11158 = vmatmul.msk.f32.vlgmr.msra.gmra.mxu3 %vm196_vm0, %v8043_v35  ;;  %v7267_v60 = vadd.f32 %v7266_v55, %v7057_v37 }
 0x7c0   : > { %v7766_v45 = vpop.permute.xlu0 %7765  ;;  %v16332_v12 = vld [vmem:[#allocation2 + $0x20] sm:$0xff]  ;;  %v7679_v19 = vadd.f32 %v7647_v23, %v14901_v41  ;;  %v7060_v7 = vpop.f32.mrf.mxu3 }
 0x7c1   : > { %v7520_v10 = vpop.f32.mrf.mxu1  ;;  %7856 = vst.msk [vmem:[#allocation2 + $0x38] sm:$0xff] %vm430_vm1, %v7766_v45  ;;  %11127 = vmatmul.msk.f32.gmra.mxu2 %vm196_vm0, %v8089_v63  ;;  %11202 = vmatmul.msk.f32.vlgmr.msrb.gmra.mxu0 %vm196_vm0, %v16332_v12 }
 0x7c2   : > { %v7574_v26 = vadd.f32 %v7520_v10, %v7267_v60  ;;  %7887 = vst.msk [vmem:[#allocation2 + $0x31] sm:$0xff] %vm463_vm2, %v16047_v59  ;;  %v16341_v42 = vmax.f32 %v7679_v19, 0.0  ;;  %v11259_v10 = vld [vmem:[%s17568_s1 + $0x898] sm:$0xff] }
 0x7c3   : > { %7888 = vst.msk [vmem:[#allocation2 + $0x39] sm:$0x7f] %vm465_vm3, %v16074_v31  ;;  %9453 = vmatpush.msrb.mxu1 %v11259_v10 }
 0x7c4   : > { %v7611_v41 = vmul.f32 %v15914_v15, %v7574_v26  ;;  %8015 = vst.msk [vmem:[#allocation2 + $0x2f] sm:$0xfe] %vm593_vm4, %v7924_v25  ;;  %7955 = vrot.lane.b32.xlu0 %v16341_v42, %s11515_s6  ;;  %7795 = vrot.lane.b32.xlu1 %v16341_v42, %s11516_s7 }
 0x7c5   : > { %8016 = vst.msk [vmem:[#allocation2 + $0x37] sm:$0xff] %vm595_vm5, %v7926_v52  ;;  %v7774_v18 = vpop.permute.xlu2 %7773 }
 0x7c6   : > { %v7648_v53 = vadd.f32 %v15928_v57, %v7611_v41  ;;  %7860 = vst.msk [vmem:[#allocation2 + $0x58] sm:$0xff] %vm430_vm1, %v7774_v18  ;;  %v7269_v2 = vpop.f32.mrf.mxu0 }
 0x7c7   : > { %11099 = vmatmul.msk.f32.gmra.mxu1 %vm196_vm0, %v7330_v62  ;;  %11159 = vmatmul.msk.f32.gmra.mxu3 %vm196_vm0, %v8044_v28  ;;  %7892 = vst.msk [vmem:[#allocation2 + $0x59] sm:$0x7f] %vm465_vm3, %v16131_v36 }
 0x7c8   : > { %v7768_v46 = vpop.permute.xlu0 %7767  ;;  %v7680_v48 = vadd.f32 %v7648_v53, %v14916_v8  ;;  %v7270_v8 = vadd.f32 %v7269_v2, %v7060_v7  ;;  %v7063_v17 = vpop.f32.mrf.mxu3  ;;  %v11246_v7 = vld [vmem:[%s17568_s1 + $0x830] sm:$0xff] }
 0x7c9   : > { %7857 = vst.msk [vmem:[#allocation2 + $0x40] sm:$0xff] %vm430_vm1, %v7768_v46  ;;  %11128 = vmatmul.msk.f32.gmra.mxu2 %vm196_vm0, %v16332_v12  ;;  %11203 = vmatmul.msk.f32.gmra.mxu0 %vm196_vm0, %v8552_v40 }
 0x7ca   : > { %v16363_v3 = vmax.f32 %v7680_v48, 0.0 }
 0x7cc   : > { %7957 = vrot.lane.b32.xlu1 %v16363_v3, %s11515_s6  ;;  %7797 = vrot.lane.b32.xlu2 %v16363_v3, %s11516_s7  ;;  %v8553_v6 = vld [vmem:[#allocation2 + $0x30] sm:$0xff]  ;;  %v8554_v35 = vld [vmem:[#allocation2 + $0x38] sm:$0xff] }
 0x7cd   : > { %v7770_v52 = vpop.permute.xlu1 %7769  ;;  %v7776_v27 = vpop.permute.xlu2 %7775 }
 0x7ce   : > { %7858 = vst.msk [vmem:[#allocation2 + $0x48] sm:$0xff] %vm430_vm1, %v7770_v52  ;;  %v7272_v22 = vpop.f32.mrf.mxu0  ;;  %v11334_v52 = vld [vmem:[%s17568_s1 + $0x8f0] sm:$0xff] }
 0x7cf   : > { %11160 = vmatmul.msk.f32.gmra.mxu3 %vm196_vm0, %v8088_v47  ;;  %7861 = vst.msk [vmem:[#allocation2 + $0x60] sm:$0xff] %vm430_vm1, %v7776_v27  ;;  %v7273_v21 = vadd.f32 %v7272_v22, %v7063_v17 }
 0x7d0   : > { %7889 = vst.msk [vmem:[#allocation2 + $0x41] sm:$0xff] %vm463_vm2, %v16087_v1  ;;  %v7930_v4 = vpop.permute.xlu0 %7929 }
 0x7d1   : > { %7890 = vst.msk [vmem:[#allocation2 + $0x49] sm:$0x7f] %vm465_vm3, %v16105_v5  ;;  %v7523_v29 = vpop.f32.mrf.mxu1  ;;  %11129 = vmatmul.msk.f32.gmra.mxu2 %vm196_vm0, %v8552_v40  ;;  %11204 = vmatmul.msk.f32.gmra.mxu0 %vm196_vm0, %v8553_v6 }
 0x7d2   : > { %v7575_v51 = vadd.f32 %v7523_v29, %v7270_v8  ;;  %8017 = vst.msk [vmem:[#allocation2 + $0x3f] sm:$0xfe] %vm593_vm4, %v7928_v56 }
 0x7d3   : > { %8018 = vst.msk [vmem:[#allocation2 + $0x47] sm:$0xff] %vm595_vm5, %v7930_v4  ;;  %v11258_v4 = vld [vmem:[%s17568_s1 + $0x890] sm:$0xff] }
 0x7d4   : > { %v7612_v11 = vmul.f32 %v15914_v15, %v7575_v51  ;;  %9454 = vmatpush.msrb.mxu1 %v11258_v4 }
 0x7d5   : > { %v7772_v47 = vpop.permute.xlu1 %7771  ;;  %v7938_v19 = vpop.permute.xlu2 %7937 }
 0x7d6   : > { %v7649_v33 = vadd.f32 %v15928_v57, %v7612_v11  ;;  %7859 = vst.msk [vmem:[#allocation2 + $0x50] sm:$0xff] %vm430_vm1, %v7772_v47  ;;  %v7275_v28 = vpop.f32.mrf.mxu0 }
 0x7d7   : > { %11161 = vmatmul.msk.f32.gmra.mxu3 %vm196_vm0, %v8089_v63  ;;  %7891 = vst.msk [vmem:[#allocation2 + $0x51] sm:$0xff] %vm463_vm2, %v16121_v49 }
 0x7d8   : > { %v7681_v9 = vadd.f32 %v7649_v33, %v14956_v32  ;;  %v7932_v50 = vpop.permute.xlu0 %7931  ;;  %v16473_v33 = vld [vmem:[%s17569_s2 + $0x5] ss:$0 sm:$0xff] }
 0x7d9   : > { %v7526_v56 = vpop.f32.mrf.mxu1  ;;  %8019 = vst.msk [vmem:[#allocation2 + $0x4f] sm:$0xfe] %vm593_vm4, %v7932_v50  ;;  %11130 = vmatmul.msk.f32.gmra.mxu2 %vm196_vm0, %v8553_v6  ;;  %11205 = vmatmul.msk.f32.gmra.mxu0 %vm196_vm0, %v8554_v35 }
 0x7da   : > { %v7576_v37 = vadd.f32 %v7526_v56, %v7273_v21  ;;  %v16390_v23 = vmax.f32 %v7681_v9, 0.0  ;;  %v8555_v63 = vld [vmem:[#allocation2 + $0x40] sm:$0xff] }
 0x7db   : > { %v16483_v21 = vld [vmem:[%s17570_s3 + $0x5] ss:$0 sm:$0xff] }
 0x7dc   : > { %v7613_v55 = vmul.f32 %v15914_v15, %v7576_v37  ;;  %7959 = vrot.lane.b32.xlu1 %v16390_v23, %s11515_s6  ;;  %7799 = vrot.lane.b32.xlu2 %v16390_v23, %s11516_s7 }
 0x7dd   : > { %v7934_v32 = vpop.permute.xlu1 %7933  ;;  %v7940_v26 = vpop.permute.xlu2 %7939 }
 0x7de   : > { %v7650_v60 = vadd.f32 %v15928_v57, %v7613_v55  ;;  %8020 = vst.msk [vmem:[#allocation2 + $0x57] sm:$0xff] %vm595_vm5, %v7934_v32  ;;  %v8556_v57 = vld [vmem:[#allocation2 + $0x48] sm:$0xff]  ;;  %v7278_v8 = vpop.f32.mrf.mxu0  ;;  %v17608_v55 = vld [vmem:[#allocation10_spill] sm:$0xff] }
 0x7df   : > { %11162 = vmatmul.msk.f32.gmra.mxu3 %vm196_vm0, %v16332_v12  ;;  %v11335_v12 = vld [vmem:[%s17568_s1 + $0x8f8] sm:$0xff] }
 0x7e0   : > { %v7682_v45 = vadd.f32 %v7650_v60, %v14976_v54  ;;  %v11247_v54 = vld [vmem:[%s17568_s1 + $0x838] sm:$0xff]  ;;  %9916 = vmatpush.msrb.mxu3 %v11335_v12 }
 0x7e1   : > { %11131 = vmatmul.msk.f32.gmra.mxu2 %vm196_vm0, %v8554_v35  ;;  %11206 = vmatmul.msk.f32.gmra.mxu0 %vm196_vm0, %v8555_v63 }
 0x7e2   : > { %v16404_v15 = vmax.f32 %v7682_v45, 0.0  ;;  %9662 = vmatpush.msrb.mxu2 %v11247_v54  ;;  %9917 = vmatpush.msrb.mxu3 %v11334_v52 }
 0x7e4   : > { %7961 = vrot.lane.b32.xlu2 %v16404_v15, %s11515_s6  ;;  %7801 = vrot.lane.b32.xlu0 %v16404_v15, %s11516_s7 }
 0x7e5   : > { %v7936_v41 = vpop.permute.xlu1 %7935  ;;  %v16428_v62 = vld [vmem:[#allocation2 + $0x50] sm:$0xff]  ;;  %v16440_v46 = vld [vmem:[#allocation2 + $0x58] sm:$0xff]  ;;  %9663 = vmatpush.msrb.mxu2 %v11246_v7 }
 0x7e6   : > { %v7281_v56 = vpop.f32.mrf.mxu0 }
 0x7e7   : > { %11163 = vmatmul.msk.f32.gmra.mxu3 %vm196_vm0, %v8552_v40  ;;  %v7066_v40 = vpop.f32.mrf.mxu3 }
 0x7e8   : > { %v7276_v29 = vadd.f32 %v7275_v28, %v7066_v40  ;;  %v11245_v28 = vld [vmem:[%s17568_s1 + $0x828] sm:$0xff] }
 0x7e9   : > { %11132 = vmatmul.msk.f32.gmra.mxu2 %vm196_vm0, %v8555_v63  ;;  %11207 = vmatmul.msk.f32.gmra.mxu0 %vm196_vm0, %v8556_v57 }
 0x7ea   : > { %9664 = vmatpush.msrb.mxu2 %v11245_v28  ;;  %v11332_v28 = vld [vmem:[%s17568_s1 + $0x8e0] sm:$0xff] }
 0x7ed   : > { %v7778_v25 = vpop.permute.xlu0 %7777 }
 0x7ee   : > { %7862 = vst.msk [vmem:[#allocation2 + $0x68] sm:$0xff] %vm430_vm1, %v7778_v25 }
 0x7ef   : > { %11164 = vmatmul.msk.f32.gmra.mxu3 %vm196_vm0, %v8553_v6  ;;  %7893 = vst.msk [vmem:[#allocation2 + $0x61] sm:$0xff] %vm463_vm2, %v16148_v44  ;;  %v7069_v47 = vpop.f32.mrf.mxu3 }
 0x7f0   : > { %7894 = vst.msk [vmem:[#allocation2 + $0x69] sm:$0x7f] %vm465_vm3, %v16162_v20  ;;  %v7279_v37 = vadd.f32 %v7278_v8, %v7069_v47 }
 0x7f1   : > { %8021 = vst.msk [vmem:[#allocation2 + $0x5f] sm:$0xfe] %vm593_vm4, %v7936_v41  ;;  %11133 = vmatmul.msk.f32.gmra.mxu2 %vm196_vm0, %v8556_v57  ;;  %11208 = vmatmul.msk.f32.gmra.mxu0 %vm196_vm0, %v16428_v62  ;;  %v7284_v41 = vpop.f32.mrf.mxu0 }
 0x7f2   : > { %8022 = vst.msk [vmem:[#allocation2 + $0x67] sm:$0xff] %vm595_vm5, %v7938_v19 }
 0x7f5   : > { %v7786_v18 = vpop.permute.xlu2 %7785  ;;  %v7780_v53 = vpop.permute.xlu0 %7779 }
 0x7f6   : > { %7866 = vst.msk [vmem:[#allocation2 + $0x88] sm:$0xff] %vm430_vm1, %v7786_v18 }
 0x7f7   : > { %11165 = vmatmul.msk.f32.gmra.mxu3 %vm196_vm0, %v8554_v35  ;;  %7863 = vst.msk [vmem:[#allocation2 + $0x70] sm:$0xff] %vm430_vm1, %v7780_v53 }
 0x7f8   : > { %7898 = vst.msk [vmem:[#allocation2 + $0x89] sm:$0x7f] %vm465_vm3, %v16243_v43 }
 0x7f9   : > { %11134 = vmatmul.msk.f32.gmra.mxu2 %vm196_vm0, %v16428_v62  ;;  %11209 = vmatmul.msk.f32.gmra.mxu0 %vm196_vm0, %v16440_v46  ;;  %v16460_v6 = vld [vmem:[#allocation2 + $0x60] sm:$0xff]  ;;  %v16487_v35 = vld [vmem:[#allocation2 + $0x68] sm:$0xff] }
 0x7fd   : > { %v7782_v48 = vpop.permute.xlu1 %7781  ;;  %v7788_v2 = vpop.permute.xlu2 %7787 }
 0x7fe   : > { %7864 = vst.msk [vmem:[#allocation2 + $0x78] sm:$0xff] %vm430_vm1, %v7782_v48  ;;  %v7942_v27 = vpop.permute.xlu0 %7941 }
 0x7ff   : > { %11166 = vmatmul.msk.f32.gmra.mxu3 %vm196_vm0, %v8555_v63  ;;  %7867 = vst.msk [vmem:[#allocation2 + $0x90] sm:$0xff] %vm430_vm1, %v7788_v2 }
 0x800   : > { %7895 = vst.msk [vmem:[#allocation2 + $0x71] sm:$0xff] %vm463_vm2, %v16186_v30 }
 0x801   : > { %7896 = vst.msk [vmem:[#allocation2 + $0x79] sm:$0x7f] %vm465_vm3, %v16203_v58  ;;  %11135 = vmatmul.msk.f32.gmra.mxu2 %vm196_vm0, %v16440_v46  ;;  %11210 = vmatmul.msk.f32.gmra.mxu0 %vm196_vm0, %v16460_v6 }
 0x802   : > { %8023 = vst.msk [vmem:[#allocation2 + $0x6f] sm:$0xfe] %vm593_vm4, %v7940_v26  ;;  %v17609_v26 = vld [vmem:[#allocation9_spill] sm:$0xff]  ;;  %v7287_v8 = vpop.f32.mrf.mxu0 }
 0x803   : > { %8024 = vst.msk [vmem:[#allocation2 + $0x77] sm:$0xff] %vm595_vm5, %v7942_v27  ;;  %v7529_v51 = vpop.f32.mrf.mxu1 }
 0x804   : > { %v7577_v11 = vadd.f32 %v7529_v51, %v7276_v29  ;;  %v11257_v29 = vld [vmem:[%s17568_s1 + $0x888] sm:$0xff]  ;;  %v17610_v51 = vld [vmem:[#allocation11_spill] sm:$0xff] }
 0x805   : > { %v7784_v22 = vpop.permute.xlu1 %7783  ;;  %v7950_v18 = vpop.permute.xlu2 %7949  ;;  %9455 = vmatpush.msrb.mxu1 %v11257_v29  ;;  %v17612_v29 = vld [vmem:[#allocation8_spill] sm:$0xff] }
 0x806   : > { %v7614_v17 = vmul.f32 %v16473_v33, %v7577_v11  ;;  %7865 = vst.msk [vmem:[#allocation2 + $0x80] sm:$0xff] %vm430_vm1, %v7784_v22  ;;  %v7944_v9 = vpop.permute.xlu0 %7943 }
 0x807   : > { %11167 = vmatmul.msk.f32.gmra.mxu3 %vm196_vm0, %v8556_v57  ;;  %7897 = vst.msk [vmem:[#allocation2 + $0x81] sm:$0xff] %vm463_vm2, %v16222_v61 }
 0x808   : > { %v7651_v50 = vadd.f32 %v16483_v21, %v7614_v17  ;;  %8025 = vst.msk [vmem:[#allocation2 + $0x7f] sm:$0xfe] %vm593_vm4, %v7944_v9  ;;  %v7072_v57 = vpop.f32.mrf.mxu3 }
 0x809   : > { %11136 = vmatmul.msk.f32.gmra.mxu2 %vm196_vm0, %v16460_v6  ;;  %11211 = vmatmul.msk.f32.gmra.mxu0 %vm196_vm0, %v16487_v35  ;;  %v7282_v40 = vadd.f32 %v7281_v56, %v7072_v57 }
 0x80a   : > { %v7683_v32 = vadd.f32 %v7651_v50, %v17608_v55  ;;  %v16505_v10 = vld [vmem:[#allocation2 + $0x70] sm:$0xff]  ;;  %v16526_v52 = vld [vmem:[#allocation2 + $0x78] sm:$0xff] }
 0x80b   : > { %v7532_v60 = vpop.f32.mrf.mxu1 }
 0x80c   : > { %v7578_v45 = vadd.f32 %v7532_v60, %v7279_v37  ;;  %v16494_v63 = vmax.f32 %v7683_v32, 0.0  ;;  %v7290_v60 = vpop.f32.mrf.mxu0 }
 0x80d   : > { %v7946_v19 = vpop.permute.xlu1 %7945 }
 0x80e   : > { %v7615_v54 = vmul.f32 %v16473_v33, %v7578_v45  ;;  %7963 = vrot.lane.b32.xlu2 %v16494_v63, %s11515_s6  ;;  %7803 = vrot.lane.b32.xlu0 %v16494_v63, %s11516_s7  ;;  %8026 = vst.msk [vmem:[#allocation2 + $0x87] sm:$0xff] %vm595_vm5, %v7946_v19  ;;  %v7952_v47 = vpop.permute.xlu2 %7951  ;;  %v17611_v45 = vld [vmem:[#allocation12_spill] sm:$0xff] }
 0x80f   : > { %11168 = vmatmul.msk.f32.gmra.mxu3 %vm196_vm0, %v16428_v62  ;;  %v11333_v62 = vld [vmem:[%s17568_s1 + $0x8e8] sm:$0xff] }
 0x810   : > { %v7652_v12 = vadd.f32 %v16483_v21, %v7615_v54  ;;  %9918 = vmatpush.msrb.mxu3 %v11333_v62  ;;  %v7075_v7 = vpop.f32.mrf.mxu3 }
 0x811   : > { %11137 = vmatmul.msk.f32.gmra.mxu2 %vm196_vm0, %v16487_v35  ;;  %11212 = vmatmul.msk.f32.gmra.mxu0 %vm196_vm0, %v16505_v10 }
 0x812   : > { %v7684_v25 = vadd.f32 %v7652_v12, %v17609_v26  ;;  %9919 = vmatpush.msrb.mxu3 %v11332_v28 }
 0x814   : > { %v16518_v53 = vmax.f32 %v7684_v25, 0.0 }
 0x815   : > { %v7948_v56 = vpop.permute.xlu1 %7947  ;;  %v16574_v26 = vld [vmem:[#allocation2 + $0x88] sm:$0xff] }
 0x816   : > { %7965 = vrot.lane.b32.xlu0 %v16518_v53, %s11515_s6  ;;  %7805 = vrot.lane.b32.xlu1 %v16518_v53, %s11516_s7  ;;  %v7535_v48 = vpop.f32.mrf.mxu1 }
 0x817   : > { %11169 = vmatmul.msk.f32.gmra.mxu3 %vm196_vm0, %v16440_v46  ;;  %v7579_v2 = vadd.f32 %v7535_v48, %v7282_v40  ;;  %v7285_v46 = vadd.f32 %v7284_v41, %v7075_v7  ;;  %v11244_v41 = vld [vmem:[%s17568_s1 + $0x820] sm:$0xff] }
 0x818   : > { %9665 = vmatpush.msrb.mxu2 %v11244_v41 }
 0x819   : > { %v7616_v27 = vmul.f32 %v16473_v33, %v7579_v2  ;;  %11138 = vmatmul.msk.f32.gmra.mxu2 %vm196_vm0, %v16505_v10  ;;  %11213 = vmatmul.msk.f32.gmra.mxu0 %vm196_vm0, %v16526_v52 }
 0x81b   : > { %v7653_v4 = vadd.f32 %v16483_v21, %v7616_v27  ;;  %v7078_v37 = vpop.f32.mrf.mxu3 }
 0x81d   : > { %v7685_v11 = vadd.f32 %v7653_v4, %v17610_v51  ;;  %v7790_v22 = vpop.permute.xlu0 %7789  ;;  %v11256_v51 = vld [vmem:[%s17568_s1 + $0x880] sm:$0xff] }
 0x81e   : > { %v7538_v17 = vpop.f32.mrf.mxu1  ;;  %7868 = vst.msk [vmem:[#allocation2 + $0x98] sm:$0xff] %vm430_vm1, %v7790_v22  ;;  %9456 = vmatpush.msrb.mxu1 %v11256_v51  ;;  %v11255_v51 = vld [vmem:[%s17568_s1 + $0x878] sm:$0xff] }
 0x81f   : > { %11170 = vmatmul.msk.f32.gmra.mxu3 %vm196_vm0, %v16460_v6  ;;  %v7580_v9 = vadd.f32 %v7538_v17, %v7285_v46  ;;  %7899 = vst.msk [vmem:[#allocation2 + $0x91] sm:$0xff] %vm463_vm2, %v16267_v0  ;;  %v16543_v50 = vmax.f32 %v7685_v11, 0.0  ;;  %v16553_v6 = vld [vmem:[#allocation2 + $0x80] sm:$0xff] }
 0x820   : > { %7900 = vst.msk [vmem:[#allocation2 + $0x99] sm:$0x7f] %vm465_vm3, %v16291_v16  ;;  %9457 = vmatpush.msrb.mxu1 %v11255_v51 }
 0x821   : > { %v7617_v55 = vmul.f32 %v16473_v33, %v7580_v9  ;;  %8027 = vst.msk [vmem:[#allocation2 + $0x8f] sm:$0xfe] %vm593_vm4, %v7948_v56  ;;  %7967 = vrot.lane.b32.xlu0 %v16543_v50, %s11515_s6  ;;  %7807 = vrot.lane.b32.xlu1 %v16543_v50, %s11516_s7 }
 0x822   : > { %8028 = vst.msk [vmem:[#allocation2 + $0x97] sm:$0xff] %vm595_vm5, %v7950_v18  ;;  %11139 = vmatmul.msk.f32.gmra.mxu2 %vm196_vm0, %v16526_v52  ;;  %11214 = vmatmul.msk.f32.gmra.mxu0 %vm196_vm0, %v16553_v6  ;;  %v7293_v18 = vpop.f32.mrf.mxu0 }
 0x823   : > { %v7654_v32 = vadd.f32 %v16483_v21, %v7617_v55  ;;  %v7081_v25 = vpop.f32.mrf.mxu3 }
 0x825   : > { %v7686_v19 = vadd.f32 %v7654_v32, %v17611_v45 }
 0x826   : > { %v7798_v57 = vpop.permute.xlu2 %7797  ;;  %v7792_v54 = vpop.permute.xlu0 %7791 }
 0x827   : > { %11171 = vmatmul.msk.f32.gmra.mxu3 %vm196_vm0, %v16487_v35  ;;  %7872 = vst.msk [vmem:[#allocation2 + $0xb8] sm:$0xff] %vm430_vm1, %v7798_v57  ;;  %v16565_v12 = vmax.f32 %v7686_v19, 0.0  ;;  %v7288_v35 = vadd.f32 %v7287_v8, %v7078_v37  ;;  %v17613_v19 = vld [vmem:[#allocation7_spill] sm:$0xff] }
 0x828   : > { %7869 = vst.msk [vmem:[#allocation2 + $0xa0] sm:$0xff] %vm430_vm1, %v7792_v54 }
 0x829   : > { %7904 = vst.msk [vmem:[#allocation2 + $0xb9] sm:$0x7f] %vm465_vm3, %v16363_v3  ;;  %7969 = vrot.lane.b32.xlu1 %v16565_v12, %s11515_s6  ;;  %7809 = vrot.lane.b32.xlu2 %v16565_v12, %s11516_s7  ;;  %v16595_v8 = vld [vmem:[#allocation2 + $0x90] sm:$0xff] }
 0x82a   : > { %11140 = vmatmul.msk.f32.gmra.mxu2 %vm196_vm0, %v16553_v6  ;;  %11215 = vmatmul.msk.f32.gmra.mxu0 %vm196_vm0, %v16574_v26  ;;  %v7296_v56 = vpop.f32.mrf.mxu0 }
 0x82c   : > { %v7541_v62 = vpop.f32.mrf.mxu1 }
 0x82d   : > { %v7581_v40 = vadd.f32 %v7541_v62, %v7288_v35 }
 0x82e   : > { %v7794_v48 = vpop.permute.xlu1 %7793  ;;  %v7954_v7 = vpop.permute.xlu0 %7953 }
 0x82f   : > { %v7618_v2 = vmul.f32 %v16473_v33, %v7581_v40  ;;  %11172 = vmatmul.msk.f32.gmra.mxu3 %vm196_vm0, %v16505_v10  ;;  %7870 = vst.msk [vmem:[#allocation2 + $0xa8] sm:$0xff] %vm430_vm1, %v7794_v48  ;;  %v7291_v10 = vadd.f32 %v7290_v60, %v7081_v25  ;;  %v16621_v60 = vld [vmem:[#allocation2 + $0x98] sm:$0xff] }
 0x830   : > { %7901 = vst.msk [vmem:[#allocation2 + $0xa1] sm:$0xff] %vm463_vm2, %v16309_v34 }
 0x831   : > { %v7655_v27 = vadd.f32 %v16483_v21, %v7618_v2  ;;  %7902 = vst.msk [vmem:[#allocation2 + $0xa9] sm:$0x7f] %vm465_vm3, %v16322_v13 }
 0x832   : > { %v7084_v4 = vpop.f32.mrf.mxu3  ;;  %8029 = vst.msk [vmem:[#allocation2 + $0x9f] sm:$0xfe] %vm593_vm4, %v7952_v47  ;;  %11141 = vmatmul.msk.f32.gmra.mxu2 %vm196_vm0, %v16574_v26  ;;  %11216 = vmatmul.msk.f32.gmra.mxu0 %vm196_vm0, %v16595_v8 }
 0x833   : > { %v7687_v46 = vadd.f32 %v7655_v27, %v17612_v29  ;;  %8030 = vst.msk [vmem:[#allocation2 + $0xa7] sm:$0xff] %vm595_vm5, %v7954_v7  ;;  %v16645_v7 = vld [vmem:[%s17569_s2 + $0x6] ss:$0 sm:$0xff]  ;;  %v11243_v29 = vld [vmem:[%s17568_s1 + $0x818] sm:$0xff] }
 0x834   : > { %v7544_v11 = vpop.f32.mrf.mxu1  ;;  %9666 = vmatpush.msrb.mxu2 %v11243_v29 }
 0x835   : > { %v7582_v22 = vadd.f32 %v7544_v11, %v7291_v10  ;;  %v16607_v17 = vmax.f32 %v7687_v46, 0.0  ;;  %v11331_v46 = vld [vmem:[%s17568_s1 + $0x8d8] sm:$0xff] }
 0x836   : > { %v7800_v47 = vpop.permute.xlu2 %7799  ;;  %v7796_v9 = vpop.permute.xlu1 %7795  ;;  %9920 = vmatpush.msrb.mxu3 %v11331_v46 }
 0x837   : > { %v7619_v37 = vmul.f32 %v16473_v33, %v7582_v22  ;;  %7873 = vst.msk [vmem:[#allocation2 + $0xc0] sm:$0xff] %vm430_vm1, %v7800_v47  ;;  %7971 = vrot.lane.b32.xlu1 %v16607_v17, %s11515_s6  ;;  %7811 = vrot.lane.b32.xlu2 %v16607_v17, %s11516_s7  ;;  %v7956_v32 = vpop.permute.xlu0 %7955 }
 0x838   : > { %11173 = vmatmul.msk.f32.gmra.mxu3 %vm196_vm0, %v16526_v52  ;;  %7871 = vst.msk [vmem:[#allocation2 + $0xb0] sm:$0xff] %vm430_vm1, %v7796_v9  ;;  %v7294_v52 = vadd.f32 %v7293_v18, %v7084_v4  ;;  %v17614_v4 = vld [vmem:[#allocation14_spill] sm:$0xff] }
 0x839   : > { %v7656_v55 = vadd.f32 %v16483_v21, %v7619_v37  ;;  %7903 = vst.msk [vmem:[#allocation2 + $0xb1] sm:$0xff] %vm463_vm2, %v16341_v42  ;;  %v16666_v37 = vld [vmem:[%s17570_s3 + $0x6] ss:$0 sm:$0xff] }
 0x83a   : > { %v7087_v45 = vpop.f32.mrf.mxu3  ;;  %8031 = vst.msk [vmem:[#allocation2 + $0xaf] sm:$0xfe] %vm593_vm4, %v7956_v32  ;;  %11142 = vmatmul.msk.f32.gmra.mxu2 %vm196_vm0, %v16595_v8  ;;  %11217 = vmatmul.msk.f32.gmra.mxu0 %vm196_vm0, %v16621_v60  ;;  %v16640_v48 = vld [vmem:[#allocation2 + $0xa0] sm:$0xff] }
 0x83b   : > { %v7688_v57 = vadd.f32 %v7656_v55, %v17613_v19  ;;  %v7297_v27 = vadd.f32 %v7296_v56, %v7087_v45  ;;  %v16677_v19 = vld [vmem:[#allocation2 + $0xa8] sm:$0xff] }
 0x83c   : > { %v7547_v54 = vpop.f32.mrf.mxu1  ;;  %v8246_v25 = vpop.f32.mrf.mxu2 }
 0x83d   : > { %v7583_v35 = vadd.f32 %v7547_v54, %v7294_v52  ;;  %v16629_v41 = vmax.f32 %v7688_v57, 0.0 }
 0x83e   : > { %v7958_v28 = vpop.permute.xlu1 %7957  ;;  %v8709_v40 = vpop.f32.mrf.mxu0 }
 0x83f   : > { %v7620_v62 = vmul.f32 %v16473_v33, %v7583_v35  ;;  %7973 = vrot.lane.b32.xlu2 %v16629_v41, %s11515_s6  ;;  %7813 = vrot.lane.b32.xlu0 %v16629_v41, %s11516_s7  ;;  %8032 = vst.msk [vmem:[#allocation2 + $0xb7] sm:$0xff] %vm595_vm5, %v7958_v28 }
 0x840   : > { %11174 = vmatmul.msk.f32.gmra.mxu3 %vm196_vm0, %v16553_v6 }
 0x841   : > { %v7657_v18 = vadd.f32 %v16483_v21, %v7620_v62 }
 0x842   : > { %v8455_v2 = vpop.f32.mrf.mxu3  ;;  %11143 = vmatmul.msk.f32.gmra.mxu2 %vm196_vm0, %v16621_v60  ;;  %11218 = vmatmul.msk.f32.gmra.mxu0 %vm196_vm0, %v16640_v48 }
 0x843   : > { %v7689_v10 = vadd.f32 %v7657_v18, %v17614_v4  ;;  %v8456_v6 = vadd.f32 %v8455_v2, %v8246_v25 }
 0x844   : > { %v7550_v11 = vpop.f32.mrf.mxu1  ;;  %v8249_v22 = vpop.f32.mrf.mxu2 }
 0x845   : > { %v8805_v47 = vadd.f32 %v8709_v40, %v8456_v6  ;;  %v7584_v9 = vadd.f32 %v7550_v11, %v7297_v27  ;;  %v16661_v56 = vmax.f32 %v7689_v10, 0.0  ;;  %v11242_v6 = vld [vmem:[%s17568_s1 + $0x810] sm:$0xff] }
 0x846   : > { %v8712_v45 = vpop.f32.mrf.mxu0  ;;  %v16699_v27 = vld [vmem:[#allocation2 + $0xb0] sm:$0xff]  ;;  %9667 = vmatpush.msrb.mxu2 %v11242_v6 }
 0x847   : > { %v8842_v55 = vmul.f32 %v16645_v7, %v8805_v47  ;;  %v7621_v32 = vmul.f32 %v16473_v33, %v7584_v9  ;;  %7975 = vrot.lane.b32.xlu2 %v16661_v56, %s11515_s6  ;;  %7815 = vrot.lane.b32.xlu0 %v16661_v56, %s11516_s7  ;;  %v17615_v33 = vld [vmem:[#allocation13_spill] sm:$0xff] }
 0x848   : > { %11175 = vmatmul.msk.f32.gmra.mxu3 %vm196_vm0, %v16574_v26 }
 0x849   : > { %v7658_v52 = vadd.f32 %v16483_v21, %v7621_v32  ;;  %v8879_v57 = vadd.f32 %v16666_v37, %v8842_v55  ;;  %v16721_v55 = vld [vmem:[#allocation2 + $0xb8] sm:$0xff]  ;;  %v7962_v32 = vpop.permute.xlu2 %7961 }
 0x84a   : > { %v8458_v54 = vpop.f32.mrf.mxu3  ;;  %11144 = vmatmul.msk.f32.gmra.mxu2 %vm196_vm0, %v16640_v48  ;;  %11219 = vmatmul.msk.f32.gmra.mxu0 %vm196_vm0, %v16677_v19 }
 0x84b   : > { %v7690_v25 = vadd.f32 %v7658_v52, %v17615_v33  ;;  %v8459_v35 = vadd.f32 %v8458_v54, %v8249_v22  ;;  %v16687_v26 = vmax.f32 %v8879_v57, 0.0  ;;  %v11330_v57 = vld [vmem:[%s17568_s1 + $0x8d0] sm:$0xff] }
 0x84c   : > { %v8252_v28 = vpop.f32.mrf.mxu2  ;;  %v11254_v54 = vld [vmem:[%s17568_s1 + $0x870] sm:$0xff]  ;;  %9921 = vmatpush.msrb.mxu3 %v11330_v57 }
 0x84d   : > { %v8806_v62 = vadd.f32 %v8712_v45, %v8459_v35  ;;  %v16685_v40 = vmax.f32 %v7690_v25, 0.0  ;;  %9458 = vmatpush.msrb.mxu1 %v11254_v54 }
 0x84e   : > { %v8715_v18 = vpop.f32.mrf.mxu0  ;;  %v7960_v47 = vpop.permute.xlu1 %7959 }
 0x84f   : > { %v8843_v21 = vmul.f32 %v16645_v7, %v8806_v62  ;;  %7977 = vrot.lane.b32.xlu0 %v16685_v40, %s11515_s6  ;;  %7817 = vrot.lane.b32.xlu1 %v16685_v40, %s11516_s7 }
 0x850   : > { %8975 = vrot.lane.b32.xlu2 %v16687_v26, %s11516_s7  ;;  %11176 = vmatmul.msk.f32.gmra.mxu3 %vm196_vm0, %v16595_v8 }
 0x851   : > { %v8880_v2 = vadd.f32 %v16666_v37, %v8843_v21 }
 0x852   : > { %v8461_v4 = vpop.f32.mrf.mxu3  ;;  %11145 = vmatmul.msk.f32.gmra.mxu2 %vm196_vm0, %v16677_v19  ;;  %11220 = vmatmul.msk.f32.gmra.mxu0 %vm196_vm0, %v16699_v27 }
 0x853   : > { %v8462_v10 = vadd.f32 %v8461_v4, %v8252_v28  ;;  %v16708_v46 = vmax.f32 %v8880_v2, 0.0 }
 0x854   : > { %v8255_v29 = vpop.f32.mrf.mxu2 }
 0x855   : > { %v8807_v8 = vadd.f32 %v8715_v18, %v8462_v10 }
 0x856   : > { %v7802_v51 = vpop.permute.xlu0 %7801  ;;  %v8718_v22 = vpop.f32.mrf.mxu0 }
 0x857   : > { %v8844_v11 = vmul.f32 %v16645_v7, %v8807_v8  ;;  %8977 = vrot.lane.b32.xlu0 %v16708_v46, %s11516_s7  ;;  %7874 = vst.msk [vmem:[#allocation2 + $0xc8] sm:$0xff] %vm430_vm1, %v7802_v51 }
 0x858   : > { %11177 = vmatmul.msk.f32.gmra.mxu3 %vm196_vm0, %v16621_v60  ;;  %7905 = vst.msk [vmem:[#allocation2 + $0xc1] sm:$0xff] %vm463_vm2, %v16390_v23 }
 0x859   : > { %v8881_v9 = vadd.f32 %v16666_v37, %v8844_v11  ;;  %7906 = vst.msk [vmem:[#allocation2 + $0xc9] sm:$0x7f] %vm465_vm3, %v16404_v15 }
 0x85a   : > { %8033 = vst.msk [vmem:[#allocation2 + $0xbf] sm:$0xfe] %vm593_vm4, %v7960_v47  ;;  %v8464_v45 = vpop.f32.mrf.mxu3  ;;  %11146 = vmatmul.msk.f32.gmra.mxu2 %vm196_vm0, %v16699_v27  ;;  %11221 = vmatmul.msk.f32.gmra.mxu0 %vm196_vm0, %v16721_v55 }
 0x85b   : > { %v16728_v60 = vmax.f32 %v8881_v9, 0.0  ;;  %8034 = vst.msk [vmem:[#allocation2 + $0xc7] sm:$0xff] %vm595_vm5, %v7962_v32  ;;  %v8465_v52 = vadd.f32 %v8464_v45, %v8255_v29  ;;  %v11241_v9 = vld [vmem:[%s17568_s1 + $0x808] sm:$0xff] }
 0x85c   : > { %v8258_v33 = vpop.f32.mrf.mxu2  ;;  %9668 = vmatpush.msrb.mxu2 %v11241_v9 }
 0x85d   : > { %v8808_v25 = vadd.f32 %v8718_v22, %v8465_v52  ;;  %8979 = vrot.lane.b32.xlu1 %v16728_v60, %s11516_s7 }
 0x85e   : > { %v8721_v28 = vpop.f32.mrf.mxu0 }
 0x85f   : > { %v8845_v35 = vmul.f32 %v16645_v7, %v8808_v25  ;;  %9139 = vrot.lane.b32.xlu0 %v16728_v60, %s11515_s6 }
 0x860   : > { %11178 = vmatmul.msk.f32.gmra.mxu3 %vm196_vm0, %v16640_v48 }
 0x861   : > { %v8882_v62 = vadd.f32 %v16666_v37, %v8845_v35 }
 0x862   : > { %v8467_v21 = vpop.f32.mrf.mxu3  ;;  %11147 = vmatmul.msk.f32.gmra.mxu2 %vm196_vm0, %v16721_v55  ;;  %v8571_v18 = vld [vmem:[#allocation2 + $0xc0] sm:$0xff]  ;;  %v16759_v11 = vld [vmem:[#allocation2 + $0xc8] sm:$0xff] }
 0x863   : > { %v16747_v2 = vmax.f32 %v8882_v62, 0.0  ;;  %v8468_v4 = vadd.f32 %v8467_v21, %v8258_v33  ;;  %11222 = vmatmul.msk.f32.gmra.mxu0 %vm196_vm0, %v8571_v18 }
 0x864   : > { %v8261_v10 = vpop.f32.mrf.mxu2 }
 0x865   : > { %v8809_v6 = vadd.f32 %v8721_v28, %v8468_v4  ;;  %9141 = vrot.lane.b32.xlu1 %v16747_v2, %s11515_s6  ;;  %8981 = vrot.lane.b32.xlu2 %v16747_v2, %s11516_s7  ;;  %v11253_v28 = vld [vmem:[%s17568_s1 + $0x868] sm:$0xff] }
 0x866   : > { %v8724_v29 = vpop.f32.mrf.mxu0  ;;  %9459 = vmatpush.msrb.mxu1 %v11253_v28 }
 0x867   : > { %v8846_v48 = vmul.f32 %v16645_v7, %v8809_v6 }
 0x868   : > { %11179 = vmatmul.msk.f32.gmra.mxu3 %vm196_vm0, %v16677_v19  ;;  %v11329_v19 = vld [vmem:[%s17568_s1 + $0x8c8] sm:$0xff] }
 0x869   : > { %v8883_v8 = vadd.f32 %v16666_v37, %v8846_v48  ;;  %9922 = vmatpush.msrb.mxu3 %v11329_v19  ;;  %v7964_v48 = vpop.permute.xlu2 %7963 }
 0x86a   : > { %v8470_v51 = vpop.f32.mrf.mxu3  ;;  %11148 = vmatmul.msk.f32.gmra.mxu2 %vm196_vm0, %v8571_v18 }
 0x86b   : > { %v16761_v22 = vmax.f32 %v8883_v8, 0.0  ;;  %v8471_v47 = vadd.f32 %v8470_v51, %v8261_v10  ;;  %11223 = vmatmul.msk.f32.gmra.mxu0 %vm196_vm0, %v16759_v11 }
 0x86c   : > { %v8264_v32 = vpop.f32.mrf.mxu2 }
 0x86d   : > { %v8810_v45 = vadd.f32 %v8724_v29, %v8471_v47  ;;  %9135 = vrot.lane.b32.xlu1 %v16687_v26, %s11515_s6  ;;  %9137 = vrot.lane.b32.xlu2 %v16708_v46, %s11515_s6 }
 0x86e   : > { %8983 = vrot.lane.b32.xlu0 %v16761_v22, %s11516_s7  ;;  %v8727_v57 = vpop.f32.mrf.mxu0 }
 0x86f   : > { %v8847_v52 = vmul.f32 %v16645_v7, %v8810_v45 }
 0x870   : > { %11180 = vmatmul.msk.f32.gmra.mxu3 %vm196_vm0, %v16699_v27 }
 0x871   : > { %v8884_v54 = vadd.f32 %v16666_v37, %v8847_v52 }
 0x872   : > { %v8473_v33 = vpop.f32.mrf.mxu3  ;;  %11149 = vmatmul.msk.f32.gmra.mxu2 %vm196_vm0, %v16759_v11 }
 0x873   : > { %v16783_v25 = vmax.f32 %v8884_v54, 0.0  ;;  %v8474_v35 = vadd.f32 %v8473_v33, %v8264_v32  ;;  %v11240_v33 = vld [vmem:[%s17568_s1 + $0x800] sm:$0xff] }
 0x874   : > { %v8267_v62 = vpop.f32.mrf.mxu2  ;;  %9669 = vmatpush.msrb.mxu2 %v11240_v33 }
 0x875   : > { %v8811_v21 = vadd.f32 %v8727_v57, %v8474_v35  ;;  %9143 = vrot.lane.b32.xlu2 %v16761_v22, %s11515_s6  ;;  %8985 = vrot.lane.b32.xlu1 %v16783_v25, %s11516_s7  ;;  %v11328_v35 = vld [vmem:[%s17568_s1 + $0x8c0] sm:$0xff] }
 0x876   : > { %9145 = vrot.lane.b32.xlu0 %v16783_v25, %s11515_s6  ;;  %v8730_v4 = vpop.f32.mrf.mxu0  ;;  %9923 = vmatpush.msrb.mxu3 %v11328_v35  ;;  %v11239_v35 = vld [vmem:[%s17568_s1 + $0x7f8] sm:$0xff] }
 0x877   : > { %v8848_v27 = vmul.f32 %v16645_v7, %v8811_v21  ;;  %9670 = vmatpush.msrb.mxu2 %v11239_v35 }
 0x878   : > { %11181 = vmatmul.msk.f32.gmra.mxu3 %vm196_vm0, %v16721_v55 }
 0x879   : > { %v8885_v10 = vadd.f32 %v16666_v37, %v8848_v27 }
 0x87a   : > { %v8476_v6 = vpop.f32.mrf.mxu3 }
 0x87b   : > { %v16798_v29 = vmax.f32 %v8885_v10, 0.0  ;;  %v8477_v8 = vadd.f32 %v8476_v6, %v8267_v62 }
 0x87c   : > { %v8270_v51 = vpop.f32.mrf.mxu2 }
 0x87d   : > { %v8812_v47 = vadd.f32 %v8730_v4, %v8477_v8  ;;  %8987 = vrot.lane.b32.xlu1 %v16798_v29, %s11516_s7 }
 0x87e   : > { %9147 = vrot.lane.b32.xlu0 %v16798_v29, %s11515_s6  ;;  %v8733_v19 = vpop.f32.mrf.mxu0 }
 0x87f   : > { %v8849_v9 = vmul.f32 %v16645_v7, %v8812_v47 }
 0x880   : > { %11182 = vmatmul.msk.f32.gmra.mxu3 %vm196_vm0, %v8571_v18  ;;  %v7804_v55 = vpop.permute.xlu0 %7803  ;;  %v11252_v18 = vld [vmem:[%s17568_s1 + $0x860] sm:$0xff] }
 0x881   : > { %v8886_v32 = vadd.f32 %v16666_v37, %v8849_v9  ;;  %7875 = vst.msk [vmem:[#allocation2 + $0xd0] sm:$0xff] %vm430_vm1, %v7804_v55  ;;  %9460 = vmatpush.msrb.mxu1 %v11252_v18 }
 0x882   : > { %v8479_v45 = vpop.f32.mrf.mxu3 }
 0x883   : > { %v16808_v52 = vmax.f32 %v8886_v32, 0.0  ;;  %v8480_v57 = vadd.f32 %v8479_v45, %v8270_v51  ;;  %v7810_v54 = vpop.permute.xlu2 %7809 }
 0x884   : > { %7878 = vst.msk [vmem:[#allocation2 + $0xe8] sm:$0xff] %vm430_vm1, %v7810_v54  ;;  %v8273_v28 = vpop.f32.mrf.mxu2 }
 0x885   : > { %v8813_v62 = vadd.f32 %v8733_v19, %v8480_v57  ;;  %9149 = vrot.lane.b32.xlu1 %v16808_v52, %s11515_s6  ;;  %8989 = vrot.lane.b32.xlu2 %v16808_v52, %s11516_s7  ;;  %7910 = vst.msk [vmem:[#allocation2 + $0xe9] sm:$0x7f] %vm465_vm3, %v16565_v12 }
 0x886   : > { %v8736_v27 = vpop.f32.mrf.mxu0 }
 0x887   : > { %v8850_v21 = vmul.f32 %v16645_v7, %v8813_v62 }
 0x888   : > { %11183 = vmatmul.msk.f32.gmra.mxu3 %vm196_vm0, %v16759_v11  ;;  %v7806_v4 = vpop.permute.xlu1 %7805  ;;  %v7966_v47 = vpop.permute.xlu0 %7965 }
 0x889   : > { %v8887_v10 = vadd.f32 %v16666_v37, %v8850_v21  ;;  %7876 = vst.msk [vmem:[#allocation2 + $0xd8] sm:$0xff] %vm430_vm1, %v7806_v4 }
 0x88a   : > { %7907 = vst.msk [vmem:[#allocation2 + $0xd1] sm:$0xff] %vm463_vm2, %v16494_v63  ;;  %v8482_v6 = vpop.f32.mrf.mxu3 }
 0x88b   : > { %v16833_v8 = vmax.f32 %v8887_v10, 0.0  ;;  %7908 = vst.msk [vmem:[#allocation2 + $0xd9] sm:$0x7f] %vm465_vm3, %v16518_v53  ;;  %v8483_v51 = vadd.f32 %v8482_v6, %v8273_v28 }
 0x88c   : > { %8035 = vst.msk [vmem:[#allocation2 + $0xcf] sm:$0xfe] %vm593_vm4, %v7964_v48  ;;  %v8276_v9 = vpop.f32.mrf.mxu2 }
 0x88d   : > { %8036 = vst.msk [vmem:[#allocation2 + $0xd7] sm:$0xff] %vm595_vm5, %v7966_v47  ;;  %v8814_v11 = vadd.f32 %v8736_v27, %v8483_v51  ;;  %9151 = vrot.lane.b32.xlu1 %v16833_v8, %s11515_s6  ;;  %8991 = vrot.lane.b32.xlu2 %v16833_v8, %s11516_s7 }
 0x88e   : > { %v8739_v55 = vpop.f32.mrf.mxu0 }
 0x88f   : > { %v8851_v19 = vmul.f32 %v16645_v7, %v8814_v11 }
 0x891   : > { %v8888_v32 = vadd.f32 %v16666_v37, %v8851_v19  ;;  %v7812_v45 = vpop.permute.xlu2 %7811  ;;  %v11327_v19 = vld [vmem:[%s17568_s1 + $0x8b8] sm:$0xff] }
 0x892   : > { %7879 = vst.msk [vmem:[#allocation2 + $0xf0] sm:$0xff] %vm430_vm1, %v7812_v45  ;;  %v8485_v48 = vpop.f32.mrf.mxu3  ;;  %9924 = vmatpush.msrb.mxu3 %v11327_v19 }
 0x893   : > { %v16846_v57 = vmax.f32 %v8888_v32, 0.0  ;;  %v8486_v54 = vadd.f32 %v8485_v48, %v8276_v9  ;;  %v7808_v33 = vpop.permute.xlu1 %7807  ;;  %v7968_v21 = vpop.permute.xlu0 %7967 }
 0x894   : > { %v8112_v18 = vld [vmem:[#allocation2 + $0xd0] sm:$0xff]  ;;  %7877 = vst.msk [vmem:[#allocation2 + $0xe0] sm:$0xff] %vm430_vm1, %v7808_v33  ;;  %v8279_v28 = vpop.f32.mrf.mxu2  ;;  %v8113_v32 = vld [vmem:[#allocation2 + $0xd8] sm:$0xff] }
 0x895   : > { %v8815_v62 = vadd.f32 %v8739_v55, %v8486_v54  ;;  %11150 = vmatmul.msk.f32.gmra.mxu2 %vm196_vm0, %v8112_v18  ;;  %11184 = vmatmul.msk.f32.gmra.mxu3 %vm196_vm0, %v8112_v18  ;;  %7909 = vst.msk [vmem:[#allocation2 + $0xe1] sm:$0xff] %vm463_vm2, %v16543_v50  ;;  %v11251_v55 = vld [vmem:[%s17568_s1 + $0x858] sm:$0xff] }
 0x896   : > { %11224 = vmatmul.msk.f32.gmra.mxu0 %vm196_vm0, %v8112_v18  ;;  %9153 = vrot.lane.b32.xlu2 %v16846_v57, %s11515_s6  ;;  %8037 = vst.msk [vmem:[#allocation2 + $0xdf] sm:$0xfe] %vm593_vm4, %v7968_v21  ;;  %v8742_v4 = vpop.f32.mrf.mxu0 }
 0x897   : > { %v8852_v27 = vmul.f32 %v16645_v7, %v8815_v62  ;;  %8993 = vrot.lane.b32.xlu0 %v16846_v57, %s11516_s7  ;;  %9461 = vmatpush.msrb.mxu1 %v11251_v55 }
 0x899   : > { %v8889_v10 = vadd.f32 %v16666_v37, %v8852_v27  ;;  %v16864_v6 = vpop.permute.xlu2 %7973 }
 0x89a   : > { %v8488_v51 = vpop.f32.mrf.mxu3 }
 0x89b   : > { %v16866_v47 = vmax.f32 %v8889_v10, 0.0  ;;  %v8489_v9 = vadd.f32 %v8488_v51, %v8279_v28  ;;  %v7970_v11 = vpop.permute.xlu1 %7969 }
 0x89c   : > { %8038 = vst.msk [vmem:[#allocation2 + $0xe7] sm:$0xff] %vm595_vm5, %v7970_v11  ;;  %v8282_v45 = vpop.f32.mrf.mxu2 }
 0x89d   : > { %v8816_v48 = vadd.f32 %v8742_v4, %v8489_v9  ;;  %11151 = vmatmul.msk.f32.gmra.mxu2 %vm196_vm0, %v8113_v32  ;;  %11185 = vmatmul.msk.f32.gmra.mxu3 %vm196_vm0, %v8113_v32 }
 0x89e   : > { %11225 = vmatmul.msk.f32.gmra.mxu0 %vm196_vm0, %v8113_v32  ;;  %9155 = vrot.lane.b32.xlu2 %v16866_v47, %s11515_s6 }
 0x89f   : > { %v8853_v54 = vmul.f32 %v16645_v7, %v8816_v48  ;;  %8995 = vrot.lane.b32.xlu0 %v16866_v47, %s11516_s7  ;;  %v8745_v33 = vpop.f32.mrf.mxu0 }
 0x8a1   : > { %v8890_v35 = vadd.f32 %v16666_v37, %v8853_v54  ;;  %v16884_v18 = vpop.permute.xlu2 %7975  ;;  %v11238_v54 = vld [vmem:[%s17568_s1 + $0x7f0] sm:$0xff] }
 0x8a2   : > { %v8491_v28 = vpop.f32.mrf.mxu3  ;;  %9671 = vmatpush.msrb.mxu2 %v11238_v54 }
 0x8a3   : > { %v16886_v62 = vmax.f32 %v8890_v35, 0.0  ;;  %v8492_v21 = vadd.f32 %v8491_v28, %v8282_v45  ;;  %v8114_v27 = vld [vmem:[#allocation2 + $0xe0] sm:$0xff]  ;;  %v8115_v48 = vld [vmem:[#allocation2 + $0xe8] sm:$0xff]  ;;  %v11326_v28 = vld [vmem:[%s17568_s1 + $0x8b0] sm:$0xff] }
 0x8a4   : > { %9925 = vmatpush.msrb.mxu3 %v11326_v28 }
 0x8a5   : > { %v8817_v4 = vadd.f32 %v8745_v33, %v8492_v21  ;;  %8997 = vrot.lane.b32.xlu1 %v16886_v62, %s11516_s7  ;;  %v8285_v10 = vpop.f32.mrf.mxu2  ;;  %11152 = vmatmul.msk.f32.gmra.mxu2 %vm196_vm0, %v8114_v27 }
 0x8a6   : > { %11186 = vmatmul.msk.f32.gmra.mxu3 %vm196_vm0, %v8114_v27  ;;  %11226 = vmatmul.msk.f32.gmra.mxu0 %vm196_vm0, %v8114_v27 }
 0x8a7   : > { %v8854_v51 = vmul.f32 %v16645_v7, %v8817_v4  ;;  %9157 = vrot.lane.b32.xlu0 %v16886_v62, %s11515_s6  ;;  %v8748_v9 = vpop.f32.mrf.mxu0 }
 0x8a9   : > { %v8891_v11 = vadd.f32 %v16666_v37, %v8854_v51 }
 0x8aa   : > { %v8976_v19 = vpop.permute.xlu2 %8975  ;;  %v8494_v55 = vpop.f32.mrf.mxu3 }
 0x8ab   : > { %v16897_v32 = vmax.f32 %v8891_v11, 0.0  ;;  %9071 = vst.msk [vmem:[#allocation3 + $0x10] sm:$0xff] %vm430_vm1, %v8976_v19  ;;  %v8495_v45 = vadd.f32 %v8494_v55, %v8285_v10  ;;  %v7972_v19 = vpop.permute.xlu1 %7971  ;;  %v11250_v55 = vld [vmem:[%s17568_s1 + $0x850] sm:$0xff] }
 0x8ac   : > { %9462 = vmatpush.msrb.mxu1 %v11250_v55 }
 0x8ad   : > { %v8818_v33 = vadd.f32 %v8748_v9, %v8495_v45  ;;  %8999 = vrot.lane.b32.xlu1 %v16897_v32, %s11516_s7  ;;  %v8288_v35 = vpop.f32.mrf.mxu2  ;;  %11153 = vmatmul.msk.f32.gmra.mxu2 %vm196_vm0, %v8115_v48 }
 0x8ae   : > { %11187 = vmatmul.msk.f32.gmra.mxu3 %vm196_vm0, %v8115_v48  ;;  %11227 = vmatmul.msk.f32.gmra.mxu0 %vm196_vm0, %v8115_v48 }
 0x8af   : > { %v8855_v21 = vmul.f32 %v16645_v7, %v8818_v33  ;;  %9159 = vrot.lane.b32.xlu0 %v16897_v32, %s11515_s6  ;;  %v8751_v27 = vpop.f32.mrf.mxu0 }
 0x8b1   : > { %v8892_v4 = vadd.f32 %v16666_v37, %v8855_v21  ;;  %v7814_v10 = vpop.permute.xlu0 %7813 }
 0x8b2   : > { %7880 = vst.msk [vmem:[#allocation2 + $0xf8] sm:$0xff] %vm430_vm1, %v7814_v10  ;;  %v8497_v51 = vpop.f32.mrf.mxu3 }
 0x8b3   : > { %v16916_v9 = vmax.f32 %v8892_v4, 0.0  ;;  %7911 = vst.msk [vmem:[#allocation2 + $0xf1] sm:$0xff] %vm463_vm2, %v16607_v17  ;;  %v8498_v11 = vadd.f32 %v8497_v51, %v8288_v35  ;;  %v11237_v4 = vld [vmem:[%s17568_s1 + $0x7e8] sm:$0xff] }
 0x8b4   : > { %7912 = vst.msk [vmem:[#allocation2 + $0xf9] sm:$0x7f] %vm465_vm3, %v16629_v41  ;;  %9672 = vmatpush.msrb.mxu2 %v11237_v4 }
 0x8b5   : > { %8039 = vst.msk [vmem:[#allocation2 + $0xef] sm:$0xfe] %vm593_vm4, %v7972_v19  ;;  %v8819_v45 = vadd.f32 %v8751_v27, %v8498_v11  ;;  %9161 = vrot.lane.b32.xlu1 %v16916_v9, %s11515_s6  ;;  %9001 = vrot.lane.b32.xlu2 %v16916_v9, %s11516_s7  ;;  %v8291_v48 = vpop.f32.mrf.mxu2  ;;  %v11236_v11 = vld [vmem:[%s17568_s1 + $0x7e0] sm:$0xff] }
 0x8b6   : > { %8040 = vst.msk [vmem:[#allocation2 + $0xf7] sm:$0xff] %vm595_vm5, %v16864_v6  ;;  %9673 = vmatpush.msrb.mxu2 %v11236_v11 }
 0x8b7   : > { %v8856_v54 = vmul.f32 %v16645_v7, %v8819_v45  ;;  %v8754_v33 = vpop.f32.mrf.mxu0 }
 0x8b9   : > { %v8893_v35 = vadd.f32 %v16666_v37, %v8856_v54  ;;  %v7816_v28 = vpop.permute.xlu0 %7815 }
 0x8ba   : > { %7881 = vst.msk [vmem:[#allocation2 + $0x100] sm:$0xff] %vm430_vm1, %v7816_v28  ;;  %v11324_v28 = vld [vmem:[%s17568_s1 + $0x8a0] sm:$0xff] }
 0x8bb   : > { %v16935_v21 = vmax.f32 %v8893_v35, 0.0  ;;  %v8500_v27 = vpop.f32.mrf.mxu3 }
 0x8bc   : > { %v8501_v10 = vadd.f32 %v8500_v27, %v8291_v48  ;;  %v11325_v48 = vld [vmem:[%s17568_s1 + $0x8a8] sm:$0xff] }
 0x8bd   : > { %v8116_v51 = vld [vmem:[#allocation2 + $0xf0] sm:$0xff]  ;;  %9163 = vrot.lane.b32.xlu1 %v16935_v21, %s11515_s6  ;;  %9003 = vrot.lane.b32.xlu2 %v16935_v21, %s11516_s7  ;;  %v8294_v6 = vpop.f32.mrf.mxu2  ;;  %v8117_v11 = vld [vmem:[#allocation2 + $0xf8] sm:$0xff] }
 0x8be   : > { %v8820_v19 = vadd.f32 %v8754_v33, %v8501_v10  ;;  %11154 = vmatmul.msk.f32.gmra.mxu2 %vm196_vm0, %v8116_v51  ;;  %11188 = vmatmul.msk.f32.gmra.mxu3 %vm196_vm0, %v8116_v51 }
 0x8bf   : > { %11228 = vmatmul.msk.f32.gmra.mxu0 %vm196_vm0, %v8116_v51  ;;  %v8982_v55 = vpop.permute.xlu2 %8981  ;;  %v8757_v45 = vpop.f32.mrf.mxu0  ;;  %9926 = vmatpush.msrb.mxu3 %v11325_v48  ;;  %v11249_v51 = vld [vmem:[%s17568_s1 + $0x848] sm:$0xff] }
 0x8c0   : > { %v8857_v54 = vmul.f32 %v16645_v7, %v8820_v19  ;;  %9074 = vst.msk [vmem:[#allocation3 + $0x28] sm:$0xff] %vm430_vm1, %v8982_v55  ;;  %9463 = vmatpush.msrb.mxu1 %v11249_v51 }
 0x8c1   : > { %9106 = vst.msk [vmem:[#allocation3 + $0x29] sm:$0x7f] %vm465_vm3, %v16747_v2  ;;  %v7818_v33 = vpop.permute.xlu1 %7817  ;;  %v7978_v35 = vpop.permute.xlu0 %7977  ;;  %9927 = vmatpush.msrb.mxu3 %v11324_v28 }
 0x8c2   : > { %v8894_v27 = vadd.f32 %v16666_v37, %v8857_v54  ;;  %7882 = vst.msk [vmem:[#allocation2 + $0x108] sm:$0xff] %vm430_vm1, %v7818_v33 }
 0x8c3   : > { %7913 = vst.msk [vmem:[#allocation2 + $0x101] sm:$0xff] %vm463_vm2, %v16661_v56  ;;  %v8503_v4 = vpop.f32.mrf.mxu3 }
 0x8c4   : > { %v16964_v10 = vmax.f32 %v8894_v27, 0.0  ;;  %7914 = vst.msk [vmem:[#allocation2 + $0x109] sm:$0x7f] %vm465_vm3, %v16685_v40  ;;  %v8504_v2 = vadd.f32 %v8503_v4, %v8294_v6 }
 0x8c5   : > { %8041 = vst.msk [vmem:[#allocation2 + $0xff] sm:$0xfe] %vm593_vm4, %v16884_v18  ;;  %v8297_v19 = vpop.f32.mrf.mxu2 }
 0x8c6   : > { %8042 = vst.msk [vmem:[#allocation2 + $0x107] sm:$0xff] %vm595_vm5, %v7978_v35  ;;  %v8821_v55 = vadd.f32 %v8757_v45, %v8504_v2  ;;  %11155 = vmatmul.msk.f32.gmra.mxu2 %vm196_vm0, %v8117_v11  ;;  %11189 = vmatmul.msk.f32.gmra.mxu3 %vm196_vm0, %v8117_v11  ;;  %v11248_v45 = vld [vmem:[%s17568_s1 + $0x840] sm:$0xff] }
 0x8c7   : > { %11229 = vmatmul.msk.f32.gmra.mxu0 %vm196_vm0, %v8117_v11  ;;  %9165 = vrot.lane.b32.xlu2 %v16964_v10, %s11515_s6  ;;  %v8760_v6 = vpop.f32.mrf.mxu0  ;;  %v9138_v28 = vpop.permute.xlu2 %9137 }
 0x8c8   : > { %v8858_v48 = vmul.f32 %v16645_v7, %v8821_v55  ;;  %9005 = vrot.lane.b32.xlu0 %v16964_v10, %s11516_s7  ;;  %9464 = vmatpush.msrb.mxu1 %v11248_v45 }
 0x8c9   : > { %v8978_v18 = vpop.permute.xlu0 %8977 }
 0x8ca   : > { %v8895_v54 = vadd.f32 %v16666_v37, %v8858_v48  ;;  %9072 = vst.msk [vmem:[#allocation3 + $0x18] sm:$0xff] %vm430_vm1, %v8978_v18 }
 0x8cb   : > { %9104 = vst.msk [vmem:[#allocation3 + $0x19] sm:$0x7f] %vm465_vm3, %v16708_v46  ;;  %v8506_v33 = vpop.f32.mrf.mxu3 }
 0x8cc   : > { %v16989_v35 = vmax.f32 %v8895_v54, 0.0  ;;  %9103 = vst.msk [vmem:[#allocation3 + $0x11] sm:$0xff] %vm463_vm2, %v16687_v26  ;;  %v8507_v27 = vadd.f32 %v8506_v33, %v8297_v19 }
 0x8cd   : > { %9232 = vst.msk [vmem:[#allocation3 + $0x17] sm:$0xff] %vm595_vm5, %v9138_v28  ;;  %v8118_v4 = vld [vmem:[#allocation2 + $0x100] sm:$0xff]  ;;  %v8300_v2 = vpop.f32.mrf.mxu2  ;;  %v8119_v45 = vld [vmem:[#allocation2 + $0x108] sm:$0xff] }
 0x8ce   : > { %v8822_v51 = vadd.f32 %v8760_v6, %v8507_v27  ;;  %11156 = vmatmul.msk.f32.gmra.mxu2 %vm196_vm0, %v8118_v4 }
 0x8cf   : > { %11230 = vmatmul.msk.f32.gmra.mxu0 %vm196_vm0, %v8118_v4  ;;  %9167 = vrot.lane.b32.xlu2 %v16989_v35, %s11515_s6  ;;  %v8980_v46 = vpop.permute.xlu1 %8979  ;;  %v8763_v26 = vpop.f32.mrf.mxu0 }
 0x8d0   : > { %v8859_v11 = vmul.f32 %v16645_v7, %v8822_v51  ;;  %9007 = vrot.lane.b32.xlu0 %v16989_v35, %s11516_s7  ;;  %9073 = vst.msk [vmem:[#allocation3 + $0x20] sm:$0xff] %vm430_vm1, %v8980_v46  ;;  %v9144_v54 = vpop.permute.xlu2 %9143  ;;  %v9263_v46 = vld [vmem:[#allocation3] sm:$0xff] }
 0x8d1   : > { %9105 = vst.msk [vmem:[#allocation3 + $0x21] sm:$0xff] %vm463_vm2, %v16728_v60  ;;  %v9140_v19 = vpop.permute.xlu0 %9139 }
 0x8d2   : > { %v8896_v55 = vadd.f32 %v16666_v37, %v8859_v11  ;;  %9233 = vst.msk [vmem:[#allocation3 + $0x1f] sm:$0xfe] %vm593_vm4, %v9140_v19  ;;  %v8581_v19 = vld [vmem:[#allocation2 + $0x110] sm:$0xff] }
 0x8d3   : > { %v8509_v6 = vpop.f32.mrf.mxu3 }
 0x8d4   : > { %v17006_v48 = vmax.f32 %v8896_v55, 0.0  ;;  %v8510_v18 = vadd.f32 %v8509_v6, %v8300_v2 }
 0x8d5   : > { %v8303_v28 = vpop.f32.mrf.mxu2 }
 0x8d6   : > { %v8823_v33 = vadd.f32 %v8763_v26, %v8510_v18  ;;  %11157 = vmatmul.msk.f32.gmra.mxu2 %vm196_vm0, %v8119_v45  ;;  %9009 = vrot.lane.b32.xlu1 %v17006_v48, %s11516_s7 }
 0x8d7   : > { %11231 = vmatmul.msk.f32.gmra.mxu0 %vm196_vm0, %v8119_v45  ;;  %v9142_v60 = vpop.permute.xlu1 %9141  ;;  %v8766_v4 = vpop.f32.mrf.mxu0 }
 0x8d8   : > { %v8860_v27 = vmul.f32 %v16645_v7, %v8823_v33  ;;  %9169 = vrot.lane.b32.xlu0 %v17006_v48, %s11515_s6  ;;  %9234 = vst.msk [vmem:[#allocation3 + $0x27] sm:$0xff] %vm595_vm5, %v9142_v60 }
 0x8da   : > { %v8897_v2 = vadd.f32 %v16666_v37, %v8860_v27 }
 0x8db   : > { %v8512_v51 = vpop.f32.mrf.mxu3 }
 0x8dc   : > { %v17017_v11 = vmax.f32 %v8897_v2, 0.0  ;;  %v8513_v26 = vadd.f32 %v8512_v51, %v8303_v28  ;;  %v9264_v51 = vld [vmem:[#allocation3 + $0x8] sm:$0xff] }
 0x8dd   : > { %v8306_v28 = vpop.f32.mrf.mxu2 }
 0x8de   : > { %v8824_v55 = vadd.f32 %v8766_v4, %v8513_v26  ;;  %11292 = vmatmul.msk.f32.vlgmr.msrb.gmra.mxu2 %vm196_vm0, %v9263_v46  ;;  %9011 = vrot.lane.b32.xlu1 %v17017_v11, %s11516_s7 }
 0x8df   : > { %11232 = vmatmul.msk.f32.gmra.mxu0 %vm196_vm0, %v8581_v19  ;;  %v9136_v6 = vpop.permute.xlu1 %9135  ;;  %v8990_v18 = vpop.permute.xlu2 %8989  ;;  %v17023_v45 = vld [vmem:[#allocation3 + $0x20] sm:$0xff]  ;;  %v8582_v19 = vld [vmem:[#allocation2 + $0x118] sm:$0xff] }
 0x8e0   : > { %v8861_v33 = vmul.f32 %v16645_v7, %v8824_v55  ;;  %9171 = vrot.lane.b32.xlu0 %v17017_v11, %s11515_s6  ;;  %9231 = vst.msk [vmem:[#allocation3 + $0xf] sm:$0xfe] %vm593_vm4, %v9136_v6  ;;  %v8984_v60 = vpop.permute.xlu0 %8983  ;;  %11336 = vmatmul.msk.f32.vlgmr.msrb.gmra.mxu3 %vm196_vm0, %v17023_v45  ;;  %v8769_v2 = vpop.f32.mrf.mxu0 }
 0x8e1   : > { %9078 = vst.msk [vmem:[#allocation3 + $0x48] sm:$0xff] %vm430_vm1, %v8990_v18 }
 0x8e2   : > { %v8898_v27 = vadd.f32 %v16666_v37, %v8861_v33  ;;  %9075 = vst.msk [vmem:[#allocation3 + $0x30] sm:$0xff] %vm430_vm1, %v8984_v60  ;;  %v9772_v33 = vld [vmem:[#allocation3 + $0x28] sm:$0xff] }
 0x8e3   : > { %9110 = vst.msk [vmem:[#allocation3 + $0x49] sm:$0x7f] %vm465_vm3, %v16808_v52  ;;  %v8515_v4 = vpop.f32.mrf.mxu3 }
 0x8e4   : > { %v17036_v46 = vmax.f32 %v8898_v27, 0.0  ;;  %v8516_v26 = vadd.f32 %v8515_v4, %v8306_v28 }
 0x8e5   : > { %v8309_v4 = vpop.f32.mrf.mxu2 }
 0x8e6   : > { %v8825_v55 = vadd.f32 %v8769_v2, %v8516_v26  ;;  %11293 = vmatmul.msk.f32.gmra.mxu2 %vm196_vm0, %v9264_v51  ;;  %9173 = vrot.lane.b32.xlu1 %v17036_v46, %s11515_s6 }
 0x8e7   : > { %11233 = vmatmul.msk.f32.gmra.mxu0 %vm196_vm0, %v8582_v19  ;;  %9013 = vrot.lane.b32.xlu2 %v17036_v46, %s11516_s7  ;;  %v8986_v6 = vpop.permute.xlu1 %8985  ;;  %v8992_v52 = vpop.permute.xlu2 %8991  ;;  %v9308_v18 = vld [vmem:[#allocation3 + $0x10] sm:$0xff] }
 0x8e8   : > { %v8862_v60 = vmul.f32 %v16645_v7, %v8825_v55  ;;  %9076 = vst.msk [vmem:[#allocation3 + $0x38] sm:$0xff] %vm430_vm1, %v8986_v6  ;;  %v9146_v28 = vpop.permute.xlu0 %9145  ;;  %11260 = vmatmul.msk.f32.vlgmr.msrb.gmra.mxu1 %vm196_vm0, %v9308_v18  ;;  %11337 = vmatmul.msk.f32.gmra.mxu3 %vm196_vm0, %v9772_v33  ;;  %v8772_v19 = vpop.f32.mrf.mxu0 }
 0x8e9   : > { %9079 = vst.msk [vmem:[#allocation3 + $0x50] sm:$0xff] %vm430_vm1, %v8992_v52 }
 0x8ea   : > { %v8899_v27 = vadd.f32 %v16666_v37, %v8862_v60  ;;  %9107 = vst.msk [vmem:[#allocation3 + $0x31] sm:$0xff] %vm463_vm2, %v16761_v22 }
 0x8eb   : > { %9108 = vst.msk [vmem:[#allocation3 + $0x39] sm:$0x7f] %vm465_vm3, %v16783_v25  ;;  %v8518_v2 = vpop.f32.mrf.mxu3  ;;  %v9309_v25 = vld [vmem:[#allocation3 + $0x18] sm:$0xff] }
 0x8ec   : > { %v17054_v51 = vmax.f32 %v8899_v27, 0.0  ;;  %9235 = vst.msk [vmem:[#allocation3 + $0x2f] sm:$0xfe] %vm593_vm4, %v9144_v54  ;;  %v8519_v26 = vadd.f32 %v8518_v2, %v8309_v4 }
 0x8ed   : > { %9236 = vst.msk [vmem:[#allocation3 + $0x37] sm:$0xff] %vm595_vm5, %v9146_v28 }
 0x8ee   : > { %v8826_v55 = vadd.f32 %v8772_v19, %v8519_v26  ;;  %11294 = vmatmul.msk.f32.gmra.mxu2 %vm196_vm0, %v9308_v18  ;;  %9175 = vrot.lane.b32.xlu1 %v17054_v51, %s11515_s6 }
 0x8ef   : > { %9015 = vrot.lane.b32.xlu2 %v17054_v51, %s11516_s7  ;;  %v8988_v22 = vpop.permute.xlu1 %8987 }
 0x8f0   : > { %v8863_v6 = vmul.f32 %v16645_v7, %v8826_v55  ;;  %9077 = vst.msk [vmem:[#allocation3 + $0x40] sm:$0xff] %vm430_vm1, %v8988_v22  ;;  %11261 = vmatmul.msk.f32.gmra.mxu1 %vm196_vm0, %v9309_v25  ;;  %v9148_v54 = vpop.permute.xlu0 %9147  ;;  %v9154_v27 = vpop.permute.xlu2 %9153 }
 0x8f1   : > { %9109 = vst.msk [vmem:[#allocation3 + $0x41] sm:$0xff] %vm463_vm2, %v16798_v29  ;;  %v8312_v55 = vpop.f32.mrf.mxu2 }
 0x8f2   : > { %v8900_v52 = vadd.f32 %v16666_v37, %v8863_v6  ;;  %9237 = vst.msk [vmem:[#allocation3 + $0x3f] sm:$0xfe] %vm593_vm4, %v9148_v54 }
 0x8f3   : > { %v8521_v26 = vpop.f32.mrf.mxu3 }
 0x8f4   : > { %v17070_v18 = vmax.f32 %v8900_v52, 0.0  ;;  %v9773_v60 = vld [vmem:[#allocation3 + $0x30] sm:$0xff]  ;;  %v9774_v29 = vld [vmem:[#allocation3 + $0x38] sm:$0xff] }
 0x8f5   : > { %11338 = vmatmul.msk.f32.gmra.mxu3 %vm196_vm0, %v9773_v60 }
 0x8f6   : > { %11295 = vmatmul.msk.f32.gmra.mxu2 %vm196_vm0, %v9309_v25  ;;  %9017 = vrot.lane.b32.xlu0 %v17070_v18, %s11516_s7 }
 0x8f7   : > { %9177 = vrot.lane.b32.xlu2 %v17070_v18, %s11515_s6  ;;  %v9150_v28 = vpop.permute.xlu1 %9149 }
 0x8f8   : > { %9238 = vst.msk [vmem:[#allocation3 + $0x47] sm:$0xff] %vm595_vm5, %v9150_v28  ;;  %11262 = vmatmul.msk.f32.gmra.mxu1 %vm196_vm0, %v17023_v45  ;;  %v9156_v2 = vpop.permute.xlu2 %9155 }
 0x8f9   : > { %v8315_v52 = vpop.f32.mrf.mxu2 }
 0x8fd   : > { %11339 = vmatmul.msk.f32.gmra.mxu3 %vm196_vm0, %v9774_v29 }
 0x8fe   : > { %11296 = vmatmul.msk.f32.gmra.mxu2 %vm196_vm0, %v17023_v45 }
 0x8ff   : > { %v9775_v4 = vld [vmem:[#allocation3 + $0x40] sm:$0xff]  ;;  %v9152_v22 = vpop.permute.xlu1 %9151  ;;  %v9776_v45 = vld [vmem:[#allocation3 + $0x48] sm:$0xff] }
 0x900   : > { %11263 = vmatmul.msk.f32.gmra.mxu1 %vm196_vm0, %v9772_v33 }
 0x905   : > { %11340 = vmatmul.msk.f32.gmra.mxu3 %vm196_vm0, %v9775_v4 }
 0x906   : > { %11297 = vmatmul.msk.f32.gmra.mxu2 %vm196_vm0, %v9772_v33 }
 0x908   : > { %11264 = vmatmul.msk.f32.gmra.mxu1 %vm196_vm0, %v9773_v60 }
 0x909   : > { %v8994_v19 = vpop.permute.xlu0 %8993 }
 0x90a   : > { %9080 = vst.msk [vmem:[#allocation3 + $0x58] sm:$0xff] %vm430_vm1, %v8994_v19 }
 0x90b   : > { %9111 = vst.msk [vmem:[#allocation3 + $0x51] sm:$0xff] %vm463_vm2, %v16833_v8  ;;  %v8522_v8 = vadd.f32 %v8521_v26, %v8312_v55 }
 0x90c   : > { %9112 = vst.msk [vmem:[#allocation3 + $0x59] sm:$0x7f] %vm465_vm3, %v16846_v57  ;;  %v8524_v57 = vpop.f32.mrf.mxu3 }
 0x90d   : > { %9239 = vst.msk [vmem:[#allocation3 + $0x4f] sm:$0xfe] %vm593_vm4, %v9152_v22  ;;  %11341 = vmatmul.msk.f32.gmra.mxu3 %vm196_vm0, %v9776_v45  ;;  %v8525_v26 = vadd.f32 %v8524_v57, %v8315_v52 }
 0x90e   : > { %9240 = vst.msk [vmem:[#allocation3 + $0x57] sm:$0xff] %vm595_vm5, %v9154_v27  ;;  %11298 = vmatmul.msk.f32.gmra.mxu2 %vm196_vm0, %v9773_v60 }
 0x90f   : > { %v9002_v33 = vpop.permute.xlu2 %9001 }
 0x910   : > { %9084 = vst.msk [vmem:[#allocation3 + $0x78] sm:$0xff] %vm430_vm1, %v9002_v33  ;;  %11265 = vmatmul.msk.f32.gmra.mxu1 %vm196_vm0, %v9774_v29 }
 0x911   : > { %v8996_v25 = vpop.permute.xlu0 %8995  ;;  %9116 = vst.msk [vmem:[#allocation3 + $0x79] sm:$0x7f] %vm465_vm3, %v16916_v9 }
 0x912   : > { %9081 = vst.msk [vmem:[#allocation3 + $0x60] sm:$0xff] %vm430_vm1, %v8996_v25 }
 0x913   : > { %v8775_v6 = vpop.f32.mrf.mxu0 }
 0x914   : > { %v8827_v54 = vadd.f32 %v8775_v6, %v8522_v8  ;;  %v8527_v33 = vpop.f32.mrf.mxu3 }
 0x915   : > { %v9777_v28 = vld [vmem:[#allocation3 + $0x50] sm:$0xff]  ;;  %v9778_v57 = vld [vmem:[#allocation3 + $0x58] sm:$0xff] }
 0x916   : > { %v8864_v27 = vmul.f32 %v16645_v7, %v8827_v54  ;;  %11342 = vmatmul.msk.f32.gmra.mxu3 %vm196_vm0, %v9777_v28  ;;  %11299 = vmatmul.msk.f32.gmra.mxu2 %vm196_vm0, %v9774_v29 }
 0x917   : > { %v8998_v60 = vpop.permute.xlu1 %8997  ;;  %v9004_v19 = vpop.permute.xlu2 %9003 }
 0x918   : > { %v8901_v22 = vadd.f32 %v16666_v37, %v8864_v27  ;;  %9082 = vst.msk [vmem:[#allocation3 + $0x68] sm:$0xff] %vm430_vm1, %v8998_v60  ;;  %11266 = vmatmul.msk.f32.gmra.mxu1 %vm196_vm0, %v9775_v4  ;;  %v8318_v8 = vpop.f32.mrf.mxu2 }
 0x919   : > { %9085 = vst.msk [vmem:[#allocation3 + $0x80] sm:$0xff] %vm430_vm1, %v9004_v19  ;;  %v9158_v9 = vpop.permute.xlu0 %9157  ;;  %v8528_v54 = vadd.f32 %v8527_v33, %v8318_v8 }
 0x91a   : > { %v17109_v55 = vmax.f32 %v8901_v22, 0.0  ;;  %9113 = vst.msk [vmem:[#allocation3 + $0x61] sm:$0xff] %vm463_vm2, %v16866_v47 }
 0x91b   : > { %9114 = vst.msk [vmem:[#allocation3 + $0x69] sm:$0x7f] %vm465_vm3, %v16886_v62  ;;  %v8778_v29 = vpop.f32.mrf.mxu0 }
 0x91c   : > { %9241 = vst.msk [vmem:[#allocation3 + $0x5f] sm:$0xfe] %vm593_vm4, %v9156_v2  ;;  %v8828_v25 = vadd.f32 %v8778_v29, %v8525_v26  ;;  %9179 = vrot.lane.b32.xlu2 %v17109_v55, %s11515_s6  ;;  %9019 = vrot.lane.b32.xlu0 %v17109_v55, %s11516_s7  ;;  %v8530_v60 = vpop.f32.mrf.mxu3 }
 0x91d   : > { %9242 = vst.msk [vmem:[#allocation3 + $0x67] sm:$0xff] %vm595_vm5, %v9158_v9 }
 0x91e   : > { %v8865_v47 = vmul.f32 %v16645_v7, %v8828_v25  ;;  %11343 = vmatmul.msk.f32.gmra.mxu3 %vm196_vm0, %v9778_v57  ;;  %11300 = vmatmul.msk.f32.gmra.mxu2 %vm196_vm0, %v9775_v4 }
 0x91f   : > { %v9000_v62 = vpop.permute.xlu1 %8999 }
 0x920   : > { %v8902_v2 = vadd.f32 %v16666_v37, %v8865_v47  ;;  %9083 = vst.msk [vmem:[#allocation3 + $0x70] sm:$0xff] %vm430_vm1, %v9000_v62  ;;  %11267 = vmatmul.msk.f32.gmra.mxu1 %vm196_vm0, %v9776_v45  ;;  %v8321_v22 = vpop.f32.mrf.mxu2 }
 0x921   : > { %9115 = vst.msk [vmem:[#allocation3 + $0x71] sm:$0xff] %vm463_vm2, %v16897_v32  ;;  %v9160_v6 = vpop.permute.xlu0 %9159  ;;  %v17141_v32 = vld [vmem:[%s17569_s2 + $0x6] ss:$0 sm:$0xff]  ;;  %v8531_v29 = vadd.f32 %v8530_v60, %v8321_v22  ;;  %v9166_v62 = vpop.permute.xlu2 %9165 }
 0x922   : > { %v17129_v52 = vmax.f32 %v8902_v2, 0.0  ;;  %9243 = vst.msk [vmem:[#allocation3 + $0x6f] sm:$0xfe] %vm593_vm4, %v9160_v6  ;;  %v17159_v6 = vld [vmem:[%s17570_s3 + $0x6] ss:$0 sm:$0xff] }
 0x923   : > { %v8781_v7 = vpop.f32.mrf.mxu0 }
 0x924   : > { %9181 = vrot.lane.b32.xlu0 %v17129_v52, %s11515_s6  ;;  %9021 = vrot.lane.b32.xlu1 %v17129_v52, %s11516_s7  ;;  %v9779_v4 = vld [vmem:[#allocation3 + $0x60] sm:$0xff]  ;;  %v8829_v27 = vadd.f32 %v8781_v7, %v8528_v54  ;;  %v9780_v8 = vld [vmem:[#allocation3 + $0x68] sm:$0xff]  ;;  %v8533_v47 = vpop.f32.mrf.mxu3 }
 0x926   : > { %11344 = vmatmul.msk.f32.gmra.mxu3 %vm196_vm0, %v9779_v4  ;;  %11301 = vmatmul.msk.f32.gmra.mxu2 %vm196_vm0, %v9776_v45  ;;  %v8866_v19 = vmul.f32 %v17141_v32, %v8829_v27 }
 0x927   : > { %v9162_v9 = vpop.permute.xlu1 %9161 }
 0x928   : > { %v8903_v26 = vadd.f32 %v16666_v37, %v8866_v19  ;;  %9244 = vst.msk [vmem:[#allocation3 + $0x77] sm:$0xff] %vm595_vm5, %v9162_v9  ;;  %11268 = vmatmul.msk.f32.gmra.mxu1 %vm196_vm0, %v9777_v28  ;;  %v8324_v2 = vpop.f32.mrf.mxu2 }
 0x929   : > { %v9168_v60 = vpop.permute.xlu2 %9167  ;;  %v8534_v9 = vadd.f32 %v8533_v47, %v8324_v2 }
 0x92a   : > { %v17147_v33 = vmax.f32 %v8903_v26, 0.0 }
 0x92b   : > { %v8784_v25 = vpop.f32.mrf.mxu0 }
 0x92c   : > { %v8830_v45 = vadd.f32 %v8784_v25, %v8531_v29  ;;  %9183 = vrot.lane.b32.xlu0 %v17147_v33, %s11515_s6  ;;  %9023 = vrot.lane.b32.xlu1 %v17147_v33, %s11516_s7  ;;  %v8536_v27 = vpop.f32.mrf.mxu3 }
 0x92e   : > { %11345 = vmatmul.msk.f32.gmra.mxu3 %vm196_vm0, %v9780_v8  ;;  %11302 = vmatmul.msk.f32.gmra.mxu2 %vm196_vm0, %v9777_v28  ;;  %v8867_v37 = vmul.f32 %v17141_v32, %v8830_v45 }
 0x92f   : > { %v9781_v28 = vld [vmem:[#allocation3 + $0x70] sm:$0xff]  ;;  %v9164_v29 = vpop.permute.xlu1 %9163  ;;  %v17177_v45 = vld [vmem:[#allocation3 + $0x78] sm:$0xff] }
 0x930   : > { %v8904_v54 = vadd.f32 %v17159_v6, %v8867_v37  ;;  %11269 = vmatmul.msk.f32.gmra.mxu1 %vm196_vm0, %v9778_v57  ;;  %v8327_v19 = vpop.f32.mrf.mxu2 }
 0x932   : > { %v17163_v7 = vmax.f32 %v8904_v54, 0.0  ;;  %v8537_v54 = vadd.f32 %v8536_v27, %v8327_v19 }
 0x934   : > { %9185 = vrot.lane.b32.xlu1 %v17163_v7, %s11515_s6  ;;  %9025 = vrot.lane.b32.xlu2 %v17163_v7, %s11516_s7 }
 0x936   : > { %11346 = vmatmul.msk.f32.gmra.mxu3 %vm196_vm0, %v9781_v28  ;;  %11303 = vmatmul.msk.f32.gmra.mxu2 %vm196_vm0, %v9778_v57 }
 0x938   : > { %11270 = vmatmul.msk.f32.gmra.mxu1 %vm196_vm0, %v9779_v4 }
 0x93a   : > { %v9006_v22 = vpop.permute.xlu0 %9005 }
 0x93b   : > { %9086 = vst.msk [vmem:[#allocation3 + $0x88] sm:$0xff] %vm430_vm1, %v9006_v22 }
 0x93c   : > { %9117 = vst.msk [vmem:[#allocation3 + $0x81] sm:$0xff] %vm463_vm2, %v16935_v21  ;;  %v8787_v26 = vpop.f32.mrf.mxu0  ;;  %v8539_v21 = vpop.f32.mrf.mxu3 }
 0x93d   : > { %9118 = vst.msk [vmem:[#allocation3 + $0x89] sm:$0x7f] %vm465_vm3, %v16964_v10  ;;  %v8831_v25 = vadd.f32 %v8787_v26, %v8534_v9 }
 0x93e   : > { %9245 = vst.msk [vmem:[#allocation3 + $0x7f] sm:$0xfe] %vm593_vm4, %v9164_v29  ;;  %11347 = vmatmul.msk.f32.gmra.mxu3 %vm196_vm0, %v17177_v45  ;;  %11304 = vmatmul.msk.f32.gmra.mxu2 %vm196_vm0, %v9779_v4 }
 0x93f   : > { %9246 = vst.msk [vmem:[#allocation3 + $0x87] sm:$0xff] %vm595_vm5, %v9166_v62  ;;  %v8868_v57 = vmul.f32 %v17141_v32, %v8831_v25 }
 0x940   : > { %11271 = vmatmul.msk.f32.gmra.mxu1 %vm196_vm0, %v9780_v8 }
 0x941   : > { %v8905_v47 = vadd.f32 %v17159_v6, %v8868_v57  ;;  %v9014_v10 = vpop.permute.xlu2 %9013  ;;  %v8330_v37 = vpop.f32.mrf.mxu2 }
 0x942   : > { %9090 = vst.msk [vmem:[#allocation3 + $0xa8] sm:$0xff] %vm430_vm1, %v9014_v10  ;;  %v9008_v2 = vpop.permute.xlu0 %9007 }
 0x943   : > { %v17188_v22 = vmax.f32 %v8905_v47, 0.0  ;;  %9122 = vst.msk [vmem:[#allocation3 + $0xa9] sm:$0x7f] %vm465_vm3, %v17036_v46  ;;  %v8540_v47 = vadd.f32 %v8539_v21, %v8330_v37 }
 0x944   : > { %9087 = vst.msk [vmem:[#allocation3 + $0x90] sm:$0xff] %vm430_vm1, %v9008_v2  ;;  %v8790_v4 = vpop.f32.mrf.mxu0  ;;  %v8542_v57 = vpop.f32.mrf.mxu3 }
 0x945   : > { %v8832_v62 = vadd.f32 %v8790_v4, %v8537_v54  ;;  %9187 = vrot.lane.b32.xlu1 %v17188_v22, %s11515_s6  ;;  %9027 = vrot.lane.b32.xlu2 %v17188_v22, %s11516_s7 }
 0x946   : > { %v9783_v9 = vld [vmem:[#allocation3 + $0x80] sm:$0xff]  ;;  %11305 = vmatmul.msk.f32.gmra.mxu2 %vm196_vm0, %v9780_v8  ;;  %v9784_v21 = vld [vmem:[#allocation3 + $0x88] sm:$0xff] }
 0x947   : > { %v8869_v27 = vmul.f32 %v17141_v32, %v8832_v62  ;;  %11348 = vmatmul.msk.f32.gmra.mxu3 %vm196_vm0, %v9783_v9 }
 0x948   : > { %v9010_v19 = vpop.permute.xlu1 %9009  ;;  %11272 = vmatmul.msk.f32.gmra.mxu1 %vm196_vm0, %v9781_v28 }
 0x949   : > { %v8906_v46 = vadd.f32 %v17159_v6, %v8869_v27  ;;  %9088 = vst.msk [vmem:[#allocation3 + $0x98] sm:$0xff] %vm430_vm1, %v9010_v19  ;;  %v9016_v26 = vpop.permute.xlu2 %9015  ;;  %v8333_v29 = vpop.f32.mrf.mxu2 }
 0x94a   : > { %9091 = vst.msk [vmem:[#allocation3 + $0xb0] sm:$0xff] %vm430_vm1, %v9016_v26  ;;  %v9170_v25 = vpop.permute.xlu0 %9169  ;;  %v8543_v62 = vadd.f32 %v8542_v57, %v8333_v29 }
 0x94b   : > { %v17204_v10 = vmax.f32 %v8906_v46, 0.0  ;;  %9119 = vst.msk [vmem:[#allocation3 + $0x91] sm:$0xff] %vm463_vm2, %v16989_v35 }
 0x94c   : > { %9120 = vst.msk [vmem:[#allocation3 + $0x99] sm:$0x7f] %vm465_vm3, %v17006_v48  ;;  %v8793_v8 = vpop.f32.mrf.mxu0  ;;  %v8545_v4 = vpop.f32.mrf.mxu3 }
 0x94d   : > { %9247 = vst.msk [vmem:[#allocation3 + $0x8f] sm:$0xfe] %vm593_vm4, %v9168_v60  ;;  %v8833_v2 = vadd.f32 %v8793_v8, %v8540_v47  ;;  %9189 = vrot.lane.b32.xlu2 %v17204_v10, %s11515_s6  ;;  %9029 = vrot.lane.b32.xlu0 %v17204_v10, %s11516_s7 }
 0x94e   : > { %9248 = vst.msk [vmem:[#allocation3 + $0x97] sm:$0xff] %vm595_vm5, %v9170_v25  ;;  %11306 = vmatmul.msk.f32.gmra.mxu2 %vm196_vm0, %v9781_v28 }
 0x94f   : > { %v8870_v35 = vmul.f32 %v17141_v32, %v8833_v2  ;;  %11349 = vmatmul.msk.f32.gmra.mxu3 %vm196_vm0, %v9784_v21 }
 0x950   : > { %v9012_v48 = vpop.permute.xlu1 %9011  ;;  %11273 = vmatmul.msk.f32.gmra.mxu1 %vm196_vm0, %v17177_v45 }
 0x951   : > { %v8907_v60 = vadd.f32 %v17159_v6, %v8870_v35  ;;  %9089 = vst.msk [vmem:[#allocation3 + $0xa0] sm:$0xff] %vm430_vm1, %v9012_v48  ;;  %v8336_v37 = vpop.f32.mrf.mxu2 }
 0x952   : > { %9121 = vst.msk [vmem:[#allocation3 + $0xa1] sm:$0xff] %vm463_vm2, %v17017_v11  ;;  %v9172_v54 = vpop.permute.xlu0 %9171  ;;  %v8546_v57 = vadd.f32 %v8545_v4, %v8336_v37 }
 0x953   : > { %v17225_v28 = vmax.f32 %v8907_v60, 0.0  ;;  %9249 = vst.msk [vmem:[#allocation3 + $0x9f] sm:$0xfe] %vm593_vm4, %v9172_v54 }
 0x954   : > { %v8796_v27 = vpop.f32.mrf.mxu0  ;;  %v8548_v2 = vpop.f32.mrf.mxu3 }
 0x955   : > { %v8834_v19 = vadd.f32 %v8796_v27, %v8543_v62  ;;  %9191 = vrot.lane.b32.xlu2 %v17225_v28, %s11515_s6  ;;  %9031 = vrot.lane.b32.xlu0 %v17225_v28, %s11516_s7  ;;  %v9785_v46 = vld [vmem:[#allocation3 + $0x90] sm:$0xff] }
 0x956   : > { %11307 = vmatmul.msk.f32.gmra.mxu2 %vm196_vm0, %v17177_v45  ;;  %v9786_v45 = vld [vmem:[#allocation3 + $0x98] sm:$0xff] }
 0x957   : > { %v8871_v11 = vmul.f32 %v17141_v32, %v8834_v19  ;;  %11350 = vmatmul.msk.f32.gmra.mxu3 %vm196_vm0, %v9785_v46 }
 0x958   : > { %v9174_v26 = vpop.permute.xlu1 %9173  ;;  %11274 = vmatmul.msk.f32.gmra.mxu1 %vm196_vm0, %v9783_v9 }
 0x959   : > { %v8908_v29 = vadd.f32 %v17159_v6, %v8871_v11  ;;  %9250 = vst.msk [vmem:[#allocation3 + $0xa7] sm:$0xff] %vm595_vm5, %v9174_v26  ;;  %v8339_v25 = vpop.f32.mrf.mxu2 }
 0x95a   : > { %v8549_v54 = vadd.f32 %v8548_v2, %v8339_v25 }
 0x95b   : > { %v17239_v47 = vmax.f32 %v8908_v29, 0.0  ;;  %v17260_v29 = vld [vmem:[%s17569_s2 + $0x7] ss:$0 sm:$0xff] }
 0x95c   : > { %v8799_v8 = vpop.f32.mrf.mxu0 }
 0x95d   : > { %v8835_v35 = vadd.f32 %v8799_v8, %v8546_v57  ;;  %9193 = vrot.lane.b32.xlu0 %v17239_v47, %s11515_s6  ;;  %9033 = vrot.lane.b32.xlu1 %v17239_v47, %s11516_s7  ;;  %v17267_v8 = vld [vmem:[%s17570_s3 + $0x7] ss:$0 sm:$0xff] }
 0x95e   : > { %11308 = vmatmul.msk.f32.gmra.mxu2 %vm196_vm0, %v9783_v9 }
 0x95f   : > { %v8872_v48 = vmul.f32 %v17141_v32, %v8835_v35  ;;  %11351 = vmatmul.msk.f32.gmra.mxu3 %vm196_vm0, %v9786_v45 }
 0x960   : > { %11275 = vmatmul.msk.f32.gmra.mxu1 %vm196_vm0, %v9784_v21  ;;  %v9787_v11 = vld [vmem:[#allocation3 + $0xa0] sm:$0xff] }
 0x961   : > { %v8909_v60 = vadd.f32 %v17159_v6, %v8872_v48  ;;  %v9675_v37 = vpop.f32.mrf.mxu2  ;;  %v9176_v48 = vpop.permute.xlu1 %9175 }
 0x963   : > { %v17250_v4 = vmax.f32 %v8909_v60, 0.0  ;;  %v9929_v9 = vpop.f32.mrf.mxu3 }
 0x964   : > { %v8802_v62 = vpop.f32.mrf.mxu0 }
 0x965   : > { %v8836_v27 = vadd.f32 %v8802_v62, %v8549_v54  ;;  %9195 = vrot.lane.b32.xlu0 %v17250_v4, %s11515_s6  ;;  %9035 = vrot.lane.b32.xlu1 %v17250_v4, %s11516_s7  ;;  %v9466_v19 = vpop.f32.mrf.mxu1  ;;  %v9788_v62 = vld [vmem:[#allocation3 + $0xa8] sm:$0xff] }
 0x966   : > { %11309 = vmatmul.msk.f32.gmra.mxu2 %vm196_vm0, %v9784_v21  ;;  %v9676_v26 = vadd.f32 %v9675_v37, %v9466_v19  ;;  %v9178_v37 = vpop.permute.xlu2 %9177 }
 0x967   : > { %v8873_v25 = vmul.f32 %v17141_v32, %v8836_v27  ;;  %11352 = vmatmul.msk.f32.gmra.mxu3 %vm196_vm0, %v9787_v11 }
 0x968   : > { %v10025_v57 = vadd.f32 %v9929_v9, %v9676_v26  ;;  %v9018_v2 = vpop.permute.xlu0 %9017  ;;  %11276 = vmatmul.msk.f32.gmra.mxu1 %vm196_vm0, %v9785_v46 }
 0x969   : > { %v8910_v21 = vadd.f32 %v17159_v6, %v8873_v25  ;;  %v9678_v35 = vpop.f32.mrf.mxu2  ;;  %9092 = vst.msk [vmem:[#allocation3 + $0xb8] sm:$0xff] %vm430_vm1, %v9018_v2 }
 0x96a   : > { %v10062_v32 = vmul.f32 %v17260_v29, %v10025_v57  ;;  %9123 = vst.msk [vmem:[#allocation3 + $0xb1] sm:$0xff] %vm463_vm2, %v17054_v51 }
 0x96b   : > { %v17276_v60 = vmax.f32 %v8910_v21, 0.0  ;;  %9124 = vst.msk [vmem:[#allocation3 + $0xb9] sm:$0x7f] %vm465_vm3, %v17070_v18  ;;  %v9932_v27 = vpop.f32.mrf.mxu3 }
 0x96c   : > { %v10099_v6 = vadd.f32 %v17267_v8, %v10062_v32  ;;  %9251 = vst.msk [vmem:[#allocation3 + $0xaf] sm:$0xfe] %vm593_vm4, %v9176_v48 }
 0x96d   : > { %9252 = vst.msk [vmem:[#allocation3 + $0xb7] sm:$0xff] %vm595_vm5, %v9178_v37  ;;  %9197 = vrot.lane.b32.xlu1 %v17276_v60, %s11515_s6  ;;  %9037 = vrot.lane.b32.xlu2 %v17276_v60, %s11516_s7  ;;  %v9469_v51 = vpop.f32.mrf.mxu1  ;;  %s11376_s6 = sshll.u32 %s11566_s19, 8  ;;  %s10228_s19 = scalar_lea.sflag [#allocation5], %s188_s28 }
 0x96e   : > { %v10131_v54 = vadd.f32 %v10099_v6, %v15992_v24  ;;  %11310 = vmatmul.msk.f32.gmra.mxu2 %vm196_vm0, %v9785_v46  ;;  %v9679_v18 = vadd.f32 %v9678_v35, %v9469_v51  ;;  %s10239_s9 = scalar_lea.hbm %s17571_s4, %s11376_s6 }
 0x96f   : > { %11353 = vmatmul.msk.f32.gmra.mxu3 %vm196_vm0, %v9788_v62  ;;  %s10242_s11 = sshll.u32 %s10239_s9, 4  ;;  %s10243_s11 = int_to_ptr.hbm [resolvable:$true] %s10242_s11 }
 0x970   : > { %v10163_v9 = vmax.f32 %v10131_v54, 0.0  ;;  %v10026_v19 = vadd.f32 %v9932_v27, %v9679_v18  ;;  %11277 = vmatmul.msk.f32.gmra.mxu1 %vm196_vm0, %v9786_v45  ;;  %s11465_s12 = sshra.s32 %s10243_s11, 4  ;;  %s11466_s12 = int_to_ptr.hbm [resolvable:$true] %s11465_s12 }
 0x971   : > { %v9681_v26 = vpop.f32.mrf.mxu2  ;;  %s11467_s13 = scalar_lea.hbm %s11466_s12, 256  ;;  %p11472_p0 = scmp.lt.s32.totalorder %s11466_s12, %s17571_s4 }
 0x972   : > { %10195 = vst.msk [vmem:[%s17293_s30] sm:$0xff] %vm463_vm2, %v10163_v9  ;;  %v10063_v24 = vmul.f32 %v17260_v29, %v10026_v19  ;;  %p11468_p11 = scmp.ne.s32.totalorder %s11466_s12, %s11467_s13  ;;  %p11473_p1 = scmp.lt.s32.totalorder %s11471_s22, %s11467_s13 }
 0x974   : > { %v10100_v25 = vadd.f32 %v17267_v8, %v10063_v24  ;;  %v9789_v46 = vld [vmem:[#allocation3 + $0xb0] sm:$0xff]  ;;  %p11469_p12 = pnand %p11468_p11, %p11583_p5  ;;  %p11474_p2 = por %p11473_p1, %p11472_p0 }
 0x975   : > { %v9472_v57 = vpop.f32.mrf.mxu1 }
 0x976   : > { %v10132_v2 = vadd.f32 %v10100_v25, %v15963_v14  ;;  %11311 = vmatmul.msk.f32.gmra.mxu2 %vm196_vm0, %v9786_v45  ;;  %v9682_v21 = vadd.f32 %v9681_v26, %v9472_v57  ;;  %v9790_v14 = vld [vmem:[#allocation3 + $0xb8] sm:$0xff]  ;;  %p11470_p13 = pneg %p11469_p12 }
 0x977   : > { %11354 = vmatmul.msk.f32.gmra.mxu3 %vm196_vm0, %v9789_v46 }
 0x978   : > { %v10164_v35 = vmax.f32 %v10132_v2, 0.0  ;;  %v9935_v32 = vpop.f32.mrf.mxu3  ;;  %11278 = vmatmul.msk.f32.gmra.mxu1 %vm196_vm0, %v9787_v11  ;;  %p11475_p3 = pnand %p11474_p2, %p11470_p13 }
 0x979   : > { %v10027_v48 = vadd.f32 %v9935_v32, %v9682_v21  ;;  %v9684_v37 = vpop.f32.mrf.mxu2 }
 0x97a   : > { %10196 = vst.msk [vmem:[%s17293_s30 + $0x8] sm:$0xff] %vm463_vm2, %v10164_v35 }
 0x97b   : > { %v10064_v6 = vmul.f32 %v17260_v29, %v10027_v48 }
 0x97d   : > { %v10101_v51 = vadd.f32 %v17267_v8, %v10064_v6  ;;  %v9475_v54 = vpop.f32.mrf.mxu1 }
 0x97e   : > { %11312 = vmatmul.msk.f32.gmra.mxu2 %vm196_vm0, %v9787_v11  ;;  %v9685_v45 = vadd.f32 %v9684_v37, %v9475_v54  ;;  %v9180_v11 = vpop.permute.xlu2 %9179 }
 0x97f   : > { %v10133_v18 = vadd.f32 %v10101_v51, %v15994_v38  ;;  %11355 = vmatmul.msk.f32.gmra.mxu3 %vm196_vm0, %v9790_v14 }
 0x980   : > { %v9938_v27 = vpop.f32.mrf.mxu3  ;;  %11279 = vmatmul.msk.f32.gmra.mxu1 %vm196_vm0, %v9788_v62 }
 0x981   : > { %v10165_v9 = vmax.f32 %v10133_v18, 0.0  ;;  %v10028_v19 = vadd.f32 %v9938_v27, %v9685_v45  ;;  %v9687_v26 = vpop.f32.mrf.mxu2 }
 0x983   : > { %10197 = vst.msk [vmem:[%s17293_s30 + $0x10] sm:$0xff] %vm463_vm2, %v10165_v9  ;;  %v10065_v24 = vmul.f32 %v17260_v29, %v10028_v19 }
 0x985   : > { %v10102_v25 = vadd.f32 %v17267_v8, %v10065_v24  ;;  %v9478_v57 = vpop.f32.mrf.mxu1 }
 0x986   : > { %11313 = vmatmul.msk.f32.gmra.mxu2 %vm196_vm0, %v9788_v62  ;;  %v9688_v38 = vadd.f32 %v9687_v26, %v9478_v57 }
 0x987   : > { %v10134_v2 = vadd.f32 %v10102_v25, %v16020_v39 }
 0x988   : > { %v9941_v21 = vpop.f32.mrf.mxu3  ;;  %11280 = vmatmul.msk.f32.gmra.mxu1 %vm196_vm0, %v9789_v46 }
 0x989   : > { %v10166_v35 = vmax.f32 %v10134_v2, 0.0  ;;  %v10029_v32 = vadd.f32 %v9941_v21, %v9688_v38  ;;  %v9690_v48 = vpop.f32.mrf.mxu2 }
 0x98b   : > { %10198 = vst.msk [vmem:[%s17293_s30 + $0x18] sm:$0xff] %vm463_vm2, %v10166_v35  ;;  %v10066_v37 = vmul.f32 %v17260_v29, %v10029_v32 }
 0x98d   : > { %v10103_v6 = vadd.f32 %v17267_v8, %v10066_v37  ;;  %v9481_v51 = vpop.f32.mrf.mxu1 }
 0x98e   : > { %11314 = vmatmul.msk.f32.gmra.mxu2 %vm196_vm0, %v9789_v46  ;;  %v9020_v62 = vpop.permute.xlu0 %9019  ;;  %v9691_v54 = vadd.f32 %v9690_v48, %v9481_v51  ;;  %v9026_v45 = vpop.permute.xlu2 %9025 }
 0x98f   : > { %v10135_v39 = vadd.f32 %v10103_v6, %v16047_v59  ;;  %9093 = vst.msk [vmem:[#allocation3 + $0xc0] sm:$0xff] %vm430_vm1, %v9020_v62 }
 0x990   : > { %v9944_v18 = vpop.f32.mrf.mxu3  ;;  %9096 = vst.msk [vmem:[#allocation3 + $0xd8] sm:$0xff] %vm430_vm1, %v9026_v45  ;;  %11281 = vmatmul.msk.f32.gmra.mxu1 %vm196_vm0, %v9790_v14 }
 0x991   : > { %v10167_v27 = vmax.f32 %v10135_v39, 0.0  ;;  %v10030_v9 = vadd.f32 %v9944_v18, %v9691_v54  ;;  %v9693_v19 = vpop.f32.mrf.mxu2  ;;  %9128 = vst.msk [vmem:[#allocation3 + $0xd9] sm:$0x7f] %vm465_vm3, %v17163_v7 }
 0x993   : > { %10199 = vst.msk [vmem:[%s17293_s30 + $0x20] sm:$0xff] %vm463_vm2, %v10167_v27  ;;  %v10067_v46 = vmul.f32 %v17260_v29, %v10030_v9 }
 0x995   : > { %v10104_v59 = vadd.f32 %v17267_v8, %v10067_v46  ;;  %v9484_v26 = vpop.f32.mrf.mxu1 }
 0x996   : > { %v9022_v24 = vpop.permute.xlu1 %9021  ;;  %11315 = vmatmul.msk.f32.gmra.mxu2 %vm196_vm0, %v9790_v14  ;;  %v9694_v25 = vadd.f32 %v9693_v19, %v9484_v26  ;;  %v9182_v7 = vpop.permute.xlu0 %9181 }
 0x997   : > { %v10136_v57 = vadd.f32 %v10104_v59, %v16074_v31  ;;  %9094 = vst.msk [vmem:[#allocation3 + $0xc8] sm:$0xff] %vm430_vm1, %v9022_v24 }
 0x998   : > { %9125 = vst.msk [vmem:[#allocation3 + $0xc1] sm:$0xff] %vm463_vm2, %v17109_v55 }
 0x999   : > { %v10168_v38 = vmax.f32 %v10136_v57, 0.0  ;;  %9126 = vst.msk [vmem:[#allocation3 + $0xc9] sm:$0x7f] %vm465_vm3, %v17129_v52  ;;  %v9947_v2 = vpop.f32.mrf.mxu3  ;;  %v9696_v21 = vpop.f32.mrf.mxu2 }
 0x99a   : > { %9253 = vst.msk [vmem:[#allocation3 + $0xbf] sm:$0xfe] %vm593_vm4, %v9180_v11  ;;  %v10031_v35 = vadd.f32 %v9947_v2, %v9694_v25 }
 0x99b   : > { %10200 = vst.msk [vmem:[%s17293_s30 + $0x28] sm:$0xff] %vm463_vm2, %v10168_v38 }
 0x99c   : > { %9254 = vst.msk [vmem:[#allocation3 + $0xc7] sm:$0xff] %vm595_vm5, %v9182_v7  ;;  %v10068_v31 = vmul.f32 %v17260_v29, %v10031_v35 }
 0x99d   : > { %v9487_v14 = vpop.f32.mrf.mxu1 }
 0x99e   : > { %v10105_v55 = vadd.f32 %v17267_v8, %v10068_v31  ;;  %v9697_v32 = vadd.f32 %v9696_v21, %v9487_v14  ;;  %v9024_v48 = vpop.permute.xlu1 %9023  ;;  %v9184_v11 = vpop.permute.xlu0 %9183 }
 0x99f   : > { %v9028_v37 = vpop.permute.xlu2 %9027  ;;  %9095 = vst.msk [vmem:[#allocation3 + $0xd0] sm:$0xff] %vm430_vm1, %v9024_v48 }
 0x9a0   : > { %v10137_v52 = vadd.f32 %v10105_v55, %v16087_v1  ;;  %9097 = vst.msk [vmem:[#allocation3 + $0xe0] sm:$0xff] %vm430_vm1, %v9028_v37 }
 0x9a1   : > { %v9950_v6 = vpop.f32.mrf.mxu3  ;;  %v9699_v51 = vpop.f32.mrf.mxu2  ;;  %9127 = vst.msk [vmem:[#allocation3 + $0xd1] sm:$0xff] %vm463_vm2, %v17147_v33 }
 0x9a2   : > { %v10169_v62 = vmax.f32 %v10137_v52, 0.0  ;;  %v10032_v54 = vadd.f32 %v9950_v6, %v9697_v32  ;;  %9255 = vst.msk [vmem:[#allocation3 + $0xcf] sm:$0xfe] %vm593_vm4, %v9184_v11 }
 0x9a3   : > { %v9330_v45 = vld [vmem:[#allocation3 + $0xc0] sm:$0xff]  ;;  %v9331_v24 = vld [vmem:[#allocation3 + $0xc8] sm:$0xff] }
 0x9a4   : > { %10201 = vst.msk [vmem:[%s17293_s30 + $0x30] sm:$0xff] %vm463_vm2, %v10169_v62  ;;  %v10069_v39 = vmul.f32 %v17260_v29, %v10032_v54  ;;  %11282 = vmatmul.msk.f32.gmra.mxu1 %vm196_vm0, %v9330_v45  ;;  %11316 = vmatmul.msk.f32.gmra.mxu2 %vm196_vm0, %v9330_v45 }
 0x9a5   : > { %11356 = vmatmul.msk.f32.gmra.mxu3 %vm196_vm0, %v9330_v45  ;;  %v9490_v1 = vpop.f32.mrf.mxu1 }
 0x9a6   : > { %v10106_v18 = vadd.f32 %v17267_v8, %v10069_v39  ;;  %v9700_v33 = vadd.f32 %v9699_v51, %v9490_v1  ;;  %v9186_v27 = vpop.permute.xlu1 %9185 }
 0x9a7   : > { %9256 = vst.msk [vmem:[#allocation3 + $0xd7] sm:$0xff] %vm595_vm5, %v9186_v27  ;;  %v9190_v32 = vpop.permute.xlu2 %9189 }
 0x9a8   : > { %v10138_v9 = vadd.f32 %v10106_v18, %v16105_v5 }
 0x9a9   : > { %v9953_v19 = vpop.f32.mrf.mxu3  ;;  %v9702_v46 = vpop.f32.mrf.mxu2 }
 0x9aa   : > { %v10170_v59 = vmax.f32 %v10138_v9, 0.0  ;;  %v10033_v26 = vadd.f32 %v9953_v19, %v9700_v33 }
 0x9ac   : > { %10202 = vst.msk [vmem:[%s17293_s30 + $0x38] sm:$0xff] %vm463_vm2, %v10170_v59  ;;  %v10070_v25 = vmul.f32 %v17260_v29, %v10033_v26  ;;  %11283 = vmatmul.msk.f32.gmra.mxu1 %vm196_vm0, %v9331_v24  ;;  %11317 = vmatmul.msk.f32.gmra.mxu2 %vm196_vm0, %v9331_v24 }
 0x9ad   : > { %11357 = vmatmul.msk.f32.gmra.mxu3 %vm196_vm0, %v9331_v24  ;;  %v9493_v57 = vpop.f32.mrf.mxu1 }
 0x9ae   : > { %v10107_v7 = vadd.f32 %v17267_v8, %v10070_v25  ;;  %v9703_v5 = vadd.f32 %v9702_v46, %v9493_v57  ;;  %v9332_v35 = vld [vmem:[#allocation3 + $0xd0] sm:$0xff]  ;;  %v9333_v54 = vld [vmem:[#allocation3 + $0xd8] sm:$0xff] }
 0x9af   : > { %v9192_v18 = vpop.permute.xlu2 %9191 }
 0x9b0   : > { %v10139_v38 = vadd.f32 %v10107_v7, %v16121_v49 }
 0x9b1   : > { %v9956_v2 = vpop.f32.mrf.mxu3  ;;  %v9705_v21 = vpop.f32.mrf.mxu2 }
 0x9b2   : > { %v10171_v31 = vmax.f32 %v10139_v38, 0.0  ;;  %v10034_v14 = vadd.f32 %v9956_v2, %v9703_v5 }
 0x9b4   : > { %10203 = vst.msk [vmem:[%s17293_s30 + $0x40] sm:$0xff] %vm463_vm2, %v10171_v31  ;;  %v10071_v55 = vmul.f32 %v17260_v29, %v10034_v14  ;;  %11284 = vmatmul.msk.f32.gmra.mxu1 %vm196_vm0, %v9332_v35  ;;  %11318 = vmatmul.msk.f32.gmra.mxu2 %vm196_vm0, %v9332_v35 }
 0x9b5   : > { %11358 = vmatmul.msk.f32.gmra.mxu3 %vm196_vm0, %v9332_v35  ;;  %v9496_v48 = vpop.f32.mrf.mxu1 }
 0x9b6   : > { %v10108_v49 = vadd.f32 %v17267_v8, %v10071_v55  ;;  %v9706_v37 = vadd.f32 %v9705_v21, %v9496_v48 }
 0x9b7   : > { %v9188_v46 = vpop.permute.xlu1 %9187 }
 0x9b8   : > { %v10140_v52 = vadd.f32 %v10108_v49, %v16131_v36 }
 0x9b9   : > { %v9959_v11 = vpop.f32.mrf.mxu3  ;;  %v9708_v6 = vpop.f32.mrf.mxu2 }
 0x9ba   : > { %v10172_v51 = vmax.f32 %v10140_v52, 0.0  ;;  %v10035_v62 = vadd.f32 %v9959_v11, %v9706_v37 }
 0x9bc   : > { %10204 = vst.msk [vmem:[%s17293_s30 + $0x48] sm:$0xff] %vm463_vm2, %v10172_v51  ;;  %v10072_v45 = vmul.f32 %v17260_v29, %v10035_v62  ;;  %11285 = vmatmul.msk.f32.gmra.mxu1 %vm196_vm0, %v9333_v54  ;;  %11319 = vmatmul.msk.f32.gmra.mxu2 %vm196_vm0, %v9333_v54 }
 0x9bd   : > { %11359 = vmatmul.msk.f32.gmra.mxu3 %vm196_vm0, %v9333_v54  ;;  %v9499_v39 = vpop.f32.mrf.mxu1 }
 0x9be   : > { %v10109_v1 = vadd.f32 %v17267_v8, %v10072_v45  ;;  %v9709_v36 = vadd.f32 %v9708_v6, %v9499_v39 }
 0x9bf   : > { %v9030_v33 = vpop.permute.xlu0 %9029 }
 0x9c0   : > { %v10141_v27 = vadd.f32 %v10109_v1, %v16148_v44  ;;  %9098 = vst.msk [vmem:[#allocation3 + $0xe8] sm:$0xff] %vm430_vm1, %v9030_v33 }
 0x9c1   : > { %9129 = vst.msk [vmem:[#allocation3 + $0xe1] sm:$0xff] %vm463_vm2, %v17188_v22  ;;  %v9962_v9 = vpop.f32.mrf.mxu3  ;;  %v9711_v19 = vpop.f32.mrf.mxu2 }
 0x9c2   : > { %v10173_v59 = vmax.f32 %v10141_v27, 0.0  ;;  %9130 = vst.msk [vmem:[#allocation3 + $0xe9] sm:$0x7f] %vm465_vm3, %v17204_v10  ;;  %v10036_v26 = vadd.f32 %v9962_v9, %v9709_v36 }
 0x9c3   : > { %9257 = vst.msk [vmem:[#allocation3 + $0xdf] sm:$0xfe] %vm593_vm4, %v9188_v46 }
 0x9c4   : > { %10205 = vst.msk [vmem:[%s17293_s30 + $0x50] sm:$0xff] %vm463_vm2, %v10173_v59  ;;  %v10073_v44 = vmul.f32 %v17260_v29, %v10036_v26 }
 0x9c5   : > { %9258 = vst.msk [vmem:[#allocation3 + $0xe7] sm:$0xff] %vm595_vm5, %v9190_v32  ;;  %v9502_v24 = vpop.f32.mrf.mxu1 }
 0x9c6   : > { %v10110_v22 = vadd.f32 %v17267_v8, %v10073_v44  ;;  %v9712_v7 = vadd.f32 %v9711_v19, %v9502_v24 }
 0x9c7   : > { %v9038_v25 = vpop.permute.xlu2 %9037  ;;  %v9032_v57 = vpop.permute.xlu0 %9031 }
 0x9c8   : > { %v10142_v5 = vadd.f32 %v10110_v22, %v16162_v20  ;;  %9102 = vst.msk [vmem:[#allocation3 + $0x108] sm:$0xff] %vm430_vm1, %v9038_v25 }
 0x9c9   : > { %9134 = vst.msk [vmem:[#allocation3 + $0x109] sm:$0x7f] %vm465_vm3, %v17276_v60  ;;  %v9714_v10 = vpop.f32.mrf.mxu2 }
 0x9ca   : > { %v10174_v38 = vmax.f32 %v10142_v5, 0.0  ;;  %9099 = vst.msk [vmem:[#allocation3 + $0xf0] sm:$0xff] %vm430_vm1, %v9032_v57  ;;  %v9965_v2 = vpop.f32.mrf.mxu3 }
 0x9cb   : > { %v10037_v21 = vadd.f32 %v9965_v2, %v9712_v7 }
 0x9cc   : > { %10206 = vst.msk [vmem:[%s17293_s30 + $0x58] sm:$0xff] %vm463_vm2, %v10174_v38  ;;  %v9334_v35 = vld [vmem:[#allocation3 + $0xe0] sm:$0xff]  ;;  %v9335_v6 = vld [vmem:[#allocation3 + $0xe8] sm:$0xff] }
 0x9cd   : > { %v10074_v31 = vmul.f32 %v17260_v29, %v10037_v21  ;;  %11286 = vmatmul.msk.f32.gmra.mxu1 %vm196_vm0, %v9334_v35  ;;  %11320 = vmatmul.msk.f32.gmra.mxu2 %vm196_vm0, %v9334_v35  ;;  %v9505_v20 = vpop.f32.mrf.mxu1 }
 0x9ce   : > { %11360 = vmatmul.msk.f32.gmra.mxu3 %vm196_vm0, %v9334_v35  ;;  %v9715_v32 = vadd.f32 %v9714_v10, %v9505_v20 }
 0x9cf   : > { %v10111_v60 = vadd.f32 %v17267_v8, %v10074_v31  ;;  %v9034_v14 = vpop.permute.xlu1 %9033  ;;  %v9194_v55 = vpop.permute.xlu0 %9193 }
 0x9d0   : > { %9100 = vst.msk [vmem:[#allocation3 + $0xf8] sm:$0xff] %vm430_vm1, %v9034_v14 }
 0x9d1   : > { %v10143_v48 = vadd.f32 %v10111_v60, %v16186_v30  ;;  %9131 = vst.msk [vmem:[#allocation3 + $0xf1] sm:$0xff] %vm463_vm2, %v17225_v28  ;;  %v9717_v49 = vpop.f32.mrf.mxu2 }
 0x9d2   : > { %9132 = vst.msk [vmem:[#allocation3 + $0xf9] sm:$0x7f] %vm465_vm3, %v17239_v47  ;;  %v9968_v37 = vpop.f32.mrf.mxu3 }
 0x9d3   : > { %v10175_v52 = vmax.f32 %v10143_v48, 0.0  ;;  %9259 = vst.msk [vmem:[#allocation3 + $0xef] sm:$0xfe] %vm593_vm4, %v9192_v18  ;;  %v10038_v11 = vadd.f32 %v9968_v37, %v9715_v32 }
 0x9d4   : > { %9260 = vst.msk [vmem:[#allocation3 + $0xf7] sm:$0xff] %vm595_vm5, %v9194_v55 }
 0x9d5   : > { %10207 = vst.msk [vmem:[%s17293_s30 + $0x60] sm:$0xff] %vm463_vm2, %v10175_v52  ;;  %v10075_v51 = vmul.f32 %v17260_v29, %v10038_v11  ;;  %11287 = vmatmul.msk.f32.gmra.mxu1 %vm196_vm0, %v9335_v6  ;;  %11321 = vmatmul.msk.f32.gmra.mxu2 %vm196_vm0, %v9335_v6  ;;  %v9508_v30 = vpop.f32.mrf.mxu1 }
 0x9d6   : > { %11361 = vmatmul.msk.f32.gmra.mxu3 %vm196_vm0, %v9335_v6  ;;  %v9718_v62 = vadd.f32 %v9717_v49, %v9508_v30 }
 0x9d7   : > { %v10112_v28 = vadd.f32 %v17267_v8, %v10075_v51  ;;  %v9036_v47 = vpop.permute.xlu1 %9035  ;;  %v9196_v45 = vpop.permute.xlu0 %9195 }
 0x9d8   : > { %9101 = vst.msk [vmem:[#allocation3 + $0x100] sm:$0xff] %vm430_vm1, %v9036_v47 }
 0x9d9   : > { %v10144_v54 = vadd.f32 %v10112_v28, %v16203_v58  ;;  %9133 = vst.msk [vmem:[#allocation3 + $0x101] sm:$0xff] %vm463_vm2, %v17250_v4  ;;  %v9720_v39 = vpop.f32.mrf.mxu2 }
 0x9da   : > { %9261 = vst.msk [vmem:[#allocation3 + $0xff] sm:$0xfe] %vm593_vm4, %v9196_v45  ;;  %v9971_v1 = vpop.f32.mrf.mxu3 }
 0x9db   : > { %v10176_v36 = vmax.f32 %v10144_v54, 0.0  ;;  %v10039_v18 = vadd.f32 %v9971_v1, %v9718_v62  ;;  %v9336_v33 = vld [vmem:[#allocation3 + $0xf0] sm:$0xff]  ;;  %v9337_v22 = vld [vmem:[#allocation3 + $0xf8] sm:$0xff] }
 0x9dc   : > { %v9801_v62 = vld [vmem:[#allocation3 + $0x110] sm:$0xff] }
 0x9dd   : > { %10208 = vst.msk [vmem:[%s17293_s30 + $0x68] sm:$0xff] %vm463_vm2, %v10176_v36  ;;  %v10076_v27 = vmul.f32 %v17260_v29, %v10039_v18  ;;  %11288 = vmatmul.msk.f32.gmra.mxu1 %vm196_vm0, %v9336_v33  ;;  %11322 = vmatmul.msk.f32.gmra.mxu2 %vm196_vm0, %v9336_v33  ;;  %v9511_v58 = vpop.f32.mrf.mxu1 }
 0x9de   : > { %11362 = vmatmul.msk.f32.gmra.mxu3 %vm196_vm0, %v9336_v33  ;;  %v9721_v19 = vadd.f32 %v9720_v39, %v9511_v58  ;;  %v9802_v58 = vld [vmem:[#allocation3 + $0x118] sm:$0xff] }
 0x9df   : > { %v10113_v4 = vadd.f32 %v17267_v8, %v10076_v27  ;;  %v9198_v9 = vpop.permute.xlu1 %9197 }
 0x9e0   : > { %9262 = vst.msk [vmem:[#allocation3 + $0x107] sm:$0xff] %vm595_vm5, %v9198_v9 }
 0x9e1   : > { %v10145_v46 = vadd.f32 %v10113_v4, %v16222_v61  ;;  %v9723_v59 = vpop.f32.mrf.mxu2 }
 0x9e2   : > { %v9974_v26 = vpop.f32.mrf.mxu3 }
 0x9e3   : > { %v10177_v44 = vmax.f32 %v10145_v46, 0.0  ;;  %v10040_v24 = vadd.f32 %v9974_v26, %v9721_v19 }
 0x9e5   : > { %10209 = vst.msk [vmem:[%s17293_s30 + $0x70] sm:$0xff] %vm463_vm2, %v10177_v44  ;;  %v10077_v25 = vmul.f32 %v17260_v29, %v10040_v24  ;;  %11289 = vmatmul.msk.f32.gmra.mxu1 %vm196_vm0, %v9337_v22  ;;  %11323 = vmatmul.msk.f32.gmra.mxu2 %vm196_vm0, %v9337_v22  ;;  %v9514_v57 = vpop.f32.mrf.mxu1 }
 0x9e6   : > { %11363 = vmatmul.msk.f32.gmra.mxu3 %vm196_vm0, %v9337_v22  ;;  %v9724_v61 = vadd.f32 %v9723_v59, %v9514_v57 }
 0x9e7   : > { %v10114_v7 = vadd.f32 %v17267_v8, %v10077_v25  ;;  %v9338_v35 = vld [vmem:[#allocation3 + $0x100] sm:$0xff]  ;;  %v9339_v49 = vld [vmem:[#allocation3 + $0x108] sm:$0xff] }
 0x9e9   : > { %v10146_v5 = vadd.f32 %v10114_v7, %v16243_v43  ;;  %v9726_v38 = vpop.f32.mrf.mxu2 }
 0x9ea   : > { %v9977_v10 = vpop.f32.mrf.mxu3 }
 0x9eb   : > { %v10178_v2 = vmax.f32 %v10146_v5, 0.0  ;;  %v10041_v21 = vadd.f32 %v9977_v10, %v9724_v61 }
 0x9ed   : > { %10210 = vst.msk [vmem:[%s17293_s30 + $0x78] sm:$0xff] %vm463_vm2, %v10178_v2  ;;  %v10078_v31 = vmul.f32 %v17260_v29, %v10041_v21  ;;  %11290 = vmatmul.msk.f32.gmra.mxu1 %vm196_vm0, %v9338_v35  ;;  %v9517_v20 = vpop.f32.mrf.mxu1 }
 0x9ee   : > { %11364 = vmatmul.msk.f32.gmra.mxu3 %vm196_vm0, %v9338_v35  ;;  %v9727_v14 = vadd.f32 %v9726_v38, %v9517_v20 }
 0x9ef   : > { %v10115_v60 = vadd.f32 %v17267_v8, %v10078_v31 }
 0x9f1   : > { %v10147_v43 = vadd.f32 %v10115_v60, %v16267_v0  ;;  %v9729_v37 = vpop.f32.mrf.mxu2 }
 0x9f2   : > { %v9980_v55 = vpop.f32.mrf.mxu3 }
 0x9f3   : > { %v10179_v32 = vmax.f32 %v10147_v43, 0.0  ;;  %v10042_v48 = vadd.f32 %v9980_v55, %v9727_v14 }
 0x9f5   : > { %10211 = vst.msk [vmem:[%s17293_s30 + $0x80] sm:$0xff] %vm463_vm2, %v10179_v32  ;;  %v10079_v52 = vmul.f32 %v17260_v29, %v10042_v48  ;;  %11291 = vmatmul.msk.f32.gmra.mxu1 %vm196_vm0, %v9339_v49  ;;  %v9520_v11 = vpop.f32.mrf.mxu1 }
 0x9f6   : > { %11365 = vmatmul.msk.f32.gmra.mxu3 %vm196_vm0, %v9339_v49  ;;  %v9730_v51 = vadd.f32 %v9729_v37, %v9520_v11 }
 0x9f7   : > { %v10116_v6 = vadd.f32 %v17267_v8, %v10079_v52 }
 0x9f9   : > { %v10148_v0 = vadd.f32 %v10116_v6, %v16291_v16  ;;  %v9732_v39 = vpop.f32.mrf.mxu2 }
 0x9fa   : > { %v9983_v30 = vpop.f32.mrf.mxu3 }
 0x9fb   : > { %v10180_v28 = vmax.f32 %v10148_v0, 0.0  ;;  %v10043_v47 = vadd.f32 %v9983_v30, %v9730_v51 }
 0x9fd   : > { %10212 = vst.msk [vmem:[%s17293_s30 + $0x88] sm:$0xff] %vm463_vm2, %v10180_v28  ;;  %v10080_v54 = vmul.f32 %v17260_v29, %v10043_v47  ;;  %v9523_v45 = vpop.f32.mrf.mxu1 }
 0x9fe   : > { %11366 = vmatmul.msk.f32.gmra.mxu3 %vm196_vm0, %v9801_v62  ;;  %v9733_v36 = vadd.f32 %v9732_v39, %v9523_v45 }
 0x9ff   : > { %v10117_v1 = vadd.f32 %v17267_v8, %v10080_v54 }
 0xa01   : > { %v10149_v18 = vadd.f32 %v10117_v1, %v16309_v34  ;;  %v9735_v34 = vpop.f32.mrf.mxu2 }
 0xa02   : > { %v9986_v16 = vpop.f32.mrf.mxu3 }
 0xa03   : > { %v10181_v33 = vmax.f32 %v10149_v18, 0.0  ;;  %v10044_v27 = vadd.f32 %v9986_v16, %v9733_v36 }
 0xa05   : > { %10213 = vst.msk [vmem:[%s17293_s30 + $0x90] sm:$0xff] %vm463_vm2, %v10181_v33  ;;  %v10081_v4 = vmul.f32 %v17260_v29, %v10044_v27  ;;  %v9526_v59 = vpop.f32.mrf.mxu1 }
 0xa06   : > { %11367 = vmatmul.msk.f32.gmra.mxu3 %vm196_vm0, %v9802_v58  ;;  %v9736_v26 = vadd.f32 %v9735_v34, %v9526_v59 }
 0xa07   : > { %v10118_v9 = vadd.f32 %v17267_v8, %v10081_v4 }
 0xa09   : > { %v10150_v19 = vadd.f32 %v10118_v9, %v16322_v13  ;;  %v9738_v22 = vpop.f32.mrf.mxu2 }
 0xa0b   : > { %v10182_v46 = vmax.f32 %v10150_v19, 0.0 }
 0xa0d   : > { %10214 = vst.msk [vmem:[%s17293_s30 + $0x98] sm:$0xff] %vm463_vm2, %v10182_v46  ;;  %v9529_v44 = vpop.f32.mrf.mxu1 }
 0xa0e   : > { %v9739_v61 = vadd.f32 %v9738_v22, %v9529_v44 }
 0xa11   : > { %v9741_v21 = vpop.f32.mrf.mxu2 }
 0xa19   : > { %v9744_v48 = vpop.f32.mrf.mxu2 }
 0xa21   : > { %v9532_v5 = vpop.f32.mrf.mxu1 }
 0xa22   : > { %v9742_v20 = vadd.f32 %v9741_v21, %v9532_v5 }
 0xa27   : > { %v9747_v30 = vpop.f32.mrf.mxu2 }
 0xa28   : > { %v9989_v24 = vpop.f32.mrf.mxu3 }
 0xa29   : > { %v10045_v25 = vadd.f32 %v9989_v24, %v9736_v26  ;;  %v9535_v43 = vpop.f32.mrf.mxu1 }
 0xa2a   : > { %v9745_v37 = vadd.f32 %v9744_v48, %v9535_v43 }
 0xa2b   : > { %v10082_v57 = vmul.f32 %v17260_v29, %v10045_v25 }
 0xa2d   : > { %v10119_v7 = vadd.f32 %v17267_v8, %v10082_v57 }
 0xa2f   : > { %v10151_v13 = vadd.f32 %v10119_v7, %v16341_v42  ;;  %v9750_v45 = vpop.f32.mrf.mxu2 }
 0xa30   : > { %v9992_v10 = vpop.f32.mrf.mxu3 }
 0xa31   : > { %v10183_v38 = vmax.f32 %v10151_v13, 0.0  ;;  %v10046_v2 = vadd.f32 %v9992_v10, %v9739_v61  ;;  %v9538_v6 = vpop.f32.mrf.mxu1 }
 0xa33   : > { %10215 = vst.msk [vmem:[%s17293_s30 + $0xa0] sm:$0xff] %vm463_vm2, %v10183_v38  ;;  %v10083_v35 = vmul.f32 %v17260_v29, %v10046_v2 }
 0xa35   : > { %v10120_v31 = vadd.f32 %v17267_v8, %v10083_v35 }
 0xa37   : > { %v10152_v60 = vadd.f32 %v10120_v31, %v16363_v3  ;;  %v9753_v33 = vpop.f32.mrf.mxu2 }
 0xa38   : > { %v9995_v14 = vpop.f32.mrf.mxu3 }
 0xa39   : > { %v10184_v55 = vmax.f32 %v10152_v60, 0.0  ;;  %v10047_v32 = vadd.f32 %v9995_v14, %v9742_v20  ;;  %v9541_v54 = vpop.f32.mrf.mxu1 }
 0xa3a   : > { %v9751_v27 = vadd.f32 %v9750_v45, %v9541_v54 }
 0xa3b   : > { %10216 = vst.msk [vmem:[%s17293_s30 + $0xa8] sm:$0xff] %vm463_vm2, %v10184_v55  ;;  %v10084_v42 = vmul.f32 %v17260_v29, %v10047_v32 }
 0xa3d   : > { %v10121_v49 = vadd.f32 %v17267_v8, %v10084_v42 }
 0xa3f   : > { %v10153_v52 = vadd.f32 %v10121_v49, %v16390_v23  ;;  %v9748_v23 = vadd.f32 %v9747_v30, %v9538_v6  ;;  %v9756_v44 = vpop.f32.mrf.mxu2 }
 0xa40   : > { %v9998_v11 = vpop.f32.mrf.mxu3 }
 0xa41   : > { %v10185_v51 = vmax.f32 %v10153_v52, 0.0  ;;  %v10048_v0 = vadd.f32 %v9998_v11, %v9745_v37 }
 0xa43   : > { %10217 = vst.msk [vmem:[%s17293_s30 + $0xb0] sm:$0xff] %vm463_vm2, %v10185_v51  ;;  %v10085_v3 = vmul.f32 %v17260_v29, %v10048_v0 }
 0xa45   : > { %v10122_v28 = vadd.f32 %v17267_v8, %v10085_v3 }
 0xa47   : > { %v10154_v47 = vadd.f32 %v10122_v28, %v16404_v15 }
 0xa49   : > { %v10186_v62 = vmax.f32 %v10154_v47, 0.0 }
 0xa4a   : > { %v9544_v36 = vpop.f32.mrf.mxu1 }
 0xa4b   : > { %10218 = vst.msk [vmem:[%s17293_s30 + $0xb8] sm:$0xff] %vm463_vm2, %v10186_v62  ;;  %v9754_v34 = vadd.f32 %v9753_v33, %v9544_v36 }
 0xa50   : > { %v9759_v13 = vpop.f32.mrf.mxu2 }
 0xa51   : > { %v10001_v39 = vpop.f32.mrf.mxu3 }
 0xa52   : > { %v10049_v1 = vadd.f32 %v10001_v39, %v9748_v23  ;;  %v9547_v46 = vpop.f32.mrf.mxu1 }
 0xa53   : > { %v9757_v61 = vadd.f32 %v9756_v44, %v9547_v46 }
 0xa54   : > { %v10086_v18 = vmul.f32 %v17260_v29, %v10049_v1 }
 0xa56   : > { %v10123_v16 = vadd.f32 %v17267_v8, %v10086_v18 }
 0xa58   : > { %v10155_v58 = vadd.f32 %v10123_v16, %v16494_v63  ;;  %v9762_v55 = vpop.f32.mrf.mxu2 }
 0xa59   : > { %v10004_v15 = vpop.f32.mrf.mxu3 }
 0xa5a   : > { %v10187_v4 = vmax.f32 %v10155_v58, 0.0  ;;  %v10050_v9 = vadd.f32 %v10004_v15, %v9751_v27  ;;  %v9550_v7 = vpop.f32.mrf.mxu1 }
 0xa5b   : > { %v9760_v35 = vadd.f32 %v9759_v13, %v9550_v7 }
 0xa5c   : > { %10219 = vst.msk [vmem:[%s17293_s30 + $0xc0] sm:$0xff] %vm463_vm2, %v10187_v4  ;;  %v10087_v19 = vmul.f32 %v17260_v29, %v10050_v9 }
 0xa5e   : > { %v10124_v59 = vadd.f32 %v17267_v8, %v10087_v19 }
 0xa60   : > { %v10156_v26 = vadd.f32 %v10124_v59, %v16518_v53  ;;  %v9765_v6 = vpop.f32.mrf.mxu2 }
 0xa61   : > { %v10007_v24 = vpop.f32.mrf.mxu3 }
 0xa62   : > { %v10188_v22 = vmax.f32 %v10156_v26, 0.0  ;;  %v10051_v25 = vadd.f32 %v10007_v24, %v9754_v34  ;;  %v9553_v20 = vpop.f32.mrf.mxu1 }
 0xa63   : > { %v9763_v42 = vadd.f32 %v9762_v55, %v9553_v20 }
 0xa64   : > { %10220 = vst.msk [vmem:[%s17293_s30 + $0xc8] sm:$0xff] %vm463_vm2, %v10188_v22  ;;  %v10088_v63 = vmul.f32 %v17260_v29, %v10051_v25 }
 0xa66   : > { %v10125_v57 = vadd.f32 %v17267_v8, %v10088_v63 }
 0xa68   : > { %v10157_v5 = vadd.f32 %v10125_v57, %v16543_v50  ;;  %v9768_v45 = vpop.f32.mrf.mxu2 }
 0xa69   : > { %v10010_v10 = vpop.f32.mrf.mxu3 }
 0xa6a   : > { %v10189_v38 = vmax.f32 %v10157_v5, 0.0  ;;  %v10052_v2 = vadd.f32 %v10010_v10, %v9757_v61  ;;  %v9556_v11 = vpop.f32.mrf.mxu1 }
 0xa6b   : > { %v9766_v0 = vadd.f32 %v9765_v6, %v9556_v11 }
 0xa6c   : > { %10221 = vst.msk [vmem:[%s17293_s30 + $0xd0] sm:$0xff] %vm463_vm2, %v10189_v38  ;;  %v10089_v53 = vmul.f32 %v17260_v29, %v10052_v2 }
 0xa6e   : > { %v10126_v21 = vadd.f32 %v17267_v8, %v10089_v53 }
 0xa70   : > { %v10158_v31 = vadd.f32 %v10126_v21, %v16565_v12 }
 0xa71   : > { %v10013_v60 = vpop.f32.mrf.mxu3 }
 0xa72   : > { %v10190_v14 = vmax.f32 %v10158_v31, 0.0  ;;  %v10053_v43 = vadd.f32 %v10013_v60, %v9760_v35  ;;  %v9559_v62 = vpop.f32.mrf.mxu1 }
 0xa73   : > { %v9769_v23 = vadd.f32 %v9768_v45, %v9559_v62 }
 0xa74   : > { %10222 = vst.msk [vmem:[%s17293_s30 + $0xd8] sm:$0xff] %vm463_vm2, %v10190_v14  ;;  %v10090_v50 = vmul.f32 %v17260_v29, %v10053_v43 }
 0xa76   : > { %v10127_v32 = vadd.f32 %v17267_v8, %v10090_v50 }
 0xa78   : > { %v10159_v48 = vadd.f32 %v10127_v32, %v16607_v17 }
 0xa79   : > { %v10016_v49 = vpop.f32.mrf.mxu3 }
 0xa7a   : > { %v10191_v37 = vmax.f32 %v10159_v48, 0.0  ;;  %v10054_v52 = vadd.f32 %v10016_v49, %v9763_v42 }
 0xa7c   : > { %10223 = vst.msk [vmem:[%s17293_s30 + $0xe0] sm:$0xff] %vm463_vm2, %v10191_v37  ;;  %v10091_v12 = vmul.f32 %v17260_v29, %v10054_v52 }
 0xa7e   : > { %v10128_v51 = vadd.f32 %v17267_v8, %v10091_v12 }
 0xa80   : > { %v10160_v3 = vadd.f32 %v10128_v51, %v16629_v41 }
 0xa81   : > { %v10019_v30 = vpop.f32.mrf.mxu3 }
 0xa82   : > { %v10192_v28 = vmax.f32 %v10160_v3, 0.0  ;;  %v10055_v47 = vadd.f32 %v10019_v30, %v9766_v0 }
 0xa84   : > { %10224 = vst.msk [vmem:[%s17293_s30 + $0xe8] sm:$0xff] %vm463_vm2, %v10192_v28  ;;  %v10092_v17 = vmul.f32 %v17260_v29, %v10055_v47 }
 0xa86   : > { %v10129_v54 = vadd.f32 %v17267_v8, %v10092_v17 }
 0xa88   : > { %v10161_v39 = vadd.f32 %v10129_v54, %v16661_v56 }
 0xa89   : > { %v10022_v41 = vpop.f32.mrf.mxu3 }
 0xa8a   : > { %v10193_v1 = vmax.f32 %v10161_v39, 0.0  ;;  %v10056_v36 = vadd.f32 %v10022_v41, %v9769_v23 }
 0xa8c   : > { %10225 = vst.msk [vmem:[%s17293_s30 + $0xf0] sm:$0xff] %vm463_vm2, %v10193_v1  ;;  %v10093_v18 = vmul.f32 %v17260_v29, %v10056_v36 }
 0xa8e   : > { %v10130_v16 = vadd.f32 %v17267_v8, %v10093_v18 }
 0xa90   : > { %v10162_v56 = vadd.f32 %v10130_v16, %v16685_v40 }
 0xa92   : > { %v10194_v33 = vmax.f32 %v10162_v56, 0.0 }
 0xa94   : > { %10226 = vst.msk [vmem:[%s17293_s30 + $0xf8] sm:$0xff] %vm463_vm2, %v10194_v33 }
 0xa95   : > { %11478 = shalt.err (!%p11475_p3)
}
 0xa96   : > { %s11518_s27 = smov 128   ;;  %s11519_s28 = smov 8  }
 0xa97   : > { %11377 = dma.vmem_to_hbm [thread:$0]  (%p11583_p5), %s10241_s10, 4096, %s10243_s11, %s10228_s19, %s11518_s27, %s11518_s27, %s11519_s28  }
 0xa98 PF: > { %p11383_p4 = scmp.ge.s32.totalorder %s11513_s18, 2  ;;  %s10257_s29 = sand.u32 1, %s11501_s15  }
 0xa99   : > { %s10258_s30 = scalar_lea.sflag [#allocation5], %s10257_s29 }
 0xa9a   : > { %p11380_p7 = pnand %p11383_p4, %p11587_p6 }
 0xa9c   : > { %p11381_p8 = pneg %p11380_p7 }
 0xa9e   : > { %11496 = dma.done.wait (%p11381_p8), %s10258_s30, 4096  }
 0xa9f   : > { %11498 = vsyncadd (%p11381_p8), %s10258_s30, 4294963200  ;;  %p14_p9 = scmp.ge.s32.totalorder %s11570_s21, 4   ;;  %s17616_s15 = smov %s11505_s16 }
 0xaa0   : > { %s17617_s16 = smov %s11509_s17  ;;  %s17618_s17 = smov %s11581_s24 }
 0xaa1   : > { %s17619_s18 = smov %s11570_s21  ;;  %16 = sbr.rel (!%p14_p9) target bundleno = 3 (0x3), region = 112 }
 0xaa6   :  { %10264 = vsyncpa [#allocation5], 1 }
 0xaa7   :  { %10266 = vsyncpa [#allocation5 + $0x1], 1 }

</bundles_post_ra>
